<compile_context>
chip_gen: v7x
topology: tpu7x:2x2x1
jax: 0.10.0
libtpu: 0.0.40
codegen_flags: <defaults>
</compile_context>

<pallas_src>
import math
import functools

import jax
import jax.numpy as jnp
from jax import lax
from jax.experimental import pallas as pl
from jax.experimental.pallas import tpu as pltpu

# ----------------------------- model dims -----------------------------------
B = 2            # batch
S = 128          # sequence length
H = 128          # hidden size
NUM_HEADS = 2
HEAD_DIM = H // NUM_HEADS
INTER = 4 * H    # FFN intermediate size
LAYERS = 2       # num_hidden_layers (kept small for the example)
VOCAB = 384
TYPE_VOCAB = 2
MAX_POS = S
QA_OUT = 32      # TT pads num_classes=2 -> 32
QA_PAD = 128     # lane-dense QA projection width inside the kernel
LN_EPS = 1e-12

ACT_DTYPE = jnp.bfloat16   # TT tensors are bfloat16; accumulate in f32

# packed per-layer vector rows (stored in one (LAYERS, VEC_ROWS, H) tensor)
VEC_ROWS = 16
VEC_BQ, VEC_BK, VEC_BV, VEC_BO = 0, 1, 2, 3
VEC_LN1G, VEC_LN1B, VEC_B2, VEC_LN2G, VEC_LN2B = 4, 5, 6, 7, 8


# ----------------------------- math helpers -----------------------------------
def _layernorm_f32(x, gamma, beta):
    mu = jnp.mean(x, axis=-1, keepdims=True)
    xc = x - mu
    var = jnp.mean(xc * xc, axis=-1, keepdims=True)
    return xc * lax.rsqrt(var + LN_EPS) * gamma + beta


def _gelu(x):
    # TODO(synk): tanh-approx GELU; HuggingFace default is erf-GELU (~1e-3 delta).
    c = math.sqrt(2.0 / math.pi)
    return 0.5 * x * (1.0 + jnp.tanh(c * (x + 0.044715 * (x * x * x))))


# ----------------------------- fused BERT kernel ------------------------------
def _make_kernel(b_step, gelu_dtype):
    """b_step: batch elements processed per grid step (flattened to M rows)."""
    M = b_step * S

    def kernel(emb_ref, mask_ref, emb_g_ref, emb_b_ref,
               wqkv_ref, wo_ref, w1_ref, b1_ref, w2_ref, vec_ref,
               qa_w_ref, qa_b_ref,
               o_ref, h_scratch):
        l = pl.program_id(1)

        # --- embedding LayerNorm, once per batch block (layer step 0) ---
        @pl.when(l == 0)
        def _():
            xe = emb_ref[...].reshape(M, H).astype(jnp.float32)
            h_scratch[...] = _layernorm_f32(
                xe,
                emb_g_ref[...].astype(jnp.float32),
                emb_b_ref[...].astype(jnp.float32)).astype(h_scratch.dtype)

        h = h_scratch[...]                                   # (M, H) bf16

        vecs = vec_ref[0].astype(jnp.float32)                # (VEC_ROWS, H) f32
        bq = vecs[VEC_BQ:VEC_BQ + 1]
        bk = vecs[VEC_BK:VEC_BK + 1]
        bv = vecs[VEC_BV:VEC_BV + 1]
        bo = vecs[VEC_BO:VEC_BO + 1]
        ln1_g = vecs[VEC_LN1G:VEC_LN1G + 1]
        ln1_b = vecs[VEC_LN1B:VEC_LN1B + 1]
        b2 = vecs[VEC_B2:VEC_B2 + 1]
        ln2_g = vecs[VEC_LN2G:VEC_LN2G + 1]
        ln2_b = vecs[VEC_LN2B:VEC_LN2B + 1]

        # --- fused QKV projection: one MXU push, N = 3H (lane-aligned slices) ---
        qkv = jnp.dot(h, wqkv_ref[0], preferred_element_type=jnp.float32)  # (M, 3H)
        q = (qkv[:, 0:H] + bq).astype(ACT_DTYPE)      # scale folded into Wq/bq
        k = (qkv[:, H:2 * H] + bk).astype(ACT_DTYPE)
        v = (qkv[:, 2 * H:3 * H] + bv).astype(ACT_DTYPE)

        mask_all = mask_ref[...]                             # (b_step, 1, S) bf16
        wo_full = wo_ref[0]                                  # (H, H) bf16

        # --- self attention: per-head context accumulated straight through Wo ---
        rows = []
        for b in range(b_step):                              # static loop
            r = b * S
            mask_b = mask_all[b].astype(jnp.float32)         # (1, S) additive
            acc_b = jnp.zeros((S, H), jnp.float32)
            for hd in range(NUM_HEADS):                      # static loop
                lo = hd * HEAD_DIM
                qh = q[r:r + S, lo:lo + HEAD_DIM]            # (S, HEAD_DIM) bf16
                kh = k[r:r + S, lo:lo + HEAD_DIM]
                vh = v[r:r + S, lo:lo + HEAD_DIM]
                # scores: q @ k^T (query scale already folded into Wq)
                sc = lax.dot_general(qh, kh, (((1,), (1,)), ((), ())),
                                     preferred_element_type=jnp.float32)
                sc = sc + mask_b                             # (S, S) f32
                sc = sc - jnp.max(sc, axis=-1, keepdims=True)
                pm = jnp.exp(sc)
                pm = pm * pl.reciprocal(jnp.sum(pm, axis=-1, keepdims=True),
                                        approx=True)
                ctx_h = jnp.dot(pm.astype(ACT_DTYPE), vh,
                                preferred_element_type=jnp.float32).astype(ACT_DTYPE)
                # accumulate through Wo (K=64 contraction) -- no scratch stores
                acc_b = acc_b + jnp.dot(ctx_h, wo_full[lo:lo + HEAD_DIM, :],
                                        preferred_element_type=jnp.float32)
            rows.append(acc_b)
        attn_out = (rows[0] if b_step == 1
                    else jnp.concatenate(rows, axis=0)) + bo  # (M, H) f32

        y = _layernorm_f32(attn_out + h.astype(jnp.float32), ln1_g, ln1_b)
        y_b = y.astype(ACT_DTYPE)

        # --- feed forward ---
        h1_pre = (jnp.dot(y_b, w1_ref[0], preferred_element_type=jnp.float32)
                  + b1_ref[0].astype(jnp.float32))            # (M, INTER) f32
        h1 = _gelu(h1_pre.astype(gelu_dtype)).astype(ACT_DTYPE)
        h2 = jnp.dot(h1, w2_ref[0], preferred_element_type=jnp.float32) + b2
        z = _layernorm_f32(h2 + y, ln2_g, ln2_b)
        z_b = z.astype(ACT_DTYPE)
        h_scratch[...] = z_b                                  # carry to next layer

        # --- QA head at the last layer (lane-dense 128-wide store) ---
        @pl.when(l == pl.num_programs(1) - 1)
        def _():
            logits = (jnp.dot(z_b, qa_w_ref[...],
                              preferred_element_type=jnp.float32)
                      + qa_b_ref[...].astype(jnp.float32))
            o_ref[...] = logits.reshape(b_step, S, QA_PAD).astype(o_ref.dtype)

    return kernel


def _pick_config():
    """Chip-aware layout: multi-TC chips keep a parallel batch axis; single-TC
    chips collapse the batch into one grid step (M=B*S rows per matmul).
    GELU runs in bf16 only where the VPU/EUP have a bf16 path (v6e/v7x)."""
    try:
        dk = jax.devices()[0].device_kind.lower()
    except Exception:
        dk = ""
    multi_tc = ("v7" in dk) or ("7x" in dk) or ("v4" in dk)
    gelu_bf16 = ("v6" in dk) or ("v7" in dk) or ("7x" in dk)
    b_grid = B if multi_tc else 1
    gelu_dtype = ACT_DTYPE if gelu_bf16 else jnp.float32
    return b_grid, gelu_dtype


def bert_stack_fused(emb, ext_mask, params):
    """emb: (B,S,H) bf16 (pre-LN embedding sum); ext_mask: (B,1,S) bf16 additive."""
    b_grid, gelu_dtype = _pick_config()
    b_step = B // b_grid
    M = b_step * S
    enc = params["enc"]
    kernel = _make_kernel(b_step, gelu_dtype)

    return pl.pallas_call(
        kernel,
        out_shape=jax.ShapeDtypeStruct((B, S, QA_PAD), ACT_DTYPE),
        grid_spec=pltpu.PrefetchScalarGridSpec(
            num_scalar_prefetch=0,
            grid=(b_grid, LAYERS),
            in_specs=[
                pl.BlockSpec((b_step, S, H), lambda b, l: (b, 0, 0)),     # emb sum
                pl.BlockSpec((b_step, 1, S), lambda b, l: (b, 0, 0)),     # attn mask
                pl.BlockSpec((1, H), lambda b, l: (0, 0)),                # emb LN g
                pl.BlockSpec((1, H), lambda b, l: (0, 0)),                # emb LN b
                pl.BlockSpec((1, H, 3 * H), lambda b, l: (l, 0, 0)),      # Wqkv
                pl.BlockSpec((1, H, H), lambda b, l: (l, 0, 0)),          # Wo
                pl.BlockSpec((1, H, INTER), lambda b, l: (l, 0, 0)),      # W1
                pl.BlockSpec((1, 1, INTER), lambda b, l: (l, 0, 0)),      # b1
                pl.BlockSpec((1, INTER, H), lambda b, l: (l, 0, 0)),      # W2
                pl.BlockSpec((1, VEC_ROWS, H), lambda b, l: (l, 0, 0)),   # packed vecs
                pl.BlockSpec((H, QA_PAD), lambda b, l: (0, 0)),           # qa W
                pl.BlockSpec((1, QA_PAD), lambda b, l: (0, 0)),           # qa b
            ],
            out_specs=pl.BlockSpec((b_step, S, QA_PAD), lambda b, l: (b, 0, 0)),
            scratch_shapes=[
                pltpu.VMEM((M, H), ACT_DTYPE),   # hidden-state carry
            ],
        ),
        compiler_params=pltpu.CompilerParams(
            dimension_semantics=("parallel", "arbitrary")),
    )(emb, ext_mask,
      params["emb_ln_g"], params["emb_ln_b"],
      enc["wqkv"], enc["wo"], enc["w1"], enc["b1"], enc["w2"], enc["vecs"],
      params["qa_w"], params["qa_b"])


# ----------------------------- parameter init ---------------------------------
def init_params(key):
    attn_scale = 1.0 / math.sqrt(HEAD_DIM)
    keys = jax.random.split(key, 8 + LAYERS)

    def nrm32(k, shape, scale=0.02):
        return scale * jax.random.normal(k, shape, jnp.float32)

    p = {
        "word_emb": nrm32(keys[0], (VOCAB, H)).astype(ACT_DTYPE),
        "pos_emb": nrm32(keys[1], (MAX_POS, H)).astype(ACT_DTYPE),
        "type_emb": nrm32(keys[2], (TYPE_VOCAB, H)).astype(ACT_DTYPE),
        "emb_ln_g": jnp.ones((1, H), ACT_DTYPE),
        "emb_ln_b": jnp.zeros((1, H), ACT_DTYPE),
    }

    # qa_outputs.weight is (num_classes=2, hidden); TT pads to 32 outputs.
    # We pad further to 128 for a lane-dense store and slice [:32] in JAX.
    qa_w_core = nrm32(keys[3], (H, 2))
    qa_w = jnp.zeros((H, QA_PAD), jnp.float32).at[:, :2].set(qa_w_core)
    qa_b = jnp.zeros((1, QA_PAD), jnp.float32).at[0, :2].set(
        jnp.array([0.01, -0.01], jnp.float32))
    p["qa_w"] = qa_w.astype(ACT_DTYPE)
    p["qa_b"] = qa_b.astype(ACT_DTYPE)

    wqkv_l, wo_l, w1_l, b1_l, w2_l, vecs_l = [], [], [], [], [], []
    for li in range(LAYERS):
        lk = jax.random.split(keys[8 + li], 8)
        wq = nrm32(lk[0], (H, H))
        wk = nrm32(lk[1], (H, H))
        wv = nrm32(lk[2], (H, H))
        wo = nrm32(lk[3], (H, H))
        w1 = nrm32(lk[4], (H, INTER))
        w2 = nrm32(lk[5], (INTER, H))
        bq = jnp.zeros((H,), jnp.float32)
        bk = jnp.zeros((H,), jnp.float32)
        bv = jnp.zeros((H,), jnp.float32)
        bo = jnp.zeros((H,), jnp.float32)
        b1 = jnp.zeros((INTER,), jnp.float32)
        b2 = jnp.zeros((H,), jnp.float32)
        ln1_g = jnp.ones((H,), jnp.float32)
        ln1_b = jnp.zeros((H,), jnp.float32)
        ln2_g = jnp.ones((H,), jnp.float32)
        ln2_b = jnp.zeros((H,), jnp.float32)

        # fuse QKV, folding 1/sqrt(head_dim) into the query projection
        wqkv = jnp.concatenate([wq * attn_scale, wk, wv], axis=1)   # (H, 3H)

        vec = jnp.zeros((VEC_ROWS, H), jnp.float32)
        vec = vec.at[VEC_BQ].set(bq * attn_scale)
        vec = vec.at[VEC_BK].set(bk).at[VEC_BV].set(bv).at[VEC_BO].set(bo)
        vec = vec.at[VEC_LN1G].set(ln1_g).at[VEC_LN1B].set(ln1_b)
        vec = vec.at[VEC_B2].set(b2)
        vec = vec.at[VEC_LN2G].set(ln2_g).at[VEC_LN2B].set(ln2_b)

        wqkv_l.append(wqkv)
        wo_l.append(wo)
        w1_l.append(w1)
        b1_l.append(b1.reshape(1, INTER))
        w2_l.append(w2)
        vecs_l.append(vec)

    p["enc"] = {
        "wqkv": jnp.stack(wqkv_l).astype(ACT_DTYPE),   # (L, H, 3H)
        "wo": jnp.stack(wo_l).astype(ACT_DTYPE),       # (L, H, H)
        "w1": jnp.stack(w1_l).astype(ACT_DTYPE),       # (L, H, INTER)
        "b1": jnp.stack(b1_l).astype(ACT_DTYPE),       # (L, 1, INTER)
        "w2": jnp.stack(w2_l).astype(ACT_DTYPE),       # (L, INTER, H)
        "vecs": jnp.stack(vecs_l).astype(ACT_DTYPE),   # (L, VEC_ROWS, H)
    }
    return p


# ----------------------------- forward pass ------------------------------------
@functools.partial(jax.jit, static_argnames=())
def bert_qa_forward(params, input_ids, attention_mask, token_type_ids):
    # --- embeddings (gathers are glue; LayerNorm happens inside the fused kernel) ---
    positions = jnp.arange(S, dtype=jnp.int32)
    emb = (params["word_emb"][input_ids].astype(jnp.float32)
           + params["pos_emb"][positions][None, :, :].astype(jnp.float32)
           + params["type_emb"][token_type_ids].astype(jnp.float32))
    emb = emb.astype(ACT_DTYPE)                              # (B, S, H)

    # extended attention mask: 0 where attended, -100000 where masked
    # (matches torch.clamp(extended_attention_mask, -100000))
    ext_mask = jnp.where(attention_mask[:, None, :] > 0, 0.0, -100000.0)
    ext_mask = ext_mask.astype(ACT_DTYPE)                    # (B, 1, S)

    # --- fused embedding-LN + encoder stack + QA head ---
    logits_pad = bert_stack_fused(emb, ext_mask, params)     # (B, S, 128)

    # TT returns a tensor of shape (batch, 1, seq, 32)
    return logits_pad[:, :, :QA_OUT].reshape(B, 1, S, QA_OUT)


# ----------------------------- main ---------------------------------------------
if __name__ == "__main__":
    key = jax.random.PRNGKey(0)
    pkey, idkey = jax.random.split(key)

    params = init_params(pkey)

    input_ids = jax.random.randint(idkey, (B, S), 0, VOCAB, dtype=jnp.int32)
    attention_mask = jnp.ones((B, S), jnp.int32).at[1, S - 16:].set(0)
    token_type_ids = jnp.zeros((B, S), jnp.int32).at[:, S // 2:].set(1)

    out = bert_qa_forward(params, input_ids, attention_mask, token_type_ids)
    out = jax.block_until_ready(out)

    assert out.shape == (B, 1, S, QA_OUT), out.shape
    assert bool(jnp.all(jnp.isfinite(out.astype(jnp.float32))))
    print("KERNEL_OK")
</pallas_src>

<mosaic_0001>
module attributes {stable_mosaic.version = 11 : i64} {
  func.func @kernel(%arg0: i32, %arg1: i32, %arg2: memref<2x128x128xbf16, #tpu.memory_space<vmem>>, %arg3: memref<2x1x128xbf16, #tpu.memory_space<vmem>>, %arg4: memref<1x128xbf16, #tpu.memory_space<vmem>>, %arg5: memref<1x128xbf16, #tpu.memory_space<vmem>>, %arg6: memref<1x128x384xbf16, #tpu.memory_space<vmem>>, %arg7: memref<1x128x128xbf16, #tpu.memory_space<vmem>>, %arg8: memref<1x128x512xbf16, #tpu.memory_space<vmem>>, %arg9: memref<1x1x512xbf16, #tpu.memory_space<vmem>>, %arg10: memref<1x512x128xbf16, #tpu.memory_space<vmem>>, %arg11: memref<1x16x128xbf16, #tpu.memory_space<vmem>>, %arg12: memref<128x128xbf16, #tpu.memory_space<vmem>>, %arg13: memref<1x128xbf16, #tpu.memory_space<vmem>>, %arg14: memref<2x128x128xbf16, #tpu.memory_space<vmem>>, %arg15: memref<256x128xbf16, #tpu.memory_space<vmem>>) attributes {dimension_semantics = [#tpu.dimension_semantics<parallel>, #tpu.dimension_semantics<arbitrary>], iteration_bounds = array<i64: 1, 2>, scalar_prefetch = 0 : i64, scratch_operands = 1 : i64, tpu.core_type = #tpu.core_type<tc>, window_params = [{transform_indices = @transform_0, window_bounds = array<i64: 2, 128, 128>}, {transform_indices = @transform_1, window_bounds = array<i64: 2, 1, 128>}, {pipeline_mode = #tpu.pipeline_mode<synchronous>, transform_indices = @transform_2, window_bounds = array<i64: 1, 128>}, {pipeline_mode = #tpu.pipeline_mode<synchronous>, transform_indices = @transform_3, window_bounds = array<i64: 1, 128>}, {transform_indices = @transform_4, window_bounds = array<i64: 1, 128, 384>}, {transform_indices = @transform_5, window_bounds = array<i64: 1, 128, 128>}, {transform_indices = @transform_6, window_bounds = array<i64: 1, 128, 512>}, {transform_indices = @transform_7, window_bounds = array<i64: 1, 1, 512>}, {transform_indices = @transform_8, window_bounds = array<i64: 1, 512, 128>}, {transform_indices = @transform_9, window_bounds = array<i64: 1, 16, 128>}, {pipeline_mode = #tpu.pipeline_mode<synchronous>, transform_indices = @transform_10, window_bounds = array<i64: 128, 128>}, {pipeline_mode = #tpu.pipeline_mode<synchronous>, transform_indices = @transform_11, window_bounds = array<i64: 1, 128>}, {transform_indices = @transform_12, window_bounds = array<i64: 2, 128, 128>}]} {
    %c0_i32 = arith.constant 0 : i32
    %0 = arith.cmpi eq, %arg1, %c0_i32 : i32
    %1 = arith.extui %0 : i1 to i32
    %c0_i32_0 = arith.constant 0 : i32
    %2 = arith.cmpi ne, %1, %c0_i32_0 : i32
    scf.if %2 {
      %c0_64 = arith.constant 0 : index
      %c0_65 = arith.constant 0 : index
      %c0_66 = arith.constant 0 : index
      %209 = vector.load %arg2[%c0_64, %c0_65, %c0_66] : memref<2x128x128xbf16, #tpu.memory_space<vmem>>, vector<2x128x128xbf16>
      %210 = vector.shape_cast %209 : vector<2x128x128xbf16> to vector<256x128xbf16>
      %211 = arith.extf %210 : vector<256x128xbf16> to vector<256x128xf32>
      %c0_67 = arith.constant 0 : index
      %c0_68 = arith.constant 0 : index
      %212 = vector.load %arg4[%c0_67, %c0_68] : memref<1x128xbf16, #tpu.memory_space<vmem>>, vector<1x128xbf16>
      %213 = arith.extf %212 : vector<1x128xbf16> to vector<1x128xf32>
      %c0_69 = arith.constant 0 : index
      %c0_70 = arith.constant 0 : index
      %214 = vector.load %arg5[%c0_69, %c0_70] : memref<1x128xbf16, #tpu.memory_space<vmem>>, vector<1x128xbf16>
      %215 = arith.extf %214 : vector<1x128xbf16> to vector<1x128xf32>
      %cst_71 = arith.constant dense<0.000000e+00> : vector<256xf32>
      %216 = vector.multi_reduction <add>, %211, %cst_71 [1] : vector<256x128xf32> to vector<256xf32>
      %217 = vector.shape_cast %216 : vector<256xf32> to vector<256x1xf32>
      %cst_72 = arith.constant 1.280000e+02 : f32
      %218 = vector.broadcast %cst_72 : f32 to vector<256x1xf32>
      %219 = arith.divf %217, %218 : vector<256x1xf32>
      %220 = vector.broadcast %219 : vector<256x1xf32> to vector<256x128xf32>
      %221 = arith.subf %211, %220 : vector<256x128xf32>
      %222 = arith.mulf %221, %221 : vector<256x128xf32>
      %cst_73 = arith.constant dense<0.000000e+00> : vector<256xf32>
      %223 = vector.multi_reduction <add>, %222, %cst_73 [1] : vector<256x128xf32> to vector<256xf32>
      %224 = vector.shape_cast %223 : vector<256xf32> to vector<256x1xf32>
      %cst_74 = arith.constant 1.280000e+02 : f32
      %225 = vector.broadcast %cst_74 : f32 to vector<256x1xf32>
      %226 = arith.divf %224, %225 : vector<256x1xf32>
      %cst_75 = arith.constant 9.99999996E-13 : f32
      %227 = vector.broadcast %cst_75 : f32 to vector<256x1xf32>
      %228 = arith.addf %226, %227 : vector<256x1xf32>
      %229 = math.rsqrt %228 : vector<256x1xf32>
      %230 = vector.broadcast %229 : vector<256x1xf32> to vector<256x128xf32>
      %231 = arith.mulf %221, %230 : vector<256x128xf32>
      %232 = vector.broadcast %213 : vector<1x128xf32> to vector<256x128xf32>
      %233 = arith.mulf %231, %232 : vector<256x128xf32>
      %234 = vector.broadcast %215 : vector<1x128xf32> to vector<256x128xf32>
      %235 = arith.addf %233, %234 : vector<256x128xf32>
      %236 = arith.truncf %235 : vector<256x128xf32> to vector<256x128xbf16>
      %c0_76 = arith.constant 0 : index
      %c0_77 = arith.constant 0 : index
      %237 = vector.load %arg15[%c0_76, %c0_77] : memref<256x128xbf16, #tpu.memory_space<vmem>>, vector<256x128xbf16>
      tpu.vector_store %arg15[%c0_76, %c0_77], %236 {strides = array<i32>} : memref<256x128xbf16, #tpu.memory_space<vmem>>, vector<256x128xbf16>,
    } else {
    }
    %c0 = arith.constant 0 : index
    %c0_1 = arith.constant 0 : index
    %3 = vector.load %arg15[%c0, %c0_1] : memref<256x128xbf16, #tpu.memory_space<vmem>>, vector<256x128xbf16>
    %c0_2 = arith.constant 0 : index
    %c0_3 = arith.constant 0 : index
    %c0_4 = arith.constant 0 : index
    %4 = vector.load %arg11[%c0_2, %c0_3, %c0_4] : memref<1x16x128xbf16, #tpu.memory_space<vmem>>, vector<1x16x128xbf16>
    %5 = vector.shape_cast %4 : vector<1x16x128xbf16> to vector<16x128xbf16>
    %6 = arith.extf %5 : vector<16x128xbf16> to vector<16x128xf32>
    %7 = vector.extract_strided_slice %6 {offsets = [0, 0], sizes = [1, 128], strides = [1, 1]} : vector<16x128xf32> to vector<1x128xf32>
    %8 = vector.extract_strided_slice %6 {offsets = [1, 0], sizes = [1, 128], strides = [1, 1]} : vector<16x128xf32> to vector<1x128xf32>
    %9 = vector.extract_strided_slice %6 {offsets = [2, 0], sizes = [1, 128], strides = [1, 1]} : vector<16x128xf32> to vector<1x128xf32>
    %10 = vector.extract_strided_slice %6 {offsets = [3, 0], sizes = [1, 128], strides = [1, 1]} : vector<16x128xf32> to vector<1x128xf32>
    %11 = vector.extract_strided_slice %6 {offsets = [4, 0], sizes = [1, 128], strides = [1, 1]} : vector<16x128xf32> to vector<1x128xf32>
    %12 = vector.extract_strided_slice %6 {offsets = [5, 0], sizes = [1, 128], strides = [1, 1]} : vector<16x128xf32> to vector<1x128xf32>
    %13 = vector.extract_strided_slice %6 {offsets = [6, 0], sizes = [1, 128], strides = [1, 1]} : vector<16x128xf32> to vector<1x128xf32>
    %14 = vector.extract_strided_slice %6 {offsets = [7, 0], sizes = [1, 128], strides = [1, 1]} : vector<16x128xf32> to vector<1x128xf32>
    %15 = vector.extract_strided_slice %6 {offsets = [8, 0], sizes = [1, 128], strides = [1, 1]} : vector<16x128xf32> to vector<1x128xf32>
    %c0_5 = arith.constant 0 : index
    %c0_6 = arith.constant 0 : index
    %c0_7 = arith.constant 0 : index
    %16 = vector.load %arg6[%c0_5, %c0_6, %c0_7] : memref<1x128x384xbf16, #tpu.memory_space<vmem>>, vector<1x128x384xbf16>
    %17 = vector.shape_cast %16 : vector<1x128x384xbf16> to vector<128x384xbf16>
    %cst = arith.constant dense<0.000000e+00> : vector<256x384xf32>
    %18 = tpu.matmul %3, %17, %cst {dimension_numbers = #tpu.dot_dimension_numbers<[1], [0], [0], [1], [0, 0, 1, 1], [], []>} : vector<256x128xbf16>, vector<128x384xbf16>, vector<256x384xf32> -> vector<256x384xf32>
    %19 = vector.extract_strided_slice %18 {offsets = [0, 0], sizes = [256, 128], strides = [1, 1]} : vector<256x384xf32> to vector<256x128xf32>
    %20 = vector.broadcast %7 : vector<1x128xf32> to vector<256x128xf32>
    %21 = arith.addf %19, %20 : vector<256x128xf32>
    %22 = arith.truncf %21 : vector<256x128xf32> to vector<256x128xbf16>
    %23 = vector.extract_strided_slice %18 {offsets = [0, 128], sizes = [256, 128], strides = [1, 1]} : vector<256x384xf32> to vector<256x128xf32>
    %24 = vector.broadcast %8 : vector<1x128xf32> to vector<256x128xf32>
    %25 = arith.addf %23, %24 : vector<256x128xf32>
    %26 = arith.truncf %25 : vector<256x128xf32> to vector<256x128xbf16>
    %27 = vector.extract_strided_slice %18 {offsets = [0, 256], sizes = [256, 128], strides = [1, 1]} : vector<256x384xf32> to vector<256x128xf32>
    %28 = vector.broadcast %9 : vector<1x128xf32> to vector<256x128xf32>
    %29 = arith.addf %27, %28 : vector<256x128xf32>
    %30 = arith.truncf %29 : vector<256x128xf32> to vector<256x128xbf16>
    %c0_8 = arith.constant 0 : index
    %c0_9 = arith.constant 0 : index
    %c0_10 = arith.constant 0 : index
    %31 = vector.load %arg3[%c0_8, %c0_9, %c0_10] : memref<2x1x128xbf16, #tpu.memory_space<vmem>>, vector<2x1x128xbf16>
    %c0_11 = arith.constant 0 : index
    %c0_12 = arith.constant 0 : index
    %c0_13 = arith.constant 0 : index
    %32 = vector.load %arg7[%c0_11, %c0_12, %c0_13] : memref<1x128x128xbf16, #tpu.memory_space<vmem>>, vector<1x128x128xbf16>
    %33 = vector.shape_cast %32 : vector<1x128x128xbf16> to vector<128x128xbf16>
    %34 = vector.extract_strided_slice %31 {offsets = [0, 0, 0], sizes = [1, 1, 128], strides = [1, 1, 1]} : vector<2x1x128xbf16> to vector<1x1x128xbf16>
    %35 = vector.shape_cast %34 : vector<1x1x128xbf16> to vector<1x128xbf16>
    %36 = arith.extf %35 : vector<1x128xbf16> to vector<1x128xf32>
    %cst_14 = arith.constant 0.000000e+00 : f32
    %37 = vector.broadcast %cst_14 : f32 to vector<128x128xf32>
    %38 = vector.extract_strided_slice %22 {offsets = [0, 0], sizes = [128, 64], strides = [1, 1]} : vector<256x128xbf16> to vector<128x64xbf16>
    %39 = vector.extract_strided_slice %26 {offsets = [0, 0], sizes = [128, 64], strides = [1, 1]} : vector<256x128xbf16> to vector<128x64xbf16>
    %40 = vector.extract_strided_slice %30 {offsets = [0, 0], sizes = [128, 64], strides = [1, 1]} : vector<256x128xbf16> to vector<128x64xbf16>
    %cst_15 = arith.constant dense<0.000000e+00> : vector<128x128xf32>
    %41 = tpu.matmul %38, %39, %cst_15 {dimension_numbers = #tpu.dot_dimension_numbers<[1], [1], [0], [0], [0, 0, 1, 0], [], []>} : vector<128x64xbf16>, vector<128x64xbf16>, vector<128x128xf32> -> vector<128x128xf32>
    %42 = vector.broadcast %36 : vector<1x128xf32> to vector<128x128xf32>
    %43 = arith.addf %41, %42 : vector<128x128xf32>
    %cst_16 = arith.constant dense<0xFF800000> : vector<128xf32>
    %44 = vector.multi_reduction <maximumf>, %43, %cst_16 [1] : vector<128x128xf32> to vector<128xf32>
    %45 = vector.shape_cast %44 : vector<128xf32> to vector<128x1xf32>
    %46 = vector.broadcast %45 : vector<128x1xf32> to vector<128x128xf32>
    %47 = arith.subf %43, %46 : vector<128x128xf32>
    %48 = math.exp %47 : vector<128x128xf32>
    %cst_17 = arith.constant dense<0.000000e+00> : vector<128xf32>
    %49 = vector.multi_reduction <add>, %48, %cst_17 [1] : vector<128x128xf32> to vector<128xf32>
    %50 = vector.shape_cast %49 : vector<128xf32> to vector<128x1xf32>
    %51 = tpu.reciprocal %50 {approx = true} : vector<128x1xf32> -> vector<128x1xf32>
    %52 = vector.broadcast %51 : vector<128x1xf32> to vector<128x128xf32>
    %53 = arith.mulf %48, %52 : vector<128x128xf32>
    %54 = arith.truncf %53 : vector<128x128xf32> to vector<128x128xbf16>
    %cst_18 = arith.constant dense<0.000000e+00> : vector<128x64xf32>
    %55 = tpu.matmul %54, %40, %cst_18 {dimension_numbers = #tpu.dot_dimension_numbers<[1], [0], [0], [1], [0, 0, 1, 1], [], []>} : vector<128x128xbf16>, vector<128x64xbf16>, vector<128x64xf32> -> vector<128x64xf32>
    %56 = arith.truncf %55 : vector<128x64xf32> to vector<128x64xbf16>
    %57 = vector.extract_strided_slice %33 {offsets = [0, 0], sizes = [64, 128], strides = [1, 1]} : vector<128x128xbf16> to vector<64x128xbf16>
    %cst_19 = arith.constant dense<0.000000e+00> : vector<128x128xf32>
    %58 = tpu.matmul %56, %57, %cst_19 {dimension_numbers = #tpu.dot_dimension_numbers<[1], [0], [0], [1], [0, 0, 1, 1], [], []>} : vector<128x64xbf16>, vector<64x128xbf16>, vector<128x128xf32> -> vector<128x128xf32>
    %59 = arith.addf %37, %58 : vector<128x128xf32>
    %60 = vector.extract_strided_slice %22 {offsets = [0, 64], sizes = [128, 64], strides = [1, 1]} : vector<256x128xbf16> to vector<128x64xbf16>
    %61 = vector.extract_strided_slice %26 {offsets = [0, 64], sizes = [128, 64], strides = [1, 1]} : vector<256x128xbf16> to vector<128x64xbf16>
    %62 = vector.extract_strided_slice %30 {offsets = [0, 64], sizes = [128, 64], strides = [1, 1]} : vector<256x128xbf16> to vector<128x64xbf16>
    %cst_20 = arith.constant dense<0.000000e+00> : vector<128x128xf32>
    %63 = tpu.matmul %60, %61, %cst_20 {dimension_numbers = #tpu.dot_dimension_numbers<[1], [1], [0], [0], [0, 0, 1, 0], [], []>} : vector<128x64xbf16>, vector<128x64xbf16>, vector<128x128xf32> -> vector<128x128xf32>
    %64 = vector.broadcast %36 : vector<1x128xf32> to vector<128x128xf32>
    %65 = arith.addf %63, %64 : vector<128x128xf32>
    %cst_21 = arith.constant dense<0xFF800000> : vector<128xf32>
    %66 = vector.multi_reduction <maximumf>, %65, %cst_21 [1] : vector<128x128xf32> to vector<128xf32>
    %67 = vector.shape_cast %66 : vector<128xf32> to vector<128x1xf32>
    %68 = vector.broadcast %67 : vector<128x1xf32> to vector<128x128xf32>
    %69 = arith.subf %65, %68 : vector<128x128xf32>
    %70 = math.exp %69 : vector<128x128xf32>
    %cst_22 = arith.constant dense<0.000000e+00> : vector<128xf32>
    %71 = vector.multi_reduction <add>, %70, %cst_22 [1] : vector<128x128xf32> to vector<128xf32>
    %72 = vector.shape_cast %71 : vector<128xf32> to vector<128x1xf32>
    %73 = tpu.reciprocal %72 {approx = true} : vector<128x1xf32> -> vector<128x1xf32>
    %74 = vector.broadcast %73 : vector<128x1xf32> to vector<128x128xf32>
    %75 = arith.mulf %70, %74 : vector<128x128xf32>
    %76 = arith.truncf %75 : vector<128x128xf32> to vector<128x128xbf16>
    %cst_23 = arith.constant dense<0.000000e+00> : vector<128x64xf32>
    %77 = tpu.matmul %76, %62, %cst_23 {dimension_numbers = #tpu.dot_dimension_numbers<[1], [0], [0], [1], [0, 0, 1, 1], [], []>} : vector<128x128xbf16>, vector<128x64xbf16>, vector<128x64xf32> -> vector<128x64xf32>
    %78 = arith.truncf %77 : vector<128x64xf32> to vector<128x64xbf16>
    %79 = vector.extract_strided_slice %33 {offsets = [64, 0], sizes = [64, 128], strides = [1, 1]} : vector<128x128xbf16> to vector<64x128xbf16>
    %cst_24 = arith.constant dense<0.000000e+00> : vector<128x128xf32>
    %80 = tpu.matmul %78, %79, %cst_24 {dimension_numbers = #tpu.dot_dimension_numbers<[1], [0], [0], [1], [0, 0, 1, 1], [], []>} : vector<128x64xbf16>, vector<64x128xbf16>, vector<128x128xf32> -> vector<128x128xf32>
    %81 = arith.addf %59, %80 : vector<128x128xf32>
    %82 = vector.extract_strided_slice %31 {offsets = [1, 0, 0], sizes = [1, 1, 128], strides = [1, 1, 1]} : vector<2x1x128xbf16> to vector<1x1x128xbf16>
    %83 = vector.shape_cast %82 : vector<1x1x128xbf16> to vector<1x128xbf16>
    %84 = arith.extf %83 : vector<1x128xbf16> to vector<1x128xf32>
    %cst_25 = arith.constant 0.000000e+00 : f32
    %85 = vector.broadcast %cst_25 : f32 to vector<128x128xf32>
    %86 = vector.extract_strided_slice %22 {offsets = [128, 0], sizes = [128, 64], strides = [1, 1]} : vector<256x128xbf16> to vector<128x64xbf16>
    %87 = vector.extract_strided_slice %26 {offsets = [128, 0], sizes = [128, 64], strides = [1, 1]} : vector<256x128xbf16> to vector<128x64xbf16>
    %88 = vector.extract_strided_slice %30 {offsets = [128, 0], sizes = [128, 64], strides = [1, 1]} : vector<256x128xbf16> to vector<128x64xbf16>
    %cst_26 = arith.constant dense<0.000000e+00> : vector<128x128xf32>
    %89 = tpu.matmul %86, %87, %cst_26 {dimension_numbers = #tpu.dot_dimension_numbers<[1], [1], [0], [0], [0, 0, 1, 0], [], []>} : vector<128x64xbf16>, vector<128x64xbf16>, vector<128x128xf32> -> vector<128x128xf32>
    %90 = vector.broadcast %84 : vector<1x128xf32> to vector<128x128xf32>
    %91 = arith.addf %89, %90 : vector<128x128xf32>
    %cst_27 = arith.constant dense<0xFF800000> : vector<128xf32>
    %92 = vector.multi_reduction <maximumf>, %91, %cst_27 [1] : vector<128x128xf32> to vector<128xf32>
    %93 = vector.shape_cast %92 : vector<128xf32> to vector<128x1xf32>
    %94 = vector.broadcast %93 : vector<128x1xf32> to vector<128x128xf32>
    %95 = arith.subf %91, %94 : vector<128x128xf32>
    %96 = math.exp %95 : vector<128x128xf32>
    %cst_28 = arith.constant dense<0.000000e+00> : vector<128xf32>
    %97 = vector.multi_reduction <add>, %96, %cst_28 [1] : vector<128x128xf32> to vector<128xf32>
    %98 = vector.shape_cast %97 : vector<128xf32> to vector<128x1xf32>
    %99 = tpu.reciprocal %98 {approx = true} : vector<128x1xf32> -> vector<128x1xf32>
    %100 = vector.broadcast %99 : vector<128x1xf32> to vector<128x128xf32>
    %101 = arith.mulf %96, %100 : vector<128x128xf32>
    %102 = arith.truncf %101 : vector<128x128xf32> to vector<128x128xbf16>
    %cst_29 = arith.constant dense<0.000000e+00> : vector<128x64xf32>
    %103 = tpu.matmul %102, %88, %cst_29 {dimension_numbers = #tpu.dot_dimension_numbers<[1], [0], [0], [1], [0, 0, 1, 1], [], []>} : vector<128x128xbf16>, vector<128x64xbf16>, vector<128x64xf32> -> vector<128x64xf32>
    %104 = arith.truncf %103 : vector<128x64xf32> to vector<128x64xbf16>
    %105 = vector.extract_strided_slice %33 {offsets = [0, 0], sizes = [64, 128], strides = [1, 1]} : vector<128x128xbf16> to vector<64x128xbf16>
    %cst_30 = arith.constant dense<0.000000e+00> : vector<128x128xf32>
    %106 = tpu.matmul %104, %105, %cst_30 {dimension_numbers = #tpu.dot_dimension_numbers<[1], [0], [0], [1], [0, 0, 1, 1], [], []>} : vector<128x64xbf16>, vector<64x128xbf16>, vector<128x128xf32> -> vector<128x128xf32>
    %107 = arith.addf %85, %106 : vector<128x128xf32>
    %108 = vector.extract_strided_slice %22 {offsets = [128, 64], sizes = [128, 64], strides = [1, 1]} : vector<256x128xbf16> to vector<128x64xbf16>
    %109 = vector.extract_strided_slice %26 {offsets = [128, 64], sizes = [128, 64], strides = [1, 1]} : vector<256x128xbf16> to vector<128x64xbf16>
    %110 = vector.extract_strided_slice %30 {offsets = [128, 64], sizes = [128, 64], strides = [1, 1]} : vector<256x128xbf16> to vector<128x64xbf16>
    %cst_31 = arith.constant dense<0.000000e+00> : vector<128x128xf32>
    %111 = tpu.matmul %108, %109, %cst_31 {dimension_numbers = #tpu.dot_dimension_numbers<[1], [1], [0], [0], [0, 0, 1, 0], [], []>} : vector<128x64xbf16>, vector<128x64xbf16>, vector<128x128xf32> -> vector<128x128xf32>
    %112 = vector.broadcast %84 : vector<1x128xf32> to vector<128x128xf32>
    %113 = arith.addf %111, %112 : vector<128x128xf32>
    %cst_32 = arith.constant dense<0xFF800000> : vector<128xf32>
    %114 = vector.multi_reduction <maximumf>, %113, %cst_32 [1] : vector<128x128xf32> to vector<128xf32>
    %115 = vector.shape_cast %114 : vector<128xf32> to vector<128x1xf32>
    %116 = vector.broadcast %115 : vector<128x1xf32> to vector<128x128xf32>
    %117 = arith.subf %113, %116 : vector<128x128xf32>
    %118 = math.exp %117 : vector<128x128xf32>
    %cst_33 = arith.constant dense<0.000000e+00> : vector<128xf32>
    %119 = vector.multi_reduction <add>, %118, %cst_33 [1] : vector<128x128xf32> to vector<128xf32>
    %120 = vector.shape_cast %119 : vector<128xf32> to vector<128x1xf32>
    %121 = tpu.reciprocal %120 {approx = true} : vector<128x1xf32> -> vector<128x1xf32>
    %122 = vector.broadcast %121 : vector<128x1xf32> to vector<128x128xf32>
    %123 = arith.mulf %118, %122 : vector<128x128xf32>
    %124 = arith.truncf %123 : vector<128x128xf32> to vector<128x128xbf16>
    %cst_34 = arith.constant dense<0.000000e+00> : vector<128x64xf32>
    %125 = tpu.matmul %124, %110, %cst_34 {dimension_numbers = #tpu.dot_dimension_numbers<[1], [0], [0], [1], [0, 0, 1, 1], [], []>} : vector<128x128xbf16>, vector<128x64xbf16>, vector<128x64xf32> -> vector<128x64xf32>
    %126 = arith.truncf %125 : vector<128x64xf32> to vector<128x64xbf16>
    %127 = vector.extract_strided_slice %33 {offsets = [64, 0], sizes = [64, 128], strides = [1, 1]} : vector<128x128xbf16> to vector<64x128xbf16>
    %cst_35 = arith.constant dense<0.000000e+00> : vector<128x128xf32>
    %128 = tpu.matmul %126, %127, %cst_35 {dimension_numbers = #tpu.dot_dimension_numbers<[1], [0], [0], [1], [0, 0, 1, 1], [], []>} : vector<128x64xbf16>, vector<64x128xbf16>, vector<128x128xf32> -> vector<128x128xf32>
    %129 = arith.addf %107, %128 : vector<128x128xf32>
    %130 = tpu.concatenate %81, %129 in 0 : vector<128x128xf32>, vector<128x128xf32> -> vector<256x128xf32>
    %131 = vector.broadcast %10 : vector<1x128xf32> to vector<256x128xf32>
    %132 = arith.addf %130, %131 : vector<256x128xf32>
    %133 = arith.extf %3 : vector<256x128xbf16> to vector<256x128xf32>
    %134 = arith.addf %132, %133 : vector<256x128xf32>
    %cst_36 = arith.constant dense<0.000000e+00> : vector<256xf32>
    %135 = vector.multi_reduction <add>, %134, %cst_36 [1] : vector<256x128xf32> to vector<256xf32>
    %136 = vector.shape_cast %135 : vector<256xf32> to vector<256x1xf32>
    %cst_37 = arith.constant 1.280000e+02 : f32
    %137 = vector.broadcast %cst_37 : f32 to vector<256x1xf32>
    %138 = arith.divf %136, %137 : vector<256x1xf32>
    %139 = vector.broadcast %138 : vector<256x1xf32> to vector<256x128xf32>
    %140 = arith.subf %134, %139 : vector<256x128xf32>
    %141 = arith.mulf %140, %140 : vector<256x128xf32>
    %cst_38 = arith.constant dense<0.000000e+00> : vector<256xf32>
    %142 = vector.multi_reduction <add>, %141, %cst_38 [1] : vector<256x128xf32> to vector<256xf32>
    %143 = vector.shape_cast %142 : vector<256xf32> to vector<256x1xf32>
    %cst_39 = arith.constant 1.280000e+02 : f32
    %144 = vector.broadcast %cst_39 : f32 to vector<256x1xf32>
    %145 = arith.divf %143, %144 : vector<256x1xf32>
    %cst_40 = arith.constant 9.99999996E-13 : f32
    %146 = vector.broadcast %cst_40 : f32 to vector<256x1xf32>
    %147 = arith.addf %145, %146 : vector<256x1xf32>
    %148 = math.rsqrt %147 : vector<256x1xf32>
    %149 = vector.broadcast %148 : vector<256x1xf32> to vector<256x128xf32>
    %150 = arith.mulf %140, %149 : vector<256x128xf32>
    %151 = vector.broadcast %11 : vector<1x128xf32> to vector<256x128xf32>
    %152 = arith.mulf %150, %151 : vector<256x128xf32>
    %153 = vector.broadcast %12 : vector<1x128xf32> to vector<256x128xf32>
    %154 = arith.addf %152, %153 : vector<256x128xf32>
    %155 = arith.truncf %154 : vector<256x128xf32> to vector<256x128xbf16>
    %c0_41 = arith.constant 0 : index
    %c0_42 = arith.constant 0 : index
    %c0_43 = arith.constant 0 : index
    %156 = vector.load %arg8[%c0_41, %c0_42, %c0_43] : memref<1x128x512xbf16, #tpu.memory_space<vmem>>, vector<1x128x512xbf16>
    %157 = vector.shape_cast %156 : vector<1x128x512xbf16> to vector<128x512xbf16>
    %cst_44 = arith.constant dense<0.000000e+00> : vector<256x512xf32>
    %158 = tpu.matmul %155, %157, %cst_44 {dimension_numbers = #tpu.dot_dimension_numbers<[1], [0], [0], [1], [0, 0, 1, 1], [], []>} : vector<256x128xbf16>, vector<128x512xbf16>, vector<256x512xf32> -> vector<256x512xf32>
    %c0_45 = arith.constant 0 : index
    %c0_46 = arith.constant 0 : index
    %c0_47 = arith.constant 0 : index
    %159 = vector.load %arg9[%c0_45, %c0_46, %c0_47] : memref<1x1x512xbf16, #tpu.memory_space<vmem>>, vector<1x1x512xbf16>
    %160 = vector.shape_cast %159 : vector<1x1x512xbf16> to vector<1x512xbf16>
    %161 = arith.extf %160 : vector<1x512xbf16> to vector<1x512xf32>
    %162 = vector.broadcast %161 : vector<1x512xf32> to vector<256x512xf32>
    %163 = arith.addf %158, %162 : vector<256x512xf32>
    %cst_48 = arith.constant 5.000000e-01 : f32
    %164 = vector.broadcast %cst_48 : f32 to vector<256x512xf32>
    %165 = arith.mulf %164, %163 : vector<256x512xf32>
    %166 = arith.mulf %163, %163 : vector<256x512xf32>
    %167 = arith.mulf %166, %163 : vector<256x512xf32>
    %cst_49 = arith.constant 4.471500e-02 : f32
    %168 = vector.broadcast %cst_49 : f32 to vector<256x512xf32>
    %169 = arith.mulf %168, %167 : vector<256x512xf32>
    %170 = arith.addf %163, %169 : vector<256x512xf32>
    %cst_50 = arith.constant 0.797884583 : f32
    %171 = vector.broadcast %cst_50 : f32 to vector<256x512xf32>
    %172 = arith.mulf %171, %170 : vector<256x512xf32>
    %173 = math.tanh %172 : vector<256x512xf32>
    %cst_51 = arith.constant 1.000000e+00 : f32
    %174 = vector.broadcast %cst_51 : f32 to vector<256x512xf32>
    %175 = arith.addf %174, %173 : vector<256x512xf32>
    %176 = arith.mulf %165, %175 : vector<256x512xf32>
    %177 = arith.truncf %176 : vector<256x512xf32> to vector<256x512xbf16>
    %c0_52 = arith.constant 0 : index
    %c0_53 = arith.constant 0 : index
    %c0_54 = arith.constant 0 : index
    %178 = vector.load %arg10[%c0_52, %c0_53, %c0_54] : memref<1x512x128xbf16, #tpu.memory_space<vmem>>, vector<1x512x128xbf16>
    %179 = vector.shape_cast %178 : vector<1x512x128xbf16> to vector<512x128xbf16>
    %cst_55 = arith.constant dense<0.000000e+00> : vector<256x128xf32>
    %180 = tpu.matmul %177, %179, %cst_55 {dimension_numbers = #tpu.dot_dimension_numbers<[1], [0], [0], [1], [0, 0, 1, 1], [], []>} : vector<256x512xbf16>, vector<512x128xbf16>, vector<256x128xf32> -> vector<256x128xf32>
    %181 = vector.broadcast %13 : vector<1x128xf32> to vector<256x128xf32>
    %182 = arith.addf %180, %181 : vector<256x128xf32>
    %183 = arith.addf %182, %154 : vector<256x128xf32>
    %cst_56 = arith.constant dense<0.000000e+00> : vector<256xf32>
    %184 = vector.multi_reduction <add>, %183, %cst_56 [1] : vector<256x128xf32> to vector<256xf32>
    %185 = vector.shape_cast %184 : vector<256xf32> to vector<256x1xf32>
    %cst_57 = arith.constant 1.280000e+02 : f32
    %186 = vector.broadcast %cst_57 : f32 to vector<256x1xf32>
    %187 = arith.divf %185, %186 : vector<256x1xf32>
    %188 = vector.broadcast %187 : vector<256x1xf32> to vector<256x128xf32>
    %189 = arith.subf %183, %188 : vector<256x128xf32>
    %190 = arith.mulf %189, %189 : vector<256x128xf32>
    %cst_58 = arith.constant dense<0.000000e+00> : vector<256xf32>
    %191 = vector.multi_reduction <add>, %190, %cst_58 [1] : vector<256x128xf32> to vector<256xf32>
    %192 = vector.shape_cast %191 : vector<256xf32> to vector<256x1xf32>
    %cst_59 = arith.constant 1.280000e+02 : f32
    %193 = vector.broadcast %cst_59 : f32 to vector<256x1xf32>
    %194 = arith.divf %192, %193 : vector<256x1xf32>
    %cst_60 = arith.constant 9.99999996E-13 : f32
    %195 = vector.broadcast %cst_60 : f32 to vector<256x1xf32>
    %196 = arith.addf %194, %195 : vector<256x1xf32>
    %197 = math.rsqrt %196 : vector<256x1xf32>
    %198 = vector.broadcast %197 : vector<256x1xf32> to vector<256x128xf32>
    %199 = arith.mulf %189, %198 : vector<256x128xf32>
    %200 = vector.broadcast %14 : vector<1x128xf32> to vector<256x128xf32>
    %201 = arith.mulf %199, %200 : vector<256x128xf32>
    %202 = vector.broadcast %15 : vector<1x128xf32> to vector<256x128xf32>
    %203 = arith.addf %201, %202 : vector<256x128xf32>
    %204 = arith.truncf %203 : vector<256x128xf32> to vector<256x128xbf16>
    %c0_61 = arith.constant 0 : index
    %c0_62 = arith.constant 0 : index
    %205 = vector.load %arg15[%c0_61, %c0_62] : memref<256x128xbf16, #tpu.memory_space<vmem>>, vector<256x128xbf16>
    tpu.vector_store %arg15[%c0_61, %c0_62], %204 {strides = array<i32>} : memref<256x128xbf16, #tpu.memory_space<vmem>>, vector<256x128xbf16>,
    %c1_i32 = arith.constant 1 : i32
    %206 = arith.cmpi eq, %arg1, %c1_i32 : i32
    %207 = arith.extui %206 : i1 to i32
    %c0_i32_63 = arith.constant 0 : i32
    %208 = arith.cmpi ne, %207, %c0_i32_63 : i32
    scf.if %208 {
      %c0_64 = arith.constant 0 : index
      %c0_65 = arith.constant 0 : index
      %209 = vector.load %arg12[%c0_64, %c0_65] : memref<128x128xbf16, #tpu.memory_space<vmem>>, vector<128x128xbf16>
      %cst_66 = arith.constant dense<0.000000e+00> : vector<256x128xf32>
      %210 = tpu.matmul %204, %209, %cst_66 {dimension_numbers = #tpu.dot_dimension_numbers<[1], [0], [0], [1], [0, 0, 1, 1], [], []>} : vector<256x128xbf16>, vector<128x128xbf16>, vector<256x128xf32> -> vector<256x128xf32>
      %c0_67 = arith.constant 0 : index
      %c0_68 = arith.constant 0 : index
      %211 = vector.load %arg13[%c0_67, %c0_68] : memref<1x128xbf16, #tpu.memory_space<vmem>>, vector<1x128xbf16>
      %212 = arith.extf %211 : vector<1x128xbf16> to vector<1x128xf32>
      %213 = vector.broadcast %212 : vector<1x128xf32> to vector<256x128xf32>
      %214 = arith.addf %210, %213 : vector<256x128xf32>
      %215 = vector.shape_cast %214 : vector<256x128xf32> to vector<2x128x128xf32>
      %216 = arith.truncf %215 : vector<2x128x128xf32> to vector<2x128x128xbf16>
      %c0_69 = arith.constant 0 : index
      %c0_70 = arith.constant 0 : index
      %c0_71 = arith.constant 0 : index
      %217 = vector.load %arg14[%c0_69, %c0_70, %c0_71] : memref<2x128x128xbf16, #tpu.memory_space<vmem>>, vector<2x128x128xbf16>
      tpu.vector_store %arg14[%c0_69, %c0_70, %c0_71], %216 {strides = array<i32>} : memref<2x128x128xbf16, #tpu.memory_space<vmem>>, vector<2x128x128xbf16>,
    } else {
    }
    return
  }
  func.func @transform_0(%arg0: i32, %arg1: i32) -> (i32, i32, i32) {
    %c0_i32 = arith.constant 0 : i32
    %c0_i32_0 = arith.constant 0 : i32
    %c0_i32_1 = arith.constant 0 : i32
    return %arg0, %c0_i32, %c0_i32_0 : i32, i32, i32
  }
  func.func @transform_1(%arg0: i32, %arg1: i32) -> (i32, i32, i32) {
    %c0_i32 = arith.constant 0 : i32
    %c0_i32_0 = arith.constant 0 : i32
    %c0_i32_1 = arith.constant 0 : i32
    return %arg0, %c0_i32, %c0_i32_0 : i32, i32, i32
  }
  func.func @transform_2(%arg0: i32, %arg1: i32) -> (i32, i32) {
    %c0_i32 = arith.constant 0 : i32
    %c0_i32_0 = arith.constant 0 : i32
    %c0_i32_1 = arith.constant 0 : i32
    return %c0_i32, %c0_i32_0 : i32, i32
  }
  func.func @transform_3(%arg0: i32, %arg1: i32) -> (i32, i32) {
    %c0_i32 = arith.constant 0 : i32
    %c0_i32_0 = arith.constant 0 : i32
    %c0_i32_1 = arith.constant 0 : i32
    return %c0_i32, %c0_i32_0 : i32, i32
  }
  func.func @transform_4(%arg0: i32, %arg1: i32) -> (i32, i32, i32) {
    %c0_i32 = arith.constant 0 : i32
    %c0_i32_0 = arith.constant 0 : i32
    %c0_i32_1 = arith.constant 0 : i32
    return %arg1, %c0_i32, %c0_i32_0 : i32, i32, i32
  }
  func.func @transform_5(%arg0: i32, %arg1: i32) -> (i32, i32, i32) {
    %c0_i32 = arith.constant 0 : i32
    %c0_i32_0 = arith.constant 0 : i32
    %c0_i32_1 = arith.constant 0 : i32
    return %arg1, %c0_i32, %c0_i32_0 : i32, i32, i32
  }
  func.func @transform_6(%arg0: i32, %arg1: i32) -> (i32, i32, i32) {
    %c0_i32 = arith.constant 0 : i32
    %c0_i32_0 = arith.constant 0 : i32
    %c0_i32_1 = arith.constant 0 : i32
    return %arg1, %c0_i32, %c0_i32_0 : i32, i32, i32
  }
  func.func @transform_7(%arg0: i32, %arg1: i32) -> (i32, i32, i32) {
    %c0_i32 = arith.constant 0 : i32
    %c0_i32_0 = arith.constant 0 : i32
    %c0_i32_1 = arith.constant 0 : i32
    return %arg1, %c0_i32, %c0_i32_0 : i32, i32, i32
  }
  func.func @transform_8(%arg0: i32, %arg1: i32) -> (i32, i32, i32) {
    %c0_i32 = arith.constant 0 : i32
    %c0_i32_0 = arith.constant 0 : i32
    %c0_i32_1 = arith.constant 0 : i32
    return %arg1, %c0_i32, %c0_i32_0 : i32, i32, i32
  }
  func.func @transform_9(%arg0: i32, %arg1: i32) -> (i32, i32, i32) {
    %c0_i32 = arith.constant 0 : i32
    %c0_i32_0 = arith.constant 0 : i32
    %c0_i32_1 = arith.constant 0 : i32
    return %arg1, %c0_i32, %c0_i32_0 : i32, i32, i32
  }
  func.func @transform_10(%arg0: i32, %arg1: i32) -> (i32, i32) {
    %c0_i32 = arith.constant 0 : i32
    %c0_i32_0 = arith.constant 0 : i32
    %c0_i32_1 = arith.constant 0 : i32
    return %c0_i32, %c0_i32_0 : i32, i32
  }
  func.func @transform_11(%arg0: i32, %arg1: i32) -> (i32, i32) {
    %c0_i32 = arith.constant 0 : i32
    %c0_i32_0 = arith.constant 0 : i32
    %c0_i32_1 = arith.constant 0 : i32
    return %c0_i32, %c0_i32_0 : i32, i32
  }
  func.func @transform_12(%arg0: i32, %arg1: i32) -> (i32, i32, i32) {
    %c0_i32 = arith.constant 0 : i32
    %c0_i32_0 = arith.constant 0 : i32
    %c0_i32_1 = arith.constant 0 : i32
    return %arg0, %c0_i32, %c0_i32_0 : i32, i32, i32
  }
}

</mosaic_0001>

<bundles_post_ra>
// kernel: bert_qa_forward.1
= control target key start
LH: loop header
LB: loop body
LE: loop exit
PB: predicated region body
PF: predicated region fallthrough
CT: control target
= control target key end

     0   :  { %s10512_s21 = smov 0   ;;  %s10514_s22 = smov 0   ;;  %s15364_s0 = inlined_call_operand.vmem [shape: bf16[2,128,128], index: 0, kind: input, shape index: {}]   ;;  %s15365_s1 = inlined_call_operand.vmem [shape: bf16[2,1,128], index: 1, kind: input, shape index: {}]   ;;  %s15366_s2 = inlined_call_operand.vmem [shape: bf16[1,128], index: 2, kind: input, shape index: {}]   ;;  %s15367_s3 = inlined_call_operand.vmem [shape: bf16[1,128], index: 3, kind: input, shape index: {}]   ;;  %s15368_s4 = inlined_call_operand.vmem [shape: bf16[2,128,384], index: 4, kind: input, shape index: {}]   ;;  %s15369_s5 = inlined_call_operand.vmem [shape: bf16[2,128,128], index: 5, kind: input, shape index: {}]   ;;  %s15370_s6 = inlined_call_operand.vmem [shape: bf16[2,128,512], index: 6, kind: input, shape index: {}]   ;;  %s15371_s7 = inlined_call_operand.vmem [shape: bf16[2,1,512], index: 7, kind: input, shape index: {}]   ;;  %s15372_s8 = inlined_call_operand.vmem [shape: bf16[2,512,128], index: 8, kind: input, shape index: {}]   ;;  %s15373_s9 = inlined_call_operand.vmem [shape: bf16[2,16,128], index: 9, kind: input, shape index: {}]   ;;  %s15374_s10 = inlined_call_operand.vmem [shape: bf16[128,128], index: 10, kind: input, shape index: {}]   ;;  %s15375_s11 = inlined_call_operand.vmem [shape: bf16[1,128], index: 11, kind: input, shape index: {}]   ;;  %s15376_s12 = inlined_call_operand.vmem [shape: bf16[2,128,128], index: 12, kind: output, shape index: {}]  }
   0x1   :  { %15511 = sst [smem:[#allocation88_spill]] %s15369_s5  ;;  %s10516_s23 = smov 0  }
   0x2 LB: > { %15512 = sst [smem:[#allocation3_spill]] %s10439_s22  ;;  %s31_s24 = sadd.s32 1, %s10439_s22  ;;  %s10443_s23 = sphi %s10516_s23, %s22_s23   ;;  %s10439_s22 = sphi %s10514_s22, %s15919_s22   ;;  %s10435_s21 = sphi %s10512_s21, %s15918_s21  }
   0x3   : > { %15513 = sst [smem:[#allocation4_spill]] %s10443_s23  ;;  %p8114_p0 = scmp.ge.s32.totalorder %s10443_s23, 1 }
   0x4   : > { %p32_p1 = scmp.ge.s32.totalorder %s31_s24, 2  ;;  %p445_p2 = scmp.lt.s32.totalorder %s10443_s23, 3 }
   0x6   : > { %s15921_s24 = smov (%p32_p1, %s31_s24), 0  ;;  %p446_p3 = pnand %p8114_p0, %p445_p2 }
   0x7   : > { %15514 = sst [smem:[#allocation5_spill]] %s15921_s24 }
   0x8   : > { %449 = sbr.rel (%p446_p3) target bundleno = 4069 (0xfe5), region = 68 }
   0xf   : > { %p534_p4 = scmp.lt.s32.totalorder %s10435_s21, 1  ;;  %s15515_s5 = sld [smem:[#allocation88_spill]] }
  0x10   : > { %p8125_p5 = scmp.ne.s32.totalorder %s10435_s21, 0 }
  0x11   : > { %s535_s25 = scalar_select %p534_p4, %s10435_s21, 1 }
  0x12   : > { %574 = sbr.rel (%p8125_p5) target bundleno = 399 (0x18f), region = 72  ;;  %v10568_v0 = vld [vmem:[%s15364_s0] sm:$0xff] (!%p8125_p5)   ;;  %v10573_v1 = vld [vmem:[%s15364_s0 + $0x8] sm:$0xff] (!%p8125_p5)   ;;  %v10586_v6 = vld [vmem:[%s15364_s0 + $0x10] sm:$0xff] (!%p8125_p5)  }
  0x13   : > { %s9537_s26 = smul.u32 192, %s535_s25  ;;  %s8331_s27 = sshll.u32 %s535_s25, 6  ;;  %v8369_v2 = vunpack.c.l.bf16 (!%p8125_p5), %v10568_v0  ;;  %v8373_v3 = vunpack.c.l.bf16 (!%p8125_p5), %v10573_v1  ;;  %v8370_v4 = vunpack.c.h.bf16 (!%p8125_p5), %v10568_v0  ;;  %v8374_v5 = vunpack.c.h.bf16 (!%p8125_p5), %v10573_v1  ;;  %v10597_v9 = vld [vmem:[%s15364_s0 + $0x18] sm:$0xff] (!%p8125_p5)   ;;  %v10608_v12 = vld [vmem:[%s15364_s0 + $0x20] sm:$0xff] (!%p8125_p5)   ;;  %v10619_v15 = vld [vmem:[%s15364_s0 + $0x28] sm:$0xff] (!%p8125_p5)  }
  0x14   : > { %s8332_s13 = sshll.u32 %s535_s25, 8  ;;  %s8120_s20 = sshll.u32 %s535_s25, 2  ;;  %v8377_v7 = vunpack.c.l.bf16 (!%p8125_p5), %v10586_v6  ;;  %v8378_v8 = vunpack.c.h.bf16 (!%p8125_p5), %v10586_v6  ;;  %v8381_v10 = vunpack.c.l.bf16 (!%p8125_p5), %v10597_v9  ;;  %v8382_v11 = vunpack.c.h.bf16 (!%p8125_p5), %v10597_v9  ;;  %v10630_v18 = vld [vmem:[%s15364_s0 + $0x30] sm:$0xff] (!%p8125_p5)   ;;  %v10641_v21 = vld [vmem:[%s15364_s0 + $0x38] sm:$0xff] (!%p8125_p5)   ;;  %v10652_v24 = vld [vmem:[%s15364_s0 + $0x40] sm:$0xff] (!%p8125_p5)  }
  0x15   : > { %s10537_s30 = scalar_lea.vmem %s15515_s5, %s8331_s27  ;;  %s10542_s16 = scalar_lea.vmem %s15368_s4, %s9537_s26  ;;  %643 = vadd.xlane.f32.xlu0 (!%p8125_p5), %v8369_v2  ;;  %647 = vadd.xlane.f32.xlu1 (!%p8125_p5), %v8373_v3  ;;  %v8385_v13 = vunpack.c.l.bf16 (!%p8125_p5), %v10608_v12  ;;  %v8386_v14 = vunpack.c.h.bf16 (!%p8125_p5), %v10608_v12  ;;  %v8389_v16 = vunpack.c.l.bf16 (!%p8125_p5), %v10619_v15  ;;  %v8390_v17 = vunpack.c.h.bf16 (!%p8125_p5), %v10619_v15  ;;  %v10663_v27 = vld [vmem:[%s15364_s0 + $0x48] sm:$0xff] (!%p8125_p5)   ;;  %v10674_v30 = vld [vmem:[%s15364_s0 + $0x50] sm:$0xff] (!%p8125_p5)   ;;  %v10685_v33 = vld [vmem:[%s15364_s0 + $0x58] sm:$0xff] (!%p8125_p5)  }
  0x16   : > { %s10547_s19 = scalar_lea.vmem %s15370_s6, %s8332_s13  ;;  %s10552_s23 = scalar_lea.vmem %s15372_s8, %s8332_s13  ;;  %v8393_v19 = vunpack.c.l.bf16 (!%p8125_p5), %v10630_v18  ;;  %v8394_v20 = vunpack.c.h.bf16 (!%p8125_p5), %v10630_v18  ;;  %v8397_v22 = vunpack.c.l.bf16 (!%p8125_p5), %v10641_v21  ;;  %v8398_v23 = vunpack.c.h.bf16 (!%p8125_p5), %v10641_v21  ;;  %v10696_v36 = vld [vmem:[%s15364_s0 + $0x60] sm:$0xff] (!%p8125_p5)   ;;  %v10707_v39 = vld [vmem:[%s15364_s0 + $0x68] sm:$0xff] (!%p8125_p5)   ;;  %v10718_v42 = vld [vmem:[%s15364_s0 + $0x70] sm:$0xff] (!%p8125_p5)  }
  0x17   : > { %s10557_s29 = scalar_lea.vmem %s15371_s7, %s8120_s20  ;;  %s8334_s5 = sshll.u32 %s535_s25, 3  ;;  %v8401_v25 = vunpack.c.l.bf16 (!%p8125_p5), %v10652_v24  ;;  %v8402_v26 = vunpack.c.h.bf16 (!%p8125_p5), %v10652_v24  ;;  %v8405_v28 = vunpack.c.l.bf16 (!%p8125_p5), %v10663_v27  ;;  %v8406_v29 = vunpack.c.h.bf16 (!%p8125_p5), %v10663_v27  ;;  %v10729_v45 = vld [vmem:[%s15364_s0 + $0x78] sm:$0xff] (!%p8125_p5)  }
  0x18   : > { %s10562_s15 = scalar_lea.vmem %s15373_s9, %s8334_s5  ;;  %v8409_v31 = vunpack.c.l.bf16 (!%p8125_p5), %v10674_v30  ;;  %v8410_v32 = vunpack.c.h.bf16 (!%p8125_p5), %v10674_v30  ;;  %v8413_v34 = vunpack.c.l.bf16 (!%p8125_p5), %v10685_v33  ;;  %v8414_v35 = vunpack.c.h.bf16 (!%p8125_p5), %v10685_v33 }
  0x19   : > { %645 = vadd.xlane.f32.xlu0 %v8370_v4  ;;  %649 = vadd.xlane.f32.xlu1 %v8374_v5  ;;  %v8417_v37 = vunpack.c.l.bf16 %v10696_v36  ;;  %v8418_v38 = vunpack.c.h.bf16 %v10696_v36  ;;  %v8421_v40 = vunpack.c.l.bf16 %v10707_v39  ;;  %v8422_v41 = vunpack.c.h.bf16 %v10707_v39 }
  0x1a   : > { %v8425_v43 = vunpack.c.l.bf16 %v10718_v42  ;;  %v8426_v44 = vunpack.c.h.bf16 %v10718_v42  ;;  %v8429_v46 = vunpack.c.l.bf16 %v10729_v45  ;;  %v8430_v47 = vunpack.c.h.bf16 %v10729_v45 }
  0x1d   : > { %651 = vadd.xlane.f32.xlu0 %v8377_v7  ;;  %653 = vadd.xlane.f32.xlu1 %v8378_v8 }
  0x21   : > { %655 = vadd.xlane.f32.xlu0 %v8381_v10  ;;  %657 = vadd.xlane.f32.xlu1 %v8382_v11 }
  0x25   : > { %659 = vadd.xlane.f32.xlu0 %v8385_v13  ;;  %661 = vadd.xlane.f32.xlu1 %v8386_v14 }
  0x29   : > { %663 = vadd.xlane.f32.xlu0 %v8389_v16  ;;  %665 = vadd.xlane.f32.xlu1 %v8390_v17 }
  0x2d   : > { %667 = vadd.xlane.f32.xlu0 %v8393_v19  ;;  %669 = vadd.xlane.f32.xlu1 %v8394_v20 }
  0x31   : > { %671 = vadd.xlane.f32.xlu0 %v8397_v22  ;;  %673 = vadd.xlane.f32.xlu1 %v8398_v23 }
  0x35   : > { %675 = vadd.xlane.f32.xlu0 %v8401_v25  ;;  %677 = vadd.xlane.f32.xlu1 %v8402_v26 }
  0x39   : > { %679 = vadd.xlane.f32.xlu0 %v8405_v28  ;;  %681 = vadd.xlane.f32.xlu1 %v8406_v29 }
  0x3d   : > { %683 = vadd.xlane.f32.xlu0 %v8409_v31  ;;  %685 = vadd.xlane.f32.xlu1 %v8410_v32 }
  0x41   : > { %687 = vadd.xlane.f32.xlu0 %v8413_v34  ;;  %689 = vadd.xlane.f32.xlu1 %v8414_v35 }
  0x45   : > { %691 = vadd.xlane.f32.xlu0 %v8417_v37  ;;  %693 = vadd.xlane.f32.xlu1 %v8418_v38 }
  0x49   : > { %695 = vadd.xlane.f32.xlu0 %v8421_v40  ;;  %697 = vadd.xlane.f32.xlu1 %v8422_v41 }
  0x4d   : > { %699 = vadd.xlane.f32.xlu0 %v8425_v43  ;;  %701 = vadd.xlane.f32.xlu1 %v8426_v44 }
  0x51   : > { %703 = vadd.xlane.f32.xlu0 %v8429_v46  ;;  %705 = vadd.xlane.f32.xlu1 %v8430_v47 }
  0xa2   : > { %v644_v48 = vpop.xlane.xlu0 %643  ;;  %v648_v49 = vpop.xlane.xlu1 %647 }
  0xa3   : > { %v708_v50 = vmul.f32 0.0078125, %v644_v48  ;;  %v710_v51 = vmul.f32 0.0078125, %v648_v49 }
  0xa5   : > { %v10743_v52 = vsub.f32 %v8369_v2, %v708_v50  ;;  %v10747_v53 = vsub.f32 %v8373_v3, %v710_v51 }
  0xa6   : > { %v646_v54 = vpop.xlane.xlu0 %645  ;;  %v650_v55 = vpop.xlane.xlu1 %649 }
  0xa7   : > { %v709_v56 = vmul.f32 0.0078125, %v646_v54  ;;  %v772_v57 = vmul.f32 %v10743_v52, %v10743_v52  ;;  %v711_v58 = vmul.f32 0.0078125, %v650_v55  ;;  %v774_v61 = vmul.f32 %v10747_v53, %v10747_v53 }
  0xa9   : > { %v10753_v59 = vsub.f32 %v8370_v4, %v709_v56  ;;  %804 = vadd.xlane.f32.xlu0 %v772_v57  ;;  %v10757_v60 = vsub.f32 %v8374_v5, %v711_v58 }
  0xaa   : > { %v652_v62 = vpop.xlane.xlu0 %651  ;;  %v654_v63 = vpop.xlane.xlu1 %653 }
  0xab   : > { %v712_v2 = vmul.f32 0.0078125, %v652_v62  ;;  %v773_v3 = vmul.f32 %v10753_v59, %v10753_v59  ;;  %v713_v48 = vmul.f32 0.0078125, %v654_v63  ;;  %v775_v4 = vmul.f32 %v10757_v60, %v10757_v60 }
  0xad   : > { %v10765_v0 = vsub.f32 %v8377_v7, %v712_v2  ;;  %808 = vadd.xlane.f32.xlu0 %v774_v61  ;;  %806 = vadd.xlane.f32.xlu1 %v773_v3  ;;  %v10769_v1 = vsub.f32 %v8378_v8, %v713_v48 }
  0xae   : > { %v656_v5 = vpop.xlane.xlu0 %655  ;;  %v658_v49 = vpop.xlane.xlu1 %657 }
  0xaf   : > { %v714_v50 = vmul.f32 0.0078125, %v656_v5  ;;  %v776_v51 = vmul.f32 %v10765_v0, %v10765_v0  ;;  %v715_v54 = vmul.f32 0.0078125, %v658_v49  ;;  %v777_v8 = vmul.f32 %v10769_v1, %v10769_v1 }
  0xb1   : > { %v10777_v7 = vsub.f32 %v8381_v10, %v714_v50  ;;  %810 = vadd.xlane.f32.xlu1 %v775_v4  ;;  %812 = vadd.xlane.f32.xlu0 %v776_v51  ;;  %v10781_v6 = vsub.f32 %v8382_v11, %v715_v54 }
  0xb2   : > { %v660_v55 = vpop.xlane.xlu0 %659  ;;  %v662_v56 = vpop.xlane.xlu1 %661 }
  0xb3   : > { %v716_v57 = vmul.f32 0.0078125, %v660_v55  ;;  %v778_v58 = vmul.f32 %v10777_v7, %v10777_v7  ;;  %v717_v61 = vmul.f32 0.0078125, %v662_v56  ;;  %v779_v11 = vmul.f32 %v10781_v6, %v10781_v6 }
  0xb5   : > { %v10789_v10 = vsub.f32 %v8385_v13, %v716_v57  ;;  %814 = vadd.xlane.f32.xlu1 %v777_v8  ;;  %816 = vadd.xlane.f32.xlu0 %v778_v58  ;;  %v10793_v9 = vsub.f32 %v8386_v14, %v717_v61 }
  0xb6   : > { %v664_v62 = vpop.xlane.xlu0 %663  ;;  %v666_v63 = vpop.xlane.xlu1 %665 }
  0xb7   : > { %v718_v2 = vmul.f32 0.0078125, %v664_v62  ;;  %v780_v3 = vmul.f32 %v10789_v10, %v10789_v10  ;;  %v719_v48 = vmul.f32 0.0078125, %v666_v63  ;;  %v781_v14 = vmul.f32 %v10793_v9, %v10793_v9 }
  0xb9   : > { %v10801_v13 = vsub.f32 %v8389_v16, %v718_v2  ;;  %818 = vadd.xlane.f32.xlu1 %v779_v11  ;;  %820 = vadd.xlane.f32.xlu0 %v780_v3  ;;  %v10805_v12 = vsub.f32 %v8390_v17, %v719_v48 }
  0xba   : > { %v668_v4 = vpop.xlane.xlu0 %667  ;;  %v670_v5 = vpop.xlane.xlu1 %669 }
  0xbb   : > { %v720_v49 = vmul.f32 0.0078125, %v668_v4  ;;  %v782_v50 = vmul.f32 %v10801_v13, %v10801_v13  ;;  %v721_v51 = vmul.f32 0.0078125, %v670_v5  ;;  %v783_v17 = vmul.f32 %v10805_v12, %v10805_v12 }
  0xbd   : > { %v10813_v16 = vsub.f32 %v8393_v19, %v720_v49  ;;  %822 = vadd.xlane.f32.xlu1 %v781_v14  ;;  %824 = vadd.xlane.f32.xlu0 %v782_v50  ;;  %v10817_v15 = vsub.f32 %v8394_v20, %v721_v51 }
  0xbe   : > { %v672_v54 = vpop.xlane.xlu0 %671  ;;  %v674_v8 = vpop.xlane.xlu1 %673 }
  0xbf   : > { %v722_v55 = vmul.f32 0.0078125, %v672_v54  ;;  %v784_v56 = vmul.f32 %v10813_v16, %v10813_v16  ;;  %v723_v57 = vmul.f32 0.0078125, %v674_v8  ;;  %v785_v20 = vmul.f32 %v10817_v15, %v10817_v15 }
  0xc1   : > { %v10825_v19 = vsub.f32 %v8397_v22, %v722_v55  ;;  %826 = vadd.xlane.f32.xlu1 %v783_v17  ;;  %828 = vadd.xlane.f32.xlu0 %v784_v56  ;;  %v10829_v18 = vsub.f32 %v8398_v23, %v723_v57 }
  0xc2   : > { %v676_v58 = vpop.xlane.xlu0 %675  ;;  %v678_v61 = vpop.xlane.xlu1 %677 }
  0xc3   : > { %v724_v11 = vmul.f32 0.0078125, %v676_v58  ;;  %v786_v62 = vmul.f32 %v10825_v19, %v10825_v19  ;;  %v725_v63 = vmul.f32 0.0078125, %v678_v61  ;;  %v787_v23 = vmul.f32 %v10829_v18, %v10829_v18 }
  0xc5   : > { %v10837_v22 = vsub.f32 %v8401_v25, %v724_v11  ;;  %830 = vadd.xlane.f32.xlu1 %v785_v20  ;;  %832 = vadd.xlane.f32.xlu0 %v786_v62  ;;  %v10841_v21 = vsub.f32 %v8402_v26, %v725_v63 }
  0xc6   : > { %v680_v2 = vpop.xlane.xlu0 %679  ;;  %v682_v3 = vpop.xlane.xlu1 %681 }
  0xc7   : > { %v726_v48 = vmul.f32 0.0078125, %v680_v2  ;;  %v788_v14 = vmul.f32 %v10837_v22, %v10837_v22  ;;  %v727_v4 = vmul.f32 0.0078125, %v682_v3  ;;  %v789_v26 = vmul.f32 %v10841_v21, %v10841_v21 }
  0xc9   : > { %v10849_v25 = vsub.f32 %v8405_v28, %v726_v48  ;;  %834 = vadd.xlane.f32.xlu1 %v787_v23  ;;  %836 = vadd.xlane.f32.xlu0 %v788_v14  ;;  %v10853_v24 = vsub.f32 %v8406_v29, %v727_v4 }
  0xca   : > { %v684_v5 = vpop.xlane.xlu0 %683  ;;  %v686_v49 = vpop.xlane.xlu1 %685 }
  0xcb   : > { %v728_v50 = vmul.f32 0.0078125, %v684_v5  ;;  %v790_v51 = vmul.f32 %v10849_v25, %v10849_v25  ;;  %v729_v17 = vmul.f32 0.0078125, %v686_v49  ;;  %v791_v29 = vmul.f32 %v10853_v24, %v10853_v24 }
  0xcd   : > { %v10861_v28 = vsub.f32 %v8409_v31, %v728_v50  ;;  %838 = vadd.xlane.f32.xlu1 %v789_v26  ;;  %840 = vadd.xlane.f32.xlu0 %v790_v51  ;;  %v10865_v27 = vsub.f32 %v8410_v32, %v729_v17 }
  0xce   : > { %v688_v54 = vpop.xlane.xlu0 %687  ;;  %v690_v8 = vpop.xlane.xlu1 %689 }
  0xcf   : > { %v730_v55 = vmul.f32 0.0078125, %v688_v54  ;;  %v792_v56 = vmul.f32 %v10861_v28, %v10861_v28  ;;  %v731_v57 = vmul.f32 0.0078125, %v690_v8  ;;  %v793_v32 = vmul.f32 %v10865_v27, %v10865_v27 }
  0xd1   : > { %v10873_v31 = vsub.f32 %v8413_v34, %v730_v55  ;;  %842 = vadd.xlane.f32.xlu1 %v791_v29  ;;  %844 = vadd.xlane.f32.xlu0 %v792_v56  ;;  %v10877_v30 = vsub.f32 %v8414_v35, %v731_v57 }
  0xd2   : > { %v692_v20 = vpop.xlane.xlu0 %691  ;;  %v694_v58 = vpop.xlane.xlu1 %693 }
  0xd3   : > { %v732_v61 = vmul.f32 0.0078125, %v692_v20  ;;  %v794_v11 = vmul.f32 %v10873_v31, %v10873_v31  ;;  %v733_v62 = vmul.f32 0.0078125, %v694_v58  ;;  %v795_v35 = vmul.f32 %v10877_v30, %v10877_v30 }
  0xd5   : > { %v10885_v34 = vsub.f32 %v8417_v37, %v732_v61  ;;  %846 = vadd.xlane.f32.xlu1 %v793_v32  ;;  %848 = vadd.xlane.f32.xlu0 %v794_v11  ;;  %v10889_v33 = vsub.f32 %v8418_v38, %v733_v62  ;;  %v996_v32 = vlaneseq }
  0xd6   : > { %v696_v63 = vpop.xlane.xlu0 %695  ;;  %v698_v23 = vpop.xlane.xlu1 %697 }
  0xd7   : > { %v734_v2 = vmul.f32 0.0078125, %v696_v63  ;;  %v796_v3 = vmul.f32 %v10885_v34, %v10885_v34  ;;  %v735_v48 = vmul.f32 0.0078125, %v698_v23  ;;  %v797_v38 = vmul.f32 %v10889_v33, %v10889_v33  ;;  %v639_v23 = vld [vmem:[%s15366_s2] sm:$0x1] }
  0xd8   : > { %v997_v62 = vshrl.u32 %v996_v32, 7 }
  0xd9   : > { %v10897_v37 = vsub.f32 %v8421_v40, %v734_v2  ;;  %850 = vadd.xlane.f32.xlu1 %v795_v35  ;;  %852 = vadd.xlane.f32.xlu0 %v796_v3  ;;  %v10901_v36 = vsub.f32 %v8422_v41, %v735_v48 }
  0xda   : > { %v700_v14 = vpop.xlane.xlu0 %699  ;;  %v702_v4 = vpop.xlane.xlu1 %701 }
  0xdb   : > { %v736_v26 = vmul.f32 0.0078125, %v700_v14  ;;  %v798_v5 = vmul.f32 %v10897_v37, %v10897_v37  ;;  %v737_v49 = vmul.f32 0.0078125, %v702_v4  ;;  %v799_v41 = vmul.f32 %v10901_v36, %v10901_v36 }
  0xdc   : > { %v640_v14 = vunpack.c.l.bf16 %v639_v23  ;;  %v998_v4 = vsub.s32 0, %v997_v62 }
  0xdd   : > { %v10909_v40 = vsub.f32 %v8425_v43, %v736_v26  ;;  %854 = vadd.xlane.f32.xlu1 %v797_v38  ;;  %856 = vadd.xlane.f32.xlu0 %v798_v5  ;;  %v10913_v39 = vsub.f32 %v8426_v44, %v737_v49  ;;  %v641_v49 = vld [vmem:[%s15367_s3] sm:$0x1] }
  0xde   : > { %v704_v50 = vpop.xlane.xlu0 %703  ;;  %v706_v51 = vpop.xlane.xlu1 %705 }
  0xdf   : > { %v738_v17 = vmul.f32 0.0078125, %v704_v50  ;;  %v800_v29 = vmul.f32 %v10909_v40, %v10909_v40  ;;  %v739_v54 = vmul.f32 0.0078125, %v706_v51  ;;  %v801_v44 = vmul.f32 %v10913_v39, %v10913_v39 }
  0xe1   : > { %v10921_v43 = vsub.f32 %v8429_v46, %v738_v17  ;;  %858 = vadd.xlane.f32.xlu1 %v799_v41  ;;  %860 = vadd.xlane.f32.xlu0 %v800_v29  ;;  %v10925_v42 = vsub.f32 %v8430_v47, %v739_v54  ;;  %v642_v54 = vunpack.c.l.bf16 %v641_v49 }
  0xe3   : > { %v802_v8 = vmul.f32 %v10921_v43, %v10921_v43  ;;  %v803_v55 = vmul.f32 %v10925_v42, %v10925_v42 }
  0xe5   : > { %862 = vadd.xlane.f32.xlu1 %v801_v44  ;;  %864 = vadd.xlane.f32.xlu0 %v802_v8  ;;  %v10939_v44 = vrot.slane %v640_v14, %v998_v4 }
  0xe9   : > { %866 = vadd.xlane.f32.xlu1 %v803_v55 }
 0x136   : > { %v805_v46 = vpop.xlane.xlu0 %804 }
 0x137   : > { %v868_v56 = vmul.f32 0.0078125, %v805_v46 }
 0x139   : > { %v900_v57 = vadd.f32 1e-12, %v868_v56 }
 0x13a   : > { %v807_v20 = vpop.xlane.xlu1 %806  ;;  %v809_v45 = vpop.xlane.xlu0 %808 }
 0x13b   : > { %9564 = vrsqrt.f32 %v900_v57  ;;  %v869_v47 = vmul.f32 0.0078125, %v807_v20  ;;  %v870_v58 = vmul.f32 0.0078125, %v809_v45 }
 0x13d   : > { %v901_v61 = vadd.f32 1e-12, %v869_v47  ;;  %v902_v11 = vadd.f32 1e-12, %v870_v58  ;;  %v10942_v58 = vrot.slane %v642_v54, %v998_v4 }
 0x13e   : > { %v811_v35 = vpop.xlane.xlu1 %810  ;;  %v813_v63 = vpop.xlane.xlu0 %812 }
 0x13f   : > { %9566 = vrsqrt.f32 %v901_v61  ;;  %v871_v2 = vmul.f32 0.0078125, %v811_v35  ;;  %v872_v3 = vmul.f32 0.0078125, %v813_v63 }
 0x140   : > { %9568 = vrsqrt.f32 %v902_v11 }
 0x141   : > { %v903_v48 = vadd.f32 1e-12, %v871_v2  ;;  %v904_v38 = vadd.f32 1e-12, %v872_v3 }
 0x142   : > { %v815_v26 = vpop.xlane.xlu1 %814  ;;  %v817_v5 = vpop.xlane.xlu0 %816 }
 0x143   : > { %9570 = vrsqrt.f32 %v903_v48  ;;  %v873_v41 = vmul.f32 0.0078125, %v815_v26  ;;  %v874_v50 = vmul.f32 0.0078125, %v817_v5 }
 0x144   : > { %9572 = vrsqrt.f32 %v904_v38 }
 0x145   : > { %v9565_v51 = vpop.eup %9564  ;;  %v905_v17 = vadd.f32 1e-12, %v873_v41  ;;  %v906_v29 = vadd.f32 1e-12, %v874_v50 }
 0x146   : > { %v964_v8 = vmul.f32 %v9565_v51, %v10743_v52  ;;  %v819_v55 = vpop.xlane.xlu1 %818  ;;  %v821_v46 = vpop.xlane.xlu0 %820 }
 0x147   : > { %9574 = vrsqrt.f32 %v905_v17  ;;  %v875_v56 = vmul.f32 0.0078125, %v819_v55  ;;  %v876_v57 = vmul.f32 0.0078125, %v821_v46 }
 0x148   : > { %9576 = vrsqrt.f32 %v906_v29  ;;  %v1000_v61 = vmul.f32 %v10939_v44, %v964_v8 }
 0x149   : > { %v9567_v32 = vpop.eup %9566  ;;  %v907_v20 = vadd.f32 1e-12, %v875_v56  ;;  %v908_v45 = vadd.f32 1e-12, %v876_v57 }
 0x14a   : > { %v9569_v47 = vpop.eup %9568  ;;  %v965_v11 = vmul.f32 %v9567_v32, %v10753_v59  ;;  %v823_v62 = vpop.xlane.xlu1 %822  ;;  %v1036_v4 = vadd.f32 %v10942_v58, %v1000_v61 }
 0x14b   : > { %v825_v35 = vpop.xlane.xlu0 %824  ;;  %v966_v52 = vmul.f32 %v9569_v47, %v10747_v53  ;;  %9578 = vrsqrt.f32 %v907_v20  ;;  %v877_v63 = vmul.f32 0.0078125, %v823_v62 }
 0x14c   : > { %v878_v23 = vmul.f32 0.0078125, %v825_v35  ;;  %v1001_v2 = vmul.f32 %v10939_v44, %v965_v11  ;;  %9580 = vrsqrt.f32 %v908_v45 }
 0x14d   : > { %v9571_v3 = vpop.eup %9570  ;;  %v909_v48 = vadd.f32 1e-12, %v877_v63  ;;  %v1002_v59 = vmul.f32 %v10939_v44, %v966_v52 }
 0x14e   : > { %v910_v38 = vadd.f32 1e-12, %v878_v23  ;;  %v9573_v14 = vpop.eup %9572  ;;  %v1037_v26 = vadd.f32 %v10942_v58, %v1001_v2  ;;  %v967_v5 = vmul.f32 %v9571_v3, %v10757_v60  ;;  %v827_v49 = vpop.xlane.xlu1 %826 }
 0x14f   : > { %v829_v53 = vpop.xlane.xlu0 %828  ;;  %v968_v41 = vmul.f32 %v9573_v14, %v10765_v0  ;;  %9582 = vrsqrt.f32 %v909_v48  ;;  %v879_v50 = vmul.f32 0.0078125, %v827_v49  ;;  %v1038_v56 = vadd.f32 %v10942_v58, %v1002_v59 }
 0x150   : > { %v1068_v51 = vpack.c.bf16 %v1037_v26, %v1036_v4  ;;  %v1003_v17 = vmul.f32 %v10939_v44, %v967_v5  ;;  %9584 = vrsqrt.f32 %v910_v38  ;;  %v880_v29 = vmul.f32 0.0078125, %v829_v53 }
 0x151   : > { %v9575_v54 = vpop.eup %9574  ;;  %v1004_v8 = vmul.f32 %v10939_v44, %v968_v41  ;;  %v911_v55 = vadd.f32 1e-12, %v879_v50 }
 0x152   : > { %v9577_v46 = vpop.eup %9576  ;;  %1084 = vst [vmem:[#allocation2] sm:$0xff] %v1068_v51  ;;  %v1039_v60 = vadd.f32 %v10942_v58, %v1003_v17  ;;  %v969_v57 = vmul.f32 %v9575_v54, %v10769_v1  ;;  %v912_v0 = vadd.f32 1e-12, %v880_v29  ;;  %v831_v32 = vpop.xlane.xlu1 %830 }
 0x153   : > { %v833_v20 = vpop.xlane.xlu0 %832  ;;  %v970_v45 = vmul.f32 %v9577_v46, %v10777_v7  ;;  %9586 = vrsqrt.f32 %v911_v55  ;;  %v881_v47 = vmul.f32 0.0078125, %v831_v32  ;;  %v1040_v52 = vadd.f32 %v10942_v58, %v1004_v8 }
 0x154   : > { %v1069_v61 = vpack.c.bf16 %v1039_v60, %v1038_v56  ;;  %v1005_v11 = vmul.f32 %v10939_v44, %v969_v57  ;;  %9588 = vrsqrt.f32 %v912_v0  ;;  %v882_v62 = vmul.f32 0.0078125, %v833_v20 }
 0x155   : > { %v9579_v35 = vpop.eup %9578  ;;  %v913_v63 = vadd.f32 1e-12, %v881_v47  ;;  %v1006_v2 = vmul.f32 %v10939_v44, %v970_v45 }
 0x156   : > { %v9581_v23 = vpop.eup %9580  ;;  %1085 = vst [vmem:[#allocation2 + $0x8] sm:$0xff] %v1069_v61  ;;  %v1041_v1 = vadd.f32 %v10942_v58, %v1005_v11  ;;  %v971_v3 = vmul.f32 %v9579_v35, %v10781_v6  ;;  %v914_v7 = vadd.f32 1e-12, %v882_v62  ;;  %v835_v48 = vpop.xlane.xlu1 %834 }
 0x157   : > { %v837_v38 = vpop.xlane.xlu0 %836  ;;  %v972_v14 = vmul.f32 %v9581_v23, %v10789_v10  ;;  %9590 = vrsqrt.f32 %v913_v63  ;;  %v883_v4 = vmul.f32 0.0078125, %v835_v48  ;;  %v1042_v6 = vadd.f32 %v10942_v58, %v1006_v2 }
 0x158   : > { %v1070_v26 = vpack.c.bf16 %v1041_v1, %v1040_v52  ;;  %v1007_v59 = vmul.f32 %v10939_v44, %v971_v3  ;;  %9592 = vrsqrt.f32 %v914_v7  ;;  %v884_v5 = vmul.f32 0.0078125, %v837_v38 }
 0x159   : > { %v9583_v49 = vpop.eup %9582  ;;  %v1008_v53 = vmul.f32 %v10939_v44, %v972_v14  ;;  %v915_v41 = vadd.f32 1e-12, %v883_v4 }
 0x15a   : > { %v9585_v50 = vpop.eup %9584  ;;  %1086 = vst [vmem:[#allocation2 + $0x10] sm:$0xff] %v1070_v26  ;;  %v1043_v51 = vadd.f32 %v10942_v58, %v1007_v59  ;;  %v973_v17 = vmul.f32 %v9583_v49, %v10793_v9  ;;  %v916_v10 = vadd.f32 1e-12, %v884_v5  ;;  %v839_v29 = vpop.xlane.xlu1 %838 }
 0x15b   : > { %v841_v54 = vpop.xlane.xlu0 %840  ;;  %v974_v8 = vmul.f32 %v9585_v50, %v10801_v13  ;;  %9594 = vrsqrt.f32 %v915_v41  ;;  %v885_v55 = vmul.f32 0.0078125, %v839_v29  ;;  %v1044_v0 = vadd.f32 %v10942_v58, %v1008_v53 }
 0x15c   : > { %v1071_v46 = vpack.c.bf16 %v1043_v51, %v1042_v6  ;;  %v1009_v56 = vmul.f32 %v10939_v44, %v973_v17  ;;  %9596 = vrsqrt.f32 %v916_v10  ;;  %v886_v60 = vmul.f32 0.0078125, %v841_v54 }
 0x15d   : > { %v9587_v57 = vpop.eup %9586  ;;  %v917_v32 = vadd.f32 1e-12, %v885_v55  ;;  %v1010_v45 = vmul.f32 %v10939_v44, %v974_v8 }
 0x15e   : > { %v9589_v20 = vpop.eup %9588  ;;  %1087 = vst [vmem:[#allocation2 + $0x18] sm:$0xff] %v1071_v46  ;;  %v1045_v9 = vadd.f32 %v10942_v58, %v1009_v56  ;;  %v975_v47 = vmul.f32 %v9587_v57, %v10805_v12  ;;  %v918_v13 = vadd.f32 1e-12, %v886_v60  ;;  %v843_v61 = vpop.xlane.xlu1 %842 }
 0x15f   : > { %v845_v11 = vpop.xlane.xlu0 %844  ;;  %v976_v62 = vmul.f32 %v9589_v20, %v10813_v16  ;;  %9598 = vrsqrt.f32 %v917_v32  ;;  %v887_v35 = vmul.f32 0.0078125, %v843_v61  ;;  %v1046_v12 = vadd.f32 %v10942_v58, %v1010_v45 }
 0x160   : > { %v1072_v52 = vpack.c.bf16 %v1045_v9, %v1044_v0  ;;  %v1011_v63 = vmul.f32 %v10939_v44, %v975_v47  ;;  %9600 = vrsqrt.f32 %v918_v13  ;;  %v888_v23 = vmul.f32 0.0078125, %v845_v11 }
 0x161   : > { %v9591_v1 = vpop.eup %9590  ;;  %v1012_v2 = vmul.f32 %v10939_v44, %v976_v62  ;;  %v919_v3 = vadd.f32 1e-12, %v887_v35 }
 0x162   : > { %v9593_v7 = vpop.eup %9592  ;;  %1088 = vst [vmem:[#allocation2 + $0x20] sm:$0xff] %v1072_v52  ;;  %v1047_v48 = vadd.f32 %v10942_v58, %v1011_v63  ;;  %v977_v38 = vmul.f32 %v9591_v1, %v10817_v15  ;;  %v920_v16 = vadd.f32 1e-12, %v888_v23  ;;  %v847_v14 = vpop.xlane.xlu1 %846 }
 0x163   : > { %v849_v4 = vpop.xlane.xlu0 %848  ;;  %v978_v26 = vmul.f32 %v9593_v7, %v10825_v19  ;;  %9602 = vrsqrt.f32 %v919_v3  ;;  %v889_v59 = vmul.f32 0.0078125, %v847_v14  ;;  %v1048_v50 = vadd.f32 %v10942_v58, %v1012_v2 }
 0x164   : > { %v1073_v5 = vpack.c.bf16 %v1047_v48, %v1046_v12  ;;  %v1013_v49 = vmul.f32 %v10939_v44, %v977_v38  ;;  %9604 = vrsqrt.f32 %v920_v16  ;;  %v890_v53 = vmul.f32 0.0078125, %v849_v4 }
 0x165   : > { %v9595_v41 = vpop.eup %9594  ;;  %v921_v6 = vadd.f32 1e-12, %v889_v59  ;;  %v1014_v17 = vmul.f32 %v10939_v44, %v978_v26 }
 0x166   : > { %v9597_v51 = vpop.eup %9596  ;;  %1089 = vst [vmem:[#allocation2 + $0x28] sm:$0xff] %v1073_v5  ;;  %v1049_v15 = vadd.f32 %v10942_v58, %v1013_v49  ;;  %v979_v10 = vmul.f32 %v9595_v41, %v10829_v18  ;;  %v922_v19 = vadd.f32 1e-12, %v890_v53  ;;  %v851_v29 = vpop.xlane.xlu1 %850 }
 0x167   : > { %v853_v54 = vpop.xlane.xlu0 %852  ;;  %v980_v8 = vmul.f32 %v9597_v51, %v10837_v22  ;;  %9606 = vrsqrt.f32 %v921_v6  ;;  %v891_v55 = vmul.f32 0.0078125, %v851_v29  ;;  %v1050_v18 = vadd.f32 %v10942_v58, %v1014_v17 }
 0x168   : > { %v1074_v46 = vpack.c.bf16 %v1049_v15, %v1048_v50  ;;  %v1015_v56 = vmul.f32 %v10939_v44, %v979_v10  ;;  %9608 = vrsqrt.f32 %v922_v19  ;;  %v892_v60 = vmul.f32 0.0078125, %v853_v54 }
 0x169   : > { %v9599_v57 = vpop.eup %9598  ;;  %v1016_v0 = vmul.f32 %v10939_v44, %v980_v8  ;;  %v923_v32 = vadd.f32 1e-12, %v891_v55 }
 0x16a   : > { %v9601_v20 = vpop.eup %9600  ;;  %1090 = vst [vmem:[#allocation2 + $0x30] sm:$0xff] %v1074_v46  ;;  %v1051_v9 = vadd.f32 %v10942_v58, %v1015_v56  ;;  %v981_v45 = vmul.f32 %v9599_v57, %v10841_v21  ;;  %v924_v22 = vadd.f32 1e-12, %v892_v60  ;;  %v855_v47 = vpop.xlane.xlu1 %854 }
 0x16b   : > { %v857_v13 = vpop.xlane.xlu0 %856  ;;  %v982_v61 = vmul.f32 %v9601_v20, %v10849_v25  ;;  %9610 = vrsqrt.f32 %v923_v32  ;;  %v893_v11 = vmul.f32 0.0078125, %v855_v47  ;;  %v1052_v23 = vadd.f32 %v10942_v58, %v1016_v0 }
 0x16c   : > { %v1075_v62 = vpack.c.bf16 %v1051_v9, %v1050_v18  ;;  %v1017_v35 = vmul.f32 %v10939_v44, %v981_v45  ;;  %9612 = vrsqrt.f32 %v924_v22  ;;  %v894_v52 = vmul.f32 0.0078125, %v857_v13 }
 0x16d   : > { %v9603_v63 = vpop.eup %9602  ;;  %v925_v1 = vadd.f32 1e-12, %v893_v11  ;;  %v1018_v3 = vmul.f32 %v10939_v44, %v982_v61 }
 0x16e   : > { %v9605_v2 = vpop.eup %9604  ;;  %1091 = vst [vmem:[#allocation2 + $0x38] sm:$0xff] %v1075_v62  ;;  %v1053_v21 = vadd.f32 %v10942_v58, %v1017_v35  ;;  %v983_v7 = vmul.f32 %v9603_v63, %v10853_v24  ;;  %v926_v25 = vadd.f32 1e-12, %v894_v52  ;;  %v859_v12 = vpop.xlane.xlu1 %858 }
 0x16f   : > { %v861_v48 = vpop.xlane.xlu0 %860  ;;  %v984_v38 = vmul.f32 %v9605_v2, %v10861_v28  ;;  %9614 = vrsqrt.f32 %v925_v1  ;;  %v895_v16 = vmul.f32 0.0078125, %v859_v12  ;;  %v1054_v24 = vadd.f32 %v10942_v58, %v1018_v3 }
 0x170   : > { %v1076_v14 = vpack.c.bf16 %v1053_v21, %v1052_v23  ;;  %v1019_v4 = vmul.f32 %v10939_v44, %v983_v7  ;;  %9616 = vrsqrt.f32 %v926_v25  ;;  %v896_v26 = vmul.f32 0.0078125, %v861_v48 }
 0x171   : > { %v9607_v59 = vpop.eup %9606  ;;  %v1020_v5 = vmul.f32 %v10939_v44, %v984_v38  ;;  %v927_v49 = vadd.f32 1e-12, %v895_v16 }
 0x172   : > { %v9609_v53 = vpop.eup %9608  ;;  %1092 = vst [vmem:[#allocation2 + $0x40] sm:$0xff] %v1076_v14  ;;  %v1055_v41 = vadd.f32 %v10942_v58, %v1019_v4  ;;  %v985_v50 = vmul.f32 %v9607_v59, %v10865_v27  ;;  %v928_v28 = vadd.f32 1e-12, %v896_v26  ;;  %v863_v6 = vpop.xlane.xlu1 %862 }
 0x173   : > { %v865_v51 = vpop.xlane.xlu0 %864  ;;  %v986_v15 = vmul.f32 %v9609_v53, %v10873_v31  ;;  %9618 = vrsqrt.f32 %v927_v49  ;;  %v897_v17 = vmul.f32 0.0078125, %v863_v6  ;;  %v1056_v8 = vadd.f32 %v10942_v58, %v1020_v5 }
 0x174   : > { %v1077_v10 = vpack.c.bf16 %v1055_v41, %v1054_v24  ;;  %v1021_v19 = vmul.f32 %v10939_v44, %v985_v50  ;;  %9620 = vrsqrt.f32 %v928_v28  ;;  %v898_v29 = vmul.f32 0.0078125, %v865_v51 }
 0x175   : > { %v9611_v54 = vpop.eup %9610  ;;  %v929_v55 = vadd.f32 1e-12, %v897_v17  ;;  %v1022_v56 = vmul.f32 %v10939_v44, %v986_v15 }
 0x176   : > { %v9613_v46 = vpop.eup %9612  ;;  %1093 = vst [vmem:[#allocation2 + $0x48] sm:$0xff] %v1077_v10  ;;  %v1057_v27 = vadd.f32 %v10942_v58, %v1021_v19  ;;  %v987_v60 = vmul.f32 %v9611_v54, %v10877_v30  ;;  %v930_v31 = vadd.f32 1e-12, %v898_v29  ;;  %v867_v57 = vpop.xlane.xlu1 %866 }
 0x177   : > { %v988_v0 = vmul.f32 %v9613_v46, %v10885_v34  ;;  %9622 = vrsqrt.f32 %v929_v55  ;;  %v899_v32 = vmul.f32 0.0078125, %v867_v57  ;;  %v1058_v47 = vadd.f32 %v10942_v58, %v1022_v56 }
 0x178   : > { %v1078_v20 = vpack.c.bf16 %v1057_v27, %v1056_v8  ;;  %v1023_v18 = vmul.f32 %v10939_v44, %v987_v60  ;;  %9624 = vrsqrt.f32 %v930_v31 }
 0x179   : > { %v9615_v9 = vpop.eup %9614  ;;  %v931_v45 = vadd.f32 1e-12, %v899_v32  ;;  %v1024_v30 = vmul.f32 %v10939_v44, %v988_v0 }
 0x17a   : > { %v9617_v22 = vpop.eup %9616  ;;  %1094 = vst [vmem:[#allocation2 + $0x50] sm:$0xff] %v1078_v20  ;;  %v1059_v13 = vadd.f32 %v10942_v58, %v1023_v18  ;;  %v989_v61 = vmul.f32 %v9615_v9, %v10889_v33 }
 0x17b   : > { %v990_v34 = vmul.f32 %v9617_v22, %v10897_v37  ;;  %9626 = vrsqrt.f32 %v931_v45  ;;  %v1060_v63 = vadd.f32 %v10942_v58, %v1024_v30 }
 0x17c   : > { %v1079_v11 = vpack.c.bf16 %v1059_v13, %v1058_v47  ;;  %v1025_v62 = vmul.f32 %v10939_v44, %v989_v61 }
 0x17d   : > { %v9619_v35 = vpop.eup %9618  ;;  %v1026_v1 = vmul.f32 %v10939_v44, %v990_v34 }
 0x17e   : > { %v9621_v52 = vpop.eup %9620  ;;  %1095 = vst [vmem:[#allocation2 + $0x58] sm:$0xff] %v1079_v11  ;;  %v1061_v23 = vadd.f32 %v10942_v58, %v1025_v62  ;;  %v991_v2 = vmul.f32 %v9619_v35, %v10901_v36 }
 0x17f   : > { %v992_v21 = vmul.f32 %v9621_v52, %v10909_v40  ;;  %v1062_v25 = vadd.f32 %v10942_v58, %v1026_v1 }
 0x180   : > { %v1080_v33 = vpack.c.bf16 %v1061_v23, %v1060_v63  ;;  %v1027_v37 = vmul.f32 %v10939_v44, %v991_v2 }
 0x181   : > { %v9623_v3 = vpop.eup %9622  ;;  %v1028_v48 = vmul.f32 %v10939_v44, %v992_v21 }
 0x182   : > { %v9625_v7 = vpop.eup %9624  ;;  %1096 = vst [vmem:[#allocation2 + $0x60] sm:$0xff] %v1080_v33  ;;  %v1063_v12 = vadd.f32 %v10942_v58, %v1027_v37  ;;  %v993_v38 = vmul.f32 %v9623_v3, %v10913_v39 }
 0x183   : > { %v994_v16 = vmul.f32 %v9625_v7, %v10921_v43  ;;  %v1064_v4 = vadd.f32 %v10942_v58, %v1028_v48 }
 0x184   : > { %v1081_v14 = vpack.c.bf16 %v1063_v12, %v1062_v25  ;;  %v1029_v36 = vmul.f32 %v10939_v44, %v993_v38 }
 0x185   : > { %v9627_v40 = vpop.eup %9626  ;;  %v1030_v59 = vmul.f32 %v10939_v44, %v994_v16 }
 0x186   : > { %1097 = vst [vmem:[#allocation2 + $0x68] sm:$0xff] %v1081_v14  ;;  %v1065_v26 = vadd.f32 %v10942_v58, %v1029_v36  ;;  %v995_v5 = vmul.f32 %v9627_v40, %v10925_v42 }
 0x187   : > { %v1066_v39 = vadd.f32 %v10942_v58, %v1030_v59 }
 0x188   : > { %v1082_v49 = vpack.c.bf16 %v1065_v26, %v1064_v4  ;;  %v1031_v53 = vmul.f32 %v10939_v44, %v995_v5 }
 0x18a   : > { %1098 = vst [vmem:[#allocation2 + $0x70] sm:$0xff] %v1082_v49  ;;  %v1067_v43 = vadd.f32 %v10942_v58, %v1031_v53 }
 0x18c   : > { %v1083_v24 = vpack.c.bf16 %v1067_v43, %v1066_v39 }
 0x18e   : > { %1099 = vst [vmem:[#allocation2 + $0x78] sm:$0xff] %v1083_v24 }
 0x18f PF: > { %v9628_v41 = vld [vmem:[%s10542_s16 + $0x4] ss:$12 sps:$4 sm:$0xff]   ;;  %v9630_v50 = vld [vmem:[%s10542_s16] ss:$12 sps:$4 sm:$0xff]   ;;  %v15380_v42 = vmov 0   ;;  %v1103_v13 = vld [vmem:[#allocation2 + $0x18] sm:$0xff]  ;;  %v1634_v2 = vlaneseq }
 0x190   : > { %1312 = vmatprep.mubr.bf16.mxu0 %v15380_v42  ;;  %1432 = vmatprep.mubr.bf16.mxu1 %v15380_v42  ;;  %v9631_v44 = vld [vmem:[%s10542_s16 + $0x1c] ss:$12 sps:$4 sm:$0xff]   ;;  %v9633_v58 = vld [vmem:[%s10542_s16 + $0x18] ss:$12 sps:$4 sm:$0xff]   ;;  %v9634_v28 = vld [vmem:[%s10542_s16 + $0x34] ss:$12 sps:$4 sm:$0xff]  }
 0x191   : > { %1280 = vmatprep.subr.bf16.mxu0 %v9628_v41  ;;  %9441 = vmatprep.subr.bf16.mxu1 %v9628_v41  ;;  %v9636_v6 = vld [vmem:[%s10542_s16 + $0x30] ss:$12 sps:$4 sm:$0xff]   ;;  %v9637_v51 = vld [vmem:[%s10542_s16 + $0x4c] ss:$12 sps:$4 sm:$0xff]   ;;  %v9639_v15 = vld [vmem:[%s10542_s16 + $0x48] ss:$12 sps:$4 sm:$0xff]  }
 0x192   : > { %1281 = vmatpush1.bf16.msra.mxu0 %v9630_v50  ;;  %9449 = vmatpush1.bf16.msra.mxu1 %v9630_v50  ;;  %v9640_v17 = vld [vmem:[%s10542_s16 + $0x64] ss:$12 sps:$4 sm:$0xff]   ;;  %v9642_v10 = vld [vmem:[%s10542_s16 + $0x60] ss:$12 sps:$4 sm:$0xff]   ;;  %v9643_v19 = vld [vmem:[%s10542_s16 + $0x7c] ss:$12 sps:$4 sm:$0xff]  }
 0x193   : > { %1282 = vmatprep.subr.bf16.mxu0 %v9631_v44  ;;  %9442 = vmatprep.subr.bf16.mxu1 %v9631_v44  ;;  %v9645_v29 = vld [vmem:[%s10542_s16 + $0x78] ss:$12 sps:$4 sm:$0xff]   ;;  %v9646_v54 = vld [vmem:[%s10542_s16 + $0x94] ss:$12 sps:$4 sm:$0xff]   ;;  %v9648_v8 = vld [vmem:[%s10542_s16 + $0x90] ss:$12 sps:$4 sm:$0xff]  }
 0x194   : > { %v9649_v55 = vld [vmem:[%s10542_s16 + $0xac] ss:$12 sps:$4 sm:$0xff]   ;;  %v9651_v46 = vld [vmem:[%s10542_s16 + $0xa8] ss:$12 sps:$4 sm:$0xff]   ;;  %v1100_v56 = vld [vmem:[#allocation2] sm:$0xff]  ;;  %v11087_v21 = vshrl.u32 %v1634_v2, 7 }
 0x195   : > { %v9652_v27 = vld [vmem:[%s10542_s16 + $0x8] ss:$12 sps:$4 sm:$0xff]   ;;  %v11058_v60 = vld [vmem:[#allocation2 + $0x60] sm:$0xff]  ;;  %v9655_v20 = vld [vmem:[%s10542_s16 + $0x50] ss:$12 sps:$4 sm:$0xff]   ;;  %vm1813_vm0 = vcmask 523264  }
 0x196   : > { %1283 = vmatpush1.bf16.msra.mxu0 %v9633_v58  ;;  %9450 = vmatpush1.bf16.msra.mxu1 %v9633_v58  ;;  %v9653_v31 = vld [vmem:[%s10542_s16 + $0x20] ss:$12 sps:$4 sm:$0xff]   ;;  %v9654_v57 = vld [vmem:[%s10542_s16 + $0x38] ss:$12 sps:$4 sm:$0xff]   ;;  %v9656_v18 = vld [vmem:[%s10542_s16 + $0x68] ss:$12 sps:$4 sm:$0xff]  }
 0x197   : > { %1284 = vmatprep.subr.bf16.mxu0 %v9634_v28  ;;  %9443 = vmatprep.subr.bf16.mxu1 %v9634_v28  ;;  %v1101_v0 = vld [vmem:[#allocation2 + $0x8] sm:$0xff]  ;;  %v1102_v9 = vld [vmem:[#allocation2 + $0x10] sm:$0xff]  ;;  %v9658_v47 = vld [vmem:[%s10542_s16 + $0x98] ss:$12 sps:$4 sm:$0xff]   ;;  %15516 = vst [vmem:[#allocation6_spill] sm:$0xff] %v11087_v21  ;;  %v11093_v3 = vsub.s32 0, %v11087_v21 }
 0x198   : > { %v11065_v32 = vld [vmem:[#allocation2 + $0x68] sm:$0xff]  ;;  %v1114_v45 = vld [vmem:[#allocation2 + $0x70] sm:$0xff]  ;;  %v1115_v30 = vld [vmem:[#allocation2 + $0x78] sm:$0xff]  ;;  %v1688_v7 = vsub.s32 1, %v11087_v21  ;;  %p8286_p6 = scmp.ne.s32.totalorder %s10435_s21, 1 }
 0x199   : > { %v9657_v22 = vld [vmem:[%s10542_s16 + $0x80] ss:$12 sps:$4 sm:$0xff]   ;;  %v9659_v61 = vld [vmem:[%s10542_s16 + $0xb0] ss:$12 sps:$4 sm:$0xff]   ;;  %15518 = vst [vmem:[#allocation8_spill] sm:$0xff] %v11093_v3  ;;  %s10446_s16 = smov 64  }
 0x19a   : > { %1285 = vmatpush1.bf16.msra.mxu0 %v9636_v6  ;;  %9451 = vmatpush1.bf16.msra.mxu1 %v9636_v6  ;;  %v1104_v34 = vld [vmem:[#allocation2 + $0x20] sm:$0xff]  ;;  %v1105_v11 = vld [vmem:[#allocation2 + $0x28] sm:$0xff]  ;;  %v1106_v62 = vld [vmem:[#allocation2 + $0x30] sm:$0xff] }
 0x19b   : > { %1286 = vmatprep.subr.bf16.mxu0 %v9637_v51  ;;  %9444 = vmatprep.subr.bf16.mxu1 %v9637_v51  ;;  %v1107_v35 = vld [vmem:[#allocation2 + $0x38] sm:$0xff]  ;;  %v1108_v52 = vld [vmem:[#allocation2 + $0x40] sm:$0xff]  ;;  %v1109_v63 = vld [vmem:[#allocation2 + $0x48] sm:$0xff] }
 0x19c   : > { %v1110_v23 = vld [vmem:[#allocation2 + $0x50] sm:$0xff]  ;;  %v1111_v1 = vld [vmem:[#allocation2 + $0x58] sm:$0xff]  ;;  %v8432_v33 = vld [vmem:[%s10562_s15] sm:$0xff]  }
 0x19d   : > { %v11090_v37 = vunpack.c.l.bf16 %v8432_v33 }
 0x19e   : > { %1287 = vmatpush1.bf16.msra.mxu0 %v9639_v15  ;;  %9452 = vmatpush1.bf16.msra.mxu1 %v9639_v15 }
 0x19f   : > { %1288 = vmatprep.subr.bf16.mxu0 %v9640_v17  ;;  %9445 = vmatprep.subr.bf16.mxu1 %v9640_v17  ;;  %15517 = vst [vmem:[#allocation7_spill] sm:$0xff] %v11090_v37  ;;  %v11098_v25 = vrot.slane %v11090_v37, %v11093_v3  ;;  %v11101_v48 = vrot.slane %v11090_v37, %v1688_v7 }
 0x1a2   : > { %1289 = vmatpush1.bf16.msra.mxu0 %v9642_v10  ;;  %9453 = vmatpush1.bf16.msra.mxu1 %v9642_v10 }
 0x1a3   : > { %1290 = vmatprep.subr.bf16.mxu0 %v9643_v19  ;;  %9446 = vmatprep.subr.bf16.mxu1 %v9643_v19 }
 0x1a6   : > { %1291 = vmatpush1.bf16.msra.mxu0 %v9645_v29  ;;  %9454 = vmatpush1.bf16.msra.mxu1 %v9645_v29 }
 0x1a7   : > { %1292 = vmatprep.subr.bf16.mxu0 %v9646_v54  ;;  %9447 = vmatprep.subr.bf16.mxu1 %v9646_v54 }
 0x1aa   : > { %1293 = vmatpush1.bf16.msra.mxu0 %v9648_v8  ;;  %9455 = vmatpush1.bf16.msra.mxu1 %v9648_v8 }
 0x1ab   : > { %1294 = vmatprep.subr.bf16.mxu0 %v9649_v55  ;;  %9448 = vmatprep.subr.bf16.mxu1 %v9649_v55 }
 0x1ae   : > { %1295 = vmatpush1.bf16.msra.mxu0 %v9651_v46  ;;  %9456 = vmatpush1.bf16.msra.mxu1 %v9651_v46 }
 0x1af   : > { %8993 = vmatprep.subr.bf16.mxu1 %v9652_v27 }
 0x1b1   : > { %1313 = vmatmul.mubr.bf16.vlgmr.msra.gmra.mrb[0].mxu0 %v1100_v56  ;;  %1433 = vmatmul.mubr.bf16.vlgmr.msra.gmra.mrb[0].mxu1 %v11058_v60 }
 0x1b2   : > { %1322 = vmatprep.mubr.bf16.mxu0 %v15380_v42  ;;  %8994 = vmatpush3.bf16.msra.mxu1 %v9652_v27 }
 0x1b3   : > { %8995 = vmatprep.subr.bf16.mxu1 %v9653_v31  ;;  %1442 = vmatprep.mubr.bf16.mxu1 %v15380_v42 }
 0x1b6   : > { %8996 = vmatpush3.bf16.msra.mxu1 %v9653_v31 }
 0x1b7   : > { %8997 = vmatprep.subr.bf16.mxu1 %v9654_v57 }
 0x1b9   : > { %1323 = vmatmul.mubr.bf16.gmra.mrb[4].mxu0 %v1101_v0  ;;  %1443 = vmatmul.mubr.bf16.gmra.mrb[4].mxu1 %v11065_v32 }
 0x1ba   : > { %1332 = vmatprep.mubr.bf16.mxu0 %v15380_v42  ;;  %8998 = vmatpush3.bf16.msra.mxu1 %v9654_v57 }
 0x1bb   : > { %8999 = vmatprep.subr.bf16.mxu1 %v9655_v20  ;;  %1452 = vmatprep.mubr.bf16.mxu1 %v15380_v42 }
 0x1be   : > { %9000 = vmatpush3.bf16.msra.mxu1 %v9655_v20 }
 0x1bf   : > { %9001 = vmatprep.subr.bf16.mxu1 %v9656_v18 }
 0x1c1   : > { %1333 = vmatmul.mubr.bf16.gmra.mrb[8].mxu0 %v1102_v9  ;;  %1453 = vmatmul.mubr.bf16.gmra.mrb[8].mxu1 %v1114_v45 }
 0x1c2   : > { %1342 = vmatprep.mubr.bf16.mxu0 %v15380_v42  ;;  %9002 = vmatpush3.bf16.msra.mxu1 %v9656_v18 }
 0x1c3   : > { %9003 = vmatprep.subr.bf16.mxu1 %v9657_v22  ;;  %1462 = vmatprep.mubr.bf16.mxu1 %v15380_v42 }
 0x1c6   : > { %9004 = vmatpush3.bf16.msra.mxu1 %v9657_v22 }
 0x1c7   : > { %9005 = vmatprep.subr.bf16.mxu1 %v9658_v47 }
 0x1c9   : > { %1343 = vmatmul.mubr.bf16.gmra.mrb[12].mxu0 %v1103_v13  ;;  %1463 = vmatmul.mubr.bf16.gmra.mrb[12].mxu1 %v1115_v30 }
 0x1ca   : > { %1352 = vmatprep.mubr.bf16.mxu0 %v15380_v42  ;;  %9006 = vmatpush3.bf16.msra.mxu1 %v9658_v47 }
 0x1cb   : > { %9007 = vmatprep.subr.bf16.mxu1 %v9659_v61  ;;  %9009 = vmatprep.mubr.bf16.mxu1 %v1100_v56 }
 0x1ce   : > { %9008 = vmatpush3.bf16.msra.mxu1 %v9659_v61 }
 0x1d1   : > { %1353 = vmatmul.mubr.bf16.gmra.mrb[16].mxu0 %v1104_v34  ;;  %9010 = vmatmul.mubr.bf16.vlgmr.msra.gmra.mrb[16].mxu1 %v1101_v0 }
 0x1d2   : > { %1362 = vmatprep.mubr.bf16.mxu0 %v15380_v42  ;;  %9013 = vmatprep.mubr.bf16.mxu1 %v1102_v9 }
 0x1d9   : > { %1363 = vmatmul.mubr.bf16.gmra.mrb[20].mxu0 %v1105_v11  ;;  %9014 = vmatmul.mubr.bf16.gmra.mrb[20].mxu1 %v1103_v13 }
 0x1da   : > { %1372 = vmatprep.mubr.bf16.mxu0 %v15380_v42  ;;  %9017 = vmatprep.mubr.bf16.mxu1 %v1104_v34 }
 0x1e1   : > { %1373 = vmatmul.mubr.bf16.gmra.mrb[24].mxu0 %v1106_v62  ;;  %9018 = vmatmul.mubr.bf16.gmra.mrb[24].mxu1 %v1105_v11 }
 0x1e2   : > { %1382 = vmatprep.mubr.bf16.mxu0 %v15380_v42  ;;  %9021 = vmatprep.mubr.bf16.mxu1 %v1106_v62 }
 0x1e9   : > { %1383 = vmatmul.mubr.bf16.gmra.mrb[28].mxu0 %v1107_v35  ;;  %9022 = vmatmul.mubr.bf16.gmra.mrb[28].mxu1 %v1107_v35 }
 0x1ea   : > { %9025 = vmatprep.mubr.bf16.mxu1 %v1108_v52  ;;  %1392 = vmatprep.mubr.bf16.mxu0 %v15380_v42 }
 0x1f1   : > { %9026 = vmatmul.mubr.bf16.gmra.mrb[32].mxu1 %v1109_v63  ;;  %1393 = vmatmul.mubr.bf16.gmra.mrb[32].mxu0 %v1108_v52 }
 0x1f2   : > { %9029 = vmatprep.mubr.bf16.mxu1 %v1110_v23  ;;  %1402 = vmatprep.mubr.bf16.mxu0 %v15380_v42 }
 0x1f9   : > { %9030 = vmatmul.mubr.bf16.gmra.mrb[36].mxu1 %v1111_v1  ;;  %1403 = vmatmul.mubr.bf16.gmra.mrb[36].mxu0 %v1109_v63 }
 0x1fa   : > { %9033 = vmatprep.mubr.bf16.mxu1 %v11058_v60  ;;  %1412 = vmatprep.mubr.bf16.mxu0 %v15380_v42 }
 0x201   : > { %9034 = vmatmul.mubr.bf16.gmra.mrb[40].mxu1 %v11065_v32  ;;  %1413 = vmatmul.mubr.bf16.gmra.mrb[40].mxu0 %v1110_v23 }
 0x202   : > { %9037 = vmatprep.mubr.bf16.mxu1 %v1114_v45  ;;  %1422 = vmatprep.mubr.bf16.mxu0 %v15380_v42 }
 0x209   : > { %9038 = vmatmul.mubr.bf16.gmra.mrb[44].mxu1 %v1115_v30  ;;  %1423 = vmatmul.mubr.bf16.gmra.mrb[44].mxu0 %v1111_v1 }
 0x284   : > { %v1314_v12 = vpop.f32.mrb[0].mxu0 }
 0x285   : > { %v1316_v38 = vpop.f32.mrb[1].mxu0  ;;  %v1638_v14 = vadd.f32 %v11098_v25, %v1314_v12 }
 0x286   : > { %v1318_v16 = vpop.f32.mrb[2].mxu0  ;;  %v1690_v4 = vadd.f32 %v11101_v48, %v1316_v38 }
 0x287   : > { %v1639_v36 = vadd.f32 %v11098_v25, %v1318_v16  ;;  %v1320_v40 = vpop.f32.mrb[3].mxu0 }
 0x288   : > { %v1691_v26 = vadd.f32 %v11101_v48, %v1320_v40 }
 0x289   : > { %v11107_v59 = vpack.c.bf16 %v1639_v36, %v1638_v14 }
 0x28a   : > { %v1722_v5 = vpack.c.bf16 %v1691_v26, %v1690_v4 }
 0x28b   : > { %9057 = vmatprep.mubr.msk.bf16.mxu1 %vm1813_vm0, %v11107_v59 }
 0x28c   : > { %2248 = vrot.lane.b32.xlu0 %v1722_v5, %s10446_s16  ;;  %v1324_v49 = vpop.f32.mrb[4].mxu0  ;;  %9505 = vmatprep.subr.msk.bf16.mxu1 %vm1813_vm0, %v1722_v5  ;;  %v1839_v53 = vsel %vm1813_vm0, %v1722_v5, 0 }
 0x28d   : > { %v1326_v39 = vpop.f32.mrb[5].mxu0  ;;  %9042 = vmatpush3.bf16.xpose.msra.mxu1 %v1839_v53  ;;  %v1640_v24 = vadd.f32 %v11098_v25, %v1324_v49 }
 0x28e   : > { %v1328_v43 = vpop.f32.mrb[6].mxu0  ;;  %v1692_v44 = vadd.f32 %v11101_v48, %v1326_v39 }
 0x28f   : > { %v1641_v41 = vadd.f32 %v11098_v25, %v1328_v43  ;;  %v1330_v50 = vpop.f32.mrb[7].mxu0 }
 0x290   : > { %v1693_v58 = vadd.f32 %v11101_v48, %v1330_v50 }
 0x291   : > { %v11118_v28 = vpack.c.bf16 %v1641_v41, %v1640_v24 }
 0x292   : > { %v1723_v6 = vpack.c.bf16 %v1693_v58, %v1692_v44 }
 0x294   : > { %2250 = vrot.lane.b32.xlu0 %v1723_v6, %s10446_s16  ;;  %v1334_v51 = vpop.f32.mrb[8].mxu0  ;;  %9506 = vmatprep.subr.msk.bf16.mxu1 %vm1813_vm0, %v1723_v6  ;;  %v1842_v15 = vsel %vm1813_vm0, %v1723_v6, 0 }
 0x295   : > { %v1336_v17 = vpop.f32.mrb[9].mxu0  ;;  %9044 = vmatpush3.bf16.xpose.msra.mxu1 %v1842_v15  ;;  %v1642_v19 = vadd.f32 %v11098_v25, %v1334_v51 }
 0x296   : > { %v1338_v10 = vpop.f32.mrb[10].mxu0  ;;  %v1694_v8 = vadd.f32 %v11101_v48, %v1336_v17 }
 0x297   : > { %v1643_v29 = vadd.f32 %v11098_v25, %v1338_v10  ;;  %v1340_v54 = vpop.f32.mrb[11].mxu0 }
 0x298   : > { %v1695_v55 = vadd.f32 %v11101_v48, %v1340_v54 }
 0x299   : > { %v11127_v46 = vpack.c.bf16 %v1643_v29, %v1642_v19 }
 0x29a   : > { %v1724_v27 = vpack.c.bf16 %v1695_v55, %v1694_v8 }
 0x29c   : > { %2252 = vrot.lane.b32.xlu1 %v1724_v27, %s10446_s16  ;;  %v1344_v56 = vpop.f32.mrb[12].mxu0  ;;  %9507 = vmatprep.subr.msk.bf16.mxu1 %vm1813_vm0, %v1724_v27  ;;  %v1845_v60 = vsel %vm1813_vm0, %v1724_v27, 0 }
 0x29d   : > { %v1346_v31 = vpop.f32.mrb[13].mxu0  ;;  %9046 = vmatpush3.bf16.xpose.msra.mxu1 %v1845_v60  ;;  %v1644_v0 = vadd.f32 %v11098_v25, %v1344_v56 }
 0x29e   : > { %v1348_v57 = vpop.f32.mrb[14].mxu0  ;;  %v1696_v18 = vadd.f32 %v11101_v48, %v1346_v31 }
 0x29f   : > { %v1645_v32 = vadd.f32 %v11098_v25, %v1348_v57  ;;  %v1350_v20 = vpop.f32.mrb[15].mxu0 }
 0x2a0   : > { %v1697_v9 = vadd.f32 %v11101_v48, %v1350_v20 }
 0x2a1   : > { %v11136_v45 = vpack.c.bf16 %v1645_v32, %v1644_v0 }
 0x2a2   : > { %v1725_v22 = vpack.c.bf16 %v1697_v9, %v1696_v18 }
 0x2a4   : > { %2254 = vrot.lane.b32.xlu1 %v1725_v22, %s10446_s16  ;;  %v1354_v47 = vpop.f32.mrb[16].mxu0  ;;  %9508 = vmatprep.subr.msk.bf16.mxu1 %vm1813_vm0, %v1725_v22  ;;  %v1848_v13 = vsel %vm1813_vm0, %v1725_v22, 0 }
 0x2a5   : > { %v1356_v30 = vpop.f32.mrb[17].mxu0  ;;  %9048 = vmatpush3.bf16.xpose.msra.mxu1 %v1848_v13  ;;  %v1646_v34 = vadd.f32 %v11098_v25, %v1354_v47 }
 0x2a6   : > { %v1358_v61 = vpop.f32.mrb[18].mxu0  ;;  %v1698_v35 = vadd.f32 %v11101_v48, %v1356_v30 }
 0x2a7   : > { %v1647_v11 = vadd.f32 %v11098_v25, %v1358_v61  ;;  %v1360_v62 = vpop.f32.mrb[19].mxu0 }
 0x2a8   : > { %v1699_v52 = vadd.f32 %v11101_v48, %v1360_v62 }
 0x2a9   : > { %v1674_v63 = vpack.c.bf16 %v1647_v11, %v1646_v34 }
 0x2aa   : > { %v1726_v23 = vpack.c.bf16 %v1699_v52, %v1698_v35 }
 0x2ac   : > { %2256 = vrot.lane.b32.xlu0 %v1726_v23, %s10446_s16  ;;  %v1364_v1 = vpop.f32.mrb[20].mxu0  ;;  %9509 = vmatprep.subr.msk.bf16.mxu1 %vm1813_vm0, %v1726_v23  ;;  %v1851_v2 = vsel %vm1813_vm0, %v1726_v23, 0 }
 0x2ad   : > { %v1366_v33 = vpop.f32.mrb[21].mxu0  ;;  %9050 = vmatpush3.bf16.xpose.msra.mxu1 %v1851_v2  ;;  %v1648_v12 = vadd.f32 %v11098_v25, %v1364_v1  ;;  %v15379_v2 = vsub.s32 2, %v11087_v21 }
 0x2ae   : > { %v1368_v7 = vpop.f32.mrb[22].mxu0  ;;  %v1700_v14 = vadd.f32 %v11101_v48, %v1366_v33 }
 0x2af   : > { %v1649_v38 = vadd.f32 %v11098_v25, %v1368_v7  ;;  %v1370_v16 = vpop.f32.mrb[23].mxu0 }
 0x2b0   : > { %v1701_v36 = vadd.f32 %v11101_v48, %v1370_v16 }
 0x2b1   : > { %v1675_v40 = vpack.c.bf16 %v1649_v38, %v1648_v12 }
 0x2b2   : > { %v1727_v4 = vpack.c.bf16 %v1701_v36, %v1700_v14 }
 0x2b4   : > { %2258 = vrot.lane.b32.xlu1 %v1727_v4, %s10446_s16  ;;  %v1374_v26 = vpop.f32.mrb[24].mxu0  ;;  %9510 = vmatprep.subr.msk.bf16.mxu1 %vm1813_vm0, %v1727_v4  ;;  %v1854_v5 = vsel %vm1813_vm0, %v1727_v4, 0 }
 0x2b5   : > { %v1376_v49 = vpop.f32.mrb[25].mxu0  ;;  %9052 = vmatpush3.bf16.xpose.msra.mxu1 %v1854_v5  ;;  %v1650_v39 = vadd.f32 %v11098_v25, %v1374_v26  ;;  %v11221_v5 = vrot.slane %v11090_v37, %v15379_v2 }
 0x2b6   : > { %v1378_v53 = vpop.f32.mrb[26].mxu0  ;;  %v1702_v41 = vadd.f32 %v11101_v48, %v1376_v49 }
 0x2b7   : > { %v1651_v43 = vadd.f32 %v11098_v25, %v1378_v53  ;;  %v1380_v24 = vpop.f32.mrb[27].mxu0 }
 0x2b8   : > { %v1703_v50 = vadd.f32 %v11101_v48, %v1380_v24 }
 0x2b9   : > { %v1676_v44 = vpack.c.bf16 %v1651_v43, %v1650_v39 }
 0x2ba   : > { %v1728_v58 = vpack.c.bf16 %v1703_v50, %v1702_v41 }
 0x2bc   : > { %2260 = vrot.lane.b32.xlu0 %v1728_v58, %s10446_s16  ;;  %v1384_v6 = vpop.f32.mrb[28].mxu0  ;;  %9511 = vmatprep.subr.msk.bf16.mxu1 %vm1813_vm0, %v1728_v58  ;;  %v1857_v51 = vsel %vm1813_vm0, %v1728_v58, 0 }
 0x2bd   : > { %v1386_v15 = vpop.f32.mrb[29].mxu0  ;;  %9054 = vmatpush3.bf16.xpose.msra.mxu1 %v1857_v51  ;;  %v1652_v10 = vadd.f32 %v11098_v25, %v1384_v6 }
 0x2be   : > { %v1388_v17 = vpop.f32.mrb[30].mxu0  ;;  %v1704_v54 = vadd.f32 %v11101_v48, %v1386_v15 }
 0x2bf   : > { %v1653_v19 = vadd.f32 %v11098_v25, %v1388_v17  ;;  %v1390_v29 = vpop.f32.mrb[31].mxu0 }
 0x2c0   : > { %v1705_v8 = vadd.f32 %v11101_v48, %v1390_v29  ;;  %2224 = vrot.lane.b32.xlu0 %v11107_v59, %s10446_s16  ;;  %v1434_v59 = vpop.f32.mrb[0].mxu1 }
 0x2c1   : > { %v1677_v55 = vpack.c.bf16 %v1653_v19, %v1652_v10  ;;  %v1662_v60 = vadd.f32 %v11098_v25, %v1434_v59  ;;  %v1436_v31 = vpop.f32.mrb[1].mxu1 }
 0x2c2   : > { %v1729_v27 = vpack.c.bf16 %v1705_v8, %v1704_v54  ;;  %v1714_v57 = vadd.f32 %v11101_v48, %v1436_v31  ;;  %v1438_v0 = vpop.f32.mrb[2].mxu1 }
 0x2c3   : > { %v1440_v32 = vpop.f32.mrb[3].mxu1 }
 0x2c4   : > { %2228 = vrot.lane.b32.xlu0 %v11127_v46, %s10446_s16  ;;  %2262 = vrot.lane.b32.xlu1 %v1729_v27, %s10446_s16  ;;  %v1860_v56 = vsel %vm1813_vm0, %v1729_v27, 0  ;;  %v1444_v20 = vpop.f32.mrb[4].mxu1 }
 0x2c5   : > { %9512 = vmatprep.subr.msk.bf16.mxu1 %vm1813_vm0, %v1729_v27  ;;  %v1664_v9 = vadd.f32 %v11098_v25, %v1444_v20 }
 0x2c6   : > { %9056 = vmatpush3.bf16.xpose.msra.mxu1 %v1860_v56 }
 0x2c8   : > { %2232 = vrot.lane.b32.xlu0 %v1674_v63, %s10446_s16  ;;  %2226 = vrot.lane.b32.xlu1 %v11118_v28, %s10446_s16 }
 0x2cc   : > { %2230 = vrot.lane.b32.xlu1 %v11136_v45, %s10446_s16  ;;  %2236 = vrot.lane.b32.xlu0 %v1676_v44, %s10446_s16 }
 0x2cd   : > { %9058 = vmatmul.mubr.msk.bf16.vlgmr.msra.gmra.mrb[48].mxu1 %vm1813_vm0, %v11118_v28  ;;  %v1663_v28 = vadd.f32 %v11098_v25, %v1438_v0 }
 0x2ce   : > { %9061 = vmatprep.mubr.msk.bf16.mxu1 %vm1813_vm0, %v11127_v46  ;;  %v1715_v46 = vadd.f32 %v11101_v48, %v1440_v32 }
 0x2cf   : > { %v11192_v18 = vpack.c.bf16 %v1663_v28, %v1662_v60 }
 0x2d0   : > { %2234 = vrot.lane.b32.xlu1 %v1675_v40, %s10446_s16  ;;  %v11196_v22 = vpack.c.bf16 %v1715_v46, %v1714_v57 }
 0x2d1   : > { %15519 = vst [vmem:[#allocation9_spill] sm:$0xff] %v11192_v18 }
 0x2d4   : > { %2238 = vrot.lane.b32.xlu1 %v1677_v55, %s10446_s16 }
 0x2d5   : > { %9062 = vmatmul.mubr.msk.bf16.gmra.mrb[52].mxu1 %vm1813_vm0, %v11136_v45  ;;  %v1446_v45 = vpop.f32.mrb[5].mxu1 }
 0x2d6   : > { %9065 = vmatprep.mubr.msk.bf16.mxu1 %vm1813_vm0, %v1674_v63  ;;  %v1716_v47 = vadd.f32 %v11101_v48, %v1446_v45  ;;  %v1448_v13 = vpop.f32.mrb[6].mxu1 }
 0x2d7   : > { %v1665_v30 = vadd.f32 %v11098_v25, %v1448_v13  ;;  %v1450_v61 = vpop.f32.mrb[7].mxu1 }
 0x2d8   : > { %v1717_v34 = vadd.f32 %v11101_v48, %v1450_v61  ;;  %v1454_v11 = vpop.f32.mrb[8].mxu1 }
 0x2d9   : > { %v11202_v62 = vpack.c.bf16 %v1665_v30, %v1664_v9  ;;  %v1666_v35 = vadd.f32 %v11098_v25, %v1454_v11  ;;  %v1456_v52 = vpop.f32.mrb[9].mxu1 }
 0x2da   : > { %v11205_v63 = vpack.c.bf16 %v1717_v34, %v1716_v47  ;;  %v1718_v23 = vadd.f32 %v11101_v48, %v1456_v52  ;;  %v1458_v1 = vpop.f32.mrb[10].mxu1 }
 0x2db   : > { %15520 = vst [vmem:[#allocation10_spill] sm:$0xff] %v11202_v62  ;;  %v1667_v33 = vadd.f32 %v11098_v25, %v1458_v1  ;;  %v1460_v7 = vpop.f32.mrb[11].mxu1 }
 0x2dc   : > { %15521 = vst [vmem:[#allocation11_spill] sm:$0xff] %v11205_v63  ;;  %v1719_v12 = vadd.f32 %v11101_v48, %v1460_v7  ;;  %v1464_v38 = vpop.f32.mrb[12].mxu1 }
 0x2dd   : > { %9066 = vmatmul.mubr.msk.bf16.gmra.mrb[56].mxu1 %vm1813_vm0, %v1675_v40  ;;  %v11211_v16 = vpack.c.bf16 %v1667_v33, %v1666_v35  ;;  %v1668_v14 = vadd.f32 %v11098_v25, %v1464_v38  ;;  %v1466_v36 = vpop.f32.mrb[13].mxu1 }
 0x2de   : > { %9069 = vmatprep.mubr.msk.bf16.mxu1 %vm1813_vm0, %v1676_v44  ;;  %v11215_v40 = vpack.c.bf16 %v1719_v12, %v1718_v23  ;;  %v1720_v4 = vadd.f32 %v11101_v48, %v1466_v36  ;;  %v1468_v26 = vpop.f32.mrb[14].mxu1 }
 0x2df   : > { %15522 = vst [vmem:[#allocation12_spill] sm:$0xff] %v11211_v16  ;;  %v1669_v49 = vadd.f32 %v11098_v25, %v1468_v26  ;;  %v1470_v53 = vpop.f32.mrb[15].mxu1 }
 0x2e0   : > { %v1721_v39 = vadd.f32 %v11101_v48, %v1470_v53  ;;  %v9011_v43 = vpop.f32.mrb[16].mxu1 }
 0x2e1   : > { %v11225_v24 = vpack.c.bf16 %v1669_v49, %v1668_v14  ;;  %v1744_v41 = vadd.f32 %v9011_v43, %v11221_v5  ;;  %v1507_v50 = vpop.f32.mrb[17].mxu1 }
 0x2e2   : > { %v11228_v44 = vpack.c.bf16 %v1721_v39, %v1720_v4  ;;  %v1742_v58 = vadd.f32 %v11221_v5, %v1507_v50  ;;  %v9012_v6 = vpop.f32.mrb[18].mxu1 }
 0x2e3   : > { %15523 = vst [vmem:[#allocation13_spill] sm:$0xff] %v11225_v24  ;;  %v1745_v51 = vadd.f32 %v9012_v6, %v11221_v5  ;;  %v1510_v15 = vpop.f32.mrb[19].mxu1 }
 0x2e4   : > { %15524 = vst [vmem:[#allocation14_spill] sm:$0xff] %v11228_v44  ;;  %v1743_v17 = vadd.f32 %v11221_v5, %v1510_v15  ;;  %v9015_v10 = vpop.f32.mrb[20].mxu1 }
 0x2e5   : > { %9070 = vmatmul.mubr.msk.bf16.gmra.mrb[60].mxu1 %vm1813_vm0, %v1677_v55  ;;  %v1775_v19 = vpack.c.bf16 %v1745_v51, %v1744_v41  ;;  %v1748_v29 = vadd.f32 %v9015_v10, %v11221_v5  ;;  %v1523_v54 = vpop.f32.mrb[21].mxu1 }
 0x2e6   : > { %v1774_v8 = vpack.c.bf16 %v1743_v17, %v1742_v58  ;;  %v1746_v55 = vadd.f32 %v11221_v5, %v1523_v54  ;;  %v9016_v27 = vpop.f32.mrb[22].mxu1 }
 0x2e7   : > { %v1749_v56 = vadd.f32 %v9016_v27, %v11221_v5  ;;  %v1526_v59 = vpop.f32.mrb[23].mxu1  ;;  %2571 = vrot.lane.b32.xlu0 %v1775_v19, %s10446_s16 }
 0x2e8   : > { %v1747_v60 = vadd.f32 %v11221_v5, %v1526_v59  ;;  %2569 = vrot.lane.b32.xlu1 %v1774_v8, %s10446_s16  ;;  %v9019_v31 = vpop.f32.mrb[24].mxu1  ;;  %9073 = vmatprep.subr.bf16.mxu1 %v1774_v8 }
 0x2e9   : > { %v11239_v57 = vpack.c.bf16 %v1749_v56, %v1748_v29  ;;  %v1752_v0 = vadd.f32 %v9019_v31, %v11221_v5  ;;  %v1539_v28 = vpop.f32.mrb[25].mxu1  ;;  %9074 = vmatpush3.bf16.msra.mxu1 %v1774_v8 }
 0x2ea   : > { %v1776_v32 = vpack.c.bf16 %v1747_v60, %v1746_v55  ;;  %v1750_v46 = vadd.f32 %v11221_v5, %v1539_v28  ;;  %v9020_v20 = vpop.f32.mrb[26].mxu1  ;;  %9075 = vmatprep.subr.bf16.mxu1 %v1775_v19 }
 0x2eb   : > { %v1753_v9 = vadd.f32 %v9020_v20, %v11221_v5  ;;  %v1542_v45 = vpop.f32.mrb[27].mxu1 }
 0x2ec   : > { %2573 = vrot.lane.b32.xlu1 %v1776_v32, %s10446_s16  ;;  %v1751_v47 = vadd.f32 %v11221_v5, %v1542_v45  ;;  %v9023_v13 = vpop.f32.mrb[28].mxu1 }
 0x2ed   : > { %v11246_v30 = vpack.c.bf16 %v1753_v9, %v1752_v0  ;;  %v1756_v61 = vadd.f32 %v9023_v13, %v11221_v5  ;;  %v1555_v34 = vpop.f32.mrb[29].mxu1  ;;  %9076 = vmatpush3.bf16.msra.mxu1 %v1775_v19 }
 0x2ee   : > { %v11249_v11 = vpack.c.bf16 %v1751_v47, %v1750_v46  ;;  %v1754_v35 = vadd.f32 %v11221_v5, %v1555_v34  ;;  %v9024_v52 = vpop.f32.mrb[30].mxu1  ;;  %9077 = vmatprep.subr.bf16.mxu1 %v1776_v32 }
 0x2ef   : > { %v1757_v23 = vadd.f32 %v9024_v52, %v11221_v5  ;;  %v1558_v1 = vpop.f32.mrb[31].mxu1 }
 0x2f0   : > { %v1755_v33 = vadd.f32 %v11221_v5, %v1558_v1  ;;  %v9027_v7 = vpop.f32.mrb[32].mxu1 }
 0x2f1   : > { %v11254_v12 = vpack.c.bf16 %v1757_v23, %v1756_v61  ;;  %v1760_v38 = vadd.f32 %v9027_v7, %v11221_v5  ;;  %v1571_v14 = vpop.f32.mrb[33].mxu1  ;;  %9078 = vmatpush3.bf16.msra.mxu1 %v1776_v32 }
 0x2f2   : > { %v11257_v36 = vpack.c.bf16 %v1755_v33, %v1754_v35  ;;  %v1758_v4 = vadd.f32 %v11221_v5, %v1571_v14  ;;  %v9028_v26 = vpop.f32.mrb[34].mxu1  ;;  %9079 = vmatprep.subr.bf16.mxu1 %v11239_v57 }
 0x2f3   : > { %v1761_v49 = vadd.f32 %v9028_v26, %v11221_v5  ;;  %v1574_v53 = vpop.f32.mrb[35].mxu1 }
 0x2f4   : > { %v1759_v39 = vadd.f32 %v11221_v5, %v1574_v53  ;;  %v9031_v43 = vpop.f32.mrb[36].mxu1 }
 0x2f5   : > { %v11263_v41 = vpack.c.bf16 %v1761_v49, %v1760_v38  ;;  %v1764_v50 = vadd.f32 %v9031_v43, %v11221_v5  ;;  %v1587_v58 = vpop.f32.mrb[37].mxu1  ;;  %9080 = vmatpush3.bf16.msra.mxu1 %v11239_v57 }
 0x2f6   : > { %v11267_v6 = vpack.c.bf16 %v1759_v39, %v1758_v4  ;;  %v1762_v51 = vadd.f32 %v11221_v5, %v1587_v58  ;;  %v9032_v15 = vpop.f32.mrb[38].mxu1  ;;  %9081 = vmatprep.subr.bf16.mxu1 %v11249_v11 }
 0x2f7   : > { %15525 = vst [vmem:[#allocation15_spill] sm:$0xff] %v11263_v41  ;;  %v1765_v10 = vadd.f32 %v9032_v15, %v11221_v5  ;;  %v1590_v19 = vpop.f32.mrb[39].mxu1 }
 0x2f8   : > { %15526 = vst [vmem:[#allocation16_spill] sm:$0xff] %v11267_v6  ;;  %v1763_v54 = vadd.f32 %v11221_v5, %v1590_v19  ;;  %v9035_v8 = vpop.f32.mrb[40].mxu1  ;;  %v1394_v19 = vpop.f32.mrb[32].mxu0 }
 0x2f9   : > { %v11275_v55 = vpack.c.bf16 %v1765_v10, %v1764_v50  ;;  %v1768_v27 = vadd.f32 %v9035_v8, %v11221_v5  ;;  %v1603_v56 = vpop.f32.mrb[41].mxu1  ;;  %9082 = vmatpush3.bf16.msra.mxu1 %v11249_v11 }
 0x2fa   : > { %v11279_v59 = vpack.c.bf16 %v1763_v54, %v1762_v51  ;;  %v1766_v60 = vadd.f32 %v11221_v5, %v1603_v56  ;;  %v9036_v31 = vpop.f32.mrb[42].mxu1  ;;  %9083 = vmatprep.subr.bf16.mxu1 %v11246_v30  ;;  %v1396_v54 = vpop.f32.mrb[33].mxu0 }
 0x2fb   : > { %15527 = vst [vmem:[#allocation17_spill] sm:$0xff] %v11275_v55  ;;  %v1769_v0 = vadd.f32 %v9036_v31, %v11221_v5  ;;  %v1606_v28 = vpop.f32.mrb[43].mxu1  ;;  %v1706_v8 = vadd.f32 %v11101_v48, %v1396_v54 }
 0x2fc   : > { %15528 = vst [vmem:[#allocation18_spill] sm:$0xff] %v11279_v59  ;;  %v1767_v32 = vadd.f32 %v11221_v5, %v1606_v28  ;;  %v9039_v46 = vpop.f32.mrb[44].mxu1 }
 0x2fd   : > { %v11285_v20 = vpack.c.bf16 %v1769_v0, %v1768_v27  ;;  %v1772_v9 = vadd.f32 %v9039_v46, %v11221_v5  ;;  %v1619_v45 = vpop.f32.mrb[45].mxu1  ;;  %9084 = vmatpush3.bf16.msra.mxu1 %v11246_v30  ;;  %v1398_v27 = vpop.f32.mrb[34].mxu0 }
 0x2fe   : > { %v2249_v17 = vpop.permute.xlu0 %2248  ;;  %v11289_v47 = vpack.c.bf16 %v1767_v32, %v1766_v60  ;;  %v1770_v13 = vadd.f32 %v11221_v5, %v1619_v45  ;;  %v9040_v61 = vpop.f32.mrb[46].mxu1  ;;  %9085 = vmatprep.subr.bf16.mxu1 %v11257_v36  ;;  %v1655_v60 = vadd.f32 %v11098_v25, %v1398_v27 }
 0x2ff   : > { %9513 = vmatprep.subr.msk.bf16.mxu0 %vm1813_vm0, %v2249_v17  ;;  %v2289_v29 = vsel %vm1813_vm0, %v2249_v17, 0  ;;  %15529 = vst [vmem:[#allocation19_spill] sm:$0xff] %v11285_v20  ;;  %v1773_v35 = vadd.f32 %v9040_v61, %v11221_v5  ;;  %v1622_v52 = vpop.f32.mrb[47].mxu1  ;;  %v1400_v31 = vpop.f32.mrb[35].mxu0 }
 0x300   : > { %9106 = vmatpush3.bf16.xpose.msra.mxu0 %v2289_v29  ;;  %15530 = vst [vmem:[#allocation20_spill] sm:$0xff] %v11289_v47  ;;  %v1771_v1 = vadd.f32 %v11221_v5, %v1622_v52  ;;  %v1654_v29 = vadd.f32 %v11098_v25, %v1394_v19  ;;  %v1707_v28 = vadd.f32 %v11101_v48, %v1400_v31  ;;  %v1404_v32 = vpop.f32.mrb[36].mxu0 }
 0x301   : > { %v11297_v33 = vpack.c.bf16 %v1773_v35, %v1772_v9  ;;  %9086 = vmatpush3.bf16.msra.mxu1 %v11257_v36  ;;  %v1656_v9 = vadd.f32 %v11098_v25, %v1404_v32  ;;  %v1406_v45 = vpop.f32.mrb[37].mxu0 }
 0x302   : > { %v11300_v7 = vpack.c.bf16 %v1771_v1, %v1770_v13  ;;  %9087 = vmatprep.subr.bf16.mxu1 %v11254_v12  ;;  %v11325_v46 = vpack.c.bf16 %v1655_v60, %v1654_v29  ;;  %v11328_v13 = vpack.c.bf16 %v1707_v28, %v1706_v8  ;;  %v1708_v61 = vadd.f32 %v11101_v48, %v1406_v45  ;;  %v1790_v28 = vld [vmem:[%s15365_s1] sm:$0x1] }
 0x303   : > { %15531 = vst [vmem:[#allocation21_spill] sm:$0xff] %v11297_v33  ;;  %v1808_v32 = vunpack.c.l.bf16 %v1790_v28 }
 0x304   : > { %15532 = vst [vmem:[#allocation22_spill] sm:$0xff] %v11300_v7  ;;  %15533 = vst [vmem:[#allocation23_spill] sm:$0xff] %v11325_v46 }
 0x305   : > { %9088 = vmatpush3.bf16.msra.mxu1 %v11254_v12 }
 0x306   : > { %v2251_v34 = vpop.permute.xlu0 %2250 }
 0x307   : > { %9514 = vmatprep.subr.msk.bf16.mxu0 %vm1813_vm0, %v2251_v34  ;;  %v2292_v23 = vsel %vm1813_vm0, %v2251_v34, 0  ;;  %v1408_v34 = vpop.f32.mrb[38].mxu0 }
 0x308   : > { %9108 = vmatpush3.bf16.xpose.msra.mxu0 %v2292_v23  ;;  %v1657_v35 = vadd.f32 %v11098_v25, %v1408_v34  ;;  %v1410_v52 = vpop.f32.mrb[39].mxu0 }
 0x309   : > { %v1709_v23 = vadd.f32 %v11101_v48, %v1410_v52  ;;  %v1414_v1 = vpop.f32.mrb[40].mxu0 }
 0x30e   : > { %v2253_v38 = vpop.permute.xlu1 %2252 }
 0x30f   : > { %9515 = vmatprep.subr.msk.bf16.mxu0 %vm1813_vm0, %v2253_v38  ;;  %v2295_v14 = vsel %vm1813_vm0, %v2253_v38, 0  ;;  %v11333_v38 = vpack.c.bf16 %v1657_v35, %v1656_v9  ;;  %v11360_v9 = vrot.slane %v1808_v32, %v11093_v3 }
 0x310   : > { %9110 = vmatpush3.bf16.xpose.msra.mxu0 %v2295_v14  ;;  %v1658_v14 = vadd.f32 %v11098_v25, %v1414_v1 }
 0x311   : > { %15534 = vst [vmem:[#allocation24_spill] sm:$0xff] %v11333_v38 }
 0x316   : > { %v2255_v4 = vpop.permute.xlu1 %2254 }
 0x317   : > { %9516 = vmatprep.subr.msk.bf16.mxu0 %vm1813_vm0, %v2255_v4  ;;  %v2298_v5 = vsel %vm1813_vm0, %v2255_v4, 0  ;;  %v1416_v4 = vpop.f32.mrb[41].mxu0 }
 0x318   : > { %9112 = vmatpush3.bf16.xpose.msra.mxu0 %v2298_v5  ;;  %v11336_v5 = vpack.c.bf16 %v1709_v23, %v1708_v61 }
 0x31e   : > { %v2257_v26 = vpop.permute.xlu0 %2256 }
 0x31f   : > { %9517 = vmatprep.subr.msk.bf16.mxu0 %vm1813_vm0, %v2257_v26  ;;  %v2301_v49 = vsel %vm1813_vm0, %v2257_v26, 0  ;;  %v1710_v26 = vadd.f32 %v11101_v48, %v1416_v4 }
 0x320   : > { %9114 = vmatpush3.bf16.xpose.msra.mxu0 %v2301_v49  ;;  %v1418_v49 = vpop.f32.mrb[42].mxu0 }
 0x326   : > { %v2259_v53 = vpop.permute.xlu1 %2258 }
 0x327   : > { %9518 = vmatprep.subr.msk.bf16.mxu0 %vm1813_vm0, %v2259_v53  ;;  %v2304_v39 = vsel %vm1813_vm0, %v2259_v53, 0 }
 0x328   : > { %9116 = vmatpush3.bf16.xpose.msra.mxu0 %v2304_v39  ;;  %v1659_v39 = vadd.f32 %v11098_v25, %v1418_v49 }
 0x32e   : > { %v2261_v43 = vpop.permute.xlu0 %2260 }
 0x32f   : > { %9519 = vmatprep.subr.msk.bf16.mxu0 %vm1813_vm0, %v2261_v43  ;;  %v2307_v50 = vsel %vm1813_vm0, %v2261_v43, 0  ;;  %v1420_v43 = vpop.f32.mrb[43].mxu0 }
 0x330   : > { %9118 = vmatpush3.bf16.xpose.msra.mxu0 %v2307_v50 }
 0x332   : > { %v2225_v58 = vpop.permute.xlu0 %2224 }
 0x333   : > { %9121 = vmatprep.mubr.msk.bf16.mxu0 %vm1813_vm0, %v2225_v58  ;;  %v1711_v58 = vadd.f32 %v11101_v48, %v1420_v43 }
 0x335   : > { %v11346_v19 = vpack.c.bf16 %v1711_v58, %v1710_v26 }
 0x336   : > { %v2263_v51 = vpop.permute.xlu1 %2262  ;;  %v2229_v10 = vpop.permute.xlu0 %2228 }
 0x337   : > { %9520 = vmatprep.subr.msk.bf16.mxu0 %vm1813_vm0, %v2263_v51  ;;  %v2310_v15 = vsel %vm1813_vm0, %v2263_v51, 0  ;;  %v1424_v51 = vpop.f32.mrb[44].mxu0 }
 0x338   : > { %9120 = vmatpush3.bf16.xpose.msra.mxu0 %v2310_v15  ;;  %v11343_v15 = vpack.c.bf16 %v1659_v39, %v1658_v14 }
 0x33a   : > { %v2227_v17 = vpop.permute.xlu1 %2226  ;;  %v2233_v0 = vpop.permute.xlu0 %2232  ;;  %15535 = vst [vmem:[#allocation25_spill] sm:$0xff] %v11343_v15 }
 0x33e   : > { %v2231_v56 = vpop.permute.xlu1 %2230  ;;  %v2237_v50 = vpop.permute.xlu0 %2236 }
 0x33f   : > { %9122 = vmatmul.mubr.msk.bf16.vlgmr.msra.gmra.mrb[48].mxu0 %vm1813_vm0, %v2227_v17  ;;  %v1660_v17 = vadd.f32 %v11098_v25, %v1424_v51 }
 0x340   : > { %9125 = vmatprep.mubr.msk.bf16.mxu0 %vm1813_vm0, %v2229_v10  ;;  %v1426_v10 = vpop.f32.mrb[45].mxu0 }
 0x341   : > { %v1712_v29 = vadd.f32 %v11101_v48, %v1426_v10  ;;  %v1428_v54 = vpop.f32.mrb[46].mxu0 }
 0x342   : > { %v2235_v53 = vpop.permute.xlu1 %2234  ;;  %v1661_v8 = vadd.f32 %v11098_v25, %v1428_v54  ;;  %v1430_v27 = vpop.f32.mrb[47].mxu0 }
 0x344   : > { %v11351_v60 = vpack.c.bf16 %v1661_v8, %v1660_v17 }
 0x346   : > { %15536 = vst [vmem:[#allocation26_spill] sm:$0xff] %v11351_v60 }
 0x347   : > { %9126 = vmatmul.mubr.msk.bf16.gmra.mrb[52].mxu0 %vm1813_vm0, %v2231_v56  ;;  %v1713_v56 = vadd.f32 %v11101_v48, %v1430_v27 }
 0x348   : > { %9129 = vmatprep.mubr.msk.bf16.mxu0 %vm1813_vm0, %v2233_v0  ;;  %v2239_v0 = vpop.permute.xlu1 %2238 }
 0x349   : > { %v11353_v31 = vpack.c.bf16 %v1713_v56, %v1712_v29 }
 0x34f   : > { %9130 = vmatmul.mubr.msk.bf16.gmra.mrb[56].mxu0 %vm1813_vm0, %v2235_v53 }
 0x350   : > { %9133 = vmatprep.mubr.msk.bf16.mxu0 %vm1813_vm0, %v2237_v50 }
 0x357   : > { %9134 = vmatmul.mubr.msk.bf16.gmra.mrb[60].mxu0 %vm1813_vm0, %v2239_v0 }
 0x359   : > { %v11473_v33 = vpop.permute.xlu0 %2571 }
 0x35a   : > { %v11365_v34 = vpop.permute.xlu1 %2569 }
 0x35b   : > { %9137 = vmatprep.subr.bf16.mxu1 %v11365_v34 }
 0x35e   : > { %v11478_v55 = vpop.permute.xlu1 %2573 }
 0x3a0   : > { %v9059_v45 = vpop.f32.mrb[48].mxu1 }
 0x3a1   : > { %v11363_v25 = vadd.f32 %v9059_v45, %v11360_v9  ;;  %v1896_v48 = vpop.f32.mrb[49].mxu1 }
 0x3a2   : > { %v9060_v61 = vpop.f32.mrb[50].mxu1  ;;  %v11373_v23 = vadd.f32 %v1896_v48, %v11360_v9 }
 0x3a3   : > { %1963 = vmax.xlane.f32.xlu0 %v11363_v25  ;;  %v1899_v35 = vpop.f32.mrb[51].mxu1  ;;  %v11378_v14 = vadd.f32 %v9060_v61, %v11360_v9 }
 0x3a4   : > { %v11370_v52 = vadd.f32 %v1899_v35, %v11360_v9 }
 0x3a6   : > { %1961 = vmax.xlane.f32.xlu1 %v11370_v52 }
 0x3a7   : > { %1959 = vmax.xlane.f32.xlu0 %v11373_v23 }
 0x3a8   : > { %v9063_v1 = vpop.f32.mrb[52].mxu1 }
 0x3a9   : > { %v11381_v4 = vadd.f32 %v9063_v1, %v11360_v9  ;;  %v1912_v26 = vpop.f32.mrb[53].mxu1 }
 0x3aa   : > { %v9064_v49 = vpop.f32.mrb[54].mxu1  ;;  %v11386_v39 = vadd.f32 %v1912_v26, %v11360_v9 }
 0x3ab   : > { %v1915_v53 = vpop.f32.mrb[55].mxu1  ;;  %1971 = vmax.xlane.f32.xlu1 %v11381_v4  ;;  %1965 = vmax.xlane.f32.xlu0 %v11378_v14  ;;  %v11389_v43 = vadd.f32 %v9064_v49, %v11360_v9 }
 0x3ac   : > { %v11394_v58 = vadd.f32 %v1915_v53, %v11360_v9 }
 0x3af   : > { %1967 = vmax.xlane.f32.xlu1 %v11386_v39  ;;  %1973 = vmax.xlane.f32.xlu0 %v11389_v43 }
 0x3b0   : > { %v9067_v50 = vpop.f32.mrb[56].mxu1 }
 0x3b1   : > { %v11397_v51 = vadd.f32 %v9067_v50, %v11360_v9  ;;  %v1928_v17 = vpop.f32.mrb[57].mxu1 }
 0x3b2   : > { %v9068_v10 = vpop.f32.mrb[58].mxu1  ;;  %v11402_v54 = vadd.f32 %v1928_v17, %v11360_v9 }
 0x3b3   : > { %v1931_v29 = vpop.f32.mrb[59].mxu1  ;;  %1979 = vmax.xlane.f32.xlu1 %v11397_v51  ;;  %1969 = vmax.xlane.f32.xlu0 %v11394_v58  ;;  %v11405_v8 = vadd.f32 %v9068_v10, %v11360_v9 }
 0x3b4   : > { %v11410_v56 = vadd.f32 %v1931_v29, %v11360_v9 }
 0x3b7   : > { %1975 = vmax.xlane.f32.xlu1 %v11402_v54  ;;  %1981 = vmax.xlane.f32.xlu0 %v11405_v8 }
 0x3b8   : > { %v9071_v27 = vpop.f32.mrb[60].mxu1 }
 0x3b9   : > { %v11413_v0 = vadd.f32 %v9071_v27, %v11360_v9  ;;  %v1944_v28 = vpop.f32.mrb[61].mxu1 }
 0x3ba   : > { %v9072_v32 = vpop.f32.mrb[62].mxu1  ;;  %v11418_v48 = vadd.f32 %v1944_v28, %v11360_v9 }
 0x3bb   : > { %v1947_v45 = vpop.f32.mrb[63].mxu1  ;;  %1987 = vmax.xlane.f32.xlu1 %v11413_v0  ;;  %1977 = vmax.xlane.f32.xlu0 %v11410_v56  ;;  %v11421_v61 = vadd.f32 %v9072_v32, %v11360_v9 }
 0x3bc   : > { %v11426_v35 = vadd.f32 %v1947_v45, %v11360_v9 }
 0x3bf   : > { %1983 = vmax.xlane.f32.xlu1 %v11418_v48  ;;  %1989 = vmax.xlane.f32.xlu0 %v11421_v61 }
 0x3c3   : > { %1985 = vmax.xlane.f32.xlu0 %v11426_v35 }
 0x412   : > { %v9123_v1 = vpop.f32.mrb[48].mxu0 }
 0x413   : > { %v11430_v26 = vadd.f32 %v9123_v1, %v11360_v9  ;;  %v2346_v49 = vpop.f32.mrb[49].mxu0 }
 0x414   : > { %v9124_v53 = vpop.f32.mrb[50].mxu0  ;;  %v11437_v10 = vadd.f32 %v2346_v49, %v11360_v9 }
 0x415   : > { %v11433_v50 = vadd.f32 %v9124_v53, %v11360_v9  ;;  %2413 = vmax.xlane.f32.xlu1 %v11430_v26  ;;  %v2349_v17 = vpop.f32.mrb[51].mxu0 }
 0x416   : > { %v11441_v29 = vadd.f32 %v2349_v17, %v11360_v9 }
 0x417   : > { %2415 = vmax.xlane.f32.xlu0 %v11433_v50 }
 0x419   : > { %2409 = vmax.xlane.f32.xlu1 %v11437_v10 }
 0x41a   : > { %v9127_v27 = vpop.f32.mrb[52].mxu0 }
 0x41b   : > { %v11444_v28 = vpop.f32.mrb[53].mxu0  ;;  %2411 = vmax.xlane.f32.xlu0 %v11441_v29 }
 0x41c   : > { %v9128_v32 = vpop.f32.mrb[54].mxu0 }
 0x41d   : > { %v11448_v45 = vadd.f32 %v9128_v32, %v11360_v9  ;;  %v2365_v1 = vpop.f32.mrb[55].mxu0 }
 0x41e   : > { %v11452_v49 = vadd.f32 %v2365_v1, %v11360_v9 }
 0x41f   : > { %2423 = vmax.xlane.f32.xlu0 %v11448_v45 }
 0x422   : > { %v11454_v53 = vpop.f32.mrb[56].mxu0 }
 0x423   : > { %v11456_v17 = vpop.f32.mrb[57].mxu0  ;;  %2419 = vmax.xlane.f32.xlu0 %v11452_v49 }
 0x424   : > { %v9132_v2 = vpop.f32.mrb[58].mxu0 }
 0x425   : > { %v11460_v42 = vadd.f32 %v9132_v2, %v11360_v9  ;;  %v2381_v37 = vpop.f32.mrb[59].mxu0 }
 0x426   : > { %v11464_v32 = vadd.f32 %v2381_v37, %v11360_v9 }
 0x427   : > { %2431 = vmax.xlane.f32.xlu0 %v11460_v42 }
 0x42a   : > { %v11466_v21 = vpop.f32.mrb[60].mxu0  ;;  %2575 = vrot.lane.b32.xlu1 %v11239_v57, %s10446_s16 }
 0x42b   : > { %v11470_v1 = vpop.f32.mrb[61].mxu0  ;;  %2427 = vmax.xlane.f32.xlu0 %v11464_v32 }
 0x42c   : > { %v9136_v7 = vpop.f32.mrb[62].mxu0 }
 0x42d   : > { %v11476_v2 = vadd.f32 %v9136_v7, %v11360_v9  ;;  %v2397_v3 = vpop.f32.mrb[63].mxu0 }
 0x42e   : > { %v11482_v41 = vadd.f32 %v2397_v3, %v11360_v9 }
 0x42f   : > { %2439 = vmax.xlane.f32.xlu0 %v11476_v2 }
 0x430   : > { %v1964_v37 = vpop.xlane.xlu0 %1963 }
 0x433   : > { %v1962_v57 = vpop.xlane.xlu1 %1961  ;;  %2435 = vmax.xlane.f32.xlu0 %v11482_v41 }
 0x434   : > { %v1960_v20 = vpop.xlane.xlu0 %1959  ;;  %v1992_v7 = vsub.f32 %v11370_v52, %v1962_v57  ;;  %v1993_v57 = vsub.f32 %v11363_v25, %v1964_v37  ;;  %v11534_v25 = vadd.f32 %v11456_v17, %v11360_v9 }
 0x436   : > { %v2009_v60 = vmul.f32 1.442695, %v1992_v7 }
 0x438   : > { %v11485_v6 = vpop.xlane.xlu1 %1971  ;;  %v1966_v47 = vpop.xlane.xlu0 %1965 }
 0x439   : > { %v1994_v24 = vsub.f32 %v11378_v14, %v1966_v47 }
 0x43b   : > { %v2013_v59 = vmul.f32 1.442695, %v1994_v24 }
 0x43c   : > { %v11489_v62 = vpop.xlane.xlu1 %1967  ;;  %v1974_v16 = vpop.xlane.xlu0 %1973 }
 0x43d   : > { %9748 = vpow2.f32 %v2013_v59  ;;  %v1998_v3 = vsub.f32 %v11389_v43, %v1974_v16  ;;  %v1995_v17 = vsub.f32 %v11386_v39, %v11489_v62 }
 0x43e   : > { %9750 = vpow2.f32 %v2009_v60 }
 0x43f   : > { %v2021_v15 = vmul.f32 1.442695, %v1998_v3  ;;  %v11524_v3 = vadd.f32 %v11454_v53, %v11360_v9 }
 0x440   : > { %v11492_v18 = vpop.xlane.xlu1 %1979  ;;  %v1970_v38 = vpop.xlane.xlu0 %1969 }
 0x441   : > { %v1996_v44 = vsub.f32 %v11394_v58, %v1970_v38  ;;  %9752 = vpow2.f32 %v2021_v15  ;;  %v11505_v38 = vadd.f32 %v9127_v27, %v11360_v9 }
 0x443   : > { %v2017_v47 = vmul.f32 1.442695, %v1996_v44 }
 0x444   : > { %v1982_v46 = vpop.xlane.xlu0 %1981  ;;  %v11495_v63 = vpop.xlane.xlu1 %1975 }
 0x445   : > { %v2002_v24 = vsub.f32 %v11405_v8, %v1982_v46  ;;  %9754 = vpow2.f32 %v2017_v47  ;;  %v11514_v8 = vadd.f32 %v11444_v28, %v11360_v9 }
 0x447   : > { %v11498_v52 = vpop.eup %9748  ;;  %v2029_v16 = vmul.f32 1.442695, %v2002_v24  ;;  %v1991_v24 = vsub.f32 %v11373_v23, %v1960_v20  ;;  %v11544_v20 = vadd.f32 %v11466_v21, %v11360_v9  ;;  %v2015_v21 = vmul.f32 1.442695, %v1995_v17 }
 0x448   : > { %v1978_v14 = vpop.xlane.xlu0 %1977  ;;  %2045 = vadd.xlane.f32.xlu0 %v11498_v52  ;;  %v1988_v60 = vpop.xlane.xlu1 %1987 }
 0x449   : > { %v2000_v59 = vsub.f32 %v11410_v56, %v1978_v14  ;;  %v11502_v43 = vpop.eup %9750  ;;  %9756 = vpow2.f32 %v2029_v16  ;;  %v2005_v44 = vsub.f32 %v11413_v0, %v1988_v60  ;;  %v2007_v37 = vmul.f32 1.442695, %v1991_v24 }
 0x44b   : > { %v2025_v46 = vmul.f32 1.442695, %v2000_v59  ;;  %v11510_v15 = vpop.eup %9752  ;;  %v2035_v56 = vmul.f32 1.442695, %v2005_v44 }
 0x44c   : > { %v1990_v58 = vpop.xlane.xlu0 %1989  ;;  %2041 = vadd.xlane.f32.xlu0 %v11502_v43 }
 0x44d   : > { %9758 = vpow2.f32 %v2025_v46  ;;  %v2006_v27 = vsub.f32 %v11421_v61, %v1990_v58  ;;  %v2011_v61 = vmul.f32 1.442695, %v1993_v57 }
 0x44e   : > { %2421 = vmax.xlane.f32.xlu1 %v11505_v38  ;;  %9760 = vpow2.f32 %v2035_v56 }
 0x44f   : > { %v11520_v7 = vpop.eup %9754  ;;  %v2037_v28 = vmul.f32 1.442695, %v2006_v27 }
 0x450   : > { %2053 = vadd.xlane.f32.xlu0 %v11510_v15  ;;  %v1986_v0 = vpop.xlane.xlu0 %1985 }
 0x451   : > { %v2004_v47 = vsub.f32 %v11426_v35, %v1986_v0  ;;  %9762 = vpow2.f32 %v2037_v28  ;;  %v1997_v35 = vsub.f32 %v11381_v4, %v11485_v6  ;;  %v11554_v6 = vadd.f32 %v11470_v1, %v11360_v9  ;;  %v1984_v1 = vpop.xlane.xlu1 %1983 }
 0x452   : > { %2417 = vmax.xlane.f32.xlu1 %v11514_v8  ;;  %9764 = vpow2.f32 %v2011_v61  ;;  %v2001_v4 = vsub.f32 %v11397_v51, %v11492_v18  ;;  %v1999_v9 = vsub.f32 %v11402_v54, %v11495_v63  ;;  %v2003_v51 = vsub.f32 %v11418_v48, %v1984_v1 }
 0x453   : > { %v11530_v14 = vpop.eup %9756  ;;  %v2033_v53 = vmul.f32 1.442695, %v2004_v47  ;;  %v2019_v23 = vmul.f32 1.442695, %v1997_v35 }
 0x454   : > { %2049 = vadd.xlane.f32.xlu0 %v11520_v7  ;;  %v2027_v62 = vmul.f32 1.442695, %v2001_v4  ;;  %v2023_v18 = vmul.f32 1.442695, %v1999_v9  ;;  %v2031_v56 = vmul.f32 1.442695, %v2003_v51 }
 0x455   : > { %9766 = vpow2.f32 %v2033_v53 }
 0x456   : > { %2429 = vmax.xlane.f32.xlu1 %v11524_v3  ;;  %9768 = vpow2.f32 %v2007_v37 }
 0x457   : > { %v11540_v16 = vpop.eup %9758  ;;  %9770 = vpow2.f32 %v2019_v23 }
 0x458   : > { %2061 = vadd.xlane.f32.xlu0 %v11530_v14  ;;  %v11550_v59 = vpop.eup %9760  ;;  %9772 = vpow2.f32 %v2015_v21 }
 0x459   : > { %9774 = vpow2.f32 %v2027_v62 }
 0x45a   : > { %2425 = vmax.xlane.f32.xlu1 %v11534_v25  ;;  %9776 = vpow2.f32 %v2023_v18 }
 0x45b   : > { %v11560_v60 = vpop.eup %9762  ;;  %9778 = vpow2.f32 %v2031_v56 }
 0x45c   : > { %2057 = vadd.xlane.f32.xlu0 %v11540_v16  ;;  %v11562_v58 = vpop.eup %9764 }
 0x45e   : > { %2437 = vmax.xlane.f32.xlu1 %v11544_v20 }
 0x45f   : > { %v11568_v39 = vpop.eup %9766 }
 0x460   : > { %2067 = vadd.xlane.f32.xlu0 %v11550_v59  ;;  %v11570_v44 = vpop.eup %9768 }
 0x461   : > { %v11575_v46 = vpop.eup %9770 }
 0x462   : > { %2433 = vmax.xlane.f32.xlu1 %v11554_v6  ;;  %v11578_v63 = vpop.eup %9772 }
 0x463   : > { %v11581_v54 = vpop.eup %9774 }
 0x464   : > { %2069 = vadd.xlane.f32.xlu0 %v11560_v60  ;;  %v11584_v27 = vpop.eup %9776 }
 0x465   : > { %v11587_v48 = vpop.eup %9778 }
 0x466   : > { %2043 = vadd.xlane.f32.xlu1 %v11562_v58 }
 0x468   : > { %2065 = vadd.xlane.f32.xlu0 %v11568_v39 }
 0x46a   : > { %2039 = vadd.xlane.f32.xlu1 %v11570_v44 }
 0x46e   : > { %2051 = vadd.xlane.f32.xlu1 %v11575_v46 }
 0x472   : > { %2047 = vadd.xlane.f32.xlu1 %v11578_v63 }
 0x476   : > { %2059 = vadd.xlane.f32.xlu1 %v11581_v54 }
 0x47a   : > { %2055 = vadd.xlane.f32.xlu1 %v11584_v27 }
 0x47e   : > { %2063 = vadd.xlane.f32.xlu1 %v11587_v48 }
 0x4a2   : > { %v2414_v57 = vpop.xlane.xlu1 %2413 }
 0x4a3   : > { %v2443_v0 = vsub.f32 %v11430_v26, %v2414_v57 }
 0x4a4   : > { %v2416_v28 = vpop.xlane.xlu0 %2415 }
 0x4a5   : > { %v2461_v47 = vmul.f32 1.442695, %v2443_v0  ;;  %v2444_v61 = vsub.f32 %v11433_v50, %v2416_v28 }
 0x4a6   : > { %v2410_v24 = vpop.xlane.xlu1 %2409 }
 0x4a7   : > { %9780 = vpow2.f32 %v2461_v47  ;;  %v2463_v53 = vmul.f32 1.442695, %v2444_v61  ;;  %v2441_v37 = vsub.f32 %v11437_v10, %v2410_v24 }
 0x4a8   : > { %v2412_v35 = vpop.xlane.xlu0 %2411 }
 0x4a9   : > { %v2457_v23 = vmul.f32 1.442695, %v2441_v37  ;;  %v2442_v17 = vsub.f32 %v11441_v29, %v2412_v35  ;;  %9782 = vpow2.f32 %v2463_v53 }
 0x4aa   : > { %v11614_v56 = vpop.permute.xlu1 %2575 }
 0x4ab   : > { %9784 = vpow2.f32 %v2457_v23  ;;  %v2459_v21 = vmul.f32 1.442695, %v2442_v17 }
 0x4ac   : > { %v2424_v62 = vpop.xlane.xlu0 %2423 }
 0x4ad   : > { %9786 = vpow2.f32 %v2459_v21 }
 0x4b0   : > { %v2420_v29 = vpop.xlane.xlu0 %2419 }
 0x4b1   : > { %v11594_v4 = vpop.eup %9780  ;;  %v2446_v28 = vsub.f32 %v11452_v49, %v2420_v29 }
 0x4b2   : > { %2493 = vadd.xlane.f32.xlu0 %v11594_v4 }
 0x4b3   : > { %v11597_v26 = vpop.eup %9782  ;;  %v2467_v24 = vmul.f32 1.442695, %v2446_v28 }
 0x4b4   : > { %v2432_v9 = vpop.xlane.xlu0 %2431 }
 0x4b5   : > { %v11599_v50 = vpop.eup %9784  ;;  %9788 = vpow2.f32 %v2467_v24  ;;  %v2452_v49 = vsub.f32 %v11460_v42, %v2432_v9 }
 0x4b6   : > { %2495 = vadd.xlane.f32.xlu0 %v11597_v26  ;;  %2489 = vadd.xlane.f32.xlu1 %v11599_v50 }
 0x4b7   : > { %v11603_v10 = vpop.eup %9786 }
 0x4b8   : > { %v2428_v1 = vpop.xlane.xlu0 %2427 }
 0x4ba   : > { %2491 = vadd.xlane.f32.xlu0 %v11603_v10 }
 0x4bc   : > { %v2440_v18 = vpop.xlane.xlu0 %2439 }
 0x4bf   : > { %v11628_v42 = vpop.eup %9788 }
 0x4c0   : > { %v2436_v51 = vpop.xlane.xlu0 %2435 }
 0x4c7   : > { %2579 = vrot.lane.b32.xlu1 %v11246_v30, %s10446_s16  ;;  %v2448_v30 = vsub.f32 %v11448_v45, %v2424_v62 }
 0x4c9   : > { %v2471_v53 = vmul.f32 1.442695, %v2448_v30 }
 0x4cb   : > { %2581 = vrot.lane.b32.xlu1 %v11257_v36, %s10446_s16  ;;  %9790 = vpow2.f32 %v2471_v53 }
 0x4cf   : > { %2583 = vrot.lane.b32.xlu1 %v11254_v12, %s10446_s16  ;;  %v2450_v12 = vsub.f32 %v11464_v32, %v2428_v1  ;;  %v2454_v32 = vsub.f32 %v11482_v41, %v2436_v51  ;;  %v2479_v1 = vmul.f32 1.442695, %v2452_v49 }
 0x4d0   : > { %2577 = vrot.lane.b32.xlu0 %v11249_v11, %s10446_s16 }
 0x4d1   : > { %v2475_v17 = vmul.f32 1.442695, %v2450_v12  ;;  %v2483_v9 = vmul.f32 1.442695, %v2454_v32 }
 0x4d5   : > { %v2046_v57 = vpop.xlane.xlu0 %2045 }
 0x4d9   : > { %v2042_v47 = vpop.xlane.xlu0 %2041 }
 0x4db   : > { %v2422_v0 = vpop.xlane.xlu1 %2421 }
 0x4dc   : > { %v2447_v35 = vsub.f32 %v11505_v38, %v2422_v0 }
 0x4dd   : > { %v11620_v37 = vpop.xlane.xlu0 %2053 }
 0x4de   : > { %v2469_v45 = vmul.f32 1.442695, %v2447_v35 }
 0x4df   : > { %v2418_v61 = vpop.xlane.xlu1 %2417 }
 0x4e0   : > { %v2445_v36 = vsub.f32 %v11514_v8, %v2418_v61  ;;  %v2456_v8 = vsub.f32 %v11476_v2, %v2440_v18  ;;  %v11634_v18 = vpop.eup %9790 }
 0x4e1   : > { %v2050_v29 = vpop.xlane.xlu0 %2049 }
 0x4e2   : > { %v2465_v23 = vmul.f32 1.442695, %v2445_v36  ;;  %v2487_v30 = vmul.f32 1.442695, %v2456_v8 }
 0x4e3   : > { %v2430_v11 = vpop.xlane.xlu1 %2429 }
 0x4e4   : > { %9792 = vpow2.f32 %v2465_v23  ;;  %v2451_v38 = vsub.f32 %v11524_v3, %v2430_v11 }
 0x4e5   : > { %9794 = vpow2.f32 %v2475_v17  ;;  %v11630_v61 = vpop.xlane.xlu0 %2061 }
 0x4e6   : > { %9796 = vpow2.f32 %v2469_v45 }
 0x4e7   : > { %v2426_v21 = vpop.xlane.xlu1 %2425  ;;  %9798 = vpow2.f32 %v2479_v1 }
 0x4e8   : > { %v2449_v62 = vsub.f32 %v11534_v25, %v2426_v21  ;;  %v2477_v25 = vmul.f32 1.442695, %v2451_v38 }
 0x4e9   : > { %v2058_v12 = vpop.xlane.xlu0 %2057 }
 0x4ea   : > { %v2473_v0 = vmul.f32 1.442695, %v2449_v62 }
 0x4eb   : > { %v2438_v28 = vpop.xlane.xlu1 %2437 }
 0x4ec   : > { %9800 = vpow2.f32 %v2473_v0  ;;  %v2455_v36 = vsub.f32 %v11544_v20, %v2438_v28 }
 0x4ed   : > { %9802 = vpow2.f32 %v2487_v30  ;;  %v2068_v49 = vpop.xlane.xlu0 %2067 }
 0x4ee   : > { %v11636_v51 = vpop.eup %9792  ;;  %9804 = vpow2.f32 %v2483_v9  ;;  %v2485_v11 = vmul.f32 1.442695, %v2455_v36 }
 0x4ef   : > { %2499 = vadd.xlane.f32.xlu0 %v11628_v42  ;;  %v2434_v2 = vpop.xlane.xlu1 %2433  ;;  %9806 = vrcp.f32 %v2046_v57  ;;  %v11641_v53 = vpop.eup %9794 }
 0x4f0   : > { %v2453_v41 = vsub.f32 %v11554_v6, %v2434_v2  ;;  %9808 = vpow2.f32 %v2477_v25  ;;  %v11643_v6 = vpop.eup %9796 }
 0x4f1   : > { %v11647_v35 = vpop.eup %9798  ;;  %v2070_v28 = vpop.xlane.xlu0 %2069 }
 0x4f2   : > { %v2481_v3 = vmul.f32 1.442695, %v2453_v41 }
 0x4f3   : > { %2503 = vadd.xlane.f32.xlu0 %v11634_v18  ;;  %2497 = vadd.xlane.f32.xlu1 %v11636_v51  ;;  %v2044_v24 = vpop.xlane.xlu1 %2043 }
 0x4f4   : > { %9810 = vrcp.f32 %v2044_v24 }
 0x4f5   : > { %9812 = vrcp.f32 %v2042_v47 }
 0x4f6   : > { %9814 = vpow2.f32 %v2481_v3  ;;  %v11649_v23 = vpop.eup %9800 }
 0x4f7   : > { %2507 = vadd.xlane.f32.xlu0 %v11641_v53  ;;  %2501 = vadd.xlane.f32.xlu1 %v11643_v6  ;;  %v2040_v57 = vpop.xlane.xlu1 %2039  ;;  %v11651_v20 = vpop.eup %9802 }
 0x4f8   : > { %9816 = vrcp.f32 %v2040_v57  ;;  %v11655_v17 = vpop.eup %9804 }
 0x4f9   : > { %9818 = vpow2.f32 %v2485_v11  ;;  %v9807_v21 = vpop.eup %9806 }
 0x4fa   : > { %v11657_v45 = vpop.eup %9808  ;;  %v2090_v9 = vmul.f32 %v9807_v21, %v11498_v52 }
 0x4fb   : > { %2511 = vadd.xlane.f32.xlu0 %v11647_v35  ;;  %2505 = vadd.xlane.f32.xlu1 %v11649_v23  ;;  %v2052_v47 = vpop.xlane.xlu1 %2051 }
 0x4fc   : > { %9820 = vrcp.f32 %v2052_v47 }
 0x4fd   : > { %9822 = vrcp.f32 %v2050_v29 }
 0x4fe   : > { %v9811_v62 = vpop.eup %9810  ;;  %9824 = vrcp.f32 %v11620_v37 }
 0x4ff   : > { %2515 = vadd.xlane.f32.xlu0 %v11655_v17  ;;  %2509 = vadd.xlane.f32.xlu1 %v11657_v45  ;;  %v2048_v8 = vpop.xlane.xlu1 %2047  ;;  %v9813_v32 = vpop.eup %9812  ;;  %v2089_v0 = vmul.f32 %v9811_v62, %v11562_v58 }
 0x500   : > { %9826 = vrcp.f32 %v2048_v8  ;;  %v11662_v1 = vpop.eup %9814  ;;  %v2088_v30 = vmul.f32 %v9813_v32, %v11502_v43  ;;  %v2066_v58 = vpop.xlane.xlu0 %2065 }
 0x501   : > { %v2104_v41 = vpack.c.bf16 %v2090_v9, %v2089_v0  ;;  %v15543_v9 = vld [vmem:[#allocation26_spill] sm:$0xff] }
 0x502   : > { %v9817_v38 = vpop.eup %9816 }
 0x503   : > { %2519 = vadd.xlane.f32.xlu0 %v11651_v20  ;;  %2513 = vadd.xlane.f32.xlu1 %v11662_v1  ;;  %v2060_v29 = vpop.xlane.xlu1 %2059  ;;  %v2087_v37 = vmul.f32 %v9817_v38, %v11570_v44  ;;  %v11670_v25 = vpop.eup %9818 }
 0x504   : > { %9828 = vrcp.f32 %v2060_v29 }
 0x505   : > { %v2103_v2 = vpack.c.bf16 %v2088_v30, %v2087_v37  ;;  %9830 = vrcp.f32 %v2058_v12  ;;  %v15541_v37 = vld [vmem:[#allocation24_spill] sm:$0xff]  ;;  %v15542_v30 = vld [vmem:[#allocation9_spill] sm:$0xff] }
 0x506   : > { %v9821_v3 = vpop.eup %9820  ;;  %9832 = vrcp.f32 %v11630_v61 }
 0x507   : > { %2517 = vadd.xlane.f32.xlu1 %v11670_v25  ;;  %9089 = vmatprep.mubr.bf16.mxu1 %v2103_v2  ;;  %v2056_v24 = vpop.xlane.xlu1 %2055  ;;  %v9823_v36 = vpop.eup %9822  ;;  %v2093_v44 = vmul.f32 %v9821_v3, %v11575_v46  ;;  %v15544_v2 = vld [vmem:[#allocation12_spill] sm:$0xff]  ;;  %v15546_v3 = vld [vmem:[#allocation18_spill] sm:$0xff] }
 0x508   : > { %9834 = vrcp.f32 %v2056_v24  ;;  %9090 = vmatmul.mubr.bf16.vlgmr.msra.gmra.mrb[64].mxu1 %v2104_v41  ;;  %v9825_v43 = vpop.eup %9824  ;;  %v2092_v57 = vmul.f32 %v9823_v36, %v11520_v7  ;;  %v15545_v41 = vld [vmem:[#allocation10_spill] sm:$0xff]  ;;  %v15548_v24 = vld [vmem:[#allocation20_spill] sm:$0xff] }
 0x509   : > { %9138 = vmatpush3.bf16.msra.mxu1 %v11365_v34  ;;  %9836 = vrcp.f32 %v2066_v58  ;;  %v2094_v11 = vmul.f32 %v9825_v43, %v11510_v15  ;;  %v15547_v58 = vld [vmem:[#allocation13_spill] sm:$0xff]  ;;  %v15549_v36 = vld [vmem:[#allocation16_spill] sm:$0xff]  ;;  %v15550_v43 = vld [vmem:[#allocation19_spill] sm:$0xff] }
 0x50a   : > { %v9827_v52 = vpop.eup %9826  ;;  %9139 = vmatprep.subr.bf16.mxu1 %v11473_v33 }
 0x50b   : > { %v2064_v12 = vpop.xlane.xlu1 %2063  ;;  %v2091_v61 = vmul.f32 %v9827_v52, %v11578_v63  ;;  %v2106_v34 = vpack.c.bf16 %v2094_v11, %v2093_v44  ;;  %v15551_v44 = vld [vmem:[#allocation15_spill] sm:$0xff] }
 0x50c   : > { %9838 = vrcp.f32 %v2064_v12 }
 0x50d   : > { %9840 = vrcp.f32 %v2070_v28  ;;  %9140 = vmatpush3.bf16.msra.mxu1 %v11473_v33  ;;  %v2105_v47 = vpack.c.bf16 %v2092_v57, %v2091_v61  ;;  %v15552_v57 = vld [vmem:[#allocation17_spill] sm:$0xff] }
 0x50e   : > { %9141 = vmatprep.subr.bf16.mxu1 %v11478_v55  ;;  %v9829_v21 = vpop.eup %9828  ;;  %9842 = vrcp.f32 %v2068_v49 }
 0x50f   : > { %9093 = vmatprep.mubr.bf16.mxu1 %v2105_v47  ;;  %v9831_v62 = vpop.eup %9830  ;;  %v2097_v15 = vmul.f32 %v9829_v21, %v11581_v54 }
 0x510   : > { %9094 = vmatmul.mubr.bf16.gmra.mrb[68].mxu1 %v2106_v34  ;;  %v9833_v46 = vpop.eup %9832  ;;  %v2096_v33 = vmul.f32 %v9831_v62, %v11540_v16 }
 0x511   : > { %9142 = vmatpush3.bf16.msra.mxu1 %v11478_v55  ;;  %v2098_v32 = vmul.f32 %v9833_v46, %v11530_v14 }
 0x512   : > { %v9835_v63 = vpop.eup %9834  ;;  %9143 = vmatprep.subr.bf16.mxu1 %v11614_v56 }
 0x513   : > { %v2095_v7 = vmul.f32 %v9835_v63, %v11584_v27  ;;  %v9837_v8 = vpop.eup %9836  ;;  %v2108_v38 = vpack.c.bf16 %v2098_v32, %v2097_v15 }
 0x514   : > { %v2100_v29 = vmul.f32 %v9837_v8, %v11568_v39 }
 0x515   : > { %9144 = vmatpush3.bf16.msra.mxu1 %v11614_v56  ;;  %v2107_v49 = vpack.c.bf16 %v2096_v33, %v2095_v7  ;;  %v15539_v56 = vld [vmem:[#allocation14_spill] sm:$0xff] }
 0x516   : > { %v9839_v28 = vpop.eup %9838 }
 0x517   : > { %v9841_v0 = vpop.eup %9840  ;;  %9097 = vmatprep.mubr.bf16.mxu1 %v2107_v49  ;;  %v2099_v55 = vmul.f32 %v9839_v28, %v11587_v48  ;;  %v15537_v48 = vld [vmem:[#allocation11_spill] sm:$0xff] }
 0x518   : > { %3427 = vrot.lane.b32.xlu1 %v11328_v13, %s10446_s16  ;;  %9098 = vmatmul.mubr.bf16.gmra.mrb[72].mxu1 %v2108_v38  ;;  %v9843_v54 = vpop.eup %9842  ;;  %v2102_v16 = vmul.f32 %v9841_v0, %v11560_v60  ;;  %v15538_v60 = vld [vmem:[#allocation23_spill] sm:$0xff] }
 0x519   : > { %3429 = vrot.lane.b32.xlu0 %v11336_v5, %s10446_s16  ;;  %v2109_v14 = vpack.c.bf16 %v2100_v29, %v2099_v55  ;;  %v2101_v27 = vmul.f32 %v9843_v54, %v11550_v59  ;;  %v15540_v59 = vld [vmem:[#allocation25_spill] sm:$0xff]  ;;  %v9660_v29 = vld [vmem:[%s10537_s30 + $0x20] sm:$0xff]   ;;  %v9661_v54 = vld [vmem:[%s10537_s30 + $0x28] sm:$0xff]  }
 0x51a   : > { %9169 = vmatprep.subr.bf16.mxu0 %v9660_v29 }
 0x51b   : > { %9101 = vmatprep.mubr.bf16.mxu1 %v2109_v14  ;;  %v2110_v39 = vpack.c.bf16 %v2102_v16, %v2101_v27  ;;  %9170 = vmatpush3.bf16.msra.mxu0 %v9660_v29  ;;  %v9662_v27 = vld [vmem:[%s10537_s30 + $0x30] sm:$0xff]  }
 0x51c   : > { %3431 = vrot.lane.b32.xlu1 %v11346_v19, %s10446_s16  ;;  %9171 = vmatprep.subr.bf16.mxu0 %v9661_v54 }
 0x51d   : > { %3435 = vrot.lane.b32.xlu0 %v11196_v22, %s10446_s16 }
 0x51f   : > { %9172 = vmatpush3.bf16.msra.mxu0 %v9661_v54 }
 0x520   : > { %9102 = vmatmul.mubr.bf16.gmra.mrb[76].mxu1 %v2110_v39  ;;  %3433 = vrot.lane.b32.xlu1 %v11353_v31, %s10446_s16 }
 0x521   : > { %3439 = vrot.lane.b32.xlu0 %v11215_v40, %s10446_s16  ;;  %9173 = vmatprep.subr.bf16.mxu0 %v9662_v27 }
 0x523   : > { %9174 = vmatpush3.bf16.msra.mxu0 %v9662_v27 }
 0x524   : > { %3437 = vrot.lane.b32.xlu1 %v15537_v48, %s10446_s16 }
 0x525   : > { %3403 = vrot.lane.b32.xlu0 %v15538_v60, %s10446_s16 }
 0x528   : > { %3441 = vrot.lane.b32.xlu1 %v15539_v56, %s10446_s16 }
 0x529   : > { %3407 = vrot.lane.b32.xlu0 %v15540_v59, %s10446_s16 }
 0x52c   : > { %3405 = vrot.lane.b32.xlu1 %v15541_v37, %s10446_s16 }
 0x52d   : > { %3411 = vrot.lane.b32.xlu0 %v15542_v30, %s10446_s16 }
 0x530   : > { %3409 = vrot.lane.b32.xlu1 %v15543_v9, %s10446_s16 }
 0x531   : > { %3415 = vrot.lane.b32.xlu0 %v15544_v2, %s10446_s16 }
 0x534   : > { %3413 = vrot.lane.b32.xlu1 %v15545_v41, %s10446_s16 }
 0x535   : > { %3752 = vrot.lane.b32.xlu0 %v15546_v3, %s10446_s16 }
 0x538   : > { %3417 = vrot.lane.b32.xlu1 %v15547_v58, %s10446_s16 }
 0x539   : > { %3756 = vrot.lane.b32.xlu0 %v15548_v24, %s10446_s16 }
 0x53c   : > { %3748 = vrot.lane.b32.xlu1 %v15549_v36, %s10446_s16 }
 0x53d   : > { %3758 = vrot.lane.b32.xlu0 %v15550_v43, %s10446_s16 }
 0x53f   : > { %v2494_v52 = vpop.xlane.xlu0 %2493 }
 0x540   : > { %3750 = vrot.lane.b32.xlu1 %v15551_v44, %s10446_s16 }
 0x543   : > { %v2496_v12 = vpop.xlane.xlu0 %2495  ;;  %v2490_v61 = vpop.xlane.xlu1 %2489 }
 0x544   : > { %3754 = vrot.lane.b32.xlu1 %v15552_v57, %s10446_s16  ;;  %9844 = vrcp.f32 %v2490_v61 }
 0x547   : > { %v2492_v11 = vpop.xlane.xlu0 %2491  ;;  %v2580_v47 = vpop.permute.xlu1 %2579 }
 0x548   : > { %9846 = vrcp.f32 %v2492_v11 }
 0x549   : > { %9848 = vrcp.f32 %v2496_v12 }
 0x54a   : > { %9850 = vrcp.f32 %v2494_v52 }
 0x54b   : > { %v2578_v34 = vpop.permute.xlu0 %2577  ;;  %v2582_v21 = vpop.permute.xlu1 %2581 }
 0x54c   : > { %9145 = vmatprep.subr.bf16.mxu1 %v2578_v34 }
 0x54d   : > { %9146 = vmatpush3.bf16.msra.mxu1 %v2578_v34 }
 0x54e   : > { %9147 = vmatprep.subr.bf16.mxu1 %v2580_v47  ;;  %v9845_v62 = vpop.eup %9844 }
 0x54f   : > { %v2537_v15 = vmul.f32 %v9845_v62, %v11599_v50  ;;  %v2584_v8 = vpop.permute.xlu1 %2583  ;;  %v3018_v50 = vsel %vm1813_vm0, %v11328_v13, 0 }
 0x551   : > { %9148 = vmatpush3.bf16.msra.mxu1 %v2580_v47 }
 0x552   : > { %v9847_v46 = vpop.eup %9846  ;;  %9149 = vmatprep.subr.bf16.mxu1 %v2582_v21 }
 0x553   : > { %v9849_v63 = vpop.eup %9848  ;;  %v2538_v7 = vmul.f32 %v9847_v46, %v11603_v10 }
 0x554   : > { %v9851_v33 = vpop.eup %9850  ;;  %v2540_v49 = vmul.f32 %v9849_v63, %v11597_v26  ;;  %v3021_v26 = vsel %vm1813_vm0, %v11336_v5, 0  ;;  %v3036_v63 = vsel %vm1813_vm0, %v11215_v40, 0 }
 0x555   : > { %9150 = vmatpush3.bf16.msra.mxu1 %v2582_v21  ;;  %v2553_v32 = vpack.c.bf16 %v2538_v7, %v2537_v15  ;;  %v2539_v28 = vmul.f32 %v9851_v33, %v11594_v4  ;;  %v3024_v4 = vsel %vm1813_vm0, %v11346_v19, 0 }
 0x556   : > { %9151 = vmatprep.subr.bf16.mxu1 %v2584_v8 }
 0x557   : > { %9153 = vmatprep.mubr.bf16.mxu1 %v2553_v32  ;;  %v2554_v38 = vpack.c.bf16 %v2540_v49, %v2539_v28 }
 0x559   : > { %9152 = vmatpush3.bf16.msra.mxu1 %v2584_v8 }
 0x55a   : > { %9521 = vmatprep.subr.msk.bf16.mxu1 %vm1813_vm0, %v11328_v13  ;;  %v3027_v13 = vsel %vm1813_vm0, %v11353_v31, 0 }
 0x55c   : > { %9154 = vmatmul.mubr.bf16.vlgmr.msra.gmra.mrb[80].mxu1 %v2554_v38 }
 0x562   : > { %9218 = vmatpush3.bf16.xpose.msra.mxu1 %v3018_v50 }
 0x563   : > { %9522 = vmatprep.subr.msk.bf16.mxu1 %vm1813_vm0, %v11336_v5 }
 0x56a   : > { %9220 = vmatpush3.bf16.xpose.msra.mxu1 %v3021_v26 }
 0x56b   : > { %9523 = vmatprep.subr.msk.bf16.mxu1 %vm1813_vm0, %v11346_v19  ;;  %v3030_v19 = vsel %vm1813_vm0, %v11196_v22, 0 }
 0x572   : > { %9222 = vmatpush3.bf16.xpose.msra.mxu1 %v3024_v4 }
 0x573   : > { %9524 = vmatprep.subr.msk.bf16.mxu1 %vm1813_vm0, %v11353_v31 }
 0x57a   : > { %9224 = vmatpush3.bf16.xpose.msra.mxu1 %v3027_v13 }
 0x57b   : > { %9525 = vmatprep.subr.msk.bf16.mxu1 %vm1813_vm0, %v11196_v22  ;;  %v3033_v22 = vsel %vm1813_vm0, %v15537_v48, 0 }
 0x57c   : > { %v2500_v5 = vpop.xlane.xlu0 %2499 }
 0x57d   : > { %9852 = vrcp.f32 %v2500_v5 }
 0x580   : > { %v2504_v10 = vpop.xlane.xlu0 %2503  ;;  %v2498_v0 = vpop.xlane.xlu1 %2497 }
 0x581   : > { %9854 = vrcp.f32 %v2498_v0 }
 0x582   : > { %9226 = vmatpush3.bf16.xpose.msra.mxu1 %v3030_v19  ;;  %9856 = vrcp.f32 %v2504_v10 }
 0x583   : > { %9526 = vmatprep.subr.msk.bf16.mxu1 %vm1813_vm0, %v15537_v48 }
 0x584   : > { %v2508_v55 = vpop.xlane.xlu0 %2507  ;;  %v2502_v31 = vpop.xlane.xlu1 %2501 }
 0x585   : > { %9858 = vrcp.f32 %v2502_v31 }
 0x586   : > { %9860 = vrcp.f32 %v2508_v55 }
 0x587   : > { %v9853_v39 = vpop.eup %9852 }
 0x588   : > { %v2512_v14 = vpop.xlane.xlu0 %2511  ;;  %v2506_v16 = vpop.xlane.xlu1 %2505  ;;  %v2542_v47 = vmul.f32 %v9853_v39, %v11628_v42 }
 0x589   : > { %9862 = vrcp.f32 %v2506_v16 }
 0x58a   : > { %9228 = vmatpush3.bf16.xpose.msra.mxu1 %v3033_v22  ;;  %9864 = vrcp.f32 %v2512_v14 }
 0x58b   : > { %9527 = vmatprep.subr.msk.bf16.mxu1 %vm1813_vm0, %v11215_v40  ;;  %v9855_v52 = vpop.eup %9854 }
 0x58c   : > { %v2516_v12 = vpop.xlane.xlu0 %2515  ;;  %v2510_v61 = vpop.xlane.xlu1 %2509  ;;  %v2541_v11 = vmul.f32 %v9855_v52, %v11636_v51 }
 0x58d   : > { %v9857_v34 = vpop.eup %9856  ;;  %9866 = vrcp.f32 %v2510_v61 }
 0x58e   : > { %v2555_v48 = vpack.c.bf16 %v2542_v47, %v2541_v11  ;;  %9868 = vrcp.f32 %v2516_v12  ;;  %v2544_v7 = vmul.f32 %v9857_v34, %v11634_v18  ;;  %v3039_v18 = vsel %vm1813_vm0, %v15539_v56, 0 }
 0x58f   : > { %v9859_v21 = vpop.eup %9858 }
 0x590   : > { %v2520_v62 = vpop.xlane.xlu0 %2519  ;;  %v2514_v46 = vpop.xlane.xlu1 %2513  ;;  %9157 = vmatprep.mubr.bf16.mxu1 %v2555_v48  ;;  %v2543_v15 = vmul.f32 %v9859_v21, %v11643_v6 }
 0x591   : > { %v9861_v51 = vpop.eup %9860  ;;  %9870 = vrcp.f32 %v2514_v46 }
 0x592   : > { %9230 = vmatpush3.bf16.xpose.msra.mxu1 %v3036_v63  ;;  %9872 = vrcp.f32 %v2520_v62  ;;  %v2556_v42 = vpack.c.bf16 %v2544_v7, %v2543_v15  ;;  %v2546_v40 = vmul.f32 %v9861_v51, %v11641_v53 }
 0x593   : > { %9528 = vmatprep.subr.msk.bf16.mxu1 %vm1813_vm0, %v15539_v56  ;;  %v9863_v33 = vpop.eup %9862 }
 0x594   : > { %v2518_v8 = vpop.xlane.xlu1 %2517  ;;  %9158 = vmatmul.mubr.bf16.gmra.mrb[84].mxu1 %v2556_v42  ;;  %v2545_v32 = vmul.f32 %v9863_v33, %v11649_v23  ;;  %v9865_v49 = vpop.eup %9864 }
 0x595   : > { %9874 = vrcp.f32 %v2518_v8  ;;  %v2548_v50 = vmul.f32 %v9865_v49, %v11647_v35  ;;  %v3430_v55 = vpop.permute.xlu0 %3429 }
 0x596   : > { %v2557_v6 = vpack.c.bf16 %v2546_v40, %v2545_v32 }
 0x597   : > { %v9867_v28 = vpop.eup %9866 }
 0x598   : > { %9161 = vmatprep.mubr.bf16.mxu1 %v2557_v6  ;;  %v2547_v38 = vmul.f32 %v9867_v28, %v11657_v45  ;;  %v9869_v26 = vpop.eup %9868  ;;  %v3428_v4 = vpop.permute.xlu1 %3427 }
 0x599   : > { %v2550_v10 = vmul.f32 %v9869_v26, %v11655_v17  ;;  %v3471_v17 = vsel %vm1813_vm0, %v3430_v55, 0 }
 0x59a   : > { %9232 = vmatpush3.bf16.xpose.msra.mxu1 %v3039_v18  ;;  %v2558_v13 = vpack.c.bf16 %v2548_v50, %v2547_v38 }
 0x59b   : > { %9529 = vmatprep.subr.msk.bf16.mxu1 %vm1813_vm0, %v3428_v4  ;;  %v9871_v23 = vpop.eup %9870 }
 0x59c   : > { %v9873_v5 = vpop.eup %9872  ;;  %9162 = vmatmul.mubr.bf16.gmra.mrb[88].mxu1 %v2558_v13  ;;  %v2549_v53 = vmul.f32 %v9871_v23, %v11662_v1  ;;  %v3468_v1 = vsel %vm1813_vm0, %v3428_v4, 0  ;;  %v15553_v23 = vmov 0  }
 0x59d   : > { %v2552_v35 = vmul.f32 %v9873_v5, %v11651_v20  ;;  %v9663_v20 = vld [vmem:[%s10537_s30 + $0x38] sm:$0xff]  }
 0x59e   : > { %v2559_v56 = vpack.c.bf16 %v2550_v10, %v2549_v53  ;;  %9175 = vmatprep.subr.bf16.mxu0 %v9663_v20 }
 0x59f   : > { %v9875_v0 = vpop.eup %9874  ;;  %9176 = vmatpush3.bf16.msra.mxu0 %v9663_v20 }
 0x5a0   : > { %v2551_v45 = vmul.f32 %v9875_v0, %v11670_v25  ;;  %9165 = vmatprep.mubr.bf16.mxu1 %v2559_v56  ;;  %v11802_v25 = vld [vmem:[%s10537_s30] sm:$0xff]  }
 0x5a1   : > { %9193 = vmatprep.subr.bf16.mxu0 %v11802_v25 }
 0x5a2   : > { %v2560_v19 = vpack.c.bf16 %v2552_v35, %v2551_v45  ;;  %v9665_v35 = vld [vmem:[%s10537_s30 + $0x8] sm:$0xff]  }
 0x5a4   : > { %9166 = vmatmul.mubr.bf16.gmra.mrb[92].mxu1 %v2560_v19  ;;  %v9666_v19 = vld [vmem:[%s10537_s30 + $0x10] sm:$0xff]  }
 0x5a5   : > { %9233 = vmatprep.mubr.msk.bf16.mxu1 %vm1813_vm0, %v15538_v60  ;;  %v3432_v60 = vpop.permute.xlu1 %3431 }
 0x5ac   : > { %9234 = vmatmul.mubr.msk.bf16.vlgmr.msra.gmra.mrb[96].mxu1 %vm1813_vm0, %v15541_v37  ;;  %v3474_v37 = vsel %vm1813_vm0, %v3432_v60, 0 }
 0x5ad   : > { %9282 = vmatpush3.bf16.xpose.msra.mxu1 %v3468_v1  ;;  %9237 = vmatprep.mubr.msk.bf16.mxu1 %vm1813_vm0, %v15540_v59  ;;  %v3436_v59 = vpop.permute.xlu0 %3435  ;;  %v9667_v1 = vld [vmem:[%s10537_s30 + $0x18] sm:$0xff]  }
 0x5ae   : > { %9530 = vmatprep.subr.msk.bf16.mxu1 %vm1813_vm0, %v3430_v55 }
 0x5b1   : > { %v3440_v31 = vpop.permute.xlu0 %3439 }
 0x5b2   : > { %v3486_v16 = vsel %vm1813_vm0, %v3440_v31, 0 }
 0x5b4   : > { %9238 = vmatmul.mubr.msk.bf16.gmra.mrb[100].mxu1 %vm1813_vm0, %v15543_v9  ;;  %v3434_v9 = vpop.permute.xlu1 %3433 }
 0x5b5   : > { %9284 = vmatpush3.bf16.xpose.msra.mxu1 %v3471_v17  ;;  %9241 = vmatprep.mubr.msk.bf16.mxu1 %vm1813_vm0, %v15542_v30  ;;  %v3404_v29 = vpop.permute.xlu0 %3403  ;;  %v3477_v30 = vsel %vm1813_vm0, %v3434_v9, 0 }
 0x5b6   : > { %9531 = vmatprep.subr.msk.bf16.mxu1 %vm1813_vm0, %v3432_v60 }
 0x5b8   : > { %v3438_v54 = vpop.permute.xlu1 %3437 }
 0x5b9   : > { %v3408_v7 = vpop.permute.xlu0 %3407 }
 0x5bc   : > { %9242 = vmatmul.mubr.msk.bf16.gmra.mrb[104].mxu1 %vm1813_vm0, %v15545_v41  ;;  %v3480_v41 = vsel %vm1813_vm0, %v3436_v59, 0  ;;  %v3442_v27 = vpop.permute.xlu1 %3441 }
 0x5bd   : > { %9286 = vmatpush3.bf16.xpose.msra.mxu1 %v3474_v37  ;;  %9245 = vmatprep.mubr.msk.bf16.mxu1 %vm1813_vm0, %v15544_v2  ;;  %v3483_v2 = vsel %vm1813_vm0, %v3438_v54, 0  ;;  %v3489_v47 = vsel %vm1813_vm0, %v3442_v27, 0  ;;  %v3412_v6 = vpop.permute.xlu0 %3411 }
 0x5be   : > { %9532 = vmatprep.subr.msk.bf16.mxu1 %vm1813_vm0, %v3434_v9 }
 0x5c0   : > { %v3406_v63 = vpop.permute.xlu1 %3405 }
 0x5c1   : > { %v3416_v4 = vpop.permute.xlu0 %3415 }
 0x5c4   : > { %9246 = vmatmul.mubr.msk.bf16.gmra.mrb[108].mxu1 %vm1813_vm0, %v15547_v58  ;;  %v3410_v40 = vpop.permute.xlu1 %3409 }
 0x5c5   : > { %9288 = vmatpush3.bf16.xpose.msra.mxu1 %v3477_v30  ;;  %9297 = vmatprep.mubr.msk.bf16.mxu1 %vm1813_vm0, %v3404_v29 }
 0x5c6   : > { %9533 = vmatprep.subr.msk.bf16.mxu1 %vm1813_vm0, %v3436_v59 }
 0x5c8   : > { %v3414_v26 = vpop.permute.xlu1 %3413 }
 0x5cc   : > { %v3418_v13 = vpop.permute.xlu1 %3417 }
 0x5cd   : > { %9290 = vmatpush3.bf16.xpose.msra.mxu1 %v3480_v41 }
 0x5ce   : > { %9534 = vmatprep.subr.msk.bf16.mxu1 %vm1813_vm0, %v3438_v54  ;;  %v1791_v54 = vld [vmem:[%s15365_s1 + $0x1] sm:$0x1] }
 0x5d5   : > { %9292 = vmatpush3.bf16.xpose.msra.mxu1 %v3483_v2 }
 0x5d6   : > { %9535 = vmatprep.subr.msk.bf16.mxu1 %vm1813_vm0, %v3440_v31 }
 0x5db   : > { %v11823_v14 = vpop.f32.mrb[64].mxu1 }
 0x5dc   : > { %v11825_v58 = vpop.f32.mrb[65].mxu1 }
 0x5dd   : > { %v11828_v22 = vpop.f32.mrb[66].mxu1  ;;  %9294 = vmatpush3.bf16.xpose.msra.mxu1 %v3486_v16 }
 0x5de   : > { %v2209_v39 = vpack.c.bf16 %v11828_v22, %v11823_v14  ;;  %v11832_v52 = vpop.f32.mrb[67].mxu1  ;;  %9536 = vmatprep.subr.msk.bf16.mxu1 %vm1813_vm0, %v3442_v27  ;;  %v2988_v27 = vunpack.c.l.bf16 %v1791_v54 }
 0x5df   : > { %v2208_v12 = vpack.c.bf16 %v11832_v52, %v11825_v58 }
 0x5e3   : > { %v11837_v61 = vpop.f32.mrb[68].mxu1 }
 0x5e4   : > { %v11839_v11 = vpop.f32.mrb[69].mxu1 }
 0x5e5   : > { %v11842_v34 = vpop.f32.mrb[70].mxu1  ;;  %9296 = vmatpush3.bf16.xpose.msra.mxu1 %v3489_v47 }
 0x5e6   : > { %v2211_v48 = vpack.c.bf16 %v11842_v34, %v11837_v61  ;;  %v11846_v21 = vpop.f32.mrb[71].mxu1 }
 0x5e7   : > { %v2210_v62 = vpack.c.bf16 %v11846_v21, %v11839_v11 }
 0x5eb   : > { %v11850_v46 = vpop.f32.mrb[72].mxu1 }
 0x5ec   : > { %v11852_v15 = vpop.f32.mrb[73].mxu1  ;;  %9298 = vmatmul.mubr.msk.bf16.vlgmr.msra.gmra.mrb[112].mxu1 %vm1813_vm0, %v3406_v63 }
 0x5ed   : > { %v11855_v51 = vpop.f32.mrb[74].mxu1  ;;  %9301 = vmatprep.mubr.msk.bf16.mxu1 %vm1813_vm0, %v3408_v7 }
 0x5ee   : > { %v2213_v42 = vpack.c.bf16 %v11855_v51, %v11850_v46  ;;  %v11860_v33 = vpop.f32.mrb[75].mxu1 }
 0x5ef   : > { %v2212_v8 = vpack.c.bf16 %v11860_v33, %v11852_v15 }
 0x5f3   : > { %v11864_v32 = vpop.f32.mrb[76].mxu1 }
 0x5f4   : > { %v11866_v49 = vpop.f32.mrb[77].mxu1  ;;  %9302 = vmatmul.mubr.msk.bf16.gmra.mrb[116].mxu1 %vm1813_vm0, %v3410_v40 }
 0x5f5   : > { %v11869_v28 = vpop.f32.mrb[78].mxu1  ;;  %9305 = vmatprep.mubr.msk.bf16.mxu1 %vm1813_vm0, %v3412_v6  ;;  %v15554_v6 = vld [vmem:[#allocation8_spill] sm:$0xff] }
 0x5f6   : > { %v2215_v18 = vpack.c.bf16 %v11869_v28, %v11864_v32  ;;  %v11874_v38 = vpop.f32.mrb[79].mxu1 }
 0x5f7   : > { %v2214_v50 = vpack.c.bf16 %v11874_v38, %v11866_v49  ;;  %v15555_v49 = vld [vmem:[#allocation22_spill] sm:$0xff] }
 0x5fc   : > { %9306 = vmatmul.mubr.msk.bf16.gmra.mrb[120].mxu1 %vm1813_vm0, %v3414_v26  ;;  %v11897_v26 = vrot.slane %v2988_v27, %v15554_v6 }
 0x5fd   : > { %9309 = vmatprep.mubr.msk.bf16.mxu1 %vm1813_vm0, %v3416_v4 }
 0x604   : > { %9310 = vmatmul.mubr.msk.bf16.gmra.mrb[124].mxu1 %vm1813_vm0, %v3418_v13 }
 0x605   : > { %4923 = vmatprep.mubr.bf16.mxu1 %v15553_v23  ;;  %v10389_v23 = vld [vmem:[#allocation2 + $0x8] sm:$0xff] }
 0x62f   : > { %v9155_v5 = vpop.f32.mrb[80].mxu1 }
 0x630   : > { %v2627_v53 = vpop.f32.mrb[81].mxu1 }
 0x631   : > { %v9156_v10 = vpop.f32.mrb[82].mxu1 }
 0x632   : > { %v2691_v0 = vpack.c.bf16 %v9156_v10, %v9155_v5  ;;  %v2630_v56 = vpop.f32.mrb[83].mxu1 }
 0x633   : > { %v2690_v45 = vpack.c.bf16 %v2630_v56, %v2627_v53 }
 0x635   : > { %9177 = vmatprep.mubr.msk.bf16.mxu0 %vm1813_vm0, %v2690_v45  ;;  %v12010_v45 = vpop.permute.xlu1 %3748 }
 0x636   : > { %9178 = vmatmul.mubr.msk.bf16.vlgmr.msra.gmra.mrb[64].mxu0 %vm1813_vm0, %v2691_v0 }
 0x637   : > { %9194 = vmatpush3.bf16.msra.mxu0 %v11802_v25 }
 0x638   : > { %9195 = vmatprep.subr.bf16.mxu0 %v9665_v35 }
 0x63b   : > { %9196 = vmatpush3.bf16.msra.mxu0 %v9665_v35 }
 0x63c   : > { %9197 = vmatprep.subr.bf16.mxu0 %v9666_v19 }
 0x63f   : > { %9198 = vmatpush3.bf16.msra.mxu0 %v9666_v19 }
 0x640   : > { %9199 = vmatprep.subr.bf16.mxu0 %v9667_v1 }
 0x643   : > { %9200 = vmatpush3.bf16.msra.mxu0 %v9667_v1 }
 0x644   : > { %9249 = vmatprep.subr.bf16.mxu0 %v15549_v36 }
 0x667   : > { %v9159_v55 = vpop.f32.mrb[84].mxu1 }
 0x668   : > { %v2643_v20 = vpop.f32.mrb[85].mxu1 }
 0x669   : > { %v9160_v17 = vpop.f32.mrb[86].mxu1 }
 0x66a   : > { %v2693_v60 = vpack.c.bf16 %v9160_v17, %v9159_v55  ;;  %v2646_v59 = vpop.f32.mrb[87].mxu1 }
 0x66b   : > { %v2692_v37 = vpack.c.bf16 %v2646_v59, %v2643_v20 }
 0x66d   : > { %9181 = vmatprep.mubr.msk.bf16.mxu0 %vm1813_vm0, %v2692_v37 }
 0x66e   : > { %9182 = vmatmul.mubr.msk.bf16.gmra.mrb[68].mxu0 %vm1813_vm0, %v2693_v60 }
 0x66f   : > { %v9163_v25 = vpop.f32.mrb[88].mxu1 }
 0x670   : > { %v2659_v9 = vpop.f32.mrb[89].mxu1 }
 0x671   : > { %v9164_v31 = vpop.f32.mrb[90].mxu1 }
 0x672   : > { %v2695_v29 = vpack.c.bf16 %v9164_v31, %v9163_v25  ;;  %v2662_v30 = vpop.f32.mrb[91].mxu1 }
 0x673   : > { %v2694_v41 = vpack.c.bf16 %v2662_v30, %v2659_v9 }
 0x675   : > { %9185 = vmatprep.mubr.msk.bf16.mxu0 %vm1813_vm0, %v2694_v41 }
 0x676   : > { %9186 = vmatmul.mubr.msk.bf16.gmra.mrb[72].mxu0 %vm1813_vm0, %v2695_v29 }
 0x677   : > { %v9167_v2 = vpop.f32.mrb[92].mxu1 }
 0x678   : > { %v2675_v16 = vpop.f32.mrb[93].mxu1 }
 0x679   : > { %v9168_v47 = vpop.f32.mrb[94].mxu1 }
 0x67a   : > { %v2697_v63 = vpack.c.bf16 %v9168_v47, %v9167_v2  ;;  %v2678_v7 = vpop.f32.mrb[95].mxu1 }
 0x67b   : > { %v2696_v40 = vpack.c.bf16 %v2678_v7, %v2675_v16 }
 0x67d   : > { %9189 = vmatprep.mubr.msk.bf16.mxu0 %vm1813_vm0, %v2696_v40 }
 0x67e   : > { %9190 = vmatmul.mubr.msk.bf16.gmra.mrb[76].mxu0 %vm1813_vm0, %v2697_v63 }
 0x67f   : > { %9201 = vmatprep.mubr.msk.bf16.mxu0 %vm1813_vm0, %v2208_v12  ;;  %v9235_v4 = vpop.f32.mrb[96].mxu1 }
 0x680   : > { %v11906_v13 = vadd.f32 %v9235_v4, %v11897_v26  ;;  %v3075_v5 = vpop.f32.mrb[97].mxu1 }
 0x681   : > { %v9236_v53 = vpop.f32.mrb[98].mxu1  ;;  %v11913_v56 = vadd.f32 %v3075_v5, %v11897_v26 }
 0x682   : > { %3142 = vmax.xlane.f32.xlu0 %v11906_v13  ;;  %v3078_v10 = vpop.f32.mrb[99].mxu1  ;;  %v11927_v52 = vadd.f32 %v9236_v53, %v11897_v26 }
 0x683   : > { %v11910_v0 = vadd.f32 %v3078_v10, %v11897_v26 }
 0x685   : > { %3140 = vmax.xlane.f32.xlu1 %v11910_v0 }
 0x686   : > { %9202 = vmatmul.mubr.msk.bf16.vlgmr.msra.gmra.mrb[64].mxu0 %vm1813_vm0, %v2209_v39  ;;  %3138 = vmax.xlane.f32.xlu0 %v11913_v56 }
 0x687   : > { %9250 = vmatpush3.bf16.msra.mxu0 %v15549_v36  ;;  %9205 = vmatprep.mubr.msk.bf16.mxu0 %vm1813_vm0, %v2210_v62  ;;  %v9239_v58 = vpop.f32.mrb[100].mxu1 }
 0x688   : > { %v11930_v12 = vadd.f32 %v9239_v58, %v11897_v26  ;;  %9251 = vmatprep.subr.bf16.mxu0 %v15551_v44  ;;  %v3091_v14 = vpop.f32.mrb[101].mxu1 }
 0x689   : > { %v9240_v22 = vpop.f32.mrb[102].mxu1  ;;  %v11937_v36 = vadd.f32 %v3091_v14, %v11897_v26 }
 0x68a   : > { %v3094_v39 = vpop.f32.mrb[103].mxu1  ;;  %3150 = vmax.xlane.f32.xlu1 %v11930_v12  ;;  %3144 = vmax.xlane.f32.xlu0 %v11927_v52  ;;  %v11941_v11 = vadd.f32 %v9240_v22, %v11897_v26  ;;  %v12079_v22 = vpop.permute.xlu0 %3752 }
 0x68b   : > { %9252 = vmatpush3.bf16.msra.mxu0 %v15551_v44  ;;  %v11959_v34 = vadd.f32 %v3094_v39, %v11897_v26 }
 0x68c   : > { %9253 = vmatprep.subr.bf16.mxu0 %v15546_v3 }
 0x68e   : > { %9206 = vmatmul.mubr.msk.bf16.gmra.mrb[68].mxu0 %vm1813_vm0, %v2211_v48  ;;  %3146 = vmax.xlane.f32.xlu1 %v11937_v36  ;;  %v12081_v39 = vpop.permute.xlu0 %3756 }
 0x68f   : > { %9254 = vmatpush3.bf16.msra.mxu0 %v15546_v3  ;;  %3152 = vmax.xlane.f32.xlu0 %v11941_v11  ;;  %v9243_v44 = vpop.f32.mrb[104].mxu1 }
 0x690   : > { %9209 = vmatprep.mubr.msk.bf16.mxu0 %vm1813_vm0, %v2212_v8  ;;  %v11955_v21 = vadd.f32 %v9243_v44, %v11897_v26  ;;  %9255 = vmatprep.subr.bf16.mxu0 %v15552_v57  ;;  %v3107_v61 = vpop.f32.mrb[105].mxu1  ;;  %v12083_v44 = vpop.permute.xlu1 %3750 }
 0x691   : > { %v9244_v48 = vpop.f32.mrb[106].mxu1  ;;  %v11965_v3 = vadd.f32 %v3107_v61, %v11897_v26 }
 0x692   : > { %v3110_v62 = vpop.f32.mrb[107].mxu1  ;;  %3158 = vmax.xlane.f32.xlu1 %v11955_v21  ;;  %v11969_v15 = vadd.f32 %v9244_v48, %v11897_v26  ;;  %v12085_v61 = vpop.permute.xlu0 %3758 }
 0x693   : > { %9256 = vmatpush3.bf16.msra.mxu0 %v15552_v57  ;;  %3148 = vmax.xlane.f32.xlu0 %v11959_v34  ;;  %v11987_v51 = vadd.f32 %v3110_v62, %v11897_v26 }
 0x694   : > { %9257 = vmatprep.subr.bf16.mxu0 %v15548_v24  ;;  %v12087_v48 = vpop.permute.xlu1 %3754 }
 0x696   : > { %9210 = vmatmul.mubr.msk.bf16.gmra.mrb[72].mxu0 %vm1813_vm0, %v2213_v42  ;;  %3154 = vmax.xlane.f32.xlu1 %v11965_v3 }
 0x697   : > { %9258 = vmatpush3.bf16.msra.mxu0 %v15548_v24  ;;  %3160 = vmax.xlane.f32.xlu0 %v11969_v15  ;;  %v9247_v57 = vpop.f32.mrb[108].mxu1 }
 0x698   : > { %9213 = vmatprep.mubr.msk.bf16.mxu0 %vm1813_vm0, %v2214_v50  ;;  %v11983_v33 = vadd.f32 %v9247_v57, %v11897_v26  ;;  %9259 = vmatprep.subr.bf16.mxu0 %v15550_v43  ;;  %v3123_v46 = vpop.f32.mrb[109].mxu1 }
 0x699   : > { %v9248_v42 = vpop.f32.mrb[110].mxu1  ;;  %v11993_v24 = vadd.f32 %v3123_v46, %v11897_v26 }
 0x69a   : > { %v3126_v8 = vpop.f32.mrb[111].mxu1  ;;  %3166 = vmax.xlane.f32.xlu1 %v11983_v33  ;;  %v11997_v38 = vadd.f32 %v9248_v42, %v11897_v26 }
 0x69b   : > { %9260 = vmatpush3.bf16.msra.mxu0 %v15550_v43  ;;  %3156 = vmax.xlane.f32.xlu0 %v11987_v51  ;;  %v15556_v43 = vld [vmem:[#allocation21_spill] sm:$0xff]  ;;  %v12008_v50 = vadd.f32 %v3126_v8, %v11897_v26 }
 0x69c   : > { %9261 = vmatprep.subr.bf16.mxu0 %v15555_v49 }
 0x69e   : > { %9214 = vmatmul.mubr.msk.bf16.gmra.mrb[76].mxu0 %vm1813_vm0, %v2215_v18  ;;  %3162 = vmax.xlane.f32.xlu1 %v11993_v24 }
 0x69f   : > { %9262 = vmatpush3.bf16.msra.mxu0 %v15555_v49  ;;  %3168 = vmax.xlane.f32.xlu0 %v11997_v38 }
 0x6a0   : > { %9263 = vmatprep.subr.bf16.mxu0 %v15556_v43 }
 0x6a3   : > { %9264 = vmatpush3.bf16.msra.mxu0 %v15556_v43  ;;  %3164 = vmax.xlane.f32.xlu0 %v12008_v50 }
 0x6a4   : > { %9313 = vmatprep.subr.bf16.mxu0 %v12010_v45 }
 0x6bf   : > { %v9299_v32 = vpop.f32.mrb[112].mxu1 }
 0x6c0   : > { %v12016_v28 = vadd.f32 %v9299_v32, %v11897_v26  ;;  %v3525_v18 = vpop.f32.mrb[113].mxu1 }
 0x6c1   : > { %v9300_v35 = vpop.f32.mrb[114].mxu1  ;;  %v12023_v55 = vadd.f32 %v3525_v18, %v11897_v26 }
 0x6c2   : > { %v12019_v19 = vadd.f32 %v9300_v35, %v11897_v26  ;;  %v3528_v1 = vpop.f32.mrb[115].mxu1  ;;  %3592 = vmax.xlane.f32.xlu1 %v12016_v28 }
 0x6c3   : > { %v12027_v20 = vadd.f32 %v3528_v1, %v11897_v26 }
 0x6c4   : > { %3594 = vmax.xlane.f32.xlu0 %v12019_v19 }
 0x6c6   : > { %3588 = vmax.xlane.f32.xlu1 %v12023_v55 }
 0x6c7   : > { %v9303_v17 = vpop.f32.mrb[116].mxu1 }
 0x6c8   : > { %v12031_v60 = vadd.f32 %v9303_v17, %v11897_v26  ;;  %v3541_v59 = vpop.f32.mrb[117].mxu1  ;;  %3590 = vmax.xlane.f32.xlu0 %v12027_v20 }
 0x6c9   : > { %v9304_v37 = vpop.f32.mrb[118].mxu1  ;;  %v12039_v31 = vadd.f32 %v3541_v59, %v11897_v26 }
 0x6ca   : > { %v12035_v25 = vadd.f32 %v9304_v37, %v11897_v26  ;;  %v3544_v9 = vpop.f32.mrb[119].mxu1  ;;  %3600 = vmax.xlane.f32.xlu1 %v12031_v60 }
 0x6cb   : > { %v12043_v29 = vadd.f32 %v3544_v9, %v11897_v26 }
 0x6cc   : > { %3602 = vmax.xlane.f32.xlu0 %v12035_v25 }
 0x6ce   : > { %3596 = vmax.xlane.f32.xlu1 %v12039_v31 }
 0x6cf   : > { %v9307_v30 = vpop.f32.mrb[120].mxu1 }
 0x6d0   : > { %v12047_v41 = vadd.f32 %v9307_v30, %v11897_v26  ;;  %v3557_v54 = vpop.f32.mrb[121].mxu1  ;;  %3598 = vmax.xlane.f32.xlu0 %v12043_v29 }
 0x6d1   : > { %v9308_v2 = vpop.f32.mrb[122].mxu1  ;;  %v12055_v47 = vadd.f32 %v3557_v54, %v11897_v26 }
 0x6d2   : > { %v12051_v16 = vadd.f32 %v9308_v2, %v11897_v26  ;;  %v3560_v27 = vpop.f32.mrb[123].mxu1  ;;  %3608 = vmax.xlane.f32.xlu1 %v12047_v41 }
 0x6d3   : > { %v12059_v63 = vadd.f32 %v3560_v27, %v11897_v26 }
 0x6d4   : > { %3610 = vmax.xlane.f32.xlu0 %v12051_v16 }
 0x6d6   : > { %3604 = vmax.xlane.f32.xlu1 %v12055_v47 }
 0x6d7   : > { %v9311_v7 = vpop.f32.mrb[124].mxu1 }
 0x6d8   : > { %v12063_v40 = vadd.f32 %v9311_v7, %v11897_v26  ;;  %v3573_v4 = vpop.f32.mrb[125].mxu1  ;;  %3606 = vmax.xlane.f32.xlu0 %v12059_v63 }
 0x6d9   : > { %v9312_v5 = vpop.f32.mrb[126].mxu1  ;;  %v12071_v58 = vadd.f32 %v3573_v4, %v11897_v26 }
 0x6da   : > { %v12067_v53 = vadd.f32 %v9312_v5, %v11897_v26  ;;  %v3576_v10 = vpop.f32.mrb[127].mxu1  ;;  %3616 = vmax.xlane.f32.xlu1 %v12063_v40 }
 0x6db   : > { %v12075_v14 = vadd.f32 %v3576_v10, %v11897_v26 }
 0x6dc   : > { %3618 = vmax.xlane.f32.xlu0 %v12067_v53 }
 0x6de   : > { %3612 = vmax.xlane.f32.xlu1 %v12071_v58 }
 0x6e0   : > { %3614 = vmax.xlane.f32.xlu0 %v12075_v14 }
 0x70f   : > { %v3143_v62 = vpop.xlane.xlu0 %3142 }
 0x710   : > { %v3172_v57 = vsub.f32 %v11906_v13, %v3143_v62 }
 0x712   : > { %v3190_v46 = vmul.f32 1.442695, %v3172_v57  ;;  %v3141_v26 = vpop.xlane.xlu1 %3140 }
 0x713   : > { %v3139_v42 = vpop.xlane.xlu0 %3138  ;;  %v3171_v59 = vsub.f32 %v11910_v0, %v3141_v26 }
 0x714   : > { %9876 = vpow2.f32 %v3190_v46  ;;  %v3170_v8 = vsub.f32 %v11913_v56, %v3139_v42 }
 0x715   : > { %v3188_v2 = vmul.f32 1.442695, %v3171_v59 }
 0x716   : > { %v3186_v32 = vmul.f32 1.442695, %v3170_v8 }
 0x717   : > { %v3151_v18 = vpop.xlane.xlu1 %3150  ;;  %v3145_v35 = vpop.xlane.xlu0 %3144 }
 0x718   : > { %9878 = vpow2.f32 %v3186_v32  ;;  %v3176_v1 = vsub.f32 %v11930_v12, %v3151_v18  ;;  %v3173_v17 = vsub.f32 %v11927_v52, %v3145_v35 }
 0x71a   : > { %v3198_v37 = vmul.f32 1.442695, %v3176_v1  ;;  %v3192_v9 = vmul.f32 1.442695, %v3173_v17 }
 0x71b   : > { %v3147_v30 = vpop.xlane.xlu1 %3146 }
 0x71c   : > { %9880 = vpow2.f32 %v3198_v37  ;;  %v3174_v13 = vsub.f32 %v11937_v36, %v3147_v30  ;;  %v3153_v54 = vpop.xlane.xlu0 %3152 }
 0x71d   : > { %9882 = vpow2.f32 %v3192_v9  ;;  %v3177_v56 = vsub.f32 %v11941_v11, %v3153_v54 }
 0x71e   : > { %v12096_v27 = vpop.eup %9876  ;;  %v3194_v7 = vmul.f32 1.442695, %v3174_v13 }
 0x71f   : > { %3222 = vadd.xlane.f32.xlu1 %v12096_v27  ;;  %v3159_v12 = vpop.xlane.xlu1 %3158  ;;  %v3200_v4 = vmul.f32 1.442695, %v3177_v56 }
 0x720   : > { %9884 = vpow2.f32 %v3194_v7  ;;  %v3180_v0 = vsub.f32 %v11955_v21, %v3159_v12  ;;  %v3149_v52 = vpop.xlane.xlu0 %3148 }
 0x721   : > { %9886 = vpow2.f32 %v3188_v2  ;;  %v3175_v5 = vsub.f32 %v11959_v34, %v3149_v52 }
 0x722   : > { %v12101_v36 = vpop.eup %9878  ;;  %v3206_v10 = vmul.f32 1.442695, %v3180_v0 }
 0x723   : > { %v3155_v62 = vpop.xlane.xlu1 %3154  ;;  %3218 = vadd.xlane.f32.xlu1 %v12101_v36  ;;  %v3196_v46 = vmul.f32 1.442695, %v3175_v5 }
 0x724   : > { %9888 = vpow2.f32 %v3206_v10  ;;  %v3178_v11 = vsub.f32 %v11965_v3, %v3155_v62  ;;  %v3161_v57 = vpop.xlane.xlu0 %3160 }
 0x725   : > { %9890 = vpow2.f32 %v3200_v4  ;;  %v3181_v26 = vsub.f32 %v11969_v15, %v3161_v57 }
 0x726   : > { %v12106_v21 = vpop.eup %9880  ;;  %v3202_v42 = vmul.f32 1.442695, %v3178_v11 }
 0x727   : > { %v12108_v8 = vpop.eup %9882  ;;  %v3167_v34 = vpop.xlane.xlu1 %3166  ;;  %3230 = vadd.xlane.f32.xlu1 %v12106_v21  ;;  %v3208_v3 = vmul.f32 1.442695, %v3181_v26 }
 0x728   : > { %9892 = vpow2.f32 %v3202_v42  ;;  %v3184_v32 = vsub.f32 %v11983_v33, %v3167_v34  ;;  %3224 = vadd.xlane.f32.xlu0 %v12108_v8  ;;  %v3157_v18 = vpop.xlane.xlu0 %3156 }
 0x729   : > { %9894 = vpow2.f32 %v3196_v46  ;;  %v3179_v35 = vsub.f32 %v11987_v51, %v3157_v18 }
 0x72a   : > { %v12114_v1 = vpop.eup %9884  ;;  %v3214_v15 = vmul.f32 1.442695, %v3184_v32 }
 0x72b   : > { %v12116_v17 = vpop.eup %9886  ;;  %v3163_v59 = vpop.xlane.xlu1 %3162  ;;  %3226 = vadd.xlane.f32.xlu1 %v12114_v1  ;;  %v3204_v9 = vmul.f32 1.442695, %v3179_v35 }
 0x72c   : > { %9896 = vpow2.f32 %v3214_v15  ;;  %v3182_v37 = vsub.f32 %v11993_v24, %v3163_v59  ;;  %3220 = vadd.xlane.f32.xlu0 %v12116_v17  ;;  %v3169_v33 = vpop.xlane.xlu0 %3168 }
 0x72d   : > { %9898 = vpow2.f32 %v3208_v3  ;;  %v3185_v30 = vsub.f32 %v11997_v38, %v3169_v33 }
 0x72e   : > { %v12122_v13 = vpop.eup %9888  ;;  %v3210_v51 = vmul.f32 1.442695, %v3182_v37 }
 0x72f   : > { %v12124_v54 = vpop.eup %9890  ;;  %3238 = vadd.xlane.f32.xlu1 %v12122_v13  ;;  %v3216_v24 = vmul.f32 1.442695, %v3185_v30 }
 0x730   : > { %9900 = vpow2.f32 %v3210_v51  ;;  %3232 = vadd.xlane.f32.xlu0 %v12124_v54  ;;  %v3165_v2 = vpop.xlane.xlu0 %3164 }
 0x731   : > { %9902 = vpow2.f32 %v3204_v9  ;;  %v3183_v56 = vsub.f32 %v12008_v50, %v3165_v2 }
 0x732   : > { %v12129_v7 = vpop.eup %9892  ;;  %9904 = vpow2.f32 %v3216_v24 }
 0x733   : > { %v12131_v12 = vpop.eup %9894  ;;  %3234 = vadd.xlane.f32.xlu1 %v12129_v7  ;;  %v3212_v38 = vmul.f32 1.442695, %v3183_v56 }
 0x734   : > { %3228 = vadd.xlane.f32.xlu0 %v12131_v12 }
 0x735   : > { %9906 = vpow2.f32 %v3212_v38 }
 0x736   : > { %v12135_v0 = vpop.eup %9896 }
 0x737   : > { %v12137_v52 = vpop.eup %9898  ;;  %3246 = vadd.xlane.f32.xlu1 %v12135_v0 }
 0x738   : > { %3240 = vadd.xlane.f32.xlu0 %v12137_v52 }
 0x73a   : > { %v12141_v50 = vpop.eup %9900 }
 0x73b   : > { %v12143_v4 = vpop.eup %9902  ;;  %3242 = vadd.xlane.f32.xlu1 %v12141_v50 }
 0x73c   : > { %3236 = vadd.xlane.f32.xlu0 %v12143_v4  ;;  %v12147_v5 = vpop.eup %9904 }
 0x73f   : > { %v12150_v10 = vpop.eup %9906 }
 0x740   : > { %3248 = vadd.xlane.f32.xlu0 %v12147_v5 }
 0x744   : > { %3244 = vadd.xlane.f32.xlu0 %v12150_v10 }
 0x74c   : > { %3760 = vrot.lane.b32.xlu1 %v15555_v49, %s10446_s16 }
 0x74f   : > { %v3593_v62 = vpop.xlane.xlu1 %3592 }
 0x750   : > { %v3622_v11 = vsub.f32 %v12016_v28, %v3593_v62 }
 0x751   : > { %v3595_v57 = vpop.xlane.xlu0 %3594 }
 0x752   : > { %v3640_v46 = vmul.f32 1.442695, %v3622_v11  ;;  %v3623_v42 = vsub.f32 %v12019_v19, %v3595_v57 }
 0x753   : > { %v3589_v26 = vpop.xlane.xlu1 %3588 }
 0x754   : > { %9908 = vpow2.f32 %v3640_v46  ;;  %v3620_v34 = vsub.f32 %v12023_v55, %v3589_v26  ;;  %v3642_v35 = vmul.f32 1.442695, %v3623_v42 }
 0x755   : > { %v3591_v32 = vpop.xlane.xlu0 %3590 }
 0x756   : > { %v3636_v18 = vmul.f32 1.442695, %v3620_v34  ;;  %v3621_v15 = vsub.f32 %v12027_v20, %v3591_v32 }
 0x757   : > { %v3601_v3 = vpop.xlane.xlu1 %3600 }
 0x758   : > { %9910 = vpow2.f32 %v3636_v18  ;;  %v3638_v9 = vmul.f32 1.442695, %v3621_v15  ;;  %v3626_v55 = vsub.f32 %v12031_v60, %v3601_v3 }
 0x759   : > { %v3603_v59 = vpop.xlane.xlu0 %3602  ;;  %v12159_v49 = vpop.f32.mrb[64].mxu0  ;;  %9912 = vpow2.f32 %v3642_v35 }
 0x75a   : > { %v12161_v37 = vpop.f32.mrb[65].mxu0  ;;  %9914 = vpow2.f32 %v3638_v9  ;;  %v3648_v56 = vmul.f32 1.442695, %v3626_v55  ;;  %v3627_v42 = vsub.f32 %v12035_v25, %v3603_v59 }
 0x75b   : > { %v3597_v28 = vpop.xlane.xlu1 %3596  ;;  %v12163_v33 = vpop.f32.mrb[66].mxu0 }
 0x75c   : > { %v12165_v19 = vpop.f32.mrb[67].mxu0  ;;  %v3624_v38 = vsub.f32 %v12039_v31, %v3597_v28  ;;  %v3650_v28 = vmul.f32 1.442695, %v3627_v42 }
 0x75d   : > { %v3599_v30 = vpop.xlane.xlu0 %3598 }
 0x75e   : > { %v12168_v51 = vpop.eup %9908  ;;  %v3625_v2 = vsub.f32 %v12043_v29, %v3599_v30  ;;  %v3644_v34 = vmul.f32 1.442695, %v3624_v38 }
 0x75f   : > { %v3609_v20 = vpop.xlane.xlu1 %3608  ;;  %3672 = vadd.xlane.f32.xlu0 %v12168_v51 }
 0x760   : > { %v3646_v24 = vmul.f32 1.442695, %v3625_v2  ;;  %v3630_v9 = vsub.f32 %v12047_v41, %v3609_v20 }
 0x761   : > { %v3611_v62 = vpop.xlane.xlu0 %3610  ;;  %v12173_v11 = vpop.f32.mrb[68].mxu0 }
 0x762   : > { %v12175_v57 = vpop.eup %9910  ;;  %v12177_v46 = vpop.f32.mrb[69].mxu0  ;;  %9916 = vpow2.f32 %v3646_v24 }
 0x763   : > { %v3605_v60 = vpop.xlane.xlu1 %3604  ;;  %3668 = vadd.xlane.f32.xlu0 %v12175_v57  ;;  %v12180_v26 = vpop.f32.mrb[70].mxu0  ;;  %9918 = vpow2.f32 %v3648_v56 }
 0x764   : > { %v12182_v29 = vpop.f32.mrb[71].mxu0  ;;  %v12185_v32 = vpop.eup %9912  ;;  %9920 = vpow2.f32 %v3644_v34  ;;  %v3628_v56 = vsub.f32 %v12055_v47, %v3605_v60 }
 0x765   : > { %v3607_v31 = vpop.xlane.xlu0 %3606  ;;  %v12193_v25 = vpop.eup %9914 }
 0x766   : > { %v3629_v18 = vsub.f32 %v12059_v63, %v3607_v31  ;;  %v3631_v31 = vsub.f32 %v12051_v16, %v3611_v62 }
 0x767   : > { %v3617_v3 = vpop.xlane.xlu1 %3616  ;;  %3674 = vadd.xlane.f32.xlu0 %v12185_v32 }
 0x768   : > { %v3654_v35 = vmul.f32 1.442695, %v3629_v18  ;;  %v3634_v15 = vsub.f32 %v12063_v40, %v3617_v3  ;;  %v3656_v40 = vmul.f32 1.442695, %v3630_v9  ;;  %v3652_v18 = vmul.f32 1.442695, %v3628_v56 }
 0x769   : > { %v3619_v55 = vpop.xlane.xlu0 %3618  ;;  %v12191_v30 = vpop.f32.mrb[72].mxu0  ;;  %v3658_v9 = vmul.f32 1.442695, %v3631_v31  ;;  %v15558_v31 = vld [vmem:[#allocation6_spill] sm:$0xff] }
 0x76a   : > { %9922 = vpow2.f32 %v3654_v35  ;;  %v3664_v59 = vmul.f32 1.442695, %v3634_v15  ;;  %v12195_v2 = vpop.f32.mrb[73].mxu0 }
 0x76b   : > { %3670 = vadd.xlane.f32.xlu0 %v12193_v25  ;;  %v12198_v63 = vpop.f32.mrb[74].mxu0  ;;  %9924 = vpow2.f32 %v3650_v28  ;;  %v3613_v47 = vpop.xlane.xlu1 %3612 }
 0x76c   : > { %v12200_v24 = vpop.f32.mrb[75].mxu0  ;;  %v12203_v20 = vpop.eup %9916  ;;  %9926 = vpow2.f32 %v3664_v59  ;;  %v3632_v16 = vsub.f32 %v12071_v58, %v3613_v47 }
 0x76d   : > { %v3615_v41 = vpop.xlane.xlu0 %3614  ;;  %v12206_v42 = vpop.eup %9918  ;;  %9928 = vpow2.f32 %v3656_v40  ;;  %v3635_v40 = vsub.f32 %v12067_v53, %v3619_v55  ;;  %v4121_v53 = vsub.s32 3, %v15558_v31 }
 0x76e   : > { %v3633_v38 = vsub.f32 %v12075_v14, %v3615_v41  ;;  %v12215_v35 = vpop.eup %9920  ;;  %v3660_v56 = vmul.f32 1.442695, %v3632_v16 }
 0x76f   : > { %3678 = vadd.xlane.f32.xlu0 %v12203_v20  ;;  %v3666_v58 = vmul.f32 1.442695, %v3635_v40  ;;  %v10388_v40 = vld [vmem:[#allocation2] sm:$0xff] }
 0x770   : > { %v3662_v34 = vmul.f32 1.442695, %v3633_v38  ;;  %3680 = vadd.xlane.f32.xlu1 %v12206_v42 }
 0x771   : > { %v12211_v3 = vpop.f32.mrb[76].mxu0 }
 0x772   : > { %9930 = vpow2.f32 %v3662_v34  ;;  %v12213_v60 = vpop.f32.mrb[77].mxu0 }
 0x773   : > { %v12217_v14 = vpop.f32.mrb[78].mxu0  ;;  %9932 = vpow2.f32 %v3652_v18  ;;  %v15559_v18 = vld [vmem:[#allocation7_spill] sm:$0xff] }
 0x774   : > { %v12219_v15 = vpop.eup %9922  ;;  %v12221_v28 = vpop.f32.mrb[79].mxu0  ;;  %3676 = vadd.xlane.f32.xlu1 %v12215_v35  ;;  %9934 = vpow2.f32 %v3658_v9  ;;  %v12247_v47 = vrot.slane %v15559_v18, %v4121_v53  ;;  %v4156_v53 = vunpack.c.h.bf16 %v10388_v40 }
 0x775   : > { %3686 = vadd.xlane.f32.xlu0 %v12219_v15  ;;  %v12226_v62 = vpop.eup %9924  ;;  %9936 = vpow2.f32 %v3660_v56  ;;  %v4155_v56 = vunpack.c.l.bf16 %v10388_v40  ;;  %v4158_v40 = vunpack.c.h.bf16 %v10389_v23 }
 0x776   : > { %v12228_v59 = vpop.eup %9926  ;;  %9938 = vpow2.f32 %v3666_v58  ;;  %v4123_v16 = vadd.f32 %v12247_v47, %v12161_v37  ;;  %v4124_v31 = vadd.f32 %v12247_v47, %v12165_v19  ;;  %v4125_v18 = vadd.f32 %v12159_v49, %v12247_v47 }
 0x777   : > { %15557 = vst [vmem:[#allocation11_spill] sm:$0xff] %v12228_v59  ;;  %v12233_v41 = vpop.eup %9928  ;;  %v4126_v19 = vadd.f32 %v12163_v33, %v12247_v47  ;;  %v4127_v49 = vadd.f32 %v12247_v47, %v12177_v46  ;;  %v10391_v33 = vld [vmem:[#allocation2 + $0x18] sm:$0xff] }
 0x778   : > { %3682 = vadd.xlane.f32.xlu1 %v12226_v62  ;;  %v12257_v58 = vadd.f32 %v4155_v56, %v4123_v16  ;;  %v12264_v37 = vadd.f32 %v4156_v53, %v4124_v31  ;;  %v10390_v31 = vld [vmem:[#allocation2 + $0x10] sm:$0xff] }
 0x779   : > { %3696 = vadd.xlane.f32.xlu0 %v12228_v59  ;;  %v4157_v59 = vunpack.c.l.bf16 %v10389_v23  ;;  %v12274_v56 = vadd.f32 %v4158_v40, %v4126_v19  ;;  %v4159_v53 = vunpack.c.l.bf16 %v10390_v31  ;;  %v4130_v23 = vadd.f32 %v12180_v26, %v12247_v47 }
 0x77a   : > { %v4162_v19 = vunpack.c.h.bf16 %v10391_v33  ;;  %v4132_v26 = vadd.f32 %v12247_v47, %v12200_v24  ;;  %v4137_v24 = vadd.f32 %v12211_v3, %v12247_v47 }
 0x77b   : > { %v12269_v16 = vadd.f32 %v4157_v59, %v4125_v18  ;;  %15560 = vst [vmem:[#allocation23_spill] sm:$0xff] %v12274_v56  ;;  %v4128_v59 = vadd.f32 %v12247_v47, %v12182_v29  ;;  %v4160_v18 = vunpack.c.h.bf16 %v10390_v31 }
 0x77c   : > { %v12235_v38 = vpop.eup %9930  ;;  %3688 = vadd.xlane.f32.xlu1 %v12233_v41  ;;  %v12289_v46 = vadd.f32 %v4162_v19, %v4130_v23  ;;  %v10393_v23 = vld [vmem:[#allocation2 + $0x28] sm:$0xff] }
 0x77d   : > { %3694 = vadd.xlane.f32.xlu0 %v12235_v38  ;;  %v12239_v34 = vpop.eup %9932  ;;  %v12286_v40 = vadd.f32 %v4160_v18, %v4128_v59  ;;  %v4129_v59 = vadd.f32 %v12173_v11, %v12247_v47  ;;  %v4161_v18 = vunpack.c.l.bf16 %v10391_v33  ;;  %v4165_v19 = vunpack.c.l.bf16 %v10393_v23 }
 0x77e   : > { %v12243_v55 = vpop.eup %9934  ;;  %15563 = vst [vmem:[#allocation24_spill] sm:$0xff] %v12289_v46  ;;  %v4134_v33 = vadd.f32 %v12198_v63, %v12247_v47 }
 0x77f   : > { %v12249_v9 = vpop.eup %9936  ;;  %15562 = vst [vmem:[#allocation25_spill] sm:$0xff] %v12286_v40 }
 0x780   : > { %3684 = vadd.xlane.f32.xlu1 %v12239_v34  ;;  %v12254_v6 = vpop.eup %9938 }
 0x784   : > { %3690 = vadd.xlane.f32.xlu1 %v12243_v55 }
 0x788   : > { %3692 = vadd.xlane.f32.xlu1 %v12249_v9 }
 0x78c   : > { %3698 = vadd.xlane.f32.xlu1 %v12254_v6 }
 0x790   : > { %4219 = vadd.xlane.f32.xlu1 %v12257_v58 }
 0x793   : > { %3762 = vrot.lane.b32.xlu0 %v15556_v43, %s10446_s16  ;;  %v12279_v43 = vadd.f32 %v4159_v53, %v4127_v49  ;;  %v4131_v49 = vadd.f32 %v12247_v47, %v12195_v2  ;;  %v10392_v53 = vld [vmem:[#allocation2 + $0x20] sm:$0xff]  ;;  %v4133_v2 = vadd.f32 %v12191_v30, %v12247_v47  ;;  %v4166_v30 = vunpack.c.h.bf16 %v10393_v23 }
 0x794   : > { %4221 = vadd.xlane.f32.xlu1 %v12264_v37  ;;  %v4164_v31 = vunpack.c.h.bf16 %v10392_v53 }
 0x795   : > { %15561 = vst [vmem:[#allocation14_spill] sm:$0xff] %v12279_v43  ;;  %v12310_v11 = vadd.f32 %v4165_v19, %v4133_v2  ;;  %v12318_v3 = vadd.f32 %v4166_v30, %v4134_v33  ;;  %v4138_v30 = vadd.f32 %v12217_v14, %v12247_v47 }
 0x798   : > { %4223 = vadd.xlane.f32.xlu1 %v12269_v16 }
 0x79c   : > { %4225 = vadd.xlane.f32.xlu1 %v12274_v56  ;;  %v4163_v56 = vunpack.c.l.bf16 %v10392_v53 }
 0x79e   : > { %v12294_v29 = vadd.f32 %v4163_v56, %v4131_v49  ;;  %v12305_v56 = vadd.f32 %v4161_v18, %v4129_v59  ;;  %v10394_v49 = vld [vmem:[#allocation2 + $0x38] sm:$0xff]  ;;  %v4135_v18 = vadd.f32 %v12247_v47, %v12213_v60 }
 0x79f   : > { %v4169_v53 = vunpack.c.l.bf16 %v10394_v49 }
 0x7a0   : > { %4227 = vadd.xlane.f32.xlu1 %v12279_v43  ;;  %v12303_v43 = vadd.f32 %v4164_v31, %v4132_v26 }
 0x7a1   : > { %v12315_v26 = vadd.f32 %v4169_v53, %v4137_v24  ;;  %v4136_v24 = vadd.f32 %v12247_v47, %v12221_v28 }
 0x7a2   : > { %15564 = vst [vmem:[#allocation9_spill] sm:$0xff] %v12303_v43 }
 0x7a3   : > { %15565 = vst [vmem:[#allocation26_spill] sm:$0xff] %v12315_v26 }
 0x7a4   : > { %4229 = vadd.xlane.f32.xlu1 %v12286_v40 }
 0x7a8   : > { %4233 = vadd.xlane.f32.xlu1 %v12289_v46 }
 0x7ac   : > { %v3223_v40 = vpop.xlane.xlu1 %3222  ;;  %4235 = vadd.xlane.f32.xlu1 %v12294_v29 }
 0x7b0   : > { %v3219_v46 = vpop.xlane.xlu1 %3218  ;;  %4237 = vadd.xlane.f32.xlu1 %v12303_v43  ;;  %v10395_v43 = vld [vmem:[#allocation2 + $0x30] sm:$0xff] }
 0x7b1   : > { %v4167_v2 = vunpack.c.l.bf16 %v10395_v43  ;;  %v4168_v53 = vunpack.c.h.bf16 %v10395_v43 }
 0x7b2   : > { %4231 = vadd.xlane.f32.xlu0 %v12305_v56 }
 0x7b3   : > { %v12324_v19 = vadd.f32 %v4167_v2, %v4135_v18 }
 0x7b4   : > { %v3231_v31 = vpop.xlane.xlu1 %3230  ;;  %4239 = vadd.xlane.f32.xlu1 %v12310_v11 }
 0x7b5   : > { %v3225_v59 = vpop.xlane.xlu0 %3224  ;;  %15566 = vst [vmem:[#allocation12_spill] sm:$0xff] %v12324_v19 }
 0x7b6   : > { %4247 = vadd.xlane.f32.xlu0 %v12315_v26  ;;  %9940 = vrcp.f32 %v3225_v59  ;;  %v12331_v59 = vadd.f32 %v4168_v53, %v4136_v24 }
 0x7b7   : > { %9942 = vrcp.f32 %v3219_v46  ;;  %v4170_v46 = vunpack.c.h.bf16 %v10394_v49 }
 0x7b8   : > { %v3227_v63 = vpop.xlane.xlu1 %3226  ;;  %4241 = vadd.xlane.f32.xlu1 %v12318_v3  ;;  %9944 = vrcp.f32 %v3223_v40 }
 0x7b9   : > { %v3221_v23 = vpop.xlane.xlu0 %3220  ;;  %v12334_v2 = vadd.f32 %v4170_v46, %v4138_v30 }
 0x7ba   : > { %9946 = vrcp.f32 %v3221_v23 }
 0x7bc   : > { %v3239_v33 = vpop.xlane.xlu1 %3238  ;;  %4243 = vadd.xlane.f32.xlu1 %v12324_v19 }
 0x7bd   : > { %v3233_v60 = vpop.xlane.xlu0 %3232 }
 0x7be   : > { %9948 = vrcp.f32 %v3233_v60 }
 0x7bf   : > { %9950 = vrcp.f32 %v3227_v63 }
 0x7c0   : > { %4245 = vadd.xlane.f32.xlu1 %v12331_v59  ;;  %v9941_v40 = vpop.eup %9940  ;;  %9952 = vrcp.f32 %v3231_v31  ;;  %v3235_v18 = vpop.xlane.xlu1 %3234 }
 0x7c1   : > { %v3229_v28 = vpop.xlane.xlu0 %3228  ;;  %v9943_v43 = vpop.eup %9942  ;;  %v3269_v19 = vmul.f32 %v9941_v40, %v12108_v8 }
 0x7c2   : > { %9954 = vrcp.f32 %v3229_v28  ;;  %v9945_v23 = vpop.eup %9944  ;;  %v3266_v49 = vmul.f32 %v9943_v43, %v12101_v36 }
 0x7c3   : > { %v3268_v24 = vmul.f32 %v9945_v23, %v12096_v27 }
 0x7c4   : > { %v9947_v26 = vpop.eup %9946  ;;  %4249 = vadd.xlane.f32.xlu1 %v12334_v2  ;;  %v3247_v31 = vpop.xlane.xlu1 %3246 }
 0x7c5   : > { %v3241_v14 = vpop.xlane.xlu0 %3240  ;;  %v3267_v63 = vmul.f32 %v9947_v26, %v12116_v17  ;;  %v3283_v60 = vpack.c.bf16 %v3269_v19, %v3268_v24 }
 0x7c6   : > { %9956 = vrcp.f32 %v3241_v14 }
 0x7c7   : > { %v3282_v53 = vpack.c.bf16 %v3267_v63, %v3266_v49  ;;  %9958 = vrcp.f32 %v3235_v18 }
 0x7c8   : > { %v9949_v30 = vpop.eup %9948  ;;  %9960 = vrcp.f32 %v3239_v33  ;;  %v3243_v17 = vpop.xlane.xlu1 %3242 }
 0x7c9   : > { %9265 = vmatprep.mubr.bf16.mxu0 %v3282_v53  ;;  %v3237_v46 = vpop.xlane.xlu0 %3236  ;;  %v9951_v28 = vpop.eup %9950  ;;  %v3273_v27 = vmul.f32 %v9949_v30, %v12124_v54 }
 0x7ca   : > { %9962 = vrcp.f32 %v3237_v46  ;;  %9266 = vmatmul.mubr.bf16.vlgmr.msra.gmra.mrb[80].mxu0 %v3283_v60  ;;  %v9953_v8 = vpop.eup %9952  ;;  %v3270_v40 = vmul.f32 %v9951_v28, %v12114_v1 }
 0x7cb   : > { %9314 = vmatpush3.bf16.msra.mxu0 %v12010_v45  ;;  %v3272_v33 = vmul.f32 %v9953_v8, %v12106_v21 }
 0x7cc   : > { %v9955_v36 = vpop.eup %9954  ;;  %9315 = vmatprep.subr.bf16.mxu0 %v12083_v44  ;;  %v3761_v60 = vpop.permute.xlu1 %3760 }
 0x7cd   : > { %v3249_v26 = vpop.xlane.xlu0 %3248  ;;  %v3271_v19 = vmul.f32 %v9955_v36, %v12131_v12  ;;  %v3285_v45 = vpack.c.bf16 %v3273_v27, %v3272_v33 }
 0x7ce   : > { %9964 = vrcp.f32 %v3249_v26 }
 0x7cf   : > { %9316 = vmatpush3.bf16.msra.mxu0 %v12083_v44  ;;  %v3284_v18 = vpack.c.bf16 %v3271_v19, %v3270_v40  ;;  %9966 = vrcp.f32 %v3243_v17 }
 0x7d0   : > { %9317 = vmatprep.subr.bf16.mxu0 %v12079_v22  ;;  %v9957_v43 = vpop.eup %9956  ;;  %9968 = vrcp.f32 %v3247_v31 }
 0x7d1   : > { %9269 = vmatprep.mubr.bf16.mxu0 %v3284_v18  ;;  %v3245_v54 = vpop.xlane.xlu0 %3244  ;;  %v9959_v23 = vpop.eup %9958  ;;  %v3277_v44 = vmul.f32 %v9957_v43, %v12137_v52 }
 0x7d2   : > { %9970 = vrcp.f32 %v3245_v54  ;;  %9270 = vmatmul.mubr.bf16.gmra.mrb[84].mxu0 %v3285_v45  ;;  %v9961_v1 = vpop.eup %9960  ;;  %v3274_v21 = vmul.f32 %v9959_v23, %v12129_v7 }
 0x7d3   : > { %9318 = vmatpush3.bf16.msra.mxu0 %v12079_v22  ;;  %v3276_v49 = vmul.f32 %v9961_v1, %v12122_v13 }
 0x7d4   : > { %v9963_v12 = vpop.eup %9962  ;;  %9319 = vmatprep.subr.bf16.mxu0 %v12087_v48 }
 0x7d5   : > { %v3275_v14 = vmul.f32 %v9963_v12, %v12143_v4  ;;  %v3287_v24 = vpack.c.bf16 %v3277_v44, %v3276_v49 }
 0x7d7   : > { %9320 = vmatpush3.bf16.msra.mxu0 %v12087_v48  ;;  %v3286_v63 = vpack.c.bf16 %v3275_v14, %v3274_v21 }
 0x7d8   : > { %9321 = vmatprep.subr.bf16.mxu0 %v12081_v39  ;;  %v9965_v31 = vpop.eup %9964 }
 0x7d9   : > { %9273 = vmatprep.mubr.bf16.mxu0 %v3286_v63  ;;  %v9967_v22 = vpop.eup %9966  ;;  %v3281_v7 = vmul.f32 %v9965_v31, %v12147_v5 }
 0x7da   : > { %9274 = vmatmul.mubr.bf16.gmra.mrb[88].mxu0 %v3287_v24  ;;  %v9969_v53 = vpop.eup %9968  ;;  %v3278_v13 = vmul.f32 %v9967_v22, %v12141_v50  ;;  %v10396_v24 = vld [vmem:[%s10537_s30 + $0x20] sm:$0xff]  }
 0x7db   : > { %9322 = vmatpush3.bf16.msra.mxu0 %v12081_v39  ;;  %v3280_v4 = vmul.f32 %v9969_v53, %v12135_v0  ;;  %v10397_v53 = vld [vmem:[%s10537_s30 + $0x28] sm:$0xff]  }
 0x7dc   : > { %v9971_v52 = vpop.eup %9970  ;;  %9323 = vmatprep.subr.bf16.mxu0 %v12085_v61 }
 0x7dd   : > { %v3279_v48 = vmul.f32 %v9971_v52, %v12150_v10  ;;  %v3289_v46 = vpack.c.bf16 %v3281_v7, %v3280_v4 }
 0x7df   : > { %9324 = vmatpush3.bf16.msra.mxu0 %v12085_v61  ;;  %v3288_v30 = vpack.c.bf16 %v3279_v48, %v3278_v13 }
 0x7e0   : > { %9325 = vmatprep.subr.bf16.mxu0 %v3761_v60 }
 0x7e1   : > { %9277 = vmatprep.mubr.bf16.mxu0 %v3288_v30  ;;  %v10398_v30 = vld [vmem:[%s10537_s30 + $0x30] sm:$0xff]  }
 0x7e2   : > { %9278 = vmatmul.mubr.bf16.gmra.mrb[92].mxu0 %v3289_v46 }
 0x7e3   : > { %9326 = vmatpush3.bf16.msra.mxu0 %v3761_v60 }
 0x7ec   : > { %v3673_v39 = vpop.xlane.xlu0 %3672 }
 0x7f0   : > { %v3669_v28 = vpop.xlane.xlu0 %3668 }
 0x7f1   : > { %9972 = vrcp.f32 %v3669_v28 }
 0x7f4   : > { %v3675_v8 = vpop.xlane.xlu0 %3674 }
 0x7f8   : > { %v3671_v5 = vpop.xlane.xlu0 %3670 }
 0x7f9   : > { %9974 = vrcp.f32 %v3671_v5 }
 0x7fa   : > { %9976 = vrcp.f32 %v3675_v8  ;;  %v10399_v8 = vld [vmem:[%s10537_s30 + $0x38] sm:$0xff]  }
 0x7fb   : > { %v9973_v10 = vpop.eup %9972  ;;  %9978 = vrcp.f32 %v3673_v39 }
 0x7fc   : > { %v3679_v36 = vpop.xlane.xlu0 %3678  ;;  %v3716_v17 = vmul.f32 %v9973_v10, %v12175_v57  ;;  %v10400_v10 = vld [vmem:[%s10537_s30] sm:$0xff]  }
 0x7fd   : > { %v3681_v50 = vpop.xlane.xlu1 %3680 }
 0x801   : > { %v3677_v0 = vpop.xlane.xlu1 %3676 }
 0x802   : > { %9980 = vrcp.f32 %v3677_v0  ;;  %v3687_v61 = vpop.xlane.xlu0 %3686 }
 0x803   : > { %v9975_v27 = vpop.eup %9974  ;;  %9982 = vrcp.f32 %v3679_v36 }
 0x804   : > { %v3717_v26 = vmul.f32 %v9975_v27, %v12193_v25  ;;  %v9977_v45 = vpop.eup %9976 }
 0x805   : > { %v3683_v40 = vpop.xlane.xlu1 %3682  ;;  %v9979_v54 = vpop.eup %9978  ;;  %v3719_v12 = vmul.f32 %v9977_v45, %v12185_v32 }
 0x806   : > { %v3697_v19 = vpop.xlane.xlu0 %3696  ;;  %v3732_v33 = vpack.c.bf16 %v3717_v26, %v3716_v17  ;;  %9984 = vrcp.f32 %v3683_v40  ;;  %v3718_v21 = vmul.f32 %v9979_v54, %v12168_v51 }
 0x807   : > { %9986 = vrcp.f32 %v3681_v50 }
 0x808   : > { %9329 = vmatprep.mubr.bf16.mxu0 %v3732_v33  ;;  %9988 = vrcp.f32 %v3687_v61  ;;  %v3733_v63 = vpack.c.bf16 %v3719_v12, %v3718_v21 }
 0x809   : > { %v3689_v18 = vpop.xlane.xlu1 %3688 }
 0x80a   : > { %v3695_v43 = vpop.xlane.xlu0 %3694 }
 0x80c   : > { %v9981_v23 = vpop.eup %9980 }
 0x80d   : > { %v9983_v1 = vpop.eup %9982  ;;  %v3685_v44 = vpop.xlane.xlu1 %3684  ;;  %v3720_v25 = vmul.f32 %v9981_v23, %v12215_v35 }
 0x80e   : > { %9990 = vrcp.f32 %v3685_v44  ;;  %v3763_v57 = vpop.permute.xlu0 %3762  ;;  %v3721_v14 = vmul.f32 %v9983_v1, %v12203_v20 }
 0x80f   : > { %9327 = vmatprep.subr.bf16.mxu0 %v3763_v57  ;;  %9992 = vrcp.f32 %v3689_v18 }
 0x810   : > { %9328 = vmatpush3.bf16.msra.mxu0 %v3763_v57  ;;  %v9985_v31 = vpop.eup %9984  ;;  %v3734_v32 = vpack.c.bf16 %v3721_v14, %v3720_v25 }
 0x811   : > { %v3691_v49 = vpop.xlane.xlu1 %3690  ;;  %9345 = vmatprep.subr.bf16.mxu0 %v10396_v24  ;;  %v9987_v22 = vpop.eup %9986  ;;  %v3723_v35 = vmul.f32 %v9985_v31, %v12226_v62 }
 0x812   : > { %9994 = vrcp.f32 %v3691_v49  ;;  %v9989_v52 = vpop.eup %9988  ;;  %v3722_v20 = vmul.f32 %v9987_v22, %v12206_v42 }
 0x813   : > { %9330 = vmatmul.mubr.bf16.vlgmr.msra.gmra.mrb[96].mxu0 %v3733_v63  ;;  %9996 = vrcp.f32 %v3695_v43  ;;  %v3725_v60 = vmul.f32 %v9989_v52, %v12219_v15 }
 0x814   : > { %9333 = vmatprep.mubr.bf16.mxu0 %v3734_v32  ;;  %9346 = vmatpush3.bf16.msra.mxu0 %v10396_v24  ;;  %v3735_v48 = vpack.c.bf16 %v3723_v35, %v3722_v20 }
 0x815   : > { %v3693_v51 = vpop.xlane.xlu1 %3692  ;;  %9347 = vmatprep.subr.bf16.mxu0 %v10397_v53 }
 0x816   : > { %9998 = vrcp.f32 %v3693_v51 }
 0x817   : > { %10000 = vrcp.f32 %v3697_v19 }
 0x818   : > { %v9991_v7 = vpop.eup %9990  ;;  %9348 = vmatpush3.bf16.msra.mxu0 %v10397_v53 }
 0x819   : > { %v3699_v13 = vpop.xlane.xlu1 %3698  ;;  %v3724_v4 = vmul.f32 %v9991_v7, %v12239_v34  ;;  %9349 = vmatprep.subr.bf16.mxu0 %v10398_v30  ;;  %v9993_v46 = vpop.eup %9992 }
 0x81a   : > { %10002 = vrcp.f32 %v3699_v13  ;;  %v3726_v42 = vmul.f32 %v9993_v46, %v12233_v41  ;;  %v15567_v41 = vld [vmem:[#allocation11_spill] sm:$0xff] }
 0x81b   : > { %9334 = vmatmul.mubr.bf16.gmra.mrb[100].mxu0 %v3735_v48  ;;  %v3736_v62 = vpack.c.bf16 %v3725_v60, %v3724_v4  ;;  %v10401_v4 = vld [vmem:[%s10537_s30 + $0x8] sm:$0xff]  }
 0x81c   : > { %v9995_v39 = vpop.eup %9994  ;;  %9350 = vmatpush3.bf16.msra.mxu0 %v10398_v30 }
 0x81d   : > { %9337 = vmatprep.mubr.bf16.mxu0 %v3736_v62  ;;  %v3727_v28 = vmul.f32 %v9995_v39, %v12243_v55  ;;  %9351 = vmatprep.subr.bf16.mxu0 %v10399_v8  ;;  %v9997_v5 = vpop.eup %9996  ;;  %v10402_v39 = vld [vmem:[%s10537_s30 + $0x10] sm:$0xff]  }
 0x81e   : > { %v3729_v36 = vmul.f32 %v9997_v5, %v12235_v38 }
 0x81f   : > { %v3737_v34 = vpack.c.bf16 %v3727_v28, %v3726_v42 }
 0x820   : > { %v9999_v50 = vpop.eup %9998  ;;  %9352 = vmatpush3.bf16.msra.mxu0 %v10399_v8  ;;  %v10403_v8 = vld [vmem:[%s10537_s30 + $0x18] sm:$0xff]  }
 0x821   : > { %v3728_v15 = vmul.f32 %v9999_v50, %v12249_v9  ;;  %9369 = vmatprep.subr.bf16.mxu0 %v10400_v10  ;;  %v10001_v0 = vpop.eup %10000 }
 0x822   : > { %v3730_v17 = vmul.f32 %v10001_v0, %v15567_v41 }
 0x823   : > { %9338 = vmatmul.mubr.bf16.gmra.mrb[104].mxu0 %v3737_v34  ;;  %v3738_v61 = vpack.c.bf16 %v3729_v36, %v3728_v15 }
 0x824   : > { %v10003_v27 = vpop.eup %10002 }
 0x825   : > { %9341 = vmatprep.mubr.bf16.mxu0 %v3738_v61  ;;  %v3731_v55 = vmul.f32 %v10003_v27, %v12254_v6 }
 0x827   : > { %v3739_v26 = vpack.c.bf16 %v3731_v55, %v3730_v17  ;;  %v15568_v17 = vmov 0   ;;  %v4220_v55 = vpop.xlane.xlu1 %4219 }
 0x82b   : > { %9342 = vmatmul.mubr.bf16.gmra.mrb[108].mxu0 %v3739_v26  ;;  %v4222_v26 = vpop.xlane.xlu1 %4221 }
 0x89d   : > { %v12385_v40 = vpop.f32.mrb[80].mxu0 }
 0x89e   : > { %v12387_v19 = vpop.f32.mrb[81].mxu0 }
 0x89f   : > { %v12389_v9 = vpop.f32.mrb[82].mxu0 }
 0x8a0   : > { %v3388_v38 = vpack.c.bf16 %v12389_v9, %v12385_v40  ;;  %v12393_v33 = vpop.f32.mrb[83].mxu0 }
 0x8a1   : > { %v3387_v18 = vpack.c.bf16 %v12393_v33, %v12387_v19  ;;  %v4224_v19 = vpop.xlane.xlu1 %4223  ;;  %v10404_v33 = vld [vmem:[#allocation2 + $0x40] sm:$0xff] }
 0x8a5   : > { %v12397_v45 = vpop.f32.mrb[84].mxu0  ;;  %v4226_v40 = vpop.xlane.xlu1 %4225 }
 0x8a6   : > { %v3340_v43 = vpop.f32.mrb[85].mxu0 }
 0x8a7   : > { %v9272_v6 = vpop.f32.mrb[86].mxu0 }
 0x8a8   : > { %v3390_v54 = vpack.c.bf16 %v9272_v6, %v12397_v45  ;;  %v3343_v23 = vpop.f32.mrb[87].mxu0 }
 0x8a9   : > { %v3389_v1 = vpack.c.bf16 %v3343_v23, %v3340_v43  ;;  %v4228_v9 = vpop.xlane.xlu1 %4227  ;;  %v4284_v23 = vmul.f32 0.0078125, %v4220_v55 }
 0x8ad   : > { %v9275_v12 = vpop.f32.mrb[88].mxu0 }
 0x8ae   : > { %v3356_v44 = vpop.f32.mrb[89].mxu0 }
 0x8af   : > { %v9276_v57 = vpop.f32.mrb[90].mxu0 }
 0x8b0   : > { %v3392_v25 = vpack.c.bf16 %v9276_v57, %v9275_v12  ;;  %v3359_v21 = vpop.f32.mrb[91].mxu0 }
 0x8b1   : > { %v3391_v14 = vpack.c.bf16 %v3359_v21, %v3356_v44  ;;  %v10405_v44 = vld [vmem:[#allocation2 + $0x48] sm:$0xff] }
 0x8b2   : > { %v4173_v57 = vunpack.c.l.bf16 %v10405_v44 }
 0x8b5   : > { %v9279_v49 = vpop.f32.mrb[92].mxu0 }
 0x8b6   : > { %v3372_v63 = vpop.f32.mrb[93].mxu0 }
 0x8b7   : > { %v9280_v24 = vpop.f32.mrb[94].mxu0 }
 0x8b8   : > { %v3394_v31 = vpack.c.bf16 %v9280_v24, %v9279_v49  ;;  %v3375_v32 = vpop.f32.mrb[95].mxu0  ;;  %v4230_v49 = vpop.xlane.xlu1 %4229  ;;  %v4174_v24 = vunpack.c.h.bf16 %v10405_v44  ;;  %v9679_v44 = vld [vmem:[%s10547_s19 + $0x2c] ss:$16 sps:$4 sm:$0xff]  }
 0x8b9   : > { %v3393_v22 = vpack.c.bf16 %v3375_v32, %v3372_v63  ;;  %v12433_v32 = vsub.f32 %v12257_v58, %v4284_v23 }
 0x8e6   : > { %v9331_v51 = vpop.f32.mrb[96].mxu0 }
 0x8e7   : > { %v3806_v35 = vpop.f32.mrb[97].mxu0 }
 0x8e8   : > { %v9332_v53 = vpop.f32.mrb[98].mxu0 }
 0x8e9   : > { %v3870_v52 = vpack.c.bf16 %v9332_v53, %v9331_v51  ;;  %v3809_v20 = vpop.f32.mrb[99].mxu0 }
 0x8ea   : > { %v3869_v7 = vpack.c.bf16 %v3809_v20, %v3806_v35 }
 0x8ec   : > { %9353 = vmatprep.mubr.msk.bf16.mxu0 %vm1813_vm0, %v3869_v7 }
 0x8ed   : > { %9354 = vmatmul.mubr.msk.bf16.vlgmr.msra.gmra.mrb[112].mxu0 %vm1813_vm0, %v3870_v52 }
 0x8ee   : > { %v9335_v13 = vpop.f32.mrb[100].mxu0  ;;  %9370 = vmatpush3.bf16.msra.mxu0 %v10400_v10 }
 0x8ef   : > { %v3822_v48 = vpop.f32.mrb[101].mxu0  ;;  %9371 = vmatprep.subr.bf16.mxu0 %v10401_v4 }
 0x8f0   : > { %v9336_v60 = vpop.f32.mrb[102].mxu0 }
 0x8f1   : > { %v3872_v30 = vpack.c.bf16 %v9336_v60, %v9335_v13  ;;  %v3825_v46 = vpop.f32.mrb[103].mxu0  ;;  %v4286_v13 = vmul.f32 0.0078125, %v4224_v19  ;;  %v9673_v19 = vld [vmem:[%s10547_s19 + $0xc] ss:$16 sps:$4 sm:$0xff]  }
 0x8f2   : > { %v3871_v62 = vpack.c.bf16 %v3825_v46, %v3822_v48  ;;  %9372 = vmatpush3.bf16.msra.mxu0 %v10401_v4  ;;  %v12444_v48 = vpop.xlane.xlu1 %4233  ;;  %v10406_v4 = vld [vmem:[#allocation2 + $0x50] sm:$0xff] }
 0x8f3   : > { %9373 = vmatprep.subr.bf16.mxu0 %v10402_v39  ;;  %v4175_v60 = vunpack.c.l.bf16 %v10406_v4 }
 0x8f4   : > { %9357 = vmatprep.mubr.msk.bf16.mxu0 %vm1813_vm0, %v3871_v62  ;;  %v4176_v62 = vunpack.c.h.bf16 %v10406_v4 }
 0x8f5   : > { %9358 = vmatmul.mubr.msk.bf16.gmra.mrb[116].mxu0 %vm1813_vm0, %v3872_v30  ;;  %v4348_v30 = vmul.f32 %v12433_v32, %v12433_v32 }
 0x8f6   : > { %v9339_v42 = vpop.f32.mrb[104].mxu0  ;;  %9374 = vmatpush3.bf16.msra.mxu0 %v10402_v39 }
 0x8f7   : > { %v3838_v28 = vpop.f32.mrb[105].mxu0  ;;  %9375 = vmatprep.subr.bf16.mxu0 %v10403_v8 }
 0x8f8   : > { %v9340_v5 = vpop.f32.mrb[106].mxu0 }
 0x8f9   : > { %v3874_v34 = vpack.c.bf16 %v9340_v5, %v9339_v42  ;;  %v3841_v50 = vpop.f32.mrb[107].mxu0  ;;  %v12454_v42 = vsub.f32 %v12269_v16, %v4286_v13 }
 0x8fa   : > { %v3873_v15 = vpack.c.bf16 %v3841_v50, %v3838_v28  ;;  %9376 = vmatpush3.bf16.msra.mxu0 %v10403_v8 }
 0x8fb   : > { %v4350_v55 = vmul.f32 %v12454_v42, %v12454_v42  ;;  %5084 = vmatprep.subr.bf16.mxu0 %v9673_v19  ;;  %v15572_v19 = vld [vmem:[#allocation24_spill] sm:$0xff] }
 0x8fc   : > { %9361 = vmatprep.mubr.msk.bf16.mxu0 %vm1813_vm0, %v3873_v15  ;;  %v12463_v15 = vpop.xlane.xlu1 %4235 }
 0x8fd   : > { %9362 = vmatmul.mubr.msk.bf16.gmra.mrb[120].mxu0 %vm1813_vm0, %v3874_v34  ;;  %v15569_v34 = vld [vmem:[#allocation23_spill] sm:$0xff] }
 0x8fe   : > { %v9343_v36 = vpop.f32.mrb[108].mxu0 }
 0x8ff   : > { %v3854_v10 = vpop.f32.mrb[109].mxu0 }
 0x900   : > { %v9344_v0 = vpop.f32.mrb[110].mxu0 }
 0x901   : > { %v3876_v61 = vpack.c.bf16 %v9344_v0, %v9343_v36  ;;  %v3857_v27 = vpop.f32.mrb[111].mxu0  ;;  %v4288_v0 = vmul.f32 0.0078125, %v4228_v9 }
 0x902   : > { %v3875_v41 = vpack.c.bf16 %v3857_v27, %v3854_v10  ;;  %v10407_v27 = vld [vmem:[#allocation2 + $0x58] sm:$0xff] }
 0x904   : > { %9365 = vmatprep.mubr.msk.bf16.mxu0 %vm1813_vm0, %v3875_v41  ;;  %v4177_v41 = vunpack.c.l.bf16 %v10407_v27 }
 0x905   : > { %9366 = vmatmul.mubr.msk.bf16.gmra.mrb[124].mxu0 %vm1813_vm0, %v3876_v61 }
 0x906   : > { %9377 = vmatprep.mubr.msk.bf16.mxu0 %vm1813_vm0, %v3387_v18  ;;  %v4171_v18 = vunpack.c.l.bf16 %v10404_v33 }
 0x90d   : > { %9378 = vmatmul.mubr.msk.bf16.vlgmr.msra.gmra.mrb[112].mxu0 %vm1813_vm0, %v3388_v38 }
 0x90e   : > { %9381 = vmatprep.mubr.msk.bf16.mxu0 %vm1813_vm0, %v3389_v1 }
 0x915   : > { %9382 = vmatmul.mubr.msk.bf16.gmra.mrb[116].mxu0 %vm1813_vm0, %v3390_v54  ;;  %v4172_v54 = vunpack.c.h.bf16 %v10404_v33  ;;  %v4289_v33 = vmul.f32 0.0078125, %v4230_v49  ;;  %v9677_v49 = vld [vmem:[%s10547_s19 + $0x28] ss:$16 sps:$4 sm:$0xff]  }
 0x916   : > { %9385 = vmatprep.mubr.msk.bf16.mxu0 %vm1813_vm0, %v3391_v14  ;;  %v4285_v14 = vmul.f32 0.0078125, %v4222_v26  ;;  %v9670_v26 = vld [vmem:[%s10547_s19 + $0x4] ss:$16 sps:$4 sm:$0xff]  }
 0x917   : > { %4891 = vmatprep.subr.bf16.mxu1 %v9670_v26  ;;  %v9689_v26 = vld [vmem:[%s10547_s19 + $0x68] ss:$16 sps:$4 sm:$0xff]  }
 0x918   : > { %v12439_v53 = vsub.f32 %v12264_v37, %v4285_v14  ;;  %v4287_v37 = vmul.f32 0.0078125, %v4226_v40  ;;  %v9668_v40 = vld [vmem:[%s10547_s19] ss:$16 sps:$4 sm:$0xff]  }
 0x919   : > { %4892 = vmatpush1.bf16.msra.mxu1 %v9668_v40  ;;  %v9674_v14 = vld [vmem:[%s10547_s19 + $0x20] ss:$16 sps:$4 sm:$0xff]  }
 0x91a   : > { %v4349_v39 = vmul.f32 %v12439_v53, %v12439_v53  ;;  %v12461_v50 = vsub.f32 %v15569_v34, %v4287_v37  ;;  %v9685_v37 = vld [vmem:[%s10547_s19 + $0x4c] ss:$16 sps:$4 sm:$0xff]  }
 0x91c   : > { %v4351_v9 = vmul.f32 %v12461_v50, %v12461_v50 }
 0x91d   : > { %9386 = vmatmul.mubr.msk.bf16.gmra.mrb[120].mxu0 %vm1813_vm0, %v3392_v25 }
 0x91e   : > { %9389 = vmatprep.mubr.msk.bf16.mxu0 %vm1813_vm0, %v3393_v22 }
 0x925   : > { %9390 = vmatmul.mubr.msk.bf16.gmra.mrb[124].mxu0 %vm1813_vm0, %v3394_v31 }
 0x926   : > { %5116 = vmatprep.mubr.bf16.mxu0 %v15568_v17 }
 0x9e0   : > { %v9379_v38 = vpop.f32.mrb[112].mxu0 }
 0x9e1   : > { %v4056_v45 = vpop.f32.mrb[113].mxu0  ;;  %v4141_v12 = vadd.f32 %v9379_v38, %v12247_v47  ;;  %v9671_v38 = vld [vmem:[%s10547_s19 + $0x8] ss:$16 sps:$4 sm:$0xff]  }
 0x9e2   : > { %v4139_v43 = vadd.f32 %v12247_v47, %v4056_v45  ;;  %v9380_v6 = vpop.f32.mrb[114].mxu0  ;;  %v4178_v45 = vunpack.c.h.bf16 %v10407_v27  ;;  %5085 = vmatpush1.bf16.msra.mxu0 %v9671_v38 }
 0x9e3   : > { %v4059_v1 = vpop.f32.mrb[115].mxu0  ;;  %v4142_v63 = vadd.f32 %v9380_v6, %v12247_v47  ;;  %v12435_v22 = vadd.f32 %v4173_v57, %v4141_v12  ;;  %v9676_v12 = vld [vmem:[%s10547_s19 + $0x24] ss:$16 sps:$4 sm:$0xff]   ;;  %v4232_v57 = vpop.xlane.xlu0 %4231  ;;  %5086 = vmatprep.subr.bf16.mxu0 %v9679_v44 }
 0x9e4   : > { %v12425_v25 = vadd.f32 %v4171_v18, %v4139_v43  ;;  %v4140_v21 = vadd.f32 %v12247_v47, %v4059_v1  ;;  %v15570_v43 = vld [vmem:[#allocation14_spill] sm:$0xff]  ;;  %4893 = vmatprep.subr.bf16.mxu1 %v9676_v12  ;;  %v9697_v12 = vld [vmem:[%s10547_s19 + $0x8c] ss:$16 sps:$4 sm:$0xff]  }
 0x9e5   : > { %v12441_v52 = vadd.f32 %v4174_v24, %v4142_v63  ;;  %v12482_v6 = vsub.f32 %v15570_v43, %v4288_v0  ;;  %v15571_v63 = vld [vmem:[#allocation25_spill] sm:$0xff]  ;;  %4894 = vmatpush1.bf16.msra.mxu1 %v9674_v14  ;;  %v9694_v43 = vld [vmem:[%s10547_s19 + $0x84] ss:$16 sps:$4 sm:$0xff]  }
 0x9e6   : > { %v12429_v31 = vadd.f32 %v4172_v54, %v4140_v21  ;;  %4251 = vadd.xlane.f32.xlu0 %v12425_v25  ;;  %v12484_v54 = vpop.xlane.xlu1 %4237  ;;  %v12497_v24 = vsub.f32 %v15571_v63, %v4289_v33  ;;  %5087 = vmatpush1.bf16.msra.mxu0 %v9677_v49  ;;  %v9695_v14 = vld [vmem:[%s10547_s19 + $0x88] ss:$16 sps:$4 sm:$0xff]  }
 0x9e7   : > { %5088 = vmatprep.subr.bf16.mxu0 %v9685_v37 }
 0x9e8   : > { %4253 = vadd.xlane.f32.xlu1 %v12429_v31  ;;  %v9383_v51 = vpop.f32.mrb[116].mxu0  ;;  %v4353_v0 = vmul.f32 %v12497_v24, %v12497_v24 }
 0x9e9   : > { %v4072_v35 = vpop.f32.mrb[117].mxu0  ;;  %v4145_v61 = vadd.f32 %v9383_v51, %v12247_v47 }
 0x9ea   : > { %4255 = vadd.xlane.f32.xlu0 %v12435_v22  ;;  %v9384_v20 = vpop.f32.mrb[118].mxu0  ;;  %v4143_v58 = vadd.f32 %v12247_v47, %v4072_v35 }
 0x9eb   : > { %v4075_v7 = vpop.f32.mrb[119].mxu0  ;;  %v4146_v18 = vadd.f32 %v9384_v20, %v12247_v47  ;;  %v12486_v23 = vadd.f32 %v4177_v41, %v4145_v61  ;;  %v4240_v61 = vpop.xlane.xlu1 %4239 }
 0x9ec   : > { %4257 = vadd.xlane.f32.xlu1 %v12441_v52  ;;  %v4144_v46 = vadd.f32 %v12247_v47, %v4075_v7  ;;  %v12456_v28 = vadd.f32 %v4175_v60, %v4143_v58  ;;  %v4290_v7 = vmul.f32 0.0078125, %v4232_v57  ;;  %v10408_v58 = vld [vmem:[#allocation2 + $0x60] sm:$0xff]  ;;  %v4352_v60 = vmul.f32 %v12482_v6, %v12482_v6 }
 0x9ed   : > { %v12499_v51 = vadd.f32 %v4178_v45, %v4146_v18  ;;  %v4179_v4 = vunpack.c.l.bf16 %v10408_v58  ;;  %v4180_v34 = vunpack.c.h.bf16 %v10408_v58  ;;  %v10409_v18 = vld [vmem:[#allocation2 + $0x68] sm:$0xff]  ;;  %v9692_v57 = vld [vmem:[%s10547_s19 + $0x80] ss:$16 sps:$4 sm:$0xff]   ;;  %v9700_v58 = vld [vmem:[%s10547_s19 + $0xa4] ss:$16 sps:$4 sm:$0xff]  }
 0x9ee   : > { %4380 = vadd.xlane.f32.xlu0 %v4348_v30  ;;  %v12465_v36 = vadd.f32 %v4176_v62, %v4144_v46  ;;  %v9682_v30 = vld [vmem:[%s10547_s19 + $0x44] ss:$16 sps:$4 sm:$0xff]   ;;  %v9680_v46 = vld [vmem:[%s10547_s19 + $0x40] ss:$16 sps:$4 sm:$0xff]   ;;  %v9683_v62 = vld [vmem:[%s10547_s19 + $0x48] ss:$16 sps:$4 sm:$0xff]   ;;  %v12519_v27 = vsub.f32 %v12305_v56, %v4290_v7  ;;  %v4181_v45 = vunpack.c.l.bf16 %v10409_v18  ;;  %v4182_v49 = vunpack.c.h.bf16 %v10409_v18 }
 0x9ef   : > { %4895 = vmatprep.subr.bf16.mxu1 %v9682_v30  ;;  %5089 = vmatpush1.bf16.msra.mxu0 %v9683_v62  ;;  %v4292_v56 = vmul.f32 0.0078125, %v12463_v15  ;;  %v4242_v44 = vpop.xlane.xlu1 %4241  ;;  %v4293_v15 = vmul.f32 0.0078125, %v12484_v54  ;;  %v9703_v54 = vld [vmem:[%s10547_s19 + $0xac] ss:$16 sps:$4 sm:$0xff]   ;;  %v9712_v18 = vld [vmem:[%s10547_s19 + $0xe4] ss:$16 sps:$4 sm:$0xff]  }
 0x9f0   : > { %4382 = vadd.xlane.f32.xlu1 %v4349_v39  ;;  %v12458_v8 = vpop.f32.mrb[120].mxu0  ;;  %v4291_v39 = vmul.f32 0.0078125, %v12444_v48  ;;  %4896 = vmatpush1.bf16.msra.mxu1 %v9680_v46  ;;  %v9688_v48 = vld [vmem:[%s10547_s19 + $0x64] ss:$16 sps:$4 sm:$0xff]   ;;  %v4294_v46 = vmul.f32 0.0078125, %v4240_v61 }
 0x9f1   : > { %v4088_v5 = vpop.f32.mrb[121].mxu0  ;;  %4897 = vmatprep.subr.bf16.mxu1 %v9688_v48  ;;  %v4149_v33 = vadd.f32 %v12458_v8, %v12247_v47  ;;  %v12549_v7 = vsub.f32 %v12294_v29, %v4292_v56  ;;  %v9709_v48 = vld [vmem:[%s10547_s19 + $0xcc] ss:$16 sps:$4 sm:$0xff]  }
 0x9f2   : > { %4259 = vadd.xlane.f32.xlu0 %v12456_v28  ;;  %v12468_v16 = vpop.f32.mrb[122].mxu0  ;;  %v4147_v13 = vadd.f32 %v12247_v47, %v4088_v5  ;;  %v12528_v40 = vsub.f32 %v15572_v19, %v4291_v39  ;;  %v10410_v39 = vld [vmem:[#allocation2 + $0x70] sm:$0xff]  ;;  %v12577_v56 = vsub.f32 %v12310_v11, %v4294_v46 }
 0x9f3   : > { %v4091_v10 = vpop.f32.mrb[123].mxu0  ;;  %v4150_v8 = vadd.f32 %v12468_v16, %v12247_v47  ;;  %v9701_v16 = vld [vmem:[%s10547_s19 + $0xa8] ss:$16 sps:$4 sm:$0xff]   ;;  %v4244_v29 = vpop.xlane.xlu1 %4243  ;;  %v4184_v61 = vunpack.c.h.bf16 %v10410_v39 }
 0x9f4   : > { %4261 = vadd.xlane.f32.xlu1 %v12465_v36  ;;  %v4148_v5 = vadd.f32 %v12247_v47, %v4091_v10  ;;  %v12521_v41 = vadd.f32 %v4179_v4, %v4147_v13  ;;  %v9686_v10 = vld [vmem:[%s10547_s19 + $0x60] ss:$16 sps:$4 sm:$0xff]   ;;  %v4355_v63 = vmul.f32 %v12528_v40, %v12528_v40  ;;  %v12551_v13 = vadd.f32 %v4181_v45, %v4149_v33  ;;  %v9715_v45 = vld [vmem:[%s10547_s19 + $0xec] ss:$16 sps:$4 sm:$0xff]  }
 0x9f5   : > { %4898 = vmatpush1.bf16.msra.mxu1 %v9686_v10  ;;  %v9698_v4 = vld [vmem:[%s10547_s19 + $0xa0] ss:$16 sps:$4 sm:$0xff]   ;;  %v12560_v37 = vadd.f32 %v4182_v49, %v4150_v8  ;;  %v9707_v10 = vld [vmem:[%s10547_s19 + $0xc8] ss:$16 sps:$4 sm:$0xff]   ;;  %v4296_v11 = vmul.f32 0.0078125, %v4244_v29  ;;  %v4358_v8 = vmul.f32 %v12577_v56, %v12577_v56 }
 0x9f6   : > { %4384 = vadd.xlane.f32.xlu0 %v4350_v55  ;;  %v9691_v55 = vld [vmem:[%s10547_s19 + $0x6c] ss:$16 sps:$4 sm:$0xff]   ;;  %v12530_v38 = vadd.f32 %v4180_v34, %v4148_v5  ;;  %4899 = vmatprep.subr.bf16.mxu1 %v9694_v43  ;;  %v4183_v5 = vunpack.c.l.bf16 %v10410_v39  ;;  %v4356_v34 = vmul.f32 %v12549_v7, %v12549_v7  ;;  %v9710_v43 = vld [vmem:[%s10547_s19 + $0xe0] ss:$16 sps:$4 sm:$0xff]  }
 0x9f7   : > { %5090 = vmatprep.subr.bf16.mxu0 %v9691_v55  ;;  %v9704_v55 = vld [vmem:[%s10547_s19 + $0xc0] ss:$16 sps:$4 sm:$0xff]  }
 0x9f8   : > { %4386 = vadd.xlane.f32.xlu1 %v4351_v9  ;;  %v12488_v1 = vpop.f32.mrb[124].mxu0  ;;  %v4354_v9 = vmul.f32 %v12519_v27, %v12519_v27  ;;  %5091 = vmatpush1.bf16.msra.mxu0 %v9689_v26  ;;  %v4295_v26 = vmul.f32 0.0078125, %v4242_v44 }
 0x9f9   : > { %v12492_v21 = vpop.f32.mrb[125].mxu0  ;;  %5092 = vmatprep.subr.bf16.mxu0 %v9697_v12  ;;  %4900 = vmatpush1.bf16.msra.mxu1 %v9692_v57  ;;  %v4153_v57 = vadd.f32 %v12488_v1, %v12247_v47 }
 0x9fa   : > { %4263 = vadd.xlane.f32.xlu0 %v12486_v23  ;;  %v12502_v35 = vpop.f32.mrb[126].mxu0  ;;  %4901 = vmatprep.subr.bf16.mxu1 %v9700_v58  ;;  %v4151_v62 = vadd.f32 %v12247_v47, %v12492_v21  ;;  %v12586_v12 = vsub.f32 %v12318_v3, %v4295_v26  ;;  %v4248_v3 = vpop.xlane.xlu0 %4247 }
 0x9fb   : > { %v12504_v20 = vpop.f32.mrb[127].mxu0  ;;  %v4298_v1 = vmul.f32 0.0078125, %v4248_v3 }
 0x9fc   : > { %4265 = vadd.xlane.f32.xlu1 %v12499_v51  ;;  %5093 = vmatpush1.bf16.msra.mxu0 %v9695_v14  ;;  %v4152_v21 = vadd.f32 %v12247_v47, %v12504_v20  ;;  %v12579_v33 = vadd.f32 %v4183_v5, %v4151_v62  ;;  %v9713_v20 = vld [vmem:[%s10547_s19 + $0xe8] ss:$16 sps:$4 sm:$0xff]  }
 0x9fd   : > { %5094 = vmatprep.subr.bf16.mxu0 %v9703_v54  ;;  %4902 = vmatpush1.bf16.msra.mxu1 %v9698_v4  ;;  %v10411_v14 = vld [vmem:[#allocation2 + $0x78] sm:$0xff]  ;;  %v4359_v54 = vmul.f32 %v12586_v12, %v12586_v12 }
 0x9fe   : > { %4388 = vadd.xlane.f32.xlu0 %v4352_v60  ;;  %v15573_v60 = vld [vmem:[#allocation9_spill] sm:$0xff]  ;;  %v12588_v44 = vadd.f32 %v4184_v61, %v4152_v21  ;;  %v4186_v58 = vunpack.c.h.bf16 %v10411_v14 }
 0x9ff   : > { %v12558_v30 = vsub.f32 %v15573_v60, %v4293_v15  ;;  %v4185_v15 = vunpack.c.l.bf16 %v10411_v14 }
 0xa00   : > { %4390 = vadd.xlane.f32.xlu1 %v4353_v0  ;;  %5095 = vmatpush1.bf16.msra.mxu0 %v9701_v16  ;;  %v9706_v0 = vld [vmem:[%s10547_s19 + $0xc4] ss:$16 sps:$4 sm:$0xff]  }
 0xa01   : > { %v4357_v19 = vmul.f32 %v12558_v30, %v12558_v30  ;;  %4903 = vmatprep.subr.bf16.mxu1 %v9706_v0  ;;  %5096 = vmatprep.subr.bf16.mxu0 %v9709_v48  ;;  %v15574_v16 = vld [vmem:[#allocation12_spill] sm:$0xff]  ;;  %v12603_v29 = vadd.f32 %v4185_v15, %v4153_v57 }
 0xa02   : > { %4267 = vadd.xlane.f32.xlu0 %v12521_v41  ;;  %4904 = vmatpush1.bf16.msra.mxu1 %v9704_v55  ;;  %v12601_v60 = vsub.f32 %v15574_v16, %v4296_v11 }
 0xa03   : > { %4905 = vmatprep.subr.bf16.mxu1 %v9712_v18 }
 0xa04   : > { %4269 = vadd.xlane.f32.xlu1 %v12530_v38  ;;  %5097 = vmatpush1.bf16.msra.mxu0 %v9707_v10  ;;  %v4360_v5 = vmul.f32 %v12601_v60, %v12601_v60 }
 0xa05   : > { %5098 = vmatprep.subr.bf16.mxu0 %v9715_v45 }
 0xa06   : > { %4392 = vadd.xlane.f32.xlu0 %v4354_v9  ;;  %v4246_v9 = vpop.xlane.xlu1 %4245  ;;  %4906 = vmatpush1.bf16.msra.mxu1 %v9710_v43 }
 0xa07   : > { %v4297_v49 = vmul.f32 0.0078125, %v4246_v9 }
 0xa08   : > { %4394 = vadd.xlane.f32.xlu1 %v4355_v63  ;;  %5099 = vmatpush1.bf16.msra.mxu0 %v9713_v20  ;;  %v4154_v63 = vadd.f32 %v12502_v35, %v12247_v47  ;;  %v15575_v47 = vld [vmem:[#allocation26_spill] sm:$0xff] }
 0xa09   : > { %v12606_v46 = vsub.f32 %v12331_v59, %v4297_v49  ;;  %v12612_v35 = vsub.f32 %v15575_v47, %v4298_v1 }
 0xa0a   : > { %4271 = vadd.xlane.f32.xlu0 %v12551_v13  ;;  %v4250_v4 = vpop.xlane.xlu1 %4249  ;;  %v12608_v39 = vadd.f32 %v4186_v58, %v4154_v63 }
 0xa0b   : > { %v4299_v62 = vmul.f32 0.0078125, %v4250_v4  ;;  %v4361_v59 = vmul.f32 %v12606_v46, %v12606_v46  ;;  %v4362_v0 = vmul.f32 %v12612_v35, %v12612_v35 }
 0xa0c   : > { %4273 = vadd.xlane.f32.xlu1 %v12560_v37 }
 0xa0e   : > { %4396 = vadd.xlane.f32.xlu0 %v4356_v34  ;;  %v12618_v34 = vsub.f32 %v12334_v2, %v4299_v62 }
 0xa10   : > { %4398 = vadd.xlane.f32.xlu1 %v4357_v19  ;;  %v4363_v48 = vmul.f32 %v12618_v34, %v12618_v34 }
 0xa12   : > { %4275 = vadd.xlane.f32.xlu0 %v12579_v33 }
 0xa14   : > { %4277 = vadd.xlane.f32.xlu1 %v12588_v44 }
 0xa16   : > { %4400 = vadd.xlane.f32.xlu0 %v4358_v8 }
 0xa18   : > { %4402 = vadd.xlane.f32.xlu1 %v4359_v54 }
 0xa1a   : > { %4279 = vadd.xlane.f32.xlu0 %v12603_v29 }
 0xa1c   : > { %4281 = vadd.xlane.f32.xlu1 %v12608_v39 }
 0xa1e   : > { %4404 = vadd.xlane.f32.xlu0 %v4360_v5  ;;  %v15576_v5 = vld [vmem:[#allocation6_spill] sm:$0xff] }
 0xa20   : > { %4406 = vadd.xlane.f32.xlu1 %v4361_v59  ;;  %v4574_v59 = vsub.s32 4, %v15576_v5 }
 0xa22   : > { %4408 = vadd.xlane.f32.xlu0 %v4362_v0 }
 0xa24   : > { %4410 = vadd.xlane.f32.xlu1 %v4363_v48 }
 0xa73   : > { %v4252_v55 = vpop.xlane.xlu0 %4251 }
 0xa74   : > { %v4300_v10 = vmul.f32 0.0078125, %v4252_v55 }
 0xa75   : > { %v4254_v26 = vpop.xlane.xlu1 %4253 }
 0xa76   : > { %v12627_v21 = vsub.f32 %v12425_v25, %v4300_v10  ;;  %v4301_v2 = vmul.f32 0.0078125, %v4254_v26 }
 0xa77   : > { %v4256_v61 = vpop.xlane.xlu0 %4255 }
 0xa78   : > { %v12630_v19 = vsub.f32 %v12429_v31, %v4301_v2  ;;  %v4302_v18 = vmul.f32 0.0078125, %v4256_v61  ;;  %v4364_v45 = vmul.f32 %v12627_v21, %v12627_v21 }
 0xa79   : > { %v4258_v9 = vpop.xlane.xlu1 %4257 }
 0xa7a   : > { %v12635_v43 = vsub.f32 %v12435_v22, %v4302_v18  ;;  %v4303_v20 = vmul.f32 0.0078125, %v4258_v9  ;;  %4412 = vadd.xlane.f32.xlu0 %v4364_v45  ;;  %v4365_v11 = vmul.f32 %v12630_v19, %v12630_v19  ;;  %v4610_v45 = vsub.s32 5, %v15576_v5 }
 0xa7b   : > { %v4381_v25 = vpop.xlane.xlu0 %4380 }
 0xa7c   : > { %v12640_v57 = vsub.f32 %v12441_v52, %v4303_v20  ;;  %v4444_v14 = vmul.f32 0.0078125, %v4381_v25  ;;  %4414 = vadd.xlane.f32.xlu1 %v4365_v11  ;;  %v4366_v31 = vmul.f32 %v12635_v43, %v12635_v43 }
 0xa7d   : > { %v4383_v15 = vpop.xlane.xlu1 %4382 }
 0xa7e   : > { %v4476_v8 = vadd.f32 1e-12, %v4444_v14  ;;  %v4445_v3 = vmul.f32 0.0078125, %v4383_v15  ;;  %4416 = vadd.xlane.f32.xlu0 %v4366_v31  ;;  %v4367_v22 = vmul.f32 %v12640_v57, %v12640_v57 }
 0xa7f   : > { %v4260_v49 = vpop.xlane.xlu0 %4259 }
 0xa80   : > { %10004 = vrsqrt.f32 %v4476_v8  ;;  %v4477_v63 = vadd.f32 1e-12, %v4445_v3  ;;  %v4304_v58 = vmul.f32 0.0078125, %v4260_v49  ;;  %4418 = vadd.xlane.f32.xlu1 %v4367_v22 }
 0xa81   : > { %v4262_v54 = vpop.xlane.xlu1 %4261 }
 0xa82   : > { %10006 = vrsqrt.f32 %v4477_v63  ;;  %v12647_v52 = vsub.f32 %v12456_v28, %v4304_v58  ;;  %v4305_v4 = vmul.f32 0.0078125, %v4262_v54 }
 0xa83   : > { %v4385_v1 = vpop.xlane.xlu0 %4384 }
 0xa84   : > { %v12650_v16 = vsub.f32 %v12465_v36, %v4305_v4  ;;  %v4446_v62 = vmul.f32 0.0078125, %v4385_v1  ;;  %v4368_v47 = vmul.f32 %v12647_v52, %v12647_v52  ;;  %v15577_v36 = vld [vmem:[#allocation7_spill] sm:$0xff] }
 0xa85   : > { %v4387_v0 = vpop.xlane.xlu1 %4386  ;;  %v12660_v61 = vrot.slane %v15577_v36, %v4574_v59 }
 0xa86   : > { %v4478_v48 = vadd.f32 1e-12, %v4446_v62  ;;  %v4447_v55 = vmul.f32 0.0078125, %v4387_v0  ;;  %4420 = vadd.xlane.f32.xlu0 %v4368_v47  ;;  %v4369_v10 = vmul.f32 %v12650_v16, %v12650_v16 }
 0xa87   : > { %v4264_v28 = vpop.xlane.xlu0 %4263 }
 0xa88   : > { %10008 = vrsqrt.f32 %v4478_v48  ;;  %v4479_v26 = vadd.f32 1e-12, %v4447_v55  ;;  %v4306_v2 = vmul.f32 0.0078125, %v4264_v28  ;;  %4422 = vadd.xlane.f32.xlu1 %v4369_v10 }
 0xa89   : > { %v4266_v18 = vpop.xlane.xlu1 %4265 }
 0xa8a   : > { %v10005_v9 = vpop.eup %10004  ;;  %10010 = vrsqrt.f32 %v4479_v26  ;;  %v12664_v20 = vsub.f32 %v12486_v23, %v4306_v2  ;;  %v4307_v11 = vmul.f32 0.0078125, %v4266_v18  ;;  %v12675_v23 = vrot.slane %v15577_v36, %v4610_v45 }
 0xa8b   : > { %v4540_v25 = vmul.f32 %v10005_v9, %v12433_v32  ;;  %v4389_v14 = vpop.xlane.xlu0 %4388 }
 0xa8c   : > { %v10007_v31 = vpop.eup %10006  ;;  %v12668_v15 = vsub.f32 %v12499_v51, %v4307_v11  ;;  %v4448_v8 = vmul.f32 0.0078125, %v4389_v14  ;;  %v4370_v3 = vmul.f32 %v12664_v20, %v12664_v20 }
 0xa8d   : > { %v4576_v22 = vmul.f32 %v12660_v61, %v4540_v25  ;;  %v4541_v49 = vmul.f32 %v10007_v31, %v12439_v53  ;;  %v4391_v63 = vpop.xlane.xlu1 %4390 }
 0xa8e   : > { %v4480_v58 = vadd.f32 1e-12, %v4448_v8  ;;  %v4449_v54 = vmul.f32 0.0078125, %v4391_v63  ;;  %4424 = vadd.xlane.f32.xlu0 %v4370_v3  ;;  %v4371_v32 = vmul.f32 %v12668_v15, %v12668_v15 }
 0xa8f   : > { %v4577_v51 = vmul.f32 %v12660_v61, %v4541_v49  ;;  %v4268_v4 = vpop.xlane.xlu0 %4267  ;;  %v12681_v53 = vadd.f32 %v12675_v23, %v4576_v22 }
 0xa90   : > { %10012 = vrsqrt.f32 %v4480_v58  ;;  %v4481_v1 = vadd.f32 1e-12, %v4449_v54  ;;  %v4308_v62 = vmul.f32 0.0078125, %v4268_v4  ;;  %4426 = vadd.xlane.f32.xlu1 %v4371_v32 }
 0xa91   : > { %v4270_v47 = vpop.xlane.xlu1 %4269  ;;  %15578 = vst [vmem:[#allocation10_spill] sm:$0xff] %v12681_v53  ;;  %v12684_v0 = vadd.f32 %v12675_v23, %v4577_v51 }
 0xa92   : > { %v10009_v48 = vpop.eup %10008  ;;  %10014 = vrsqrt.f32 %v4481_v1  ;;  %v12687_v55 = vsub.f32 %v12521_v41, %v4308_v62  ;;  %v4309_v10 = vmul.f32 0.0078125, %v4270_v47 }
 0xa93   : > { %15579 = vst [vmem:[#allocation18_spill] sm:$0xff] %v12684_v0  ;;  %v4393_v28 = vpop.xlane.xlu0 %4392  ;;  %v4644_v26 = vpack.c.bf16 %v12684_v0, %v12681_v53  ;;  %v4542_v2 = vmul.f32 %v10009_v48, %v12454_v42 }
 0xa94   : > { %v10011_v18 = vpop.eup %10010  ;;  %v12693_v45 = vsub.f32 %v12530_v38, %v4309_v10  ;;  %v4450_v9 = vmul.f32 0.0078125, %v4393_v28  ;;  %v4372_v11 = vmul.f32 %v12687_v55, %v12687_v55 }
 0xa95   : > { %v4395_v25 = vpop.xlane.xlu1 %4394  ;;  %4924 = vmatmul.mubr.bf16.vlgmr.msra.gmra.mrb[128].mxu1 %v4644_v26  ;;  %5117 = vmatmul.mubr.bf16.vlgmr.msra.gmra.mrb[128].mxu0 %v4644_v26  ;;  %v4543_v41 = vmul.f32 %v10011_v18, %v12461_v50  ;;  %v4578_v14 = vmul.f32 %v12660_v61, %v4542_v2 }
 0xa96   : > { %v4482_v31 = vadd.f32 1e-12, %v4450_v9  ;;  %v4451_v8 = vmul.f32 0.0078125, %v4395_v25  ;;  %4428 = vadd.xlane.f32.xlu0 %v4372_v11  ;;  %v4373_v42 = vmul.f32 %v12693_v45, %v12693_v45  ;;  %4933 = vmatprep.mubr.bf16.mxu1 %v15568_v17 }
 0xa97   : > { %v4272_v38 = vpop.xlane.xlu0 %4271  ;;  %5126 = vmatprep.mubr.bf16.mxu0 %v15568_v17  ;;  %v4579_v3 = vmul.f32 %v12660_v61, %v4543_v41  ;;  %v12705_v63 = vadd.f32 %v12675_v23, %v4578_v14 }
 0xa98   : > { %10016 = vrsqrt.f32 %v4482_v31  ;;  %v4483_v22 = vadd.f32 1e-12, %v4451_v8  ;;  %v4310_v49 = vmul.f32 0.0078125, %v4272_v38  ;;  %4430 = vadd.xlane.f32.xlu1 %v4373_v42 }
 0xa99   : > { %v4274_v50 = vpop.xlane.xlu1 %4273  ;;  %15580 = vst [vmem:[#allocation13_spill] sm:$0xff] %v12705_v63  ;;  %v12708_v58 = vadd.f32 %v12675_v23, %v4579_v3 }
 0xa9a   : > { %v10013_v54 = vpop.eup %10012  ;;  %10018 = vrsqrt.f32 %v4483_v22  ;;  %v12711_v32 = vsub.f32 %v12551_v13, %v4310_v49  ;;  %v4311_v51 = vmul.f32 0.0078125, %v4274_v50 }
 0xa9b   : > { %15581 = vst [vmem:[#allocation20_spill] sm:$0xff] %v12708_v58  ;;  %v4397_v4 = vpop.xlane.xlu0 %4396  ;;  %v4645_v1 = vpack.c.bf16 %v12708_v58, %v12705_v63  ;;  %v4544_v62 = vmul.f32 %v10013_v54, %v12482_v6 }
 0xa9c   : > { %v10015_v47 = vpop.eup %10014  ;;  %v12717_v48 = vsub.f32 %v12560_v37, %v4311_v51  ;;  %v4452_v10 = vmul.f32 0.0078125, %v4397_v4  ;;  %v4374_v28 = vmul.f32 %v12711_v32, %v12711_v32 }
 0xa9d   : > { %v4399_v26 = vpop.xlane.xlu1 %4398  ;;  %4934 = vmatmul.mubr.bf16.gmra.mrb[132].mxu1 %v4645_v1  ;;  %5127 = vmatmul.mubr.bf16.gmra.mrb[132].mxu0 %v4645_v1  ;;  %v4545_v13 = vmul.f32 %v10015_v47, %v12497_v24  ;;  %v4580_v2 = vmul.f32 %v12660_v61, %v4544_v62 }
 0xa9e   : > { %v4484_v18 = vadd.f32 1e-12, %v4452_v10  ;;  %v4453_v9 = vmul.f32 0.0078125, %v4399_v26  ;;  %4432 = vadd.xlane.f32.xlu0 %v4374_v28  ;;  %v4375_v6 = vmul.f32 %v12717_v48, %v12717_v48  ;;  %4943 = vmatprep.mubr.bf16.mxu1 %v15568_v17 }
 0xa9f   : > { %v4276_v37 = vpop.xlane.xlu0 %4275  ;;  %5136 = vmatprep.mubr.bf16.mxu0 %v15568_v17  ;;  %v4581_v11 = vmul.f32 %v12660_v61, %v4545_v13  ;;  %v12729_v14 = vadd.f32 %v12675_v23, %v4580_v2 }
 0xaa0   : > { %10020 = vrsqrt.f32 %v4484_v18  ;;  %v4485_v25 = vadd.f32 1e-12, %v4453_v9  ;;  %v4312_v41 = vmul.f32 0.0078125, %v4276_v37  ;;  %4434 = vadd.xlane.f32.xlu1 %v4375_v6 }
 0xaa1   : > { %v4278_v24 = vpop.xlane.xlu1 %4277  ;;  %15582 = vst [vmem:[#allocation16_spill] sm:$0xff] %v12729_v14  ;;  %v12732_v31 = vadd.f32 %v12675_v23, %v4581_v11 }
 0xaa2   : > { %v10017_v8 = vpop.eup %10016  ;;  %10022 = vrsqrt.f32 %v4485_v25  ;;  %v12735_v42 = vsub.f32 %v12579_v33, %v4312_v41  ;;  %v4313_v38 = vmul.f32 0.0078125, %v4278_v24 }
 0xaa3   : > { %15583 = vst [vmem:[#allocation19_spill] sm:$0xff] %v12732_v31  ;;  %v4401_v3 = vpop.xlane.xlu0 %4400  ;;  %v4646_v22 = vpack.c.bf16 %v12732_v31, %v12729_v14  ;;  %v4546_v49 = vmul.f32 %v10017_v8, %v12519_v27 }
 0xaa4   : > { %v10019_v50 = vpop.eup %10018  ;;  %v12741_v54 = vsub.f32 %v12588_v44, %v4313_v38  ;;  %v4454_v51 = vmul.f32 0.0078125, %v4401_v3  ;;  %v4376_v4 = vmul.f32 %v12735_v42, %v12735_v42 }
 0xaa5   : > { %v4403_v1 = vpop.xlane.xlu1 %4402  ;;  %4944 = vmatmul.mubr.bf16.gmra.mrb[136].mxu1 %v4646_v22  ;;  %5137 = vmatmul.mubr.bf16.gmra.mrb[136].mxu0 %v4646_v22  ;;  %v4547_v33 = vmul.f32 %v10019_v50, %v12528_v40  ;;  %v4582_v62 = vmul.f32 %v12660_v61, %v4546_v49 }
 0xaa6   : > { %v4486_v47 = vadd.f32 1e-12, %v4454_v51  ;;  %v4455_v10 = vmul.f32 0.0078125, %v4403_v1  ;;  %4436 = vadd.xlane.f32.xlu0 %v4376_v4  ;;  %v4377_v27 = vmul.f32 %v12741_v54, %v12741_v54  ;;  %4953 = vmatprep.mubr.bf16.mxu1 %v15568_v17 }
 0xaa7   : > { %v4280_v44 = vpop.xlane.xlu0 %4279  ;;  %5146 = vmatprep.mubr.bf16.mxu0 %v15568_v17  ;;  %v4583_v28 = vmul.f32 %v12660_v61, %v4547_v33  ;;  %v12753_v2 = vadd.f32 %v12675_v23, %v4582_v62 }
 0xaa8   : > { %10024 = vrsqrt.f32 %v4486_v47  ;;  %v4487_v26 = vadd.f32 1e-12, %v4455_v10  ;;  %v4314_v13 = vmul.f32 0.0078125, %v4280_v44  ;;  %4438 = vadd.xlane.f32.xlu1 %v4377_v27 }
 0xaa9   : > { %v4282_v40 = vpop.xlane.xlu1 %4281  ;;  %15584 = vst [vmem:[#allocation15_spill] sm:$0xff] %v12753_v2  ;;  %v12756_v18 = vadd.f32 %v12675_v23, %v4583_v28 }
 0xaaa   : > { %v10021_v9 = vpop.eup %10020  ;;  %10026 = vrsqrt.f32 %v4487_v26  ;;  %v12759_v6 = vsub.f32 %v12603_v29, %v4314_v13  ;;  %v4315_v37 = vmul.f32 0.0078125, %v4282_v40 }
 0xaab   : > { %15585 = vst [vmem:[#allocation17_spill] sm:$0xff] %v12756_v18  ;;  %v4405_v11 = vpop.xlane.xlu0 %4404  ;;  %v4647_v25 = vpack.c.bf16 %v12756_v18, %v12753_v2  ;;  %v4548_v41 = vmul.f32 %v10021_v9, %v12549_v7 }
 0xaac   : > { %v10023_v24 = vpop.eup %10022  ;;  %v12765_v8 = vsub.f32 %v12608_v39, %v4315_v37  ;;  %v4456_v38 = vmul.f32 0.0078125, %v4405_v11  ;;  %v4378_v3 = vmul.f32 %v12759_v6, %v12759_v6 }
 0xaad   : > { %v4407_v22 = vpop.xlane.xlu1 %4406  ;;  %4954 = vmatmul.mubr.bf16.gmra.mrb[140].mxu1 %v4647_v25  ;;  %5147 = vmatmul.mubr.bf16.gmra.mrb[140].mxu0 %v4647_v25  ;;  %v4549_v29 = vmul.f32 %v10023_v24, %v12558_v30  ;;  %v4584_v49 = vmul.f32 %v12660_v61, %v4548_v41 }
 0xaae   : > { %v4488_v50 = vadd.f32 1e-12, %v4456_v38  ;;  %v4457_v51 = vmul.f32 0.0078125, %v4407_v22  ;;  %4440 = vadd.xlane.f32.xlu0 %v4378_v3  ;;  %v4379_v7 = vmul.f32 %v12765_v8, %v12765_v8  ;;  %4963 = vmatprep.mubr.bf16.mxu1 %v15568_v17 }
 0xaaf   : > { %v4409_v39 = vpop.xlane.xlu0 %4408  ;;  %5156 = vmatprep.mubr.bf16.mxu0 %v15568_v17  ;;  %v4585_v4 = vmul.f32 %v12660_v61, %v4549_v29  ;;  %v12777_v62 = vadd.f32 %v12675_v23, %v4584_v49 }
 0xab0   : > { %10028 = vrsqrt.f32 %v4488_v50  ;;  %v4489_v1 = vadd.f32 1e-12, %v4457_v51  ;;  %v4458_v33 = vmul.f32 0.0078125, %v4409_v39  ;;  %4442 = vadd.xlane.f32.xlu1 %v4379_v7 }
 0xab1   : > { %v4411_v30 = vpop.xlane.xlu1 %4410  ;;  %15586 = vst [vmem:[#allocation22_spill] sm:$0xff] %v12777_v62  ;;  %v12780_v47 = vadd.f32 %v12675_v23, %v4585_v4 }
 0xab2   : > { %v10025_v10 = vpop.eup %10024  ;;  %10030 = vrsqrt.f32 %v4489_v1  ;;  %v4490_v27 = vadd.f32 1e-12, %v4458_v33  ;;  %v4459_v44 = vmul.f32 0.0078125, %v4411_v30  ;;  %v9716_v30 = vld [vmem:[%s10552_s23 + $0x40] sm:$0xff]  }
 0xab3   : > { %15587 = vst [vmem:[#allocation21_spill] sm:$0xff] %v12780_v47  ;;  %v4648_v28 = vpack.c.bf16 %v12780_v47, %v12777_v62  ;;  %v4550_v26 = vmul.f32 %v10025_v10, %v12577_v56  ;;  %v9717_v10 = vld [vmem:[%s10552_s23 + $0xc0] sm:$0xff]   ;;  %8745 = vmatprep.subr.bf16.mxu1 %v9716_v30 }
 0xab4   : > { %v10027_v13 = vpop.eup %10026  ;;  %10032 = vrsqrt.f32 %v4490_v27  ;;  %v4491_v40 = vadd.f32 1e-12, %v4459_v44  ;;  %8857 = vmatprep.subr.bf16.mxu0 %v9717_v10  ;;  %v9718_v27 = vld [vmem:[%s10552_s23] sm:$0xff]  }
 0xab5   : > { %4964 = vmatmul.mubr.bf16.gmra.mrb[144].mxu1 %v4648_v28  ;;  %5157 = vmatmul.mubr.bf16.gmra.mrb[144].mxu0 %v4648_v28  ;;  %v4551_v9 = vmul.f32 %v10027_v13, %v12586_v12  ;;  %v4586_v37 = vmul.f32 %v12660_v61, %v4550_v26  ;;  %v9719_v44 = vld [vmem:[%s10552_s23 + $0x80] sm:$0xff]   ;;  %v9720_v28 = vld [vmem:[%s10552_s23 + $0x48] sm:$0xff]  }
 0xab6   : > { %10034 = vrsqrt.f32 %v4491_v40  ;;  %4973 = vmatprep.mubr.bf16.mxu1 %v15568_v17  ;;  %5166 = vmatprep.mubr.bf16.mxu0 %v15568_v17  ;;  %v9721_v26 = vld [vmem:[%s10552_s23 + $0xc8] sm:$0xff]   ;;  %v9734_v10 = vld [vmem:[%s10552_s23 + $0x20] sm:$0xff]  }
 0xab7   : > { %v4587_v11 = vmul.f32 %v12660_v61, %v4551_v9  ;;  %v12791_v25 = vadd.f32 %v12675_v23, %v4586_v37  ;;  %8746 = vmatpush3.bf16.msra.mxu1 %v9718_v27  ;;  %8858 = vmatpush3.bf16.msra.mxu0 %v9719_v44  ;;  %v9722_v13 = vld [vmem:[%s10552_s23 + $0x8] sm:$0xff]   ;;  %v9724_v9 = vld [vmem:[%s10552_s23 + $0x50] sm:$0xff]   ;;  %v9735_v27 = vld [vmem:[%s10552_s23 + $0xa0] sm:$0xff]  }
 0xab8   : > { %v9723_v40 = vld [vmem:[%s10552_s23 + $0x88] sm:$0xff]   ;;  %8747 = vmatprep.subr.bf16.mxu1 %v9720_v28  ;;  %8859 = vmatprep.subr.bf16.mxu0 %v9721_v26  ;;  %v9725_v37 = vld [vmem:[%s10552_s23 + $0xd0] sm:$0xff]  }
 0xab9   : > { %15588 = vst [vmem:[#allocation11_spill] sm:$0xff] %v12791_v25  ;;  %v12794_v56 = vadd.f32 %v12675_v23, %v4587_v11  ;;  %v9726_v11 = vld [vmem:[%s10552_s23 + $0x10] sm:$0xff]  }
 0xaba   : > { %v10029_v41 = vpop.eup %10028 }
 0xabb   : > { %15589 = vst [vmem:[#allocation23_spill] sm:$0xff] %v12794_v56  ;;  %v4649_v24 = vpack.c.bf16 %v12794_v56, %v12791_v25  ;;  %v4552_v12 = vmul.f32 %v10029_v41, %v12601_v60  ;;  %8748 = vmatpush3.bf16.msra.mxu1 %v9722_v13  ;;  %8860 = vmatpush3.bf16.msra.mxu0 %v9723_v40  ;;  %v9727_v41 = vld [vmem:[%s10552_s23 + $0x90] sm:$0xff]   ;;  %v9736_v13 = vld [vmem:[%s10552_s23 + $0x68] sm:$0xff]  }
 0xabc   : > { %v10031_v38 = vpop.eup %10030  ;;  %8749 = vmatprep.subr.bf16.mxu1 %v9724_v9  ;;  %8861 = vmatprep.subr.bf16.mxu0 %v9725_v37  ;;  %v9737_v40 = vld [vmem:[%s10552_s23 + $0xe8] sm:$0xff]  }
 0xabd   : > { %4974 = vmatmul.mubr.bf16.gmra.mrb[148].mxu1 %v4649_v24  ;;  %5167 = vmatmul.mubr.bf16.gmra.mrb[148].mxu0 %v4649_v24  ;;  %v4553_v3 = vmul.f32 %v10031_v38, %v12606_v46  ;;  %v4588_v22 = vmul.f32 %v12660_v61, %v4552_v12  ;;  %v9728_v24 = vld [vmem:[%s10552_s23 + $0x58] sm:$0xff]   ;;  %v9738_v9 = vld [vmem:[%s10552_s23 + $0x28] sm:$0xff]  }
 0xabe   : > { %v10033_v29 = vpop.eup %10032  ;;  %4983 = vmatprep.mubr.bf16.mxu1 %v15568_v17  ;;  %5176 = vmatprep.mubr.bf16.mxu0 %v15568_v17  ;;  %v9729_v12 = vld [vmem:[%s10552_s23 + $0xd8] sm:$0xff]   ;;  %v9739_v37 = vld [vmem:[%s10552_s23 + $0xa8] sm:$0xff]  }
 0xabf   : > { %v4589_v49 = vmul.f32 %v12660_v61, %v4553_v3  ;;  %v12805_v51 = vadd.f32 %v12675_v23, %v4588_v22  ;;  %v4554_v7 = vmul.f32 %v10033_v29, %v12612_v35  ;;  %8750 = vmatpush3.bf16.msra.mxu1 %v9726_v11  ;;  %8862 = vmatpush3.bf16.msra.mxu0 %v9727_v41  ;;  %v9730_v38 = vld [vmem:[%s10552_s23 + $0x18] sm:$0xff]  }
 0xac0   : > { %v10035_v50 = vpop.eup %10034  ;;  %v9731_v3 = vld [vmem:[%s10552_s23 + $0x98] sm:$0xff]   ;;  %8751 = vmatprep.subr.bf16.mxu1 %v9728_v24  ;;  %8863 = vmatprep.subr.bf16.mxu0 %v9729_v12 }
 0xac1   : > { %15590 = vst [vmem:[#allocation14_spill] sm:$0xff] %v12805_v51  ;;  %v12808_v60 = vadd.f32 %v12675_v23, %v4589_v49  ;;  %v4555_v46 = vmul.f32 %v10035_v50, %v12618_v34  ;;  %v4590_v1 = vmul.f32 %v12660_v61, %v4554_v7  ;;  %v9732_v49 = vld [vmem:[%s10552_s23 + $0x60] sm:$0xff]  }
 0xac2   : > { %v9733_v50 = vld [vmem:[%s10552_s23 + $0xe0] sm:$0xff]  }
 0xac3   : > { %15591 = vst [vmem:[#allocation25_spill] sm:$0xff] %v12808_v60  ;;  %v4650_v39 = vpack.c.bf16 %v12808_v60, %v12805_v51  ;;  %v4591_v4 = vmul.f32 %v12660_v61, %v4555_v46  ;;  %v12822_v34 = vadd.f32 %v12675_v23, %v4590_v1  ;;  %8752 = vmatpush3.bf16.msra.mxu1 %v9730_v38 }
 0xac4   : > { %8864 = vmatpush3.bf16.msra.mxu0 %v9731_v3  ;;  %8753 = vmatprep.subr.bf16.mxu1 %v9732_v49 }
 0xac5   : > { %4984 = vmatmul.mubr.bf16.gmra.mrb[152].mxu1 %v4650_v39  ;;  %5177 = vmatmul.mubr.bf16.gmra.mrb[152].mxu0 %v4650_v39  ;;  %v12819_v35 = vadd.f32 %v12675_v23, %v4591_v4  ;;  %15593 = vst [vmem:[#allocation9_spill] sm:$0xff] %v12822_v34 }
 0xac6   : > { %4993 = vmatprep.mubr.bf16.mxu1 %v15568_v17  ;;  %5186 = vmatprep.mubr.bf16.mxu0 %v15568_v17 }
 0xac7   : > { %15592 = vst [vmem:[#allocation24_spill] sm:$0xff] %v12819_v35  ;;  %v4651_v33 = vpack.c.bf16 %v12819_v35, %v12822_v34  ;;  %8865 = vmatprep.subr.bf16.mxu0 %v9733_v50  ;;  %8754 = vmatpush3.bf16.msra.mxu1 %v9734_v10  ;;  %v9743_v10 = vld [vmem:[%s10552_s23 + $0xb0] sm:$0xff]  }
 0xac8   : > { %8866 = vmatpush3.bf16.msra.mxu0 %v9735_v27  ;;  %8755 = vmatprep.subr.bf16.mxu1 %v9736_v13 }
 0xac9   : > { %8867 = vmatprep.subr.bf16.mxu0 %v9737_v40 }
 0xacb   : > { %8756 = vmatpush3.bf16.msra.mxu1 %v9738_v9 }
 0xacc   : > { %8868 = vmatpush3.bf16.msra.mxu0 %v9739_v37  ;;  %v9744_v37 = vld [vmem:[%s10552_s23 + $0x78] sm:$0xff]  }
 0xacd   : > { %4994 = vmatmul.mubr.bf16.gmra.mrb[156].mxu1 %v4651_v33  ;;  %5187 = vmatmul.mubr.bf16.gmra.mrb[156].mxu0 %v4651_v33 }
 0xace   : > { %5003 = vmatprep.mubr.bf16.mxu1 %v15568_v17  ;;  %5196 = vmatprep.mubr.bf16.mxu0 %v15568_v17 }
 0xb07   : > { %v4413_v22 = vpop.xlane.xlu0 %4412 }
 0xb08   : > { %v4460_v29 = vmul.f32 0.0078125, %v4413_v22  ;;  %v9740_v22 = vld [vmem:[%s10552_s23 + $0x70] sm:$0xff]  }
 0xb09   : > { %v4415_v7 = vpop.xlane.xlu1 %4414  ;;  %8757 = vmatprep.subr.bf16.mxu1 %v9740_v22 }
 0xb0a   : > { %v4492_v46 = vadd.f32 1e-12, %v4460_v29  ;;  %v4461_v39 = vmul.f32 0.0078125, %v4415_v7  ;;  %v9741_v29 = vld [vmem:[%s10552_s23 + $0xf0] sm:$0xff]  }
 0xb0b   : > { %v4417_v4 = vpop.xlane.xlu0 %4416  ;;  %8869 = vmatprep.subr.bf16.mxu0 %v9741_v29 }
 0xb0c   : > { %10036 = vrsqrt.f32 %v4492_v46  ;;  %v4493_v1 = vadd.f32 1e-12, %v4461_v39  ;;  %v4462_v33 = vmul.f32 0.0078125, %v4417_v4  ;;  %8870 = vmatpush3.bf16.msra.mxu0 %v9743_v10 }
 0xb0d   : > { %v4419_v30 = vpop.xlane.xlu1 %4418 }
 0xb0e   : > { %10038 = vrsqrt.f32 %v4493_v1  ;;  %v4494_v44 = vadd.f32 1e-12, %v4462_v33  ;;  %v4463_v28 = vmul.f32 0.0078125, %v4419_v30  ;;  %v9742_v30 = vld [vmem:[%s10552_s23 + $0x30] sm:$0xff]  }
 0xb0f   : > { %8758 = vmatpush3.bf16.msra.mxu1 %v9742_v30 }
 0xb10   : > { %10040 = vrsqrt.f32 %v4494_v44  ;;  %v4495_v26 = vadd.f32 1e-12, %v4463_v28  ;;  %8759 = vmatprep.subr.bf16.mxu1 %v9744_v37 }
 0xb12   : > { %10042 = vrsqrt.f32 %v4495_v26 }
 0xb13   : > { %v4421_v11 = vpop.xlane.xlu0 %4420 }
 0xb14   : > { %v4464_v41 = vmul.f32 0.0078125, %v4421_v11  ;;  %v9745_v11 = vld [vmem:[%s10552_s23 + $0xf8] sm:$0xff]  }
 0xb15   : > { %v4423_v24 = vpop.xlane.xlu1 %4422  ;;  %8871 = vmatprep.subr.bf16.mxu0 %v9745_v11 }
 0xb16   : > { %v10037_v12 = vpop.eup %10036  ;;  %v4496_v38 = vadd.f32 1e-12, %v4464_v41  ;;  %v4465_v3 = vmul.f32 0.0078125, %v4423_v24 }
 0xb17   : > { %v4556_v49 = vmul.f32 %v10037_v12, %v12627_v21  ;;  %v9746_v12 = vld [vmem:[%s10552_s23 + $0x38] sm:$0xff]  }
 0xb18   : > { %v10039_v50 = vpop.eup %10038  ;;  %10044 = vrsqrt.f32 %v4496_v38  ;;  %v4497_v7 = vadd.f32 1e-12, %v4465_v3  ;;  %v9747_v38 = vld [vmem:[%s10552_s23 + $0xb8] sm:$0xff]   ;;  %8760 = vmatpush3.bf16.msra.mxu1 %v9746_v12 }
 0xb19   : > { %v4557_v46 = vmul.f32 %v10039_v50, %v12630_v19  ;;  %v4592_v39 = vmul.f32 %v12660_v61, %v4556_v49  ;;  %8872 = vmatpush3.bf16.msra.mxu0 %v9747_v38 }
 0xb1a   : > { %v10041_v4 = vpop.eup %10040  ;;  %10046 = vrsqrt.f32 %v4497_v7 }
 0xb1b   : > { %v4425_v1 = vpop.xlane.xlu0 %4424  ;;  %v4593_v33 = vmul.f32 %v12660_v61, %v4557_v46  ;;  %v12861_v44 = vadd.f32 %v12675_v23, %v4592_v39  ;;  %v4558_v26 = vmul.f32 %v10041_v4, %v12635_v43 }
 0xb1c   : > { %v10043_v21 = vpop.eup %10042  ;;  %v4466_v27 = vmul.f32 0.0078125, %v4425_v1 }
 0xb1d   : > { %15594 = vst [vmem:[#allocation12_spill] sm:$0xff] %v12861_v44  ;;  %v4427_v28 = vpop.xlane.xlu1 %4426  ;;  %v12864_v19 = vadd.f32 %v12675_v23, %v4593_v33  ;;  %v4559_v13 = vmul.f32 %v10043_v21, %v12640_v57  ;;  %v4594_v43 = vmul.f32 %v12660_v61, %v4558_v26 }
 0xb1e   : > { %v4498_v40 = vadd.f32 1e-12, %v4466_v27  ;;  %v4467_v9 = vmul.f32 0.0078125, %v4427_v28 }
 0xb1f   : > { %15595 = vst [vmem:[#allocation26_spill] sm:$0xff] %v12864_v19  ;;  %v4652_v41 = vpack.c.bf16 %v12864_v19, %v12861_v44  ;;  %v4595_v24 = vmul.f32 %v12660_v61, %v4559_v13  ;;  %v12882_v46 = vadd.f32 %v12675_v23, %v4594_v43 }
 0xb20   : > { %10048 = vrsqrt.f32 %v4498_v40  ;;  %v4499_v3 = vadd.f32 1e-12, %v4467_v9 }
 0xb21   : > { %5004 = vmatmul.mubr.bf16.gmra.mrb[160].mxu1 %v4652_v41  ;;  %5197 = vmatmul.mubr.bf16.gmra.mrb[160].mxu0 %v4652_v41  ;;  %v12879_v29 = vadd.f32 %v12675_v23, %v4595_v24  ;;  %15597 = vst [vmem:[#allocation28_spill] sm:$0xff] %v12882_v46 }
 0xb22   : > { %v10045_v57 = vpop.eup %10044  ;;  %10050 = vrsqrt.f32 %v4499_v3  ;;  %5013 = vmatprep.mubr.bf16.mxu1 %v15568_v17  ;;  %5206 = vmatprep.mubr.bf16.mxu0 %v15568_v17 }
 0xb23   : > { %v4429_v22 = vpop.xlane.xlu0 %4428  ;;  %15596 = vst [vmem:[#allocation27_spill] sm:$0xff] %v12879_v29  ;;  %v4560_v39 = vmul.f32 %v10045_v57, %v12647_v52  ;;  %v4653_v30 = vpack.c.bf16 %v12879_v29, %v12882_v46 }
 0xb24   : > { %v10047_v49 = vpop.eup %10046  ;;  %v4468_v50 = vmul.f32 0.0078125, %v4429_v22 }
 0xb25   : > { %v4431_v7 = vpop.xlane.xlu1 %4430  ;;  %v4561_v4 = vmul.f32 %v10047_v49, %v12650_v16  ;;  %v4596_v27 = vmul.f32 %v12660_v61, %v4560_v39 }
 0xb26   : > { %v4500_v1 = vadd.f32 1e-12, %v4468_v50  ;;  %v4469_v33 = vmul.f32 0.0078125, %v4431_v7 }
 0xb27   : > { %v4597_v10 = vmul.f32 %v12660_v61, %v4561_v4  ;;  %v12896_v9 = vadd.f32 %v12675_v23, %v4596_v27 }
 0xb28   : > { %10052 = vrsqrt.f32 %v4500_v1  ;;  %v4501_v21 = vadd.f32 1e-12, %v4469_v33 }
 0xb29   : > { %5014 = vmatmul.mubr.bf16.gmra.mrb[164].mxu1 %v4653_v30  ;;  %5207 = vmatmul.mubr.bf16.gmra.mrb[164].mxu0 %v4653_v30  ;;  %v12893_v16 = vadd.f32 %v12675_v23, %v4597_v10  ;;  %15599 = vst [vmem:[#allocation30_spill] sm:$0xff] %v12896_v9 }
 0xb2a   : > { %v10049_v28 = vpop.eup %10048  ;;  %10054 = vrsqrt.f32 %v4501_v21  ;;  %5023 = vmatprep.mubr.bf16.mxu1 %v15568_v17  ;;  %5216 = vmatprep.mubr.bf16.mxu0 %v15568_v17 }
 0xb2b   : > { %v4433_v52 = vpop.xlane.xlu0 %4432  ;;  %15598 = vst [vmem:[#allocation29_spill] sm:$0xff] %v12893_v16  ;;  %v4562_v37 = vmul.f32 %v10049_v28, %v12664_v20  ;;  %v4654_v12 = vpack.c.bf16 %v12893_v16, %v12896_v9 }
 0xb2c   : > { %v10051_v26 = vpop.eup %10050  ;;  %v4470_v13 = vmul.f32 0.0078125, %v4433_v52 }
 0xb2d   : > { %v4435_v40 = vpop.xlane.xlu1 %4434  ;;  %v4563_v11 = vmul.f32 %v10051_v26, %v12668_v15  ;;  %v4598_v43 = vmul.f32 %v12660_v61, %v4562_v37 }
 0xb2e   : > { %v4502_v41 = vadd.f32 1e-12, %v4470_v13  ;;  %v4471_v24 = vmul.f32 0.0078125, %v4435_v40 }
 0xb2f   : > { %v4599_v38 = vmul.f32 %v12660_v61, %v4563_v11  ;;  %v12910_v7 = vadd.f32 %v12675_v23, %v4598_v43 }
 0xb30   : > { %10056 = vrsqrt.f32 %v4502_v41  ;;  %v4503_v3 = vadd.f32 1e-12, %v4471_v24 }
 0xb31   : > { %5024 = vmatmul.mubr.bf16.gmra.mrb[168].mxu1 %v4654_v12  ;;  %5217 = vmatmul.mubr.bf16.gmra.mrb[168].mxu0 %v4654_v12  ;;  %v12907_v15 = vadd.f32 %v12675_v23, %v4599_v38  ;;  %15601 = vst [vmem:[#allocation32_spill] sm:$0xff] %v12910_v7 }
 0xb32   : > { %v10053_v57 = vpop.eup %10052  ;;  %10058 = vrsqrt.f32 %v4503_v3  ;;  %5033 = vmatprep.mubr.bf16.mxu1 %v15568_v17  ;;  %5226 = vmatprep.mubr.bf16.mxu0 %v15568_v17 }
 0xb33   : > { %v4437_v20 = vpop.xlane.xlu0 %4436  ;;  %15600 = vst [vmem:[#allocation31_spill] sm:$0xff] %v12907_v15  ;;  %v4564_v39 = vmul.f32 %v10053_v57, %v12687_v55  ;;  %v4655_v30 = vpack.c.bf16 %v12907_v15, %v12910_v7 }
 0xb34   : > { %v10055_v22 = vpop.eup %10054  ;;  %v4472_v49 = vmul.f32 0.0078125, %v4437_v20 }
 0xb35   : > { %v4439_v50 = vpop.xlane.xlu1 %4438  ;;  %v4565_v4 = vmul.f32 %v10055_v22, %v12693_v45  ;;  %v4600_v27 = vmul.f32 %v12660_v61, %v4564_v39 }
 0xb36   : > { %v4504_v1 = vadd.f32 1e-12, %v4472_v49  ;;  %v4473_v33 = vmul.f32 0.0078125, %v4439_v50 }
 0xb37   : > { %v4601_v10 = vmul.f32 %v12660_v61, %v4565_v4  ;;  %v12924_v40 = vadd.f32 %v12675_v23, %v4600_v27 }
 0xb38   : > { %10060 = vrsqrt.f32 %v4504_v1  ;;  %v4505_v21 = vadd.f32 1e-12, %v4473_v33 }
 0xb39   : > { %5034 = vmatmul.mubr.bf16.gmra.mrb[172].mxu1 %v4655_v30  ;;  %5227 = vmatmul.mubr.bf16.gmra.mrb[172].mxu0 %v4655_v30  ;;  %v12921_v45 = vadd.f32 %v12675_v23, %v4601_v10  ;;  %15603 = vst [vmem:[#allocation34_spill] sm:$0xff] %v12924_v40 }
 0xb3a   : > { %v10057_v28 = vpop.eup %10056  ;;  %10062 = vrsqrt.f32 %v4505_v21  ;;  %5043 = vmatprep.mubr.bf16.mxu1 %v15568_v17  ;;  %5236 = vmatprep.mubr.bf16.mxu0 %v15568_v17 }
 0xb3b   : > { %v4441_v55 = vpop.xlane.xlu0 %4440  ;;  %15602 = vst [vmem:[#allocation33_spill] sm:$0xff] %v12921_v45  ;;  %v4566_v37 = vmul.f32 %v10057_v28, %v12711_v32  ;;  %v4656_v12 = vpack.c.bf16 %v12921_v45, %v12924_v40 }
 0xb3c   : > { %v10059_v52 = vpop.eup %10058  ;;  %v4474_v26 = vmul.f32 0.0078125, %v4441_v55 }
 0xb3d   : > { %v4443_v13 = vpop.xlane.xlu1 %4442  ;;  %v4567_v11 = vmul.f32 %v10059_v52, %v12717_v48  ;;  %v4602_v43 = vmul.f32 %v12660_v61, %v4566_v37  ;;  %v4692_v52 = vld [vmem:[%s10557_s29] sm:$0xf]  ;;  %v15610_v37 = vld [vmem:[#allocation8_spill] sm:$0xff] }
 0xb3e   : > { %v4506_v41 = vadd.f32 1e-12, %v4474_v26  ;;  %v4475_v24 = vmul.f32 0.0078125, %v4443_v13  ;;  %v4693_v26 = vunpack.c.l.bf16 %v4692_v52  ;;  %v15414_v13 = vsub.s32 6, %v15576_v5 }
 0xb3f   : > { %v4603_v38 = vmul.f32 %v12660_v61, %v4567_v11  ;;  %v12938_v20 = vadd.f32 %v12675_v23, %v4602_v43  ;;  %v15611_v11 = vsub.s32 2, %v15576_v5 }
 0xb40   : > { %10064 = vrsqrt.f32 %v4506_v41  ;;  %v4507_v3 = vadd.f32 1e-12, %v4475_v24 }
 0xb41   : > { %5044 = vmatmul.mubr.bf16.gmra.mrb[176].mxu1 %v4656_v12  ;;  %5237 = vmatmul.mubr.bf16.gmra.mrb[176].mxu0 %v4656_v12  ;;  %v12935_v32 = vadd.f32 %v12675_v23, %v4603_v38  ;;  %15605 = vst [vmem:[#allocation36_spill] sm:$0xff] %v12938_v20  ;;  %v4702_v41 = vrot.slane %v4693_v26, %v15611_v11 }
 0xb42   : > { %v10061_v57 = vpop.eup %10060  ;;  %10066 = vrsqrt.f32 %v4507_v3  ;;  %5053 = vmatprep.mubr.bf16.mxu1 %v15568_v17  ;;  %5246 = vmatprep.mubr.bf16.mxu0 %v15568_v17 }
 0xb43   : > { %15604 = vst [vmem:[#allocation35_spill] sm:$0xff] %v12935_v32  ;;  %v4568_v22 = vmul.f32 %v10061_v57, %v12735_v42  ;;  %v4657_v50 = vpack.c.bf16 %v12935_v32, %v12938_v20  ;;  %v12986_v38 = vrot.slane %v4702_v41, %v15610_v37 }
 0xb44   : > { %v10063_v48 = vpop.eup %10062 }
 0xb45   : > { %v4569_v49 = vmul.f32 %v10063_v48, %v12741_v54  ;;  %v4604_v4 = vmul.f32 %v12660_v61, %v4568_v22 }
 0xb47   : > { %v4605_v39 = vmul.f32 %v12660_v61, %v4569_v49  ;;  %v12952_v54 = vadd.f32 %v12675_v23, %v4604_v4 }
 0xb49   : > { %5054 = vmatmul.mubr.bf16.gmra.mrb[180].mxu1 %v4657_v50  ;;  %5247 = vmatmul.mubr.bf16.gmra.mrb[180].mxu0 %v4657_v50  ;;  %v12949_v33 = vadd.f32 %v12675_v23, %v4605_v39  ;;  %15607 = vst [vmem:[#allocation38_spill] sm:$0xff] %v12952_v54 }
 0xb4a   : > { %v10065_v1 = vpop.eup %10064  ;;  %5063 = vmatprep.mubr.bf16.mxu1 %v15568_v17  ;;  %5256 = vmatprep.mubr.bf16.mxu0 %v15568_v17 }
 0xb4b   : > { %15606 = vst [vmem:[#allocation37_spill] sm:$0xff] %v12949_v33  ;;  %v4570_v30 = vmul.f32 %v10065_v1, %v12759_v6  ;;  %v4658_v21 = vpack.c.bf16 %v12949_v33, %v12952_v54 }
 0xb4c   : > { %v10067_v42 = vpop.eup %10066 }
 0xb4d   : > { %v4571_v10 = vmul.f32 %v10067_v42, %v12765_v8  ;;  %v4606_v28 = vmul.f32 %v12660_v61, %v4570_v30 }
 0xb4f   : > { %v4607_v27 = vmul.f32 %v12660_v61, %v4571_v10  ;;  %v12966_v6 = vadd.f32 %v12675_v23, %v4606_v28  ;;  %v4706_v61 = vrot.slane %v4693_v26, %v4574_v59 }
 0xb51   : > { %5064 = vmatmul.mubr.bf16.gmra.mrb[184].mxu1 %v4658_v21  ;;  %5257 = vmatmul.mubr.bf16.gmra.mrb[184].mxu0 %v4658_v21  ;;  %v12963_v55 = vadd.f32 %v12675_v23, %v4607_v27  ;;  %15609 = vst [vmem:[#allocation40_spill] sm:$0xff] %v12966_v6  ;;  %v4710_v23 = vrot.slane %v4693_v26, %v15414_v13 }
 0xb52   : > { %5073 = vmatprep.mubr.bf16.mxu1 %v15568_v17  ;;  %5266 = vmatprep.mubr.bf16.mxu0 %v15568_v17  ;;  %v4698_v17 = vrot.slane %v4693_v26, %v15610_v37  ;;  %v12983_v12 = vrot.slane %v4706_v61, %v15610_v37 }
 0xb53   : > { %15608 = vst [vmem:[#allocation39_spill] sm:$0xff] %v12963_v55  ;;  %v4659_v8 = vpack.c.bf16 %v12963_v55, %v12966_v6  ;;  %v12989_v3 = vrot.slane %v4710_v23, %v15610_v37 }
 0xb54   : > { %v12980_v24 = vrot.slane %v4698_v17, %v15610_v37 }
 0xb59   : > { %5074 = vmatmul.mubr.bf16.gmra.mrb[188].mxu1 %v4659_v8  ;;  %5267 = vmatmul.mubr.bf16.gmra.mrb[188].mxu0 %v4659_v8 }
 0xb68   : > { %v4925_v59 = vpop.f32.mrb[128].mxu1  ;;  %v5118_v43 = vpop.f32.mrb[128].mxu0 }
 0xb69   : > { %v4926_v57 = vadd.f32 %v4925_v59, %v12980_v24  ;;  %v5119_v48 = vadd.f32 %v5118_v43, %v12983_v12  ;;  %v4927_v22 = vpop.f32.mrb[129].mxu1  ;;  %v5120_v49 = vpop.f32.mrb[129].mxu0 }
 0xb6a   : > { %v12994_v50 = vadd.f32 %v4927_v22, %v12986_v38  ;;  %v12997_v39 = vadd.f32 %v5120_v49, %v12989_v3  ;;  %v4929_v4 = vpop.f32.mrb[130].mxu1  ;;  %v5122_v1 = vpop.f32.mrb[130].mxu0 }
 0xb6b   : > { %v12999_v42 = vmul.f32 0.5, %v4926_v57  ;;  %v5405_v30 = vmul.f32 %v4926_v57, %v4926_v57  ;;  %v13001_v10 = vmul.f32 0.5, %v5119_v48  ;;  %v5407_v21 = vmul.f32 %v5119_v48, %v5119_v48  ;;  %v4931_v27 = vpop.f32.mrb[131].mxu1  ;;  %v5124_v28 = vpop.f32.mrb[131].mxu0 }
 0xb6c   : > { %v5406_v8 = vmul.f32 %v12994_v50, %v12994_v50  ;;  %v5408_v52 = vmul.f32 %v12997_v39, %v12997_v39  ;;  %v4930_v26 = vadd.f32 %v4929_v4, %v12980_v24  ;;  %v5123_v61 = vadd.f32 %v5122_v1, %v12983_v12 }
 0xb6d   : > { %v5533_v17 = vmul.f32 %v5405_v30, %v4926_v57  ;;  %v5535_v11 = vmul.f32 %v5407_v21, %v5119_v48  ;;  %v13010_v41 = vadd.f32 %v4931_v27, %v12986_v38  ;;  %v13013_v23 = vadd.f32 %v5124_v28, %v12989_v3 }
 0xb6e   : > { %v5534_v59 = vmul.f32 %v5406_v8, %v12994_v50  ;;  %v5536_v43 = vmul.f32 %v5408_v52, %v12997_v39  ;;  %v13017_v22 = vmul.f32 0.5, %v4930_v26  ;;  %v5409_v49 = vmul.f32 %v4930_v26, %v4930_v26 }
 0xb6f   : > { %v5661_v13 = vmul.f32 0.044715, %v5533_v17  ;;  %v5663_v37 = vmul.f32 0.044715, %v5535_v11  ;;  %v13019_v4 = vmul.f32 0.5, %v5123_v61  ;;  %v5411_v1 = vmul.f32 %v5123_v61, %v5123_v61 }
 0xb70   : > { %v5662_v30 = vmul.f32 0.044715, %v5534_v59  ;;  %v5664_v21 = vmul.f32 0.044715, %v5536_v43  ;;  %v5537_v55 = vmul.f32 %v5409_v49, %v4930_v26  ;;  %v5410_v27 = vmul.f32 %v13010_v41, %v13010_v41  ;;  %v4935_v28 = vpop.f32.mrb[132].mxu1  ;;  %v5128_v6 = vpop.f32.mrb[132].mxu0 }
 0xb71   : > { %v5789_v33 = vadd.f32 %v5661_v13, %v4926_v57  ;;  %v5791_v8 = vadd.f32 %v5663_v37, %v5119_v48  ;;  %v5539_v54 = vmul.f32 %v5411_v1, %v5123_v61  ;;  %v5412_v52 = vmul.f32 %v13013_v23, %v13013_v23  ;;  %v4937_v32 = vpop.f32.mrb[133].mxu1  ;;  %v5130_v17 = vpop.f32.mrb[133].mxu0 }
 0xb72   : > { %v5790_v11 = vadd.f32 %v5662_v30, %v12994_v50  ;;  %v5792_v20 = vadd.f32 %v5664_v21, %v12997_v39  ;;  %v5665_v59 = vmul.f32 0.044715, %v5537_v55  ;;  %v5538_v43 = vmul.f32 %v5410_v27, %v13010_v41  ;;  %v4939_v49 = vpop.f32.mrb[134].mxu1  ;;  %v5132_v45 = vpop.f32.mrb[134].mxu0 }
 0xb73   : > { %v5917_v40 = vmul.f32 0.7978846, %v5789_v33  ;;  %v5919_v15 = vmul.f32 0.7978846, %v5791_v8  ;;  %v5667_v7 = vmul.f32 0.044715, %v5539_v54  ;;  %v5540_v13 = vmul.f32 %v5412_v52, %v13013_v23 }
 0xb74   : > { %v5918_v37 = vmul.f32 0.7978846, %v5790_v11  ;;  %v5920_v57 = vmul.f32 0.7978846, %v5792_v20  ;;  %v5793_v48 = vadd.f32 %v5665_v59, %v4930_v26  ;;  %v5666_v1 = vmul.f32 0.044715, %v5538_v43 }
 0xb75   : > { %10068 = vtanh.f32 %v5917_v40  ;;  %v5795_v16 = vadd.f32 %v5667_v7, %v5123_v61  ;;  %v5668_v9 = vmul.f32 0.044715, %v5540_v13  ;;  %v13030_v30 = vadd.f32 %v4935_v28, %v12980_v24  ;;  %v4941_v55 = vpop.f32.mrb[135].mxu1  ;;  %v5134_v21 = vpop.f32.mrb[135].mxu0 }
 0xb76   : > { %10070 = vtanh.f32 %v5919_v15  ;;  %v5921_v27 = vmul.f32 0.7978846, %v5793_v48  ;;  %v5794_v33 = vadd.f32 %v5666_v1, %v13010_v41  ;;  %v13034_v54 = vadd.f32 %v5128_v6, %v12983_v12 }
 0xb77   : > { %10072 = vtanh.f32 %v5918_v37  ;;  %v5923_v8 = vmul.f32 0.7978846, %v5795_v16  ;;  %v5796_v20 = vadd.f32 %v5668_v9, %v13013_v23  ;;  %v5413_v7 = vmul.f32 %v13030_v30, %v13030_v30 }
 0xb78   : > { %15612 = vst [vmem:[#allocation41_spill] sm:$0xff] %v13034_v54  ;;  %10074 = vtanh.f32 %v5920_v57  ;;  %v5922_v40 = vmul.f32 0.7978846, %v5794_v33  ;;  %v5415_v26 = vmul.f32 %v13034_v54, %v13034_v54  ;;  %v13042_v15 = vadd.f32 %v4937_v32, %v12986_v38  ;;  %v13044_v61 = vpop.f32.mrb[136].mxu1  ;;  %v13046_v28 = vpop.f32.mrb[136].mxu0 }
 0xb79   : > { %10076 = vtanh.f32 %v5921_v27  ;;  %v5924_v6 = vmul.f32 0.7978846, %v5796_v20  ;;  %v5541_v16 = vmul.f32 %v5413_v7, %v13030_v30  ;;  %v13050_v9 = vadd.f32 %v5130_v17, %v12989_v3  ;;  %v13052_v52 = vpop.f32.mrb[137].mxu1  ;;  %v13054_v11 = vpop.f32.mrb[137].mxu0 }
 0xb7a   : > { %10078 = vtanh.f32 %v5923_v8  ;;  %v5543_v59 = vmul.f32 %v5415_v26, %v13034_v54  ;;  %v5414_v32 = vmul.f32 %v13042_v15, %v13042_v15  ;;  %v13060_v43 = vadd.f32 %v4939_v49, %v12980_v24  ;;  %v13062_v13 = vpop.f32.mrb[138].mxu1  ;;  %v13064_v37 = vpop.f32.mrb[138].mxu0 }
 0xb7b   : > { %10080 = vtanh.f32 %v5922_v40  ;;  %v5669_v17 = vmul.f32 0.044715, %v5541_v16  ;;  %v5416_v57 = vmul.f32 %v13050_v9, %v13050_v9  ;;  %v13069_v48 = vadd.f32 %v5132_v45, %v12983_v12  ;;  %v13071_v1 = vpop.f32.mrb[139].mxu1  ;;  %v13073_v27 = vpop.f32.mrb[139].mxu0 }
 0xb7c   : > { %15613 = vst [vmem:[#allocation42_spill] sm:$0xff] %v13060_v43  ;;  %10082 = vtanh.f32 %v5924_v6  ;;  %v5671_v33 = vmul.f32 0.044715, %v5543_v59  ;;  %v5542_v49 = vmul.f32 %v5414_v32, %v13042_v15  ;;  %v5417_v8 = vmul.f32 %v13060_v43, %v13060_v43 }
 0xb7d   : > { %15614 = vst [vmem:[#allocation43_spill] sm:$0xff] %v13069_v48  ;;  %v5797_v20 = vadd.f32 %v5669_v17, %v13030_v30  ;;  %v5544_v7 = vmul.f32 %v5416_v57, %v13050_v9  ;;  %v5419_v40 = vmul.f32 %v13069_v48, %v13069_v48  ;;  %v13083_v45 = vadd.f32 %v4941_v55, %v12986_v38 }
 0xb7e   : > { %v5799_v26 = vadd.f32 %v5671_v33, %v13034_v54  ;;  %v5670_v16 = vmul.f32 0.044715, %v5542_v49  ;;  %v5545_v6 = vmul.f32 %v5417_v8, %v13060_v43  ;;  %v13088_v59 = vadd.f32 %v5134_v21, %v12989_v3 }
 0xb7f   : > { %v10069_v32 = vpop.eup %10068  ;;  %v5925_v29 = vmul.f32 0.7978846, %v5797_v20  ;;  %v5672_v46 = vmul.f32 0.044715, %v5544_v7  ;;  %v5547_v17 = vmul.f32 %v5419_v40, %v13069_v48  ;;  %v5418_v57 = vmul.f32 %v13083_v45, %v13083_v45 }
 0xb80   : > { %v10071_v19 = vpop.eup %10070  ;;  %v6173_v44 = vadd.f32 1.0, %v10069_v32  ;;  %v5927_v55 = vmul.f32 0.7978846, %v5799_v26  ;;  %v5798_v35 = vadd.f32 %v5670_v16, %v13042_v15  ;;  %v5673_v33 = vmul.f32 0.044715, %v5545_v6  ;;  %v13094_v49 = vpop.f32.mrb[140].mxu1 }
 0xb81   : > { %v13096_v8 = vpop.eup %10072  ;;  %v6175_v21 = vadd.f32 1.0, %v10071_v19  ;;  %10084 = vtanh.f32 %v5925_v29  ;;  %v5800_v20 = vadd.f32 %v5672_v46, %v13050_v9  ;;  %v5675_v7 = vmul.f32 0.044715, %v5547_v17  ;;  %v13099_v34 = vpop.f32.mrb[140].mxu0 }
 0xb82   : > { %v13101_v40 = vpop.f32.mrb[141].mxu1  ;;  %v13103_v60 = vpop.eup %10074  ;;  %v13106_v26 = vmul.f32 %v6173_v44, %v12999_v42  ;;  %10086 = vtanh.f32 %v5927_v55  ;;  %v5926_v16 = vmul.f32 0.7978846, %v5798_v35  ;;  %v5801_v6 = vadd.f32 %v5673_v33, %v13060_v43 }
 0xb83   : > { %v13109_v32 = vpop.f32.mrb[141].mxu0  ;;  %v13111_v19 = vpop.f32.mrb[142].mxu1  ;;  %v13114_v46 = vmul.f32 %v6175_v21, %v13001_v10  ;;  %v5928_v17 = vmul.f32 0.7978846, %v5800_v20  ;;  %v5803_v51 = vadd.f32 %v5675_v7, %v13069_v48  ;;  %v5546_v56 = vmul.f32 %v5418_v57, %v13083_v45 }
 0xb84   : > { %v10077_v29 = vpop.eup %10076  ;;  %v13118_v25 = vpop.f32.mrb[142].mxu0  ;;  %10088 = vtanh.f32 %v5926_v16  ;;  %v5929_v55 = vmul.f32 0.7978846, %v5801_v6  ;;  %v5420_v33 = vmul.f32 %v13088_v59, %v13088_v59  ;;  %v13136_v6 = vadd.f32 %v13044_v61, %v12980_v24 }
 0xb85   : > { %v13120_v44 = vpop.f32.mrb[143].mxu1  ;;  %v10079_v35 = vpop.eup %10078  ;;  %v6177_v42 = vadd.f32 1.0, %v10077_v29  ;;  %10090 = vtanh.f32 %v5928_v17  ;;  %v5931_v20 = vmul.f32 0.7978846, %v5803_v51  ;;  %v5674_v7 = vmul.f32 0.044715, %v5546_v56 }
 0xb86   : > { %v13124_v47 = vpop.f32.mrb[143].mxu0  ;;  %v13126_v10 = vpop.eup %10080  ;;  %v6179_v21 = vadd.f32 1.0, %v10079_v35  ;;  %10092 = vtanh.f32 %v5929_v55  ;;  %v5548_v16 = vmul.f32 %v5420_v33, %v13088_v59  ;;  %15615 = vst [vmem:[#allocation44_spill] sm:$0xff] %v13136_v6  ;;  %v13144_v56 = vadd.f32 %v13046_v28, %v12983_v12 }
 0xb87   : > { %v13128_v57 = vpop.eup %10082  ;;  %v13131_v62 = vmul.f32 %v6177_v42, %v13017_v22  ;;  %10094 = vtanh.f32 %v5931_v20  ;;  %v5802_v17 = vadd.f32 %v5674_v7, %v13083_v45  ;;  %v5421_v22 = vmul.f32 %v13136_v6, %v13136_v6 }
 0xb88   : > { %v13139_v29 = vmul.f32 %v6179_v21, %v13019_v4  ;;  %15616 = vst [vmem:[#allocation45_spill] sm:$0xff] %v13144_v56  ;;  %v5676_v51 = vmul.f32 0.044715, %v5548_v16  ;;  %v13150_v35 = vadd.f32 %v13052_v52, %v12986_v38  ;;  %v13154_v61 = vadd.f32 %v13054_v11, %v12989_v3  ;;  %v13156_v4 = vpop.f32.mrb[144].mxu1  ;;  %v13158_v42 = vpop.f32.mrb[144].mxu0 }
 0xb89   : > { %v5930_v55 = vmul.f32 0.7978846, %v5802_v17  ;;  %v5423_v28 = vmul.f32 %v13144_v56, %v13144_v56  ;;  %v13164_v33 = vadd.f32 %v13062_v13, %v12980_v24  ;;  %v13168_v52 = vadd.f32 %v13064_v37, %v12983_v12  ;;  %v13170_v21 = vpop.f32.mrb[145].mxu1  ;;  %v13172_v11 = vpop.f32.mrb[145].mxu0 }
 0xb8a   : > { %15617 = vst [vmem:[#allocation46_spill] sm:$0xff] %v13150_v35  ;;  %15618 = vst [vmem:[#allocation47_spill] sm:$0xff] %v13154_v61  ;;  %v5804_v20 = vadd.f32 %v5676_v51, %v13088_v59  ;;  %v5549_v7 = vmul.f32 %v5421_v22, %v13136_v6  ;;  %v5422_v16 = vmul.f32 %v13150_v35, %v13150_v35  ;;  %v13180_v13 = vpop.f32.mrb[146].mxu1  ;;  %v13182_v18 = vpop.f32.mrb[146].mxu0 }
 0xb8b   : > { %15619 = vst [vmem:[#allocation48_spill] sm:$0xff] %v13164_v33  ;;  %15620 = vst [vmem:[#allocation49_spill] sm:$0xff] %v13168_v52  ;;  %v5424_v17 = vmul.f32 %v13154_v61, %v13154_v61  ;;  %v13184_v37 = vpop.eup %10084  ;;  %10096 = vtanh.f32 %v5930_v55  ;;  %v5551_v2 = vmul.f32 %v5423_v28, %v13144_v56  ;;  %v5425_v51 = vmul.f32 %v13164_v33, %v13164_v33  ;;  %v13191_v31 = vpop.f32.mrb[147].mxu1 }
 0xb8c   : > { %15621 = vst [vmem:[#allocation50_spill] sm:$0xff] %v13184_v37  ;;  %v5427_v22 = vmul.f32 %v13168_v52, %v13168_v52  ;;  %v13193_v14 = vpop.f32.mrb[147].mxu0  ;;  %v13195_v58 = vpop.eup %10086  ;;  %v5932_v63 = vmul.f32 0.7978846, %v5804_v20  ;;  %v5677_v0 = vmul.f32 0.044715, %v5549_v7  ;;  %v5550_v53 = vmul.f32 %v5422_v16, %v13150_v35 }
 0xb8d   : > { %15622 = vst [vmem:[#allocation51_spill] sm:$0xff] %v13195_v58  ;;  %v5552_v55 = vmul.f32 %v5424_v17, %v13154_v61  ;;  %v5679_v36 = vmul.f32 0.044715, %v5551_v2  ;;  %v5553_v28 = vmul.f32 %v5425_v51, %v13164_v33  ;;  %v13203_v48 = vadd.f32 %v13071_v1, %v12986_v38 }
 0xb8e   : > { %v5555_v5 = vmul.f32 %v5427_v22, %v13168_v52  ;;  %v13205_v54 = vpop.eup %10088  ;;  %10098 = vtanh.f32 %v5932_v63  ;;  %v5805_v58 = vadd.f32 %v5677_v0, %v13136_v6  ;;  %v5678_v20 = vmul.f32 0.044715, %v5550_v53 }
 0xb8f   : > { %15623 = vst [vmem:[#allocation52_spill] sm:$0xff] %v13203_v48  ;;  %v5680_v7 = vmul.f32 0.044715, %v5552_v55  ;;  %v13208_v37 = vpop.eup %10090  ;;  %v5807_v16 = vadd.f32 %v5679_v36, %v13144_v56  ;;  %v5681_v2 = vmul.f32 0.044715, %v5553_v28  ;;  %v5426_v51 = vmul.f32 %v13203_v48, %v13203_v48 }
 0xb90   : > { %v5683_v17 = vmul.f32 0.044715, %v5555_v5  ;;  %v13213_v22 = vpop.eup %10092  ;;  %v5933_v1 = vmul.f32 0.7978846, %v5805_v58  ;;  %v5806_v43 = vadd.f32 %v5678_v20, %v13150_v35  ;;  %v13219_v53 = vadd.f32 %v13073_v27, %v12989_v3  ;;  %v13221_v0 = vpop.f32.mrb[148].mxu1 }
 0xb91   : > { %15624 = vst [vmem:[#allocation53_spill] sm:$0xff] %v13213_v22  ;;  %v5808_v63 = vadd.f32 %v5680_v7, %v13154_v61  ;;  %v13223_v55 = vpop.f32.mrb[148].mxu0  ;;  %v13225_v36 = vpop.eup %10094  ;;  %v5935_v5 = vmul.f32 0.7978846, %v5807_v16  ;;  %v5809_v28 = vadd.f32 %v5681_v2, %v13164_v33  ;;  %v5554_v58 = vmul.f32 %v5426_v51, %v13203_v48 }
 0xb92   : > { %15625 = vst [vmem:[#allocation54_spill] sm:$0xff] %v13219_v53  ;;  %15626 = vst [vmem:[#allocation55_spill] sm:$0xff] %v13225_v36  ;;  %v5811_v56 = vadd.f32 %v5683_v17, %v13168_v52  ;;  %v13230_v20 = vpop.f32.mrb[149].mxu1  ;;  %v13232_v7 = vpop.f32.mrb[149].mxu0  ;;  %10100 = vtanh.f32 %v5933_v1  ;;  %v5934_v27 = vmul.f32 0.7978846, %v5806_v43  ;;  %v5428_v61 = vmul.f32 %v13219_v53, %v13219_v53 }
 0xb93   : > { %v5936_v6 = vmul.f32 0.7978846, %v5808_v63  ;;  %v13236_v35 = vpop.f32.mrb[150].mxu1  ;;  %v13238_v36 = vpop.f32.mrb[150].mxu0  ;;  %10102 = vtanh.f32 %v5935_v5  ;;  %v5937_v16 = vmul.f32 0.7978846, %v5809_v28  ;;  %v13243_v52 = vadd.f32 %v13094_v49, %v12980_v24 }
 0xb94   : > { %v5939_v2 = vmul.f32 0.7978846, %v5811_v56  ;;  %v5682_v17 = vmul.f32 0.044715, %v5554_v58  ;;  %10104 = vtanh.f32 %v5934_v27  ;;  %v5556_v51 = vmul.f32 %v5428_v61, %v13219_v53  ;;  %v13249_v1 = vpop.f32.mrb[151].mxu1  ;;  %v13251_v63 = vpop.f32.mrb[151].mxu0 }
 0xb95   : > { %15627 = vst [vmem:[#allocation56_spill] sm:$0xff] %v13243_v52  ;;  %v13247_v43 = vadd.f32 %v13099_v34, %v12983_v12  ;;  %15629 = vst [vmem:[#allocation58_spill] sm:$0xff] %v13249_v1  ;;  %v13253_v33 = vpop.eup %10096  ;;  %10106 = vtanh.f32 %v5936_v6  ;;  %v13258_v61 = vadd.f32 %v13101_v40, %v12986_v38  ;;  %v13262_v49 = vadd.f32 %v13109_v32, %v12989_v3 }
 0xb96   : > { %15630 = vst [vmem:[#allocation59_spill] sm:$0xff] %v13251_v63  ;;  %v5810_v56 = vadd.f32 %v5682_v17, %v13203_v48  ;;  %10108 = vtanh.f32 %v5937_v16  ;;  %v5684_v34 = vmul.f32 0.044715, %v5556_v51  ;;  %v5429_v5 = vmul.f32 %v13243_v52, %v13243_v52 }
 0xb97   : > { %15628 = vst [vmem:[#allocation57_spill] sm:$0xff] %v13247_v43  ;;  %15631 = vst [vmem:[#allocation60_spill] sm:$0xff] %v13258_v61  ;;  %v5431_v28 = vmul.f32 %v13247_v43, %v13247_v43  ;;  %10110 = vtanh.f32 %v5939_v2  ;;  %v5430_v58 = vmul.f32 %v13258_v61, %v13258_v61  ;;  %v5432_v40 = vmul.f32 %v13262_v49, %v13262_v49 }
 0xb98   : > { %15632 = vst [vmem:[#allocation61_spill] sm:$0xff] %v13262_v49  ;;  %v5938_v6 = vmul.f32 0.7978846, %v5810_v56  ;;  %v13272_v27 = vpop.eup %10098  ;;  %v5812_v32 = vadd.f32 %v5684_v34, %v13219_v53  ;;  %v5557_v16 = vmul.f32 %v5429_v5, %v13243_v52  ;;  %v13279_v51 = vadd.f32 %v13111_v19, %v12980_v24  ;;  %v13281_v2 = vpop.f32.mrb[152].mxu1 }
 0xb99   : > { %v5559_v17 = vmul.f32 %v5431_v28, %v13247_v43  ;;  %15634 = vst [vmem:[#allocation63_spill] sm:$0xff] %v13281_v2  ;;  %v13283_v56 = vpop.f32.mrb[152].mxu0  ;;  %v5558_v48 = vmul.f32 %v5430_v58, %v13258_v61  ;;  %v5560_v63 = vmul.f32 %v5432_v40, %v13262_v49  ;;  %v13289_v34 = vadd.f32 %v13118_v25, %v12983_v12  ;;  %v13291_v5 = vpop.f32.mrb[153].mxu1 }
 0xb9a   : > { %15633 = vst [vmem:[#allocation62_spill] sm:$0xff] %v13279_v51  ;;  %15635 = vst [vmem:[#allocation64_spill] sm:$0xff] %v13283_v56  ;;  %10112 = vtanh.f32 %v5938_v6  ;;  %v13293_v28 = vpop.f32.mrb[153].mxu0  ;;  %v5940_v53 = vmul.f32 0.7978846, %v5812_v32  ;;  %v5433_v2 = vmul.f32 %v13279_v51, %v13279_v51  ;;  %v13301_v40 = vadd.f32 %v13120_v44, %v12986_v38  ;;  %v13303_v25 = vpop.f32.mrb[154].mxu1 }
 0xb9b   : > { %15636 = vst [vmem:[#allocation65_spill] sm:$0xff] %v13289_v34  ;;  %15637 = vst [vmem:[#allocation66_spill] sm:$0xff] %v13291_v5  ;;  %v5685_v19 = vmul.f32 0.044715, %v5557_v16  ;;  %v5687_v1 = vmul.f32 0.044715, %v5559_v17  ;;  %v5435_v58 = vmul.f32 %v13289_v34, %v13289_v34 }
 0xb9c   : > { %15638 = vst [vmem:[#allocation67_spill] sm:$0xff] %v13293_v28  ;;  %v5686_v56 = vmul.f32 0.044715, %v5558_v48  ;;  %v5688_v6 = vmul.f32 0.044715, %v5560_v63  ;;  %15639 = vst [vmem:[#allocation68_spill] sm:$0xff] %v13301_v40  ;;  %v13307_v28 = vpop.eup %10100  ;;  %10114 = vtanh.f32 %v5940_v53  ;;  %v5561_v48 = vmul.f32 %v5433_v2, %v13279_v51 }
 0xb9d   : > { %15640 = vst [vmem:[#allocation69_spill] sm:$0xff] %v13303_v25  ;;  %v13305_v5 = vpop.f32.mrb[154].mxu0  ;;  %v5813_v32 = vadd.f32 %v5685_v19, %v13243_v52  ;;  %v5815_v16 = vadd.f32 %v5687_v1, %v13247_v43  ;;  %v13312_v63 = vpop.f32.mrb[155].mxu1  ;;  %v5434_v53 = vmul.f32 %v13301_v40, %v13301_v40  ;;  %v13327_v52 = vadd.f32 %v13124_v47, %v12989_v3 }
 0xb9e   : > { %15641 = vst [vmem:[#allocation70_spill] sm:$0xff] %v13305_v5  ;;  %15642 = vst [vmem:[#allocation71_spill] sm:$0xff] %v13312_v63  ;;  %v13314_v17 = vpop.f32.mrb[155].mxu0  ;;  %v13316_v22 = vpop.eup %10102  ;;  %v5814_v44 = vadd.f32 %v5686_v56, %v13258_v61  ;;  %v5816_v25 = vadd.f32 %v5688_v6, %v13262_v49  ;;  %v5563_v5 = vmul.f32 %v5435_v58, %v13289_v34  ;;  %v5689_v2 = vmul.f32 0.044715, %v5561_v48 }
 0xb9f   : > { %15643 = vst [vmem:[#allocation72_spill] sm:$0xff] %v13314_v17  ;;  %v13323_v19 = vpop.eup %10104  ;;  %v5941_v1 = vmul.f32 0.7978846, %v5813_v32  ;;  %v5943_v43 = vmul.f32 0.7978846, %v5815_v16  ;;  %15644 = vst [vmem:[#allocation73_spill] sm:$0xff] %v13327_v52  ;;  %v5562_v6 = vmul.f32 %v5434_v53, %v13301_v40  ;;  %v5436_v32 = vmul.f32 %v13327_v52, %v13327_v52 }
 0xba0   : > { %v13329_v17 = vpop.eup %10106  ;;  %v5942_v63 = vmul.f32 0.7978846, %v5814_v44  ;;  %v5944_v56 = vmul.f32 0.7978846, %v5816_v25  ;;  %v5691_v61 = vmul.f32 0.044715, %v5563_v5  ;;  %v5817_v49 = vadd.f32 %v5689_v2, %v13279_v51 }
 0xba1   : > { %v13332_v58 = vpop.eup %10108  ;;  %10116 = vtanh.f32 %v5941_v1  ;;  %v13339_v16 = vadd.f32 %v13156_v4, %v12980_v24  ;;  %v13341_v47 = vpop.f32.mrb[156].mxu1  ;;  %v5690_v44 = vmul.f32 0.044715, %v5562_v6  ;;  %v13350_v53 = vadd.f32 %v13158_v42, %v12983_v12 }
 0xba2   : > { %15646 = vst [vmem:[#allocation75_spill] sm:$0xff] %v13341_v47  ;;  %v13343_v48 = vpop.f32.mrb[156].mxu0  ;;  %v13345_v25 = vpop.eup %10110  ;;  %10118 = vtanh.f32 %v5943_v43  ;;  %v5819_v5 = vadd.f32 %v5691_v61, %v13289_v34  ;;  %v5945_v4 = vmul.f32 0.7978846, %v5817_v49  ;;  %v5564_v51 = vmul.f32 %v5436_v32, %v13327_v52 }
 0xba3   : > { %15645 = vst [vmem:[#allocation74_spill] sm:$0xff] %v13339_v16  ;;  %15647 = vst [vmem:[#allocation76_spill] sm:$0xff] %v13343_v48  ;;  %v13352_v1 = vpop.f32.mrb[157].mxu1  ;;  %v13354_v2 = vpop.f32.mrb[157].mxu0  ;;  %10120 = vtanh.f32 %v5942_v63  ;;  %v5437_v48 = vmul.f32 %v13339_v16, %v13339_v16  ;;  %v5818_v6 = vadd.f32 %v5690_v44, %v13301_v40  ;;  %v5439_v34 = vmul.f32 %v13350_v53, %v13350_v53 }
 0xba4   : > { %15648 = vst [vmem:[#allocation77_spill] sm:$0xff] %v13352_v1  ;;  %15649 = vst [vmem:[#allocation78_spill] sm:$0xff] %v13354_v2  ;;  %v13359_v47 = vpop.f32.mrb[158].mxu1  ;;  %v13361_v43 = vpop.f32.mrb[158].mxu0  ;;  %10122 = vtanh.f32 %v5944_v56  ;;  %v5947_v42 = vmul.f32 0.7978846, %v5819_v5  ;;  %v13380_v44 = vadd.f32 %v13172_v11, %v12989_v3 }
 0xba5   : > { %15650 = vst [vmem:[#allocation79_spill] sm:$0xff] %v13359_v47  ;;  %15651 = vst [vmem:[#allocation80_spill] sm:$0xff] %v13361_v43  ;;  %v13363_v61 = vpop.eup %10112  ;;  %v13368_v63 = vpop.f32.mrb[159].mxu1  ;;  %10124 = vtanh.f32 %v5945_v4  ;;  %v5692_v32 = vmul.f32 0.044715, %v5564_v51  ;;  %v5565_v2 = vmul.f32 %v5437_v48, %v13339_v16  ;;  %v13375_v43 = vadd.f32 %v13170_v21, %v12986_v38 }
 0xba6   : > { %15652 = vst [vmem:[#allocation81_spill] sm:$0xff] %v13368_v63  ;;  %v13370_v49 = vpop.f32.mrb[159].mxu0  ;;  %10126 = vtanh.f32 %v5947_v42  ;;  %v5946_v56 = vmul.f32 0.7978846, %v5818_v6  ;;  %v5567_v5 = vmul.f32 %v5439_v34, %v13350_v53  ;;  %v13382_v47 = vpop.eup %10114  ;;  %v5278_v48 = vmul.f32 0.5, %v12994_v50 }
 0xba7   : > { %15653 = vst [vmem:[#allocation82_spill] sm:$0xff] %v13370_v49  ;;  %v5820_v49 = vadd.f32 %v5692_v32, %v13327_v52  ;;  %v5693_v4 = vmul.f32 0.044715, %v5565_v2  ;;  %v5438_v51 = vmul.f32 %v13375_v43, %v13375_v43  ;;  %v5440_v42 = vmul.f32 %v13380_v44, %v13380_v44 }
 0xba8   : > { %10128 = vtanh.f32 %v5946_v56  ;;  %v5695_v21 = vmul.f32 0.044715, %v5567_v5  ;;  %v5282_v34 = vmul.f32 0.5, %v13010_v41  ;;  %v6174_v32 = vadd.f32 1.0, %v13096_v8 }
 0xba9   : > { %v5948_v6 = vmul.f32 0.7978846, %v5820_v49  ;;  %v5821_v11 = vadd.f32 %v5693_v4, %v13339_v16  ;;  %v5566_v63 = vmul.f32 %v5438_v51, %v13375_v43  ;;  %v5568_v52 = vmul.f32 %v5440_v42, %v13380_v44 }
 0xbaa   : > { %v5823_v2 = vadd.f32 %v5695_v21, %v13350_v53  ;;  %v6178_v50 = vadd.f32 1.0, %v13126_v10  ;;  %v5280_v56 = vmul.f32 0.5, %v12997_v39  ;;  %v6302_v49 = vmul.f32 %v6174_v32, %v5278_v48 }
 0xbab   : > { %v13398_v5 = vpop.eup %10116  ;;  %10130 = vtanh.f32 %v5948_v6  ;;  %v5949_v40 = vmul.f32 0.7978846, %v5821_v11  ;;  %v5694_v41 = vmul.f32 0.044715, %v5566_v63  ;;  %v5696_v51 = vmul.f32 0.044715, %v5568_v52 }
 0xbac   : > { %v13400_v1 = vpop.eup %10118  ;;  %v5951_v4 = vmul.f32 0.7978846, %v5823_v2  ;;  %v6306_v16 = vmul.f32 %v6178_v50, %v5282_v34  ;;  %v5284_v8 = vmul.f32 0.5, %v13013_v23  ;;  %v6176_v39 = vadd.f32 1.0, %v13103_v60 }
 0xbad   : > { %v13403_v21 = vpop.eup %10120  ;;  %10132 = vtanh.f32 %v5949_v40  ;;  %v5822_v10 = vadd.f32 %v5694_v41, %v13375_v43  ;;  %v6180_v42 = vadd.f32 1.0, %v13128_v57  ;;  %v5824_v63 = vadd.f32 %v5696_v51, %v13380_v44 }
 0xbae   : > { %v13408_v6 = vpop.eup %10122  ;;  %10134 = vtanh.f32 %v5951_v4  ;;  %v6430_v48 = vpack.c.bf16 %v6306_v16, %v6302_v49  ;;  %v13413_v52 = vadd.f32 %v13180_v13, %v12980_v24  ;;  %v6304_v40 = vmul.f32 %v6176_v39, %v5280_v56 }
 0xbaf   : > { %v13415_v23 = vpop.eup %10124  ;;  %v5950_v34 = vmul.f32 0.7978846, %v5822_v10  ;;  %v6308_v11 = vmul.f32 %v6180_v42, %v5284_v8  ;;  %v13419_v60 = vadd.f32 %v13182_v18, %v12983_v12  ;;  %v5952_v32 = vmul.f32 0.7978846, %v5824_v63 }
 0xbb0   : > { %v13421_v57 = vpop.eup %10126  ;;  %6785 = vmatprep.mubr.bf16.mxu1 %v6430_v48  ;;  %v5441_v16 = vmul.f32 %v13413_v52, %v13413_v52  ;;  %v6429_v13 = vpack.c.bf16 %v13131_v62, %v13106_v26  ;;  %v6431_v2 = vpack.c.bf16 %v13139_v29, %v13114_v46  ;;  %v13433_v18 = vadd.f32 %v13191_v31, %v12986_v38 }
 0xbb1   : > { %15654 = vst [vmem:[#allocation83_spill] sm:$0xff] %v13419_v60  ;;  %10136 = vtanh.f32 %v5950_v34  ;;  %v6432_v50 = vpack.c.bf16 %v6308_v11, %v6304_v40  ;;  %v5443_v56 = vmul.f32 %v13419_v60, %v13419_v60  ;;  %v13440_v62 = vadd.f32 %v13193_v14, %v12989_v3 }
 0xbb2   : > { %v13435_v41 = vpop.eup %10128  ;;  %10138 = vtanh.f32 %v5952_v32  ;;  %v5569_v49 = vmul.f32 %v5441_v16, %v13413_v52  ;;  %6786 = vmatmul.mubr.bf16.vlgmr.msra.gmra.mrb[192].mxu1 %v6429_v13  ;;  %v13444_v26 = vadd.f32 %v13221_v0, %v12980_v24  ;;  %v5442_v31 = vmul.f32 %v13433_v18, %v13433_v18 }
 0xbb3   : > { %6946 = vmatprep.mubr.bf16.mxu0 %v6432_v50  ;;  %v5571_v46 = vmul.f32 %v5443_v56, %v13419_v60  ;;  %v13451_v29 = vadd.f32 %v13223_v55, %v12983_v12  ;;  %v13455_v4 = vadd.f32 %v13230_v20, %v12986_v38  ;;  %v5444_v0 = vmul.f32 %v13440_v62, %v13440_v62 }
 0xbb4   : > { %15655 = vst [vmem:[#allocation84_spill] sm:$0xff] %v13444_v26  ;;  %v5697_v14 = vmul.f32 0.044715, %v5569_v49  ;;  %6947 = vmatmul.mubr.bf16.vlgmr.msra.gmra.mrb[192].mxu0 %v6431_v2  ;;  %v5445_v51 = vmul.f32 %v13444_v26, %v13444_v26  ;;  %v13463_v8 = vadd.f32 %v13232_v7, %v12989_v3  ;;  %v5570_v39 = vmul.f32 %v5442_v31, %v13433_v18 }
 0xbb5   : > { %15656 = vst [vmem:[#allocation85_spill] sm:$0xff] %v13451_v29  ;;  %v13465_v10 = vpop.eup %10130  ;;  %v5699_v55 = vmul.f32 0.044715, %v5571_v46  ;;  %v5447_v20 = vmul.f32 %v13451_v29, %v13451_v29  ;;  %v5446_v42 = vmul.f32 %v13455_v4, %v13455_v4  ;;  %v5572_v48 = vmul.f32 %v5444_v0, %v13440_v62 }
 0xbb6   : > { %v5825_v63 = vadd.f32 %v5697_v14, %v13413_v52  ;;  %v5573_v34 = vmul.f32 %v5445_v51, %v13444_v26  ;;  %v5448_v7 = vmul.f32 %v13463_v8, %v13463_v8  ;;  %v5698_v32 = vmul.f32 0.044715, %v5570_v39 }
 0xbb7   : > { %v13477_v40 = vpop.eup %10132  ;;  %v5827_v11 = vadd.f32 %v5699_v55, %v13419_v60  ;;  %v5575_v16 = vmul.f32 %v5447_v20, %v13451_v29  ;;  %v5574_v13 = vmul.f32 %v5446_v42, %v13455_v4  ;;  %v5700_v56 = vmul.f32 0.044715, %v5572_v48 }
 0xbb8   : > { %v13482_v2 = vpop.eup %10134  ;;  %v5953_v50 = vmul.f32 0.7978846, %v5825_v63  ;;  %v5701_v49 = vmul.f32 0.044715, %v5573_v34  ;;  %v5576_v46 = vmul.f32 %v5448_v7, %v13463_v8  ;;  %v5826_v14 = vadd.f32 %v5698_v32, %v13433_v18 }
 0xbb9   : > { %v5955_v31 = vmul.f32 0.7978846, %v5827_v11  ;;  %v5703_v0 = vmul.f32 0.044715, %v5575_v16  ;;  %v5702_v51 = vmul.f32 0.044715, %v5574_v13  ;;  %v5828_v55 = vadd.f32 %v5700_v56, %v13440_v62 }
 0xbba   : > { %10140 = vtanh.f32 %v5953_v50  ;;  %v5829_v39 = vadd.f32 %v5701_v49, %v13444_v26  ;;  %v5704_v20 = vmul.f32 0.044715, %v5576_v46  ;;  %v5954_v42 = vmul.f32 0.7978846, %v5826_v14 }
 0xbbb   : > { %v13488_v60 = vpop.eup %10136  ;;  %10142 = vtanh.f32 %v5955_v31  ;;  %v5831_v63 = vadd.f32 %v5703_v0, %v13451_v29  ;;  %v5830_v48 = vadd.f32 %v5702_v51, %v13455_v4  ;;  %v5956_v7 = vmul.f32 0.7978846, %v5828_v55 }
 0xbbc   : > { %v13492_v34 = vpop.eup %10138  ;;  %v5957_v11 = vmul.f32 0.7978846, %v5829_v39  ;;  %v5832_v32 = vadd.f32 %v5704_v20, %v13463_v8  ;;  %v5286_v16 = vmul.f32 0.5, %v13042_v15  ;;  %10144 = vtanh.f32 %v5954_v42  ;;  %v15659_v42 = vld [vmem:[#allocation42_spill] sm:$0xff] }
 0xbbd   : > { %v5959_v13 = vmul.f32 0.7978846, %v5831_v63  ;;  %v5958_v50 = vmul.f32 0.7978846, %v5830_v48  ;;  %v5290_v56 = vmul.f32 0.5, %v13083_v45  ;;  %10146 = vtanh.f32 %v5956_v7  ;;  %v15660_v48 = vld [vmem:[#allocation50_spill] sm:$0xff] }
 0xbbe   : > { %v5960_v49 = vmul.f32 0.7978846, %v5832_v32  ;;  %v6182_v46 = vadd.f32 1.0, %v13205_v54  ;;  %v6186_v31 = vadd.f32 1.0, %v13253_v33  ;;  %10148 = vtanh.f32 %v5957_v11  ;;  %v15661_v11 = vld [vmem:[#allocation53_spill] sm:$0xff] }
 0xbbf   : > { %v5288_v14 = vmul.f32 0.5, %v13050_v9  ;;  %v5292_v0 = vmul.f32 0.5, %v13088_v59  ;;  %v6184_v51 = vadd.f32 1.0, %v13208_v37  ;;  %10150 = vtanh.f32 %v5959_v13 }
 0xbc0   : > { %v6310_v15 = vmul.f32 %v6182_v46, %v5286_v16  ;;  %v6314_v55 = vmul.f32 %v6186_v31, %v5290_v56  ;;  %v6188_v39 = vadd.f32 1.0, %v13272_v27  ;;  %10152 = vtanh.f32 %v5958_v50  ;;  %v15662_v16 = vld [vmem:[#allocation41_spill] sm:$0xff]  ;;  %v15663_v50 = vld [vmem:[#allocation43_spill] sm:$0xff] }
 0xbc1   : > { %v6312_v45 = vmul.f32 %v6184_v51, %v5288_v14  ;;  %v13505_v20 = vadd.f32 %v13236_v35, %v12980_v24  ;;  %v13509_v54 = vadd.f32 %v13238_v36, %v12983_v12  ;;  %10154 = vtanh.f32 %v5960_v49  ;;  %v15664_v14 = vld [vmem:[#allocation51_spill] sm:$0xff] }
 0xbc2   : > { %v6434_v9 = vpack.c.bf16 %v6314_v55, %v6310_v15  ;;  %v6316_v59 = vmul.f32 %v6188_v39, %v5292_v0  ;;  %v5285_v33 = vmul.f32 0.5, %v13030_v30  ;;  %v5289_v63 = vmul.f32 0.5, %v15659_v42  ;;  %v15665_v15 = vld [vmem:[#allocation55_spill] sm:$0xff]  ;;  %v15666_v39 = vld [vmem:[#allocation58_spill] sm:$0xff] }
 0xbc3   : > { %15657 = vst [vmem:[#allocation86_spill] sm:$0xff] %v13505_v20  ;;  %15658 = vst [vmem:[#allocation87_spill] sm:$0xff] %v13509_v54  ;;  %v5449_v37 = vmul.f32 %v13505_v20, %v13505_v20  ;;  %v5451_v27 = vmul.f32 %v13509_v54, %v13509_v54  ;;  %v6181_v35 = vadd.f32 1.0, %v15660_v48  ;;  %v6185_v32 = vadd.f32 1.0, %v15661_v11 }
 0xbc4   : > { %v13518_v7 = vpop.eup %10140  ;;  %6793 = vmatprep.mubr.bf16.mxu1 %v6434_v9  ;;  %v6436_v36 = vpack.c.bf16 %v6316_v59, %v6312_v45  ;;  %v5287_v13 = vmul.f32 0.5, %v15662_v16  ;;  %v5291_v30 = vmul.f32 0.5, %v15663_v50  ;;  %v6183_v0 = vadd.f32 1.0, %v15664_v14  ;;  %v15667_v9 = vld [vmem:[#allocation59_spill] sm:$0xff]  ;;  %v15671_v14 = vld [vmem:[#allocation64_spill] sm:$0xff] }
 0xbc5   : > { %v13523_v56 = vpop.eup %10142  ;;  %v5577_v49 = vmul.f32 %v5449_v37, %v13505_v20  ;;  %v5579_v46 = vmul.f32 %v5451_v27, %v13509_v54  ;;  %v6309_v31 = vmul.f32 %v6181_v35, %v5285_v33  ;;  %v6313_v51 = vmul.f32 %v6185_v32, %v5289_v63  ;;  %v15668_v33 = vld [vmem:[#allocation63_spill] sm:$0xff] }
 0xbc6   : > { %6954 = vmatprep.mubr.bf16.mxu0 %v6436_v36  ;;  %v6187_v55 = vadd.f32 1.0, %v15665_v15  ;;  %v13531_v45 = vadd.f32 %v15666_v39, %v12986_v38  ;;  %v13535_v59 = vadd.f32 %v15667_v9, %v12989_v3  ;;  %v13537_v42 = vpop.eup %10144  ;;  %v6311_v27 = vmul.f32 %v6183_v0, %v5287_v13 }
 0xbc7   : > { %v5705_v37 = vmul.f32 0.044715, %v5577_v49  ;;  %v5707_v48 = vmul.f32 0.044715, %v5579_v46  ;;  %v13541_v35 = vadd.f32 %v15668_v33, %v12980_v24  ;;  %v13543_v63 = vpop.eup %10146  ;;  %v6433_v36 = vpack.c.bf16 %v6313_v51, %v6309_v31 }
 0xbc8   : > { %v6315_v11 = vmul.f32 %v6187_v55, %v5291_v30  ;;  %v5450_v32 = vmul.f32 %v13531_v45, %v13531_v45  ;;  %v5452_v16 = vmul.f32 %v13535_v59, %v13535_v59  ;;  %v13549_v50 = vpop.eup %10148  ;;  %v13557_v0 = vadd.f32 %v15671_v14, %v12983_v12  ;;  %v15674_v55 = vld [vmem:[#allocation66_spill] sm:$0xff] }
 0xbc9   : > { %15669 = vst [vmem:[#allocation42_spill] sm:$0xff] %v13541_v35  ;;  %15670 = vst [vmem:[#allocation50_spill] sm:$0xff] %v13549_v50  ;;  %v5833_v49 = vadd.f32 %v5705_v37, %v13505_v20  ;;  %v5835_v13 = vadd.f32 %v5707_v48, %v13509_v54  ;;  %v5453_v46 = vmul.f32 %v13541_v35, %v13541_v35  ;;  %v13559_v30 = vpop.eup %10150  ;;  %6794 = vmatmul.mubr.bf16.gmra.mrb[196].mxu1 %v6433_v36  ;;  %v15679_v50 = vld [vmem:[#allocation52_spill] sm:$0xff] }
 0xbca   : > { %15672 = vst [vmem:[#allocation53_spill] sm:$0xff] %v13557_v0  ;;  %15673 = vst [vmem:[#allocation41_spill] sm:$0xff] %v13559_v30  ;;  %v6435_v31 = vpack.c.bf16 %v6315_v11, %v6311_v27  ;;  %v5578_v51 = vmul.f32 %v5450_v32, %v13531_v45  ;;  %v5580_v15 = vmul.f32 %v5452_v16, %v13535_v59  ;;  %v13567_v9 = vpop.eup %10152  ;;  %v15676_v32 = vld [vmem:[#allocation67_spill] sm:$0xff] }
 0xbcb   : > { %v13565_v39 = vadd.f32 %v15674_v55, %v12986_v38  ;;  %v5961_v37 = vmul.f32 0.7978846, %v5833_v49  ;;  %v5963_v48 = vmul.f32 0.7978846, %v5835_v13  ;;  %v5581_v33 = vmul.f32 %v5453_v46, %v13541_v35  ;;  %v13572_v30 = vpop.eup %10154  ;;  %v15678_v46 = vld [vmem:[#allocation46_spill] sm:$0xff] }
 0xbcc   : > { %v5455_v14 = vmul.f32 %v13557_v0, %v13557_v0  ;;  %15675 = vst [vmem:[#allocation43_spill] sm:$0xff] %v13572_v30  ;;  %6955 = vmatmul.mubr.bf16.gmra.mrb[196].mxu0 %v6435_v31  ;;  %v5706_v27 = vmul.f32 0.044715, %v5578_v51  ;;  %v5708_v36 = vmul.f32 0.044715, %v5580_v15  ;;  %v13578_v16 = vadd.f32 %v15676_v32, %v12989_v3  ;;  %v15683_v30 = vld [vmem:[#allocation54_spill] sm:$0xff] }
 0xbcd   : > { %v5454_v11 = vmul.f32 %v13565_v39, %v13565_v39  ;;  %10156 = vtanh.f32 %v5961_v37  ;;  %v5709_v49 = vmul.f32 0.044715, %v5581_v33  ;;  %v5294_v55 = vmul.f32 0.5, %v15678_v46  ;;  %v15680_v46 = vld [vmem:[#allocation69_spill] sm:$0xff] }
 0xbce   : > { %15677 = vst [vmem:[#allocation51_spill] sm:$0xff] %v13578_v16  ;;  %v5583_v13 = vmul.f32 %v5455_v14, %v13557_v0  ;;  %10158 = vtanh.f32 %v5963_v48  ;;  %v5834_v54 = vadd.f32 %v5706_v27, %v13531_v45  ;;  %v5836_v31 = vadd.f32 %v5708_v36, %v13535_v59 }
 0xbcf   : > { %v5582_v51 = vmul.f32 %v5454_v11, %v13565_v39  ;;  %v5837_v15 = vadd.f32 %v5709_v49, %v13541_v35  ;;  %v5456_v32 = vmul.f32 %v13578_v16, %v13578_v16  ;;  %v5298_v37 = vmul.f32 0.5, %v15679_v50  ;;  %v15682_v50 = vld [vmem:[#allocation47_spill] sm:$0xff] }
 0xbd0   : > { %v5711_v29 = vmul.f32 0.044715, %v5583_v13  ;;  %v5962_v33 = vmul.f32 0.7978846, %v5834_v54  ;;  %v5964_v20 = vmul.f32 0.7978846, %v5836_v31  ;;  %v13591_v48 = vadd.f32 %v15680_v46, %v12980_v24 }
 0xbd1   : > { %v5710_v14 = vmul.f32 0.044715, %v5582_v51  ;;  %v5965_v27 = vmul.f32 0.7978846, %v5837_v15  ;;  %v5584_v11 = vmul.f32 %v5456_v32, %v13578_v16  ;;  %v6190_v49 = vadd.f32 1.0, %v13323_v19 }
 0xbd2   : > { %15681 = vst [vmem:[#allocation55_spill] sm:$0xff] %v13591_v48  ;;  %v5839_v36 = vadd.f32 %v5711_v29, %v13557_v0  ;;  %10160 = vtanh.f32 %v5962_v33  ;;  %v6194_v35 = vadd.f32 1.0, %v13363_v61  ;;  %v5296_v54 = vmul.f32 0.5, %v15682_v50 }
 0xbd3   : > { %v5838_v13 = vadd.f32 %v5710_v14, %v13565_v39  ;;  %10162 = vtanh.f32 %v5964_v20  ;;  %v5712_v51 = vmul.f32 0.044715, %v5584_v11  ;;  %v6318_v26 = vmul.f32 %v6190_v49, %v5294_v55  ;;  %v15684_v14 = vld [vmem:[#allocation70_spill] sm:$0xff] }
 0xbd4   : > { %v5967_v31 = vmul.f32 0.7978846, %v5839_v36  ;;  %10164 = vtanh.f32 %v5965_v27  ;;  %v6322_v15 = vmul.f32 %v6194_v35, %v5298_v37  ;;  %v5300_v29 = vmul.f32 0.5, %v15683_v30  ;;  %v15686_v36 = vld [vmem:[#allocation44_spill] sm:$0xff] }
 0xbd5   : > { %v5966_v46 = vmul.f32 0.7978846, %v5838_v13  ;;  %v5840_v32 = vadd.f32 %v5712_v51, %v13578_v16  ;;  %v6192_v19 = vadd.f32 1.0, %v13329_v17  ;;  %v6196_v33 = vadd.f32 1.0, %v13382_v47 }
 0xbd6   : > { %10166 = vtanh.f32 %v5967_v31  ;;  %v6438_v61 = vpack.c.bf16 %v6322_v15, %v6318_v26  ;;  %v5457_v20 = vmul.f32 %v13591_v48, %v13591_v48  ;;  %v13607_v55 = vadd.f32 %v15684_v14, %v12983_v12  ;;  %v15687_v26 = vld [vmem:[#allocation48_spill] sm:$0xff] }
 0xbd7   : > { %10168 = vtanh.f32 %v5966_v46  ;;  %v13609_v27 = vpop.eup %10156  ;;  %v5968_v35 = vmul.f32 0.7978846, %v5840_v32  ;;  %v6320_v30 = vmul.f32 %v6192_v19, %v5296_v54  ;;  %v6324_v37 = vmul.f32 %v6196_v33, %v5300_v29  ;;  %v15688_v54 = vld [vmem:[#allocation45_spill] sm:$0xff] }
 0xbd8   : > { %15685 = vst [vmem:[#allocation58_spill] sm:$0xff] %v13607_v55  ;;  %v5293_v11 = vmul.f32 0.5, %v15686_v36  ;;  %v13612_v49 = vpop.eup %10158  ;;  %6801 = vmatprep.mubr.bf16.mxu1 %v6438_v61  ;;  %v5585_v17 = vmul.f32 %v5457_v20, %v13591_v48  ;;  %v5459_v47 = vmul.f32 %v13607_v55, %v13607_v55  ;;  %v5297_v13 = vmul.f32 0.5, %v15687_v26  ;;  %v15689_v19 = vld [vmem:[#allocation49_spill] sm:$0xff]  ;;  %v15691_v36 = vld [vmem:[#allocation72_spill] sm:$0xff] }
 0xbd9   : > { %v6189_v50 = vadd.f32 1.0, %v13307_v28  ;;  %10170 = vtanh.f32 %v5968_v35  ;;  %v6440_v31 = vpack.c.bf16 %v6324_v37, %v6320_v30  ;;  %v6193_v51 = vadd.f32 1.0, %v13332_v58  ;;  %v15690_v28 = vld [vmem:[#allocation71_spill] sm:$0xff] }
 0xbda   : > { %v5295_v46 = vmul.f32 0.5, %v15688_v54  ;;  %v5713_v15 = vmul.f32 0.044715, %v5585_v17  ;;  %v5587_v29 = vmul.f32 %v5459_v47, %v13607_v55  ;;  %v5299_v33 = vmul.f32 0.5, %v15689_v19  ;;  %v15692_v17 = vld [vmem:[#allocation75_spill] sm:$0xff] }
 0xbdb   : > { %v6317_v32 = vmul.f32 %v6189_v50, %v5293_v11  ;;  %6962 = vmatprep.mubr.bf16.mxu0 %v6440_v31  ;;  %v6321_v61 = vmul.f32 %v6193_v51, %v5297_v13  ;;  %v6191_v20 = vadd.f32 1.0, %v13316_v22  ;;  %v6195_v14 = vadd.f32 1.0, %v13345_v25 }
 0xbdc   : > { %v13627_v35 = vadd.f32 %v15690_v28, %v12986_v38  ;;  %v13629_v30 = vpop.eup %10160  ;;  %v5841_v58 = vadd.f32 %v5713_v15, %v13591_v48  ;;  %v5715_v37 = vmul.f32 0.044715, %v5587_v29  ;;  %v13634_v11 = vadd.f32 %v15691_v36, %v12989_v3 }
 0xbdd   : > { %v13638_v47 = vadd.f32 %v15692_v17, %v12980_v24  ;;  %v13640_v22 = vpop.eup %10162  ;;  %v6437_v25 = vpack.c.bf16 %v6321_v61, %v6317_v32  ;;  %v6319_v26 = vmul.f32 %v6191_v20, %v5295_v46  ;;  %v6323_v13 = vmul.f32 %v6195_v14, %v5299_v33  ;;  %v15696_v33 = vld [vmem:[#allocation76_spill] sm:$0xff]  ;;  %v15697_v20 = vld [vmem:[#allocation77_spill] sm:$0xff] }
 0xbde   : > { %v5458_v50 = vmul.f32 %v13627_v35, %v13627_v35  ;;  %v13644_v31 = vpop.eup %10164  ;;  %v5969_v51 = vmul.f32 0.7978846, %v5841_v58  ;;  %v5843_v54 = vadd.f32 %v5715_v37, %v13607_v55  ;;  %v5460_v15 = vmul.f32 %v13634_v11, %v13634_v11 }
 0xbdf   : > { %15693 = vst [vmem:[#allocation59_spill] sm:$0xff] %v13638_v47  ;;  %15694 = vst [vmem:[#allocation63_spill] sm:$0xff] %v13644_v31  ;;  %v5461_v29 = vmul.f32 %v13638_v47, %v13638_v47  ;;  %6802 = vmatmul.mubr.bf16.gmra.mrb[200].mxu1 %v6437_v25  ;;  %v6439_v32 = vpack.c.bf16 %v6323_v13, %v6319_v26  ;;  %v13656_v61 = vadd.f32 %v15696_v33, %v12983_v12  ;;  %v15698_v13 = vld [vmem:[#allocation78_spill] sm:$0xff] }
 0xbe0   : > { %v13651_v19 = vpop.eup %10166  ;;  %v5586_v46 = vmul.f32 %v5458_v50, %v13627_v35  ;;  %v13660_v14 = vadd.f32 %v15697_v20, %v12986_v38  ;;  %10172 = vtanh.f32 %v5969_v51  ;;  %v5971_v58 = vmul.f32 0.7978846, %v5843_v54  ;;  %v15699_v54 = vld [vmem:[#allocation60_spill] sm:$0xff] }
 0xbe1   : > { %15695 = vst [vmem:[#allocation64_spill] sm:$0xff] %v13651_v19  ;;  %v13662_v28 = vpop.eup %10168  ;;  %v5588_v37 = vmul.f32 %v5460_v15, %v13634_v11  ;;  %v5589_v36 = vmul.f32 %v5461_v29, %v13638_v47  ;;  %6963 = vmatmul.mubr.bf16.gmra.mrb[200].mxu0 %v6439_v32  ;;  %v5463_v25 = vmul.f32 %v13656_v61, %v13656_v61  ;;  %v5302_v20 = vmul.f32 0.5, %v15699_v54 }
 0xbe2   : > { %v5714_v17 = vmul.f32 0.044715, %v5586_v46  ;;  %v5462_v26 = vmul.f32 %v13660_v14, %v13660_v14  ;;  %v13672_v50 = vadd.f32 %v15698_v13, %v12989_v3  ;;  %10174 = vtanh.f32 %v5971_v58  ;;  %v15701_v58 = vld [vmem:[#allocation68_spill] sm:$0xff] }
 0xbe3   : > { %v5716_v33 = vmul.f32 0.044715, %v5588_v37  ;;  %v5717_v51 = vmul.f32 0.044715, %v5589_v36  ;;  %v13675_v15 = vpop.eup %10170  ;;  %v5591_v32 = vmul.f32 %v5463_v25, %v13656_v61  ;;  %v5306_v37 = vmul.f32 0.5, %v15701_v58 }
 0xbe4   : > { %15700 = vst [vmem:[#allocation66_spill] sm:$0xff] %v13675_v15  ;;  %v5842_v29 = vadd.f32 %v5714_v17, %v13627_v35  ;;  %v5590_v46 = vmul.f32 %v5462_v26, %v13660_v14  ;;  %v5464_v19 = vmul.f32 %v13672_v50, %v13672_v50  ;;  %v6198_v36 = vadd.f32 1.0, %v13403_v21 }
 0xbe5   : > { %v5844_v55 = vadd.f32 %v5716_v33, %v13634_v11  ;;  %v5845_v13 = vadd.f32 %v5717_v51, %v13638_v47  ;;  %v5719_v0 = vmul.f32 0.044715, %v5591_v32  ;;  %v6202_v26 = vadd.f32 1.0, %v13435_v41  ;;  %v15702_v47 = vld [vmem:[#allocation61_spill] sm:$0xff] }
 0xbe6   : > { %v5970_v54 = vmul.f32 0.7978846, %v5842_v29  ;;  %v5718_v31 = vmul.f32 0.044715, %v5590_v46  ;;  %v5592_v17 = vmul.f32 %v5464_v19, %v13672_v50  ;;  %v6326_v15 = vmul.f32 %v6198_v36, %v5302_v20  ;;  %v15703_v29 = vld [vmem:[#allocation73_spill] sm:$0xff] }
 0xbe7   : > { %v5972_v48 = vmul.f32 0.7978846, %v5844_v55  ;;  %v5973_v25 = vmul.f32 0.7978846, %v5845_v13  ;;  %v5847_v16 = vadd.f32 %v5719_v0, %v13656_v61  ;;  %v6330_v58 = vmul.f32 %v6202_v26, %v5306_v37  ;;  %v15705_v37 = vld [vmem:[#allocation80_spill] sm:$0xff]  ;;  %v15707_v26 = vld [vmem:[#allocation62_spill] sm:$0xff] }
 0xbe8   : > { %10176 = vtanh.f32 %v5970_v54  ;;  %v5846_v33 = vadd.f32 %v5718_v31, %v13660_v14  ;;  %v5720_v51 = vmul.f32 0.044715, %v5592_v17  ;;  %v5304_v21 = vmul.f32 0.5, %v15702_v47  ;;  %v15704_v31 = vld [vmem:[#allocation79_spill] sm:$0xff] }
 0xbe9   : > { %10178 = vtanh.f32 %v5972_v48  ;;  %v5308_v32 = vmul.f32 0.5, %v15703_v29  ;;  %v5975_v46 = vmul.f32 0.7978846, %v5847_v16  ;;  %v6442_v41 = vpack.c.bf16 %v6330_v58, %v6326_v15  ;;  %v15706_v16 = vld [vmem:[#allocation56_spill] sm:$0xff] }
 0xbea   : > { %10180 = vtanh.f32 %v5973_v25  ;;  %v5974_v19 = vmul.f32 0.7978846, %v5846_v33  ;;  %v5848_v55 = vadd.f32 %v5720_v51, %v13672_v50  ;;  %v13693_v13 = vpop.eup %10172  ;;  %v6200_v20 = vadd.f32 1.0, %v13408_v6 }
 0xbeb   : > { %v6204_v0 = vadd.f32 1.0, %v13465_v10  ;;  %v13699_v48 = vadd.f32 %v15704_v31, %v12980_v24  ;;  %10182 = vtanh.f32 %v5975_v46  ;;  %v13703_v36 = vadd.f32 %v15705_v37, %v12983_v12  ;;  %6809 = vmatprep.mubr.bf16.mxu1 %v6442_v41  ;;  %v15709_v41 = vld [vmem:[#allocation65_spill] sm:$0xff] }
 0xbec   : > { %v5976_v47 = vmul.f32 0.7978846, %v5848_v55  ;;  %v5301_v54 = vmul.f32 0.5, %v15706_v16  ;;  %v13706_v17 = vpop.eup %10174  ;;  %10184 = vtanh.f32 %v5974_v19  ;;  %v6328_v15 = vmul.f32 %v6200_v20, %v5304_v21  ;;  %v15708_v19 = vld [vmem:[#allocation57_spill] sm:$0xff] }
 0xbed   : > { %v6332_v6 = vmul.f32 %v6204_v0, %v5308_v32  ;;  %v5465_v10 = vmul.f32 %v13699_v48, %v13699_v48  ;;  %v5467_v25 = vmul.f32 %v13703_v36, %v13703_v36  ;;  %v5305_v33 = vmul.f32 0.5, %v15707_v26 }
 0xbee   : > { %10186 = vtanh.f32 %v5976_v47  ;;  %v6197_v51 = vadd.f32 1.0, %v13398_v5  ;;  %v6201_v46 = vadd.f32 1.0, %v13415_v23  ;;  %v5303_v55 = vmul.f32 0.5, %v15708_v19  ;;  %v15710_v5 = vld [vmem:[#allocation81_spill] sm:$0xff] }
 0xbef   : > { %v6444_v58 = vpack.c.bf16 %v6332_v6, %v6328_v15  ;;  %v5593_v29 = vmul.f32 %v5465_v10, %v13699_v48  ;;  %v5595_v21 = vmul.f32 %v5467_v25, %v13703_v36  ;;  %v5307_v20 = vmul.f32 0.5, %v15709_v41  ;;  %v15711_v10 = vld [vmem:[#allocation82_spill] sm:$0xff] }
 0xbf0   : > { %v6325_v32 = vmul.f32 %v6197_v51, %v5301_v54  ;;  %v6199_v0 = vadd.f32 1.0, %v13400_v1  ;;  %v6329_v47 = vmul.f32 %v6201_v46, %v5305_v33  ;;  %v6203_v37 = vadd.f32 1.0, %v13421_v57 }
 0xbf1   : > { %6970 = vmatprep.mubr.bf16.mxu0 %v6444_v58  ;;  %v5721_v31 = vmul.f32 0.044715, %v5593_v29  ;;  %v13723_v16 = vadd.f32 %v15710_v5, %v12986_v38  ;;  %v5723_v23 = vmul.f32 0.044715, %v5595_v21  ;;  %v13729_v54 = vadd.f32 %v15711_v10, %v12989_v3 }
 0xbf2   : > { %v13725_v15 = vpop.eup %10176  ;;  %v6327_v6 = vmul.f32 %v6199_v0, %v5303_v55  ;;  %v5310_v25 = vmul.f32 0.5, %v13375_v43  ;;  %v6441_v33 = vpack.c.bf16 %v6329_v47, %v6325_v32  ;;  %v6331_v57 = vmul.f32 %v6203_v37, %v5307_v20 }
 0xbf3   : > { %v13732_v1 = vpop.eup %10178  ;;  %v5849_v26 = vadd.f32 %v5721_v31, %v13699_v48  ;;  %v5466_v51 = vmul.f32 %v13723_v16, %v13723_v16  ;;  %v5851_v29 = vadd.f32 %v5723_v23, %v13703_v36  ;;  %v5468_v46 = vmul.f32 %v13729_v54, %v13729_v54 }
 0xbf4   : > { %v13737_v58 = vpop.eup %10180  ;;  %v5314_v19 = vmul.f32 0.5, %v13433_v18  ;;  %v6206_v43 = vadd.f32 1.0, %v13488_v60  ;;  %6810 = vmatmul.mubr.bf16.gmra.mrb[204].mxu1 %v6441_v33  ;;  %v6443_v21 = vpack.c.bf16 %v6331_v57, %v6327_v6  ;;  %v6210_v41 = vadd.f32 1.0, %v13537_v42  ;;  %v13750_v5 = vpop.f32.mrb[160].mxu1 }
 0xbf5   : > { %v5977_v55 = vmul.f32 0.7978846, %v5849_v26  ;;  %v5594_v32 = vmul.f32 %v5466_v51, %v13723_v16  ;;  %v13746_v20 = vpop.eup %10182  ;;  %v5979_v0 = vmul.f32 0.7978846, %v5851_v29  ;;  %v5596_v31 = vmul.f32 %v5468_v46, %v13729_v54  ;;  %v13752_v18 = vpop.f32.mrb[160].mxu0 }
 0xbf6   : > { %v6334_v47 = vmul.f32 %v6206_v43, %v5310_v25  ;;  %v5312_v37 = vmul.f32 0.5, %v13380_v44  ;;  %v13754_v60 = vpop.eup %10184  ;;  %6971 = vmatmul.mubr.bf16.gmra.mrb[204].mxu0 %v6443_v21  ;;  %v6338_v6 = vmul.f32 %v6210_v41, %v5314_v19  ;;  %v5316_v42 = vmul.f32 0.5, %v13440_v62  ;;  %v13757_v10 = vpop.f32.mrb[161].mxu1  ;;  %v15714_v62 = vld [vmem:[#allocation74_spill] sm:$0xff] }
 0xbf7   : > { %10188 = vtanh.f32 %v5977_v55  ;;  %v5722_v23 = vmul.f32 0.044715, %v5594_v32  ;;  %v13759_v26 = vpop.f32.mrb[161].mxu0  ;;  %v5724_v44 = vmul.f32 0.044715, %v5596_v31  ;;  %v6208_v25 = vadd.f32 1.0, %v13492_v34 }
 0xbf8   : > { %v13761_v33 = vpop.eup %10186  ;;  %10190 = vtanh.f32 %v5979_v0  ;;  %v6212_v57 = vadd.f32 1.0, %v13543_v63  ;;  %v13765_v51 = vpop.f32.mrb[162].mxu1  ;;  %v6446_v19 = vpack.c.bf16 %v6338_v6, %v6334_v47  ;;  %v5309_v43 = vmul.f32 0.5, %v15714_v62 }
 0xbf9   : > { %15712 = vst [vmem:[#allocation67_spill] sm:$0xff] %v13765_v51  ;;  %v13767_v29 = vpop.f32.mrb[162].mxu0  ;;  %v5850_v46 = vadd.f32 %v5722_v23, %v13723_v16  ;;  %v5313_v55 = vmul.f32 0.5, %v13413_v52  ;;  %v13772_v21 = vpop.f32.mrb[163].mxu1  ;;  %v5852_v41 = vadd.f32 %v5724_v44, %v13729_v54  ;;  %v6336_v34 = vmul.f32 %v6208_v25, %v5312_v37  ;;  %v15717_v23 = vld [vmem:[#allocation83_spill] sm:$0xff] }
 0xbfa   : > { %15713 = vst [vmem:[#allocation46_spill] sm:$0xff] %v13767_v29  ;;  %15715 = vst [vmem:[#allocation52_spill] sm:$0xff] %v13772_v21  ;;  %v13774_v32 = vpop.f32.mrb[163].mxu0  ;;  %v6340_v0 = vmul.f32 %v6212_v57, %v5316_v42  ;;  %v6205_v63 = vadd.f32 1.0, %v13477_v40  ;;  %6817 = vmatprep.mubr.bf16.mxu1 %v6446_v19  ;;  %v6209_v29 = vadd.f32 1.0, %v13518_v7  ;;  %v5311_v47 = vmul.f32 0.5, %v13350_v53 }
 0xbfb   : > { %15716 = vst [vmem:[#allocation69_spill] sm:$0xff] %v13774_v32  ;;  %v5978_v31 = vmul.f32 0.7978846, %v5850_v46  ;;  %v5315_v6 = vmul.f32 0.5, %v15717_v23  ;;  %v5980_v62 = vmul.f32 0.7978846, %v5852_v41 }
 0xbfc   : > { %v6448_v52 = vpack.c.bf16 %v6340_v0, %v6336_v34  ;;  %v6333_v51 = vmul.f32 %v6205_v63, %v5309_v43  ;;  %v6207_v21 = vadd.f32 1.0, %v13482_v2  ;;  %v6337_v32 = vmul.f32 %v6209_v29, %v5313_v55  ;;  %v13786_v44 = vpop.f32.mrb[164].mxu1  ;;  %v13788_v25 = vpop.f32.mrb[164].mxu0  ;;  %v15720_v0 = vld [vmem:[#allocation86_spill] sm:$0xff] }
 0xbfd   : > { %10192 = vtanh.f32 %v5978_v31  ;;  %v6211_v37 = vadd.f32 1.0, %v13523_v56  ;;  %v5318_v42 = vmul.f32 0.5, %v13455_v4  ;;  %v5322_v7 = vmul.f32 0.5, %v13531_v45  ;;  %v13792_v56 = vpop.f32.mrb[165].mxu1  ;;  %v13794_v4 = vpop.f32.mrb[165].mxu0  ;;  %v15718_v45 = vld [vmem:[#allocation43_spill] sm:$0xff] }
 0xbfe   : > { %10194 = vtanh.f32 %v5980_v62  ;;  %6978 = vmatprep.mubr.bf16.mxu0 %v6448_v52  ;;  %v6335_v40 = vmul.f32 %v6207_v21, %v5311_v47  ;;  %v6214_v53 = vadd.f32 1.0, %v13567_v9  ;;  %v6445_v57 = vpack.c.bf16 %v6337_v32, %v6333_v51  ;;  %v13799_v21 = vpop.f32.mrb[166].mxu1  ;;  %v13801_v41 = vpop.f32.mrb[166].mxu0  ;;  %v15719_v32 = vld [vmem:[#allocation84_spill] sm:$0xff] }
 0xbff   : > { %v6339_v46 = vmul.f32 %v6211_v37, %v5315_v6  ;;  %v6218_v2 = vadd.f32 1.0, %v13629_v30  ;;  %v5320_v29 = vmul.f32 0.5, %v13463_v8  ;;  %v5324_v43 = vmul.f32 0.5, %v13535_v59  ;;  %v13807_v31 = vpop.f32.mrb[167].mxu1  ;;  %v13809_v59 = vpop.f32.mrb[167].mxu0  ;;  %v15721_v6 = vld [vmem:[#allocation50_spill] sm:$0xff] }
 0xc00   : > { %v6342_v19 = vmul.f32 %v6214_v53, %v5318_v42  ;;  %v6216_v55 = vadd.f32 1.0, %v15718_v45  ;;  %v6220_v9 = vadd.f32 1.0, %v13640_v22  ;;  %6818 = vmatmul.mubr.bf16.gmra.mrb[208].mxu1 %v6445_v57  ;;  %v5317_v34 = vmul.f32 0.5, %v15719_v32  ;;  %v15722_v42 = vld [vmem:[#allocation85_spill] sm:$0xff] }
 0xc01   : > { %v13803_v51 = vpop.eup %10188  ;;  %v6447_v30 = vpack.c.bf16 %v6339_v46, %v6335_v40  ;;  %v6346_v8 = vmul.f32 %v6218_v2, %v5322_v7  ;;  %v5321_v63 = vmul.f32 0.5, %v15720_v0  ;;  %v6213_v62 = vadd.f32 1.0, %v15721_v6  ;;  %v15723_v7 = vld [vmem:[#allocation87_spill] sm:$0xff]  ;;  %v15724_v57 = vld [vmem:[#allocation41_spill] sm:$0xff] }
 0xc02   : > { %v13811_v47 = vpop.eup %10190  ;;  %v6344_v22 = vmul.f32 %v6216_v55, %v5320_v29  ;;  %v6348_v23 = vmul.f32 %v6220_v9, %v5324_v43  ;;  %v6217_v52 = vadd.f32 1.0, %v13609_v27  ;;  %v5319_v40 = vmul.f32 0.5, %v15722_v42 }
 0xc03   : > { %6979 = vmatmul.mubr.bf16.gmra.mrb[208].mxu0 %v6447_v30  ;;  %v6450_v37 = vpack.c.bf16 %v6346_v8, %v6342_v19  ;;  %v5323_v53 = vmul.f32 0.5, %v15723_v7  ;;  %v6215_v46 = vadd.f32 1.0, %v15724_v57  ;;  %v6341_v45 = vmul.f32 %v6213_v62, %v5317_v34  ;;  %v15725_v8 = vld [vmem:[#allocation51_spill] sm:$0xff] }
 0xc04   : > { %v6452_v2 = vpack.c.bf16 %v6348_v23, %v6344_v22  ;;  %v6345_v32 = vmul.f32 %v6217_v52, %v5321_v63  ;;  %v6219_v0 = vadd.f32 1.0, %v13612_v49  ;;  %v5326_v43 = vmul.f32 0.5, %v13565_v39  ;;  %v13824_v22 = vpop.f32.mrb[168].mxu1  ;;  %v13826_v34 = vpop.f32.mrb[168].mxu0  ;;  %v15726_v39 = vld [vmem:[#allocation66_spill] sm:$0xff] }
 0xc05   : > { %6825 = vmatprep.mubr.bf16.mxu1 %v6450_v37  ;;  %v6343_v29 = vmul.f32 %v6215_v46, %v5319_v40  ;;  %v5330_v55 = vmul.f32 0.5, %v13627_v35  ;;  %v6222_v27 = vadd.f32 1.0, %v13662_v28  ;;  %v6226_v30 = vadd.f32 1.0, %v13725_v15  ;;  %v13831_v28 = vpop.f32.mrb[169].mxu1  ;;  %v13833_v52 = vpop.f32.mrb[169].mxu0  ;;  %v15727_v40 = vld [vmem:[#allocation42_spill] sm:$0xff] }
 0xc06   : > { %6986 = vmatprep.mubr.bf16.mxu0 %v6452_v2  ;;  %v6449_v19 = vpack.c.bf16 %v6345_v32, %v6341_v45  ;;  %v6347_v9 = vmul.f32 %v6219_v0, %v5323_v53  ;;  %v5328_v6 = vmul.f32 0.5, %v15725_v8  ;;  %v5332_v23 = vmul.f32 0.5, %v13634_v11  ;;  %v15728_v53 = vld [vmem:[#allocation55_spill] sm:$0xff]  ;;  %v13837_v46 = vpop.f32.mrb[170].mxu1  ;;  %v13839_v2 = vpop.f32.mrb[170].mxu0 }
 0xc07   : > { %v10193_v49 = vpop.eup %10192  ;;  %v6350_v63 = vmul.f32 %v6222_v27, %v5326_v43  ;;  %v6224_v62 = vadd.f32 1.0, %v15726_v39  ;;  %v6228_v35 = vadd.f32 1.0, %v13732_v1  ;;  %v6354_v42 = vmul.f32 %v6226_v30, %v5330_v55  ;;  %v15729_v32 = vld [vmem:[#allocation63_spill] sm:$0xff]  ;;  %v13843_v43 = vpop.f32.mrb[171].mxu1  ;;  %v15730_v55 = vld [vmem:[#allocation53_spill] sm:$0xff]  ;;  %v15731_v30 = vld [vmem:[#allocation58_spill] sm:$0xff] }
 0xc08   : > { %v10195_v37 = vpop.eup %10194  ;;  %v6451_v15 = vpack.c.bf16 %v6347_v9, %v6343_v29  ;;  %v5325_v7 = vmul.f32 0.5, %v15727_v40  ;;  %v5329_v57 = vmul.f32 0.5, %v15728_v53  ;;  %6826 = vmatmul.mubr.bf16.gmra.mrb[212].mxu1 %v6449_v19  ;;  %v6221_v1 = vadd.f32 1.0, %v15729_v32  ;;  %v13845_v27 = vpop.f32.mrb[171].mxu0  ;;  %v15732_v39 = vld [vmem:[#allocation64_spill] sm:$0xff] }
 0xc09   : > { %v6352_v11 = vmul.f32 %v6224_v62, %v5328_v6  ;;  %v6356_v45 = vmul.f32 %v6228_v35, %v5332_v23  ;;  %v6225_v0 = vadd.f32 1.0, %v13693_v13  ;;  %v6454_v29 = vpack.c.bf16 %v6354_v42, %v6350_v63 }
 0xc0a   : > { %v5327_v9 = vmul.f32 0.5, %v15730_v55  ;;  %v5331_v8 = vmul.f32 0.5, %v15731_v30  ;;  %v6223_v40 = vadd.f32 1.0, %v15732_v39  ;;  %v6349_v19 = vmul.f32 %v6221_v1, %v5325_v7  ;;  %v15733_v1 = vld [vmem:[#allocation59_spill] sm:$0xff] }
 0xc0b   : > { %6987 = vmatmul.mubr.bf16.gmra.mrb[212].mxu0 %v6451_v15  ;;  %v6456_v53 = vpack.c.bf16 %v6356_v45, %v6352_v11  ;;  %v6353_v6 = vmul.f32 %v6225_v0, %v5329_v57  ;;  %v6227_v23 = vadd.f32 1.0, %v13706_v17  ;;  %6833 = vmatprep.mubr.bf16.mxu1 %v6454_v29  ;;  %v5334_v13 = vmul.f32 0.5, %v13660_v14 }
 0xc0c   : > { %v6351_v62 = vmul.f32 %v6223_v40, %v5327_v9  ;;  %v5338_v35 = vmul.f32 0.5, %v13723_v16  ;;  %v6230_v63 = vadd.f32 1.0, %v13754_v60  ;;  %v6234_v55 = vadd.f32 1.0, %v10193_v49  ;;  %v13857_v11 = vpop.f32.mrb[172].mxu1  ;;  %v13859_v45 = vpop.f32.mrb[172].mxu0 }
 0xc0d   : > { %6994 = vmatprep.mubr.bf16.mxu0 %v6456_v53  ;;  %v6453_v42 = vpack.c.bf16 %v6353_v6, %v6349_v19  ;;  %v6355_v32 = vmul.f32 %v6227_v23, %v5331_v8  ;;  %v5336_v30 = vmul.f32 0.5, %v13672_v50  ;;  %v5340_v7 = vmul.f32 0.5, %v13729_v54  ;;  %v13863_v29 = vpop.f32.mrb[173].mxu1  ;;  %v13865_v49 = vpop.f32.mrb[173].mxu0 }
 0xc0e   : > { %v6358_v15 = vmul.f32 %v6230_v63, %v5334_v13  ;;  %v6232_v57 = vadd.f32 1.0, %v13761_v33  ;;  %v6236_v17 = vadd.f32 1.0, %v10195_v37  ;;  %v6362_v16 = vmul.f32 %v6234_v55, %v5338_v35  ;;  %v13869_v37 = vpop.f32.mrb[174].mxu1  ;;  %v13871_v8 = vpop.f32.mrb[174].mxu0  ;;  %v15735_v55 = vld [vmem:[#allocation46_spill] sm:$0xff] }
 0xc0f   : > { %v6455_v14 = vpack.c.bf16 %v6355_v32, %v6351_v62  ;;  %v5333_v60 = vmul.f32 0.5, %v15733_v1  ;;  %v5337_v0 = vmul.f32 0.5, %v13699_v48  ;;  %v6229_v54 = vadd.f32 1.0, %v13737_v58  ;;  %v13876_v19 = vpop.f32.mrb[175].mxu1  ;;  %v13878_v6 = vpop.f32.mrb[175].mxu0 }
 0xc10   : > { %v6360_v50 = vmul.f32 %v6232_v57, %v5336_v30  ;;  %v6364_v9 = vmul.f32 %v6236_v17, %v5340_v7  ;;  %v6233_v33 = vadd.f32 1.0, %v13803_v51  ;;  %6834 = vmatmul.mubr.bf16.gmra.mrb[216].mxu1 %v6453_v42  ;;  %v6458_v39 = vpack.c.bf16 %v6362_v16, %v6358_v15  ;;  %v15736_v7 = vld [vmem:[#allocation52_spill] sm:$0xff] }
 0xc11   : > { %v5335_v40 = vmul.f32 0.5, %v13656_v61  ;;  %v5339_v48 = vmul.f32 0.5, %v13703_v36  ;;  %v6231_v53 = vadd.f32 1.0, %v13746_v20  ;;  %v6357_v58 = vmul.f32 %v6229_v54, %v5333_v60 }
 0xc12   : > { %v6460_v23 = vpack.c.bf16 %v6364_v9, %v6360_v50  ;;  %v6361_v62 = vmul.f32 %v6233_v33, %v5337_v0  ;;  %v6235_v51 = vadd.f32 1.0, %v13811_v47  ;;  %6841 = vmatprep.mubr.bf16.mxu1 %v6458_v39  ;;  %v13883_v35 = vadd.f32 %v13750_v5, %v12980_v24 }
 0xc13   : > { %6995 = vmatmul.mubr.bf16.gmra.mrb[216].mxu0 %v6455_v14  ;;  %v6359_v13 = vmul.f32 %v6231_v53, %v5335_v40  ;;  %v13887_v61 = vadd.f32 %v13752_v18, %v12983_v12  ;;  %v13891_v63 = vadd.f32 %v13757_v10, %v12986_v38  ;;  %v13895_v47 = vadd.f32 %v13759_v26, %v12989_v3  ;;  %v15734_v18 = vld [vmem:[#allocation67_spill] sm:$0xff]  ;;  %v15737_v40 = vld [vmem:[#allocation69_spill] sm:$0xff] }
 0xc14   : > { %7002 = vmatprep.mubr.bf16.mxu0 %v6460_v23  ;;  %v6457_v36 = vpack.c.bf16 %v6361_v62, %v6357_v58  ;;  %v6363_v20 = vmul.f32 %v6235_v51, %v5339_v48  ;;  %v5469_v42 = vmul.f32 %v13883_v35, %v13883_v35  ;;  %v13903_v32 = vadd.f32 %v15734_v18, %v12980_v24  ;;  %v13917_v17 = vpop.f32.mrb[176].mxu1  ;;  %v13919_v14 = vpop.f32.mrb[176].mxu0 }
 0xc15   : > { %v5471_v5 = vmul.f32 %v13887_v61, %v13887_v61  ;;  %v13907_v30 = vadd.f32 %v15735_v55, %v12983_v12  ;;  %v5470_v15 = vmul.f32 %v13891_v63, %v13891_v63  ;;  %v5472_v26 = vmul.f32 %v13895_v47, %v13895_v47  ;;  %v13927_v50 = vpop.f32.mrb[177].mxu1  ;;  %v13929_v9 = vpop.f32.mrb[177].mxu0 }
 0xc16   : > { %v6459_v10 = vpack.c.bf16 %v6363_v20, %v6359_v13  ;;  %v13915_v57 = vadd.f32 %v15736_v7, %v12986_v38  ;;  %v5597_v16 = vmul.f32 %v5469_v42, %v13883_v35  ;;  %v5473_v60 = vmul.f32 %v13903_v32, %v13903_v32  ;;  %v13939_v53 = vpop.f32.mrb[178].mxu1  ;;  %v13941_v23 = vpop.f32.mrb[178].mxu0 }
 0xc17   : > { %v5599_v1 = vmul.f32 %v5471_v5, %v13887_v61  ;;  %v5475_v0 = vmul.f32 %v13907_v30, %v13907_v30  ;;  %v5598_v54 = vmul.f32 %v5470_v15, %v13891_v63  ;;  %v5600_v33 = vmul.f32 %v5472_v26, %v13895_v47  ;;  %v13945_v20 = vpop.f32.mrb[179].mxu1  ;;  %v13947_v42 = vpop.f32.mrb[179].mxu0 }
 0xc18   : > { %v5474_v39 = vmul.f32 %v13915_v57, %v13915_v57  ;;  %v13937_v48 = vadd.f32 %v15737_v40, %v12989_v3  ;;  %6842 = vmatmul.mubr.bf16.gmra.mrb[220].mxu1 %v6457_v36  ;;  %v5725_v58 = vmul.f32 0.044715, %v5597_v16  ;;  %v5601_v51 = vmul.f32 %v5473_v60, %v13903_v32  ;;  %15738 = vst [vmem:[#allocation47_spill] sm:$0xff] %v13945_v20 }
 0xc19   : > { %v5727_v62 = vmul.f32 0.044715, %v5599_v1  ;;  %v5603_v13 = vmul.f32 %v5475_v0, %v13907_v30  ;;  %15739 = vst [vmem:[#allocation54_spill] sm:$0xff] %v13947_v42  ;;  %v5726_v5 = vmul.f32 0.044715, %v5598_v54 }
 0xc1a   : > { %v5728_v18 = vmul.f32 0.044715, %v5600_v33  ;;  %v5602_v55 = vmul.f32 %v5474_v39, %v13915_v57  ;;  %v5476_v15 = vmul.f32 %v13937_v48, %v13937_v48  ;;  %v5853_v36 = vadd.f32 %v5725_v58, %v13883_v35 }
 0xc1b   : > { %7003 = vmatmul.mubr.bf16.gmra.mrb[220].mxu0 %v6459_v10  ;;  %v5855_v26 = vadd.f32 %v5727_v62, %v13887_v61  ;;  %v5729_v7 = vmul.f32 0.044715, %v5601_v51  ;;  %v5731_v16 = vmul.f32 0.044715, %v5603_v13  ;;  %v5854_v1 = vadd.f32 %v5726_v5, %v13891_v63 }
 0xc1c   : > { %v5856_v60 = vadd.f32 %v5728_v18, %v13895_v47  ;;  %v5730_v0 = vmul.f32 0.044715, %v5602_v55  ;;  %v5604_v54 = vmul.f32 %v5476_v15, %v13937_v48  ;;  %v5981_v33 = vmul.f32 0.7978846, %v5853_v36  ;;  %v13964_v18 = vpop.f32.mrb[180].mxu1  ;;  %v13966_v55 = vpop.f32.mrb[180].mxu0 }
 0xc1d   : > { %v5983_v40 = vmul.f32 0.7978846, %v5855_v26  ;;  %v5857_v39 = vadd.f32 %v5729_v7, %v13903_v32  ;;  %v5859_v42 = vadd.f32 %v5731_v16, %v13907_v30  ;;  %v5982_v10 = vmul.f32 0.7978846, %v5854_v1  ;;  %v13973_v7 = vpop.f32.mrb[181].mxu1  ;;  %v13975_v16 = vpop.f32.mrb[181].mxu0 }
 0xc1e   : > { %v5984_v20 = vmul.f32 0.7978846, %v5856_v60  ;;  %v5858_v58 = vadd.f32 %v5730_v0, %v13915_v57  ;;  %v5732_v62 = vmul.f32 0.044715, %v5604_v54  ;;  %10196 = vtanh.f32 %v5981_v33  ;;  %v13987_v60 = vpop.f32.mrb[182].mxu1 }
 0xc1f   : > { %v5985_v51 = vmul.f32 0.7978846, %v5857_v39  ;;  %v5987_v13 = vmul.f32 0.7978846, %v5859_v42  ;;  %v13962_v5 = vadd.f32 %v13786_v44, %v12980_v24  ;;  %10198 = vtanh.f32 %v5983_v40  ;;  %15742 = vst [vmem:[#allocation48_spill] sm:$0xff] %v13987_v60  ;;  %v13997_v40 = vpop.f32.mrb[183].mxu1 }
 0xc20   : > { %v5986_v15 = vmul.f32 0.7978846, %v5858_v58  ;;  %v5860_v36 = vadd.f32 %v5732_v62, %v13937_v48  ;;  %v13971_v26 = vadd.f32 %v13788_v25, %v12983_v12  ;;  %10200 = vtanh.f32 %v5982_v10  ;;  %v13989_v25 = vpop.f32.mrb[182].mxu0  ;;  %15745 = vst [vmem:[#allocation71_spill] sm:$0xff] %v13997_v40 }
 0xc21   : > { %15740 = vst [vmem:[#allocation70_spill] sm:$0xff] %v13962_v5  ;;  %v5477_v44 = vmul.f32 %v13962_v5, %v13962_v5  ;;  %v13981_v42 = vadd.f32 %v13792_v56, %v12986_v38  ;;  %v13985_v1 = vadd.f32 %v13794_v4, %v12989_v3  ;;  %15743 = vst [vmem:[#allocation45_spill] sm:$0xff] %v13989_v25  ;;  %10202 = vtanh.f32 %v5984_v20  ;;  %v13999_v56 = vpop.f32.mrb[183].mxu0 }
 0xc22   : > { %15741 = vst [vmem:[#allocation44_spill] sm:$0xff] %v13971_v26  ;;  %v5988_v0 = vmul.f32 0.7978846, %v5860_v36  ;;  %v5479_v54 = vmul.f32 %v13971_v26, %v13971_v26  ;;  %v13995_v33 = vadd.f32 %v13799_v21, %v12980_v24  ;;  %15746 = vst [vmem:[#allocation72_spill] sm:$0xff] %v13999_v56  ;;  %10204 = vtanh.f32 %v5985_v51 }
 0xc23   : > { %v5605_v4 = vmul.f32 %v5477_v44, %v13962_v5  ;;  %v5478_v39 = vmul.f32 %v13981_v42, %v13981_v42  ;;  %v5480_v20 = vmul.f32 %v13985_v1, %v13985_v1  ;;  %10206 = vtanh.f32 %v5987_v13 }
 0xc24   : > { %15744 = vst [vmem:[#allocation49_spill] sm:$0xff] %v13995_v33  ;;  %v5607_v10 = vmul.f32 %v5479_v54, %v13971_v26  ;;  %v5481_v21 = vmul.f32 %v13995_v33, %v13995_v33  ;;  %v14011_v58 = vadd.f32 %v13801_v41, %v12983_v12  ;;  %10208 = vtanh.f32 %v5986_v15  ;;  %v14018_v54 = vpop.f32.mrb[184].mxu1  ;;  %v14020_v40 = vpop.f32.mrb[184].mxu0 }
 0xc25   : > { %v5733_v62 = vmul.f32 0.044715, %v5605_v4  ;;  %v5606_v51 = vmul.f32 %v5478_v39, %v13981_v42  ;;  %v5608_v36 = vmul.f32 %v5480_v20, %v13985_v1  ;;  %10210 = vtanh.f32 %v5988_v0  ;;  %15748 = vst [vmem:[#allocation76_spill] sm:$0xff] %v14018_v54  ;;  %15749 = vst [vmem:[#allocation77_spill] sm:$0xff] %v14020_v40  ;;  %v14027_v39 = vpop.f32.mrb[185].mxu1  ;;  %v14029_v0 = vpop.f32.mrb[185].mxu0 }
 0xc26   : > { %15747 = vst [vmem:[#allocation75_spill] sm:$0xff] %v14011_v58  ;;  %v5735_v44 = vmul.f32 0.044715, %v5607_v10  ;;  %v5609_v56 = vmul.f32 %v5481_v21, %v13995_v33  ;;  %v5483_v13 = vmul.f32 %v14011_v58, %v14011_v58  ;;  %v14025_v4 = vadd.f32 %v13807_v31, %v12986_v38  ;;  %15750 = vst [vmem:[#allocation78_spill] sm:$0xff] %v14027_v39 }
 0xc27   : > { %v5861_v41 = vadd.f32 %v5733_v62, %v13962_v5  ;;  %v5734_v25 = vmul.f32 0.044715, %v5606_v51  ;;  %v5736_v15 = vmul.f32 0.044715, %v5608_v36  ;;  %15751 = vst [vmem:[#allocation60_spill] sm:$0xff] %v14029_v0  ;;  %v14035_v40 = vadd.f32 %v13809_v59, %v12989_v3  ;;  %v14037_v62 = vpop.f32.mrb[186].mxu1 }
 0xc28   : > { %v5863_v20 = vadd.f32 %v5735_v44, %v13971_v26  ;;  %v5737_v10 = vmul.f32 0.044715, %v5609_v56  ;;  %v5611_v21 = vmul.f32 %v5483_v13, %v14011_v58  ;;  %15753 = vst [vmem:[#allocation61_spill] sm:$0xff] %v14037_v62  ;;  %v14039_v51 = vpop.f32.mrb[186].mxu0  ;;  %v14041_v36 = vpop.eup %10196  ;;  %v5482_v56 = vmul.f32 %v14025_v4, %v14025_v4 }
 0xc29   : > { %15752 = vst [vmem:[#allocation68_spill] sm:$0xff] %v14035_v40  ;;  %15754 = vst [vmem:[#allocation73_spill] sm:$0xff] %v14039_v51  ;;  %v5989_v31 = vmul.f32 0.7978846, %v5861_v41  ;;  %v5862_v39 = vadd.f32 %v5734_v25, %v13981_v42  ;;  %v5864_v0 = vadd.f32 %v5736_v15, %v13985_v1  ;;  %v14047_v44 = vpop.f32.mrb[187].mxu1  ;;  %v14049_v13 = vpop.f32.mrb[187].mxu0  ;;  %v5484_v41 = vmul.f32 %v14035_v40, %v14035_v40 }
 0xc2a   : > { %15755 = vst [vmem:[#allocation79_spill] sm:$0xff] %v14047_v44  ;;  %15756 = vst [vmem:[#allocation80_spill] sm:$0xff] %v14049_v13  ;;  %v14051_v59 = vpop.eup %10198  ;;  %v5991_v54 = vmul.f32 0.7978846, %v5863_v20  ;;  %v5865_v62 = vadd.f32 %v5737_v10, %v13995_v33  ;;  %v5739_v51 = vmul.f32 0.044715, %v5611_v21  ;;  %v5610_v5 = vmul.f32 %v5482_v56, %v14025_v4 }
 0xc2b   : > { %v14056_v26 = vpop.eup %10200  ;;  %10212 = vtanh.f32 %v5989_v31  ;;  %v5990_v25 = vmul.f32 0.7978846, %v5862_v39  ;;  %v5992_v15 = vmul.f32 0.7978846, %v5864_v0  ;;  %v5612_v20 = vmul.f32 %v5484_v41, %v14035_v40 }
 0xc2c   : > { %v14059_v60 = vpop.eup %10202  ;;  %10214 = vtanh.f32 %v5991_v54  ;;  %v5993_v13 = vmul.f32 0.7978846, %v5865_v62  ;;  %v5867_v44 = vadd.f32 %v5739_v51, %v14011_v58  ;;  %v5738_v21 = vmul.f32 0.044715, %v5610_v5  ;;  %v14079_v31 = vpop.f32.mrb[188].mxu1 }
 0xc2d   : > { %v14063_v10 = vpop.eup %10204  ;;  %10216 = vtanh.f32 %v5990_v25  ;;  %v14067_v33 = vadd.f32 %v13824_v22, %v12980_v24  ;;  %v14071_v39 = vadd.f32 %v13826_v34, %v12983_v12  ;;  %v5740_v62 = vmul.f32 0.044715, %v5612_v20  ;;  %15760 = vst [vmem:[#allocation65_spill] sm:$0xff] %v14079_v31  ;;  %v14081_v5 = vpop.f32.mrb[188].mxu0 }
 0xc2e   : > { %v14073_v0 = vpop.eup %10206  ;;  %10218 = vtanh.f32 %v5992_v15  ;;  %v5995_v54 = vmul.f32 0.7978846, %v5867_v44  ;;  %v14077_v51 = vadd.f32 %v13831_v28, %v12986_v38  ;;  %15761 = vst [vmem:[#allocation81_spill] sm:$0xff] %v14081_v5  ;;  %v5866_v22 = vadd.f32 %v5738_v21, %v14025_v4  ;;  %v14090_v41 = vpop.f32.mrb[189].mxu1 }
 0xc2f   : > { %15757 = vst [vmem:[#allocation56_spill] sm:$0xff] %v14067_v33  ;;  %15758 = vst [vmem:[#allocation62_spill] sm:$0xff] %v14071_v39  ;;  %v14083_v56 = vpop.eup %10208  ;;  %10220 = vtanh.f32 %v5993_v13  ;;  %v5485_v34 = vmul.f32 %v14067_v33, %v14067_v33  ;;  %v5487_v44 = vmul.f32 %v14071_v39, %v14071_v39  ;;  %v14092_v25 = vpop.f32.mrb[189].mxu0  ;;  %v5868_v15 = vadd.f32 %v5740_v62, %v14035_v40 }
 0xc30   : > { %15759 = vst [vmem:[#allocation57_spill] sm:$0xff] %v14077_v51  ;;  %15762 = vst [vmem:[#allocation82_spill] sm:$0xff] %v14090_v41  ;;  %v14094_v28 = vpop.eup %10210  ;;  %10222 = vtanh.f32 %v5995_v54  ;;  %v5486_v13 = vmul.f32 %v14077_v51, %v14077_v51  ;;  %v14101_v20 = vadd.f32 %v13833_v52, %v12989_v3  ;;  %v14103_v21 = vpop.f32.mrb[190].mxu1  ;;  %v5994_v31 = vmul.f32 0.7978846, %v5866_v22 }
 0xc31   : > { %15763 = vst [vmem:[#allocation74_spill] sm:$0xff] %v14092_v25  ;;  %15765 = vst [vmem:[#allocation43_spill] sm:$0xff] %v14103_v21  ;;  %v14105_v5 = vpop.f32.mrb[190].mxu0  ;;  %v5613_v41 = vmul.f32 %v5485_v34, %v14067_v33  ;;  %v5615_v25 = vmul.f32 %v5487_v44, %v14071_v39  ;;  %v14111_v54 = vadd.f32 %v13837_v46, %v12980_v24  ;;  %v14113_v62 = vpop.f32.mrb[191].mxu1  ;;  %v5996_v40 = vmul.f32 0.7978846, %v5868_v15 }
 0xc32   : > { %15764 = vst [vmem:[#allocation83_spill] sm:$0xff] %v14101_v20  ;;  %15766 = vst [vmem:[#allocation84_spill] sm:$0xff] %v14105_v5  ;;  %v14115_v58 = vpop.f32.mrb[191].mxu0  ;;  %v5614_v52 = vmul.f32 %v5486_v13, %v14077_v51  ;;  %v5488_v21 = vmul.f32 %v14101_v20, %v14101_v20  ;;  %v14122_v22 = vadd.f32 %v13839_v2, %v12983_v12  ;;  %10224 = vtanh.f32 %v5994_v31 }
 0xc33   : > { %15767 = vst [vmem:[#allocation86_spill] sm:$0xff] %v14111_v54  ;;  %15768 = vst [vmem:[#allocation50_spill] sm:$0xff] %v14113_v62  ;;  %v5741_v34 = vmul.f32 0.044715, %v5613_v41  ;;  %v5743_v44 = vmul.f32 0.044715, %v5615_v25  ;;  %v5489_v46 = vmul.f32 %v14111_v54, %v14111_v54  ;;  %10226 = vtanh.f32 %v5996_v40 }
 0xc34   : > { %15769 = vst [vmem:[#allocation85_spill] sm:$0xff] %v14115_v58  ;;  %15770 = vst [vmem:[#allocation87_spill] sm:$0xff] %v14122_v22  ;;  %v5742_v62 = vmul.f32 0.044715, %v5614_v52  ;;  %v5616_v58 = vmul.f32 %v5488_v21, %v14101_v20  ;;  %v5491_v15 = vmul.f32 %v14122_v22, %v14122_v22  ;;  %v14136_v41 = vadd.f32 %v13843_v43, %v12986_v38 }
 0xc35   : > { %v14129_v13 = vpop.eup %10212  ;;  %v5869_v5 = vadd.f32 %v5741_v34, %v14067_v33  ;;  %v5871_v2 = vadd.f32 %v5743_v44, %v14071_v39  ;;  %v5617_v31 = vmul.f32 %v5489_v46, %v14111_v54 }
 0xc36   : > { %15771 = vst [vmem:[#allocation41_spill] sm:$0xff] %v14129_v13  ;;  %v14138_v25 = vpop.eup %10214  ;;  %v5870_v40 = vadd.f32 %v5742_v62, %v14077_v51  ;;  %v5744_v21 = vmul.f32 0.044715, %v5616_v58  ;;  %v5619_v52 = vmul.f32 %v5491_v15, %v14122_v22  ;;  %v14144_v13 = vadd.f32 %v13845_v27, %v12989_v3 }
 0xc37   : > { %15772 = vst [vmem:[#allocation51_spill] sm:$0xff] %v14138_v25  ;;  %v14146_v34 = vpop.eup %10216  ;;  %v5997_v44 = vmul.f32 0.7978846, %v5869_v5  ;;  %v5999_v39 = vmul.f32 0.7978846, %v5871_v2  ;;  %v5490_v43 = vmul.f32 %v14136_v41, %v14136_v41  ;;  %v14161_v2 = vadd.f32 %v13857_v11, %v12980_v24 }
 0xc38   : > { %v5745_v46 = vmul.f32 0.044715, %v5617_v31  ;;  %v14150_v33 = vpop.eup %10218  ;;  %v5998_v25 = vmul.f32 0.7978846, %v5870_v40  ;;  %v5872_v62 = vadd.f32 %v5744_v21, %v14101_v20  ;;  %v5747_v58 = vmul.f32 0.044715, %v5619_v52 }
 0xc39   : > { %v5492_v15 = vmul.f32 %v14144_v13, %v14144_v13  ;;  %v14155_v51 = vpop.eup %10220  ;;  %10228 = vtanh.f32 %v5997_v44  ;;  %v5618_v5 = vmul.f32 %v5490_v43, %v14136_v41  ;;  %15774 = vst [vmem:[#allocation42_spill] sm:$0xff] %v14161_v2  ;;  %v5493_v44 = vmul.f32 %v14161_v2, %v14161_v2 }
 0xc3a   : > { %15773 = vst [vmem:[#allocation66_spill] sm:$0xff] %v14155_v51  ;;  %v5873_v27 = vadd.f32 %v5745_v46, %v14111_v54  ;;  %v14163_v31 = vpop.eup %10222  ;;  %10230 = vtanh.f32 %v5999_v39  ;;  %v6000_v40 = vmul.f32 0.7978846, %v5872_v62  ;;  %v5875_v21 = vadd.f32 %v5747_v58, %v14122_v22 }
 0xc3b   : > { %v5620_v52 = vmul.f32 %v5492_v15, %v14144_v13  ;;  %10232 = vtanh.f32 %v5998_v25  ;;  %v5746_v51 = vmul.f32 0.044715, %v5618_v5  ;;  %v14171_v11 = vadd.f32 %v13859_v45, %v12983_v12 }
 0xc3c   : > { %v6001_v20 = vmul.f32 0.7978846, %v5873_v27  ;;  %10234 = vtanh.f32 %v6000_v40  ;;  %v6003_v46 = vmul.f32 0.7978846, %v5875_v21  ;;  %v14173_v54 = vpop.eup %10224  ;;  %v5621_v62 = vmul.f32 %v5493_v44, %v14161_v2 }
 0xc3d   : > { %v5748_v43 = vmul.f32 0.044715, %v5620_v52  ;;  %15775 = vst [vmem:[#allocation55_spill] sm:$0xff] %v14171_v11  ;;  %v5874_v39 = vadd.f32 %v5746_v51, %v14136_v41  ;;  %v14179_v25 = vadd.f32 %v13863_v29, %v12986_v38  ;;  %v14181_v58 = vpop.eup %10226  ;;  %v5495_v45 = vmul.f32 %v14171_v11, %v14171_v11 }
 0xc3e   : > { %10236 = vtanh.f32 %v6001_v20  ;;  %v14188_v27 = vadd.f32 %v13865_v49, %v12989_v3  ;;  %v5749_v51 = vmul.f32 0.044715, %v5621_v62  ;;  %v14194_v29 = vadd.f32 %v13869_v37, %v12980_v24 }
 0xc3f   : > { %15776 = vst [vmem:[#allocation63_spill] sm:$0xff] %v14179_v25  ;;  %10238 = vtanh.f32 %v6003_v46  ;;  %v5876_v15 = vadd.f32 %v5748_v43, %v14144_v13  ;;  %v6002_v20 = vmul.f32 0.7978846, %v5874_v39  ;;  %v5494_v5 = vmul.f32 %v14179_v25, %v14179_v25 }
 0xc40   : > { %15777 = vst [vmem:[#allocation53_spill] sm:$0xff] %v14188_v27  ;;  %15778 = vst [vmem:[#allocation58_spill] sm:$0xff] %v14194_v29  ;;  %v5623_v21 = vmul.f32 %v5495_v45, %v14171_v11  ;;  %v5496_v52 = vmul.f32 %v14188_v27, %v14188_v27  ;;  %v14201_v44 = vadd.f32 %v13871_v8, %v12983_v12 }
 0xc41   : > { %v6004_v40 = vmul.f32 0.7978846, %v5876_v15  ;;  %10240 = vtanh.f32 %v6002_v20  ;;  %v5877_v49 = vadd.f32 %v5749_v51, %v14161_v2  ;;  %v5622_v46 = vmul.f32 %v5494_v5, %v14179_v25 }
 0xc42   : > { %15779 = vst [vmem:[#allocation64_spill] sm:$0xff] %v14201_v44  ;;  %v5497_v43 = vmul.f32 %v14194_v29, %v14194_v29  ;;  %v5751_v37 = vmul.f32 0.044715, %v5623_v21  ;;  %v5624_v39 = vmul.f32 %v5496_v52, %v14188_v27  ;;  %v5499_v62 = vmul.f32 %v14201_v44, %v14201_v44 }
 0xc43   : > { %10242 = vtanh.f32 %v6004_v40  ;;  %v14210_v15 = vpop.eup %10228  ;;  %v6005_v45 = vmul.f32 0.7978846, %v5877_v49  ;;  %v5750_v8 = vmul.f32 0.044715, %v5622_v46  ;;  %v14215_v51 = vadd.f32 %v13876_v19, %v12986_v38 }
 0xc44   : > { %v5625_v20 = vmul.f32 %v5497_v43, %v14194_v29  ;;  %v14217_v5 = vpop.eup %10230  ;;  %v5879_v40 = vadd.f32 %v5751_v37, %v14171_v11  ;;  %v5752_v21 = vmul.f32 0.044715, %v5624_v39  ;;  %v5627_v52 = vmul.f32 %v5499_v62, %v14201_v44 }
 0xc45   : > { %15780 = vst [vmem:[#allocation59_spill] sm:$0xff] %v14215_v51  ;;  %15781 = vst [vmem:[#allocation67_spill] sm:$0xff] %v14217_v5  ;;  %v14223_v2 = vadd.f32 %v13878_v6, %v12989_v3  ;;  %v14225_v22 = vpop.eup %10232  ;;  %10244 = vtanh.f32 %v6005_v45  ;;  %v5878_v49 = vadd.f32 %v5750_v8, %v14179_v25  ;;  %v5498_v19 = vmul.f32 %v14215_v51, %v14215_v51 }
 0xc46   : > { %v5753_v46 = vmul.f32 0.044715, %v5625_v20  ;;  %v14230_v43 = vpop.eup %10234  ;;  %v6007_v5 = vmul.f32 0.7978846, %v5879_v40  ;;  %v5880_v37 = vadd.f32 %v5752_v21, %v14188_v27  ;;  %v5755_v39 = vmul.f32 0.044715, %v5627_v52 }
 0xc47   : > { %15782 = vst [vmem:[#allocation46_spill] sm:$0xff] %v14223_v2  ;;  %v5500_v62 = vmul.f32 %v14223_v2, %v14223_v2  ;;  %v6006_v11 = vmul.f32 0.7978846, %v5878_v49  ;;  %v5626_v8 = vmul.f32 %v5498_v19, %v14215_v51  ;;  %v14241_v20 = vadd.f32 %v13917_v17, %v12980_v24 }
 0xc48   : > { %v14235_v6 = vpop.eup %10236  ;;  %v5881_v45 = vadd.f32 %v5753_v46, %v14194_v29  ;;  %10246 = vtanh.f32 %v6007_v5  ;;  %v6008_v40 = vmul.f32 0.7978846, %v5880_v37  ;;  %v5883_v21 = vadd.f32 %v5755_v39, %v14201_v44 }
 0xc49   : > { %15783 = vst [vmem:[#allocation52_spill] sm:$0xff] %v14235_v6  ;;  %15784 = vst [vmem:[#allocation69_spill] sm:$0xff] %v14241_v20  ;;  %v14243_v25 = vpop.eup %10238  ;;  %v5628_v52 = vmul.f32 %v5500_v62, %v14223_v2  ;;  %10248 = vtanh.f32 %v6006_v11  ;;  %v5754_v6 = vmul.f32 0.044715, %v5626_v8  ;;  %v5501_v49 = vmul.f32 %v14241_v20, %v14241_v20 }
 0xc4a   : > { %v6009_v27 = vmul.f32 0.7978846, %v5881_v45  ;;  %10250 = vtanh.f32 %v6008_v40  ;;  %v6011_v46 = vmul.f32 0.7978846, %v5883_v21  ;;  %v14251_v17 = vadd.f32 %v13919_v14, %v12983_v12 }
 0xc4b   : > { %v5756_v19 = vmul.f32 0.044715, %v5628_v52  ;;  %v14253_v29 = vpop.eup %10240  ;;  %v5882_v5 = vadd.f32 %v5754_v6, %v14215_v51  ;;  %v5629_v37 = vmul.f32 %v5501_v49, %v14241_v20  ;;  %v14259_v11 = vadd.f32 %v13927_v50, %v12986_v38 }
 0xc4c   : > { %10252 = vtanh.f32 %v6009_v27  ;;  %v5503_v14 = vmul.f32 %v14251_v17, %v14251_v17  ;;  %v14268_v45 = vadd.f32 %v13929_v9, %v12989_v3  ;;  %v5342_v50 = vmul.f32 0.5, %v13891_v63 }
 0xc4d   : > { %v14261_v39 = vpop.eup %10242  ;;  %10254 = vtanh.f32 %v6011_v46  ;;  %v5884_v62 = vadd.f32 %v5756_v19, %v14223_v2  ;;  %v6010_v27 = vmul.f32 0.7978846, %v5882_v5  ;;  %v5757_v6 = vmul.f32 0.044715, %v5629_v37 }
 0xc4e   : > { %v5502_v8 = vmul.f32 %v14259_v11, %v14259_v11  ;;  %v5631_v21 = vmul.f32 %v5503_v14, %v14251_v17  ;;  %v5504_v52 = vmul.f32 %v14268_v45, %v14268_v45  ;;  %v5346_v49 = vmul.f32 0.5, %v13915_v57 }
 0xc4f   : > { %v6012_v40 = vmul.f32 0.7978846, %v5884_v62  ;;  %v14277_v46 = vpop.eup %10244  ;;  %10256 = vtanh.f32 %v6010_v27  ;;  %v5885_v9 = vadd.f32 %v5757_v6, %v14241_v20  ;;  %v6238_v5 = vadd.f32 1.0, %v14056_v26 }
 0xc50   : > { %v5630_v19 = vmul.f32 %v5502_v8, %v14259_v11  ;;  %v5759_v37 = vmul.f32 0.044715, %v5631_v21  ;;  %v5632_v63 = vmul.f32 %v5504_v52, %v14268_v45  ;;  %v6242_v62 = vadd.f32 1.0, %v14083_v56 }
 0xc51   : > { %10258 = vtanh.f32 %v6012_v40  ;;  %v6013_v14 = vmul.f32 0.7978846, %v5885_v9  ;;  %v6366_v2 = vmul.f32 %v6238_v5, %v5342_v50  ;;  %v5344_v57 = vmul.f32 0.5, %v13895_v47 }
 0xc52   : > { %v5758_v44 = vmul.f32 0.044715, %v5630_v19  ;;  %v14285_v51 = vpop.eup %10246  ;;  %v5887_v27 = vadd.f32 %v5759_v37, %v14251_v17  ;;  %v5760_v6 = vmul.f32 0.044715, %v5632_v63  ;;  %v6370_v20 = vmul.f32 %v6242_v62, %v5346_v49 }
 0xc53   : > { %v5348_v8 = vmul.f32 0.5, %v13937_v48  ;;  %v14289_v26 = vpop.eup %10248  ;;  %10260 = vtanh.f32 %v6013_v14  ;;  %v6240_v56 = vadd.f32 1.0, %v14059_v60  ;;  %v6244_v21 = vadd.f32 1.0, %v14094_v28 }
 0xc54   : > { %v5886_v40 = vadd.f32 %v5758_v44, %v14259_v11  ;;  %v14294_v50 = vpop.eup %10250  ;;  %v6015_v47 = vmul.f32 0.7978846, %v5887_v27  ;;  %v5888_v52 = vadd.f32 %v5760_v6, %v14268_v45  ;;  %v6462_v9 = vpack.c.bf16 %v6370_v20, %v6366_v2 }
 0xc55   : > { %v14299_v49 = vadd.f32 %v13939_v53, %v12980_v24  ;;  %v6368_v5 = vmul.f32 %v6240_v56, %v5344_v57  ;;  %v6372_v37 = vmul.f32 %v6244_v21, %v5348_v8  ;;  %v14305_v60 = vadd.f32 %v13941_v23, %v12983_v12 }
 0xc56   : > { %v14301_v48 = vpop.eup %10252  ;;  %v6014_v19 = vmul.f32 0.7978846, %v5886_v40  ;;  %10262 = vtanh.f32 %v6015_v47  ;;  %v6016_v44 = vmul.f32 0.7978846, %v5888_v52  ;;  %6849 = vmatprep.mubr.bf16.mxu1 %v6462_v9  ;;  %v5341_v53 = vmul.f32 0.5, %v13883_v35  ;;  %v15785_v9 = vld [vmem:[#allocation47_spill] sm:$0xff] }
 0xc57   : > { %v14307_v28 = vpop.eup %10254  ;;  %v5505_v2 = vmul.f32 %v14299_v49, %v14299_v49  ;;  %v6464_v20 = vpack.c.bf16 %v6372_v37, %v6368_v5  ;;  %v5507_v63 = vmul.f32 %v14305_v60, %v14305_v60  ;;  %v5345_v62 = vmul.f32 0.5, %v13903_v32  ;;  %v15786_v5 = vld [vmem:[#allocation54_spill] sm:$0xff] }
 0xc58   : > { %10264 = vtanh.f32 %v6014_v19  ;;  %v6237_v14 = vadd.f32 1.0, %v14041_v36  ;;  %v6241_v57 = vadd.f32 1.0, %v14063_v10  ;;  %v5343_v35 = vmul.f32 0.5, %v13887_v61 }
 0xc59   : > { %10266 = vtanh.f32 %v6016_v44  ;;  %v5633_v23 = vmul.f32 %v5505_v2, %v14299_v49  ;;  %v14318_v27 = vpop.eup %10256  ;;  %7010 = vmatprep.mubr.bf16.mxu0 %v6464_v20  ;;  %v5635_v6 = vmul.f32 %v5507_v63, %v14305_v60  ;;  %v5347_v8 = vmul.f32 0.5, %v13907_v30 }
 0xc5a   : > { %v6239_v40 = vadd.f32 1.0, %v14051_v59  ;;  %v6365_v21 = vmul.f32 %v6237_v14, %v5341_v53  ;;  %v6369_v47 = vmul.f32 %v6241_v57, %v5345_v62  ;;  %v6243_v36 = vadd.f32 1.0, %v14073_v0 }
 0xc5b   : > { %v14324_v56 = vpop.eup %10258  ;;  %v5761_v32 = vmul.f32 0.044715, %v5633_v23  ;;  %v5763_v52 = vmul.f32 0.044715, %v5635_v6  ;;  %v14329_v19 = vadd.f32 %v15785_v9, %v12986_v38  ;;  %v14333_v61 = vadd.f32 %v15786_v5, %v12989_v3 }
 0xc5c   : > { %v6367_v10 = vmul.f32 %v6239_v40, %v5343_v35  ;;  %v6461_v59 = vpack.c.bf16 %v6369_v47, %v6365_v21  ;;  %v6371_v37 = vmul.f32 %v6243_v36, %v5347_v8  ;;  %v14338_v44 = vadd.f32 %v13964_v18, %v12980_v24 }
 0xc5d   : > { %v5889_v30 = vadd.f32 %v5761_v32, %v14299_v49  ;;  %v14340_v2 = vpop.eup %10260  ;;  %v5891_v0 = vadd.f32 %v5763_v52, %v14305_v60  ;;  %v5506_v53 = vmul.f32 %v14329_v19, %v14329_v19  ;;  %v5508_v20 = vmul.f32 %v14333_v61, %v14333_v61 }
 0xc5e   : > { %15787 = vst [vmem:[#allocation47_spill] sm:$0xff] %v14338_v44  ;;  %v14349_v63 = vadd.f32 %v13966_v55, %v12983_v12  ;;  %6850 = vmatmul.mubr.bf16.gmra.mrb[224].mxu1 %v6461_v59  ;;  %v6463_v23 = vpack.c.bf16 %v6371_v37, %v6367_v10  ;;  %v5509_v18 = vmul.f32 %v14338_v44, %v14338_v44  ;;  %v5350_v59 = vmul.f32 0.5, %v13981_v42 }
 0xc5f   : > { %v6017_v62 = vmul.f32 0.7978846, %v5889_v30  ;;  %v14355_v14 = vadd.f32 %v13973_v7, %v12986_v38  ;;  %v6019_v57 = vmul.f32 0.7978846, %v5891_v0  ;;  %v5634_v6 = vmul.f32 %v5506_v53, %v14329_v19 }
 0xc60   : > { %15788 = vst [vmem:[#allocation54_spill] sm:$0xff] %v14349_v63  ;;  %v5636_v35 = vmul.f32 %v5508_v20, %v14333_v61  ;;  %v5511_v8 = vmul.f32 %v14349_v63, %v14349_v63  ;;  %v14361_v55 = vpop.eup %10262  ;;  %7011 = vmatmul.mubr.bf16.gmra.mrb[224].mxu0 %v6463_v23  ;;  %v5637_v40 = vmul.f32 %v5509_v18, %v14338_v44  ;;  %v5354_v53 = vmul.f32 0.5, %v14025_v4 }
 0xc61   : > { %10268 = vtanh.f32 %v6017_v62  ;;  %v5510_v32 = vmul.f32 %v14355_v14, %v14355_v14  ;;  %v14368_v7 = vadd.f32 %v13975_v16, %v12989_v3  ;;  %v5762_v47 = vmul.f32 0.044715, %v5634_v6 }
 0xc62   : > { %v14370_v21 = vpop.eup %10264  ;;  %10270 = vtanh.f32 %v6019_v57  ;;  %v5764_v36 = vmul.f32 0.044715, %v5636_v35  ;;  %v5639_v52 = vmul.f32 %v5511_v8, %v14349_v63  ;;  %v5765_v9 = vmul.f32 0.044715, %v5637_v40 }
 0xc63   : > { %v14373_v10 = vpop.eup %10266  ;;  %v5638_v5 = vmul.f32 %v5510_v32, %v14355_v14  ;;  %v5512_v30 = vmul.f32 %v14368_v7, %v14368_v7  ;;  %v5890_v16 = vadd.f32 %v5762_v47, %v14329_v19  ;;  %v6246_v18 = vadd.f32 1.0, %v14146_v34 }
 0xc64   : > { %v5892_v37 = vadd.f32 %v5764_v36, %v14333_v61  ;;  %v5767_v0 = vmul.f32 0.044715, %v5639_v52  ;;  %v5893_v20 = vadd.f32 %v5765_v9, %v14338_v44  ;;  %v6250_v42 = vadd.f32 1.0, %v14173_v54 }
 0xc65   : > { %v5766_v62 = vmul.f32 0.044715, %v5638_v5  ;;  %v5640_v23 = vmul.f32 %v5512_v30, %v14368_v7  ;;  %v6018_v57 = vmul.f32 0.7978846, %v5890_v16  ;;  %v6374_v47 = vmul.f32 %v6246_v18, %v5350_v59  ;;  %v15789_v5 = vld [vmem:[#allocation68_spill] sm:$0xff] }
 0xc66   : > { %v6020_v6 = vmul.f32 0.7978846, %v5892_v37  ;;  %v5895_v35 = vadd.f32 %v5767_v0, %v14349_v63  ;;  %v6021_v8 = vmul.f32 0.7978846, %v5893_v20  ;;  %v6378_v36 = vmul.f32 %v6250_v42, %v5354_v53  ;;  %v15790_v53 = vld [vmem:[#allocation48_spill] sm:$0xff]  ;;  %v15795_v42 = vld [vmem:[#allocation49_spill] sm:$0xff] }
 0xc67   : > { %v5894_v40 = vadd.f32 %v5766_v62, %v14355_v14  ;;  %v5768_v32 = vmul.f32 0.044715, %v5640_v23  ;;  %10272 = vtanh.f32 %v6018_v57  ;;  %v5352_v52 = vmul.f32 0.5, %v13985_v1  ;;  %v15792_v1 = vld [vmem:[#allocation45_spill] sm:$0xff]  ;;  %v15794_v57 = vld [vmem:[#allocation70_spill] sm:$0xff] }
 0xc68   : > { %v6023_v4 = vmul.f32 0.7978846, %v5895_v35  ;;  %10274 = vtanh.f32 %v6020_v6  ;;  %v5356_v30 = vmul.f32 0.5, %v15789_v5  ;;  %v6466_v16 = vpack.c.bf16 %v6378_v36, %v6374_v47 }
 0xc69   : > { %v6022_v9 = vmul.f32 0.7978846, %v5894_v40  ;;  %v5896_v34 = vadd.f32 %v5768_v32, %v14368_v7  ;;  %10276 = vtanh.f32 %v6021_v8  ;;  %v6248_v54 = vadd.f32 1.0, %v14150_v33  ;;  %v15796_v32 = vld [vmem:[#allocation41_spill] sm:$0xff] }
 0xc6a   : > { %v6252_v37 = vadd.f32 1.0, %v14181_v58  ;;  %10278 = vtanh.f32 %v6023_v4  ;;  %v14397_v20 = vadd.f32 %v15790_v53, %v12980_v24  ;;  %v14401_v62 = vadd.f32 %v15792_v1, %v12983_v12  ;;  %6857 = vmatprep.mubr.bf16.mxu1 %v6466_v16  ;;  %v15797_v4 = vld [vmem:[#allocation66_spill] sm:$0xff] }
 0xc6b   : > { %v14393_v0 = vpop.eup %10268  ;;  %v6024_v59 = vmul.f32 0.7978846, %v5896_v34  ;;  %10280 = vtanh.f32 %v6022_v9  ;;  %v6376_v18 = vmul.f32 %v6248_v54, %v5352_v52  ;;  %v5349_v58 = vmul.f32 0.5, %v15794_v57  ;;  %v15798_v9 = vld [vmem:[#allocation44_spill] sm:$0xff]  ;;  %v15800_v54 = vld [vmem:[#allocation51_spill] sm:$0xff] }
 0xc6c   : > { %15791 = vst [vmem:[#allocation68_spill] sm:$0xff] %v14397_v20  ;;  %15793 = vst [vmem:[#allocation48_spill] sm:$0xff] %v14401_v62  ;;  %v14403_v23 = vpop.eup %10270  ;;  %v6380_v33 = vmul.f32 %v6252_v37, %v5356_v30  ;;  %v5513_v6 = vmul.f32 %v14397_v20, %v14397_v20  ;;  %v5515_v35 = vmul.f32 %v14401_v62, %v14401_v62  ;;  %v5353_v8 = vmul.f32 0.5, %v15795_v42  ;;  %v15799_v30 = vld [vmem:[#allocation75_spill] sm:$0xff] }
 0xc6d   : > { %10282 = vtanh.f32 %v6024_v59  ;;  %v6245_v47 = vadd.f32 1.0, %v15796_v32  ;;  %v6249_v36 = vadd.f32 1.0, %v15797_v4  ;;  %v5351_v34 = vmul.f32 0.5, %v15798_v9 }
 0xc6e   : > { %v6468_v40 = vpack.c.bf16 %v6380_v33, %v6376_v18  ;;  %v5641_v52 = vmul.f32 %v5513_v6, %v14397_v20  ;;  %v5643_v5 = vmul.f32 %v5515_v35, %v14401_v62  ;;  %v5355_v16 = vmul.f32 0.5, %v15799_v30  ;;  %v15801_v18 = vld [vmem:[#allocation71_spill] sm:$0xff]  ;;  %v15802_v6 = vld [vmem:[#allocation72_spill] sm:$0xff] }
 0xc6f   : > { %v6247_v37 = vadd.f32 1.0, %v15800_v54  ;;  %v6373_v59 = vmul.f32 %v6245_v47, %v5349_v58  ;;  %v6377_v53 = vmul.f32 %v6249_v36, %v5353_v8  ;;  %v6251_v1 = vadd.f32 1.0, %v14163_v31  ;;  %v15803_v31 = vld [vmem:[#allocation76_spill] sm:$0xff] }
 0xc70   : > { %7018 = vmatprep.mubr.bf16.mxu0 %v6468_v40  ;;  %v14421_v33 = vadd.f32 %v15801_v18, %v12986_v38  ;;  %v5769_v57 = vmul.f32 0.044715, %v5641_v52  ;;  %v5771_v42 = vmul.f32 0.044715, %v5643_v5  ;;  %v14425_v4 = vadd.f32 %v15802_v6, %v12989_v3  ;;  %v15805_v52 = vld [vmem:[#allocation77_spill] sm:$0xff] }
 0xc71   : > { %v6375_v32 = vmul.f32 %v6247_v37, %v5351_v34  ;;  %v14427_v35 = vpop.eup %10272  ;;  %v6465_v9 = vpack.c.bf16 %v6377_v53, %v6373_v59  ;;  %v6379_v30 = vmul.f32 %v6251_v1, %v5355_v16  ;;  %v14433_v8 = vadd.f32 %v15803_v31, %v12980_v24  ;;  %v15808_v53 = vld [vmem:[#allocation78_spill] sm:$0xff] }
 0xc72   : > { %v5514_v58 = vmul.f32 %v14421_v33, %v14421_v33  ;;  %v14435_v40 = vpop.eup %10274  ;;  %v5897_v47 = vadd.f32 %v5769_v57, %v14397_v20  ;;  %v5899_v36 = vadd.f32 %v5771_v42, %v14401_v62  ;;  %v5516_v34 = vmul.f32 %v14425_v4, %v14425_v4 }
 0xc73   : > { %15804 = vst [vmem:[#allocation45_spill] sm:$0xff] %v14433_v8  ;;  %v14443_v5 = vadd.f32 %v15805_v52, %v12983_v12  ;;  %v14445_v16 = vpop.eup %10276  ;;  %6858 = vmatmul.mubr.bf16.gmra.mrb[228].mxu1 %v6465_v9  ;;  %v6467_v54 = vpack.c.bf16 %v6379_v30, %v6375_v32  ;;  %v5517_v59 = vmul.f32 %v14433_v8, %v14433_v8  ;;  %v15810_v52 = vld [vmem:[#allocation60_spill] sm:$0xff]  ;;  %v5362_v20 = vmul.f32 0.5, %v14136_v41 }
 0xc74   : > { %15807 = vst [vmem:[#allocation49_spill] sm:$0xff] %v14445_v16  ;;  %v5642_v37 = vmul.f32 %v5514_v58, %v14421_v33  ;;  %v14452_v1 = vadd.f32 %v15808_v53, %v12986_v38  ;;  %v14454_v18 = vpop.eup %10278  ;;  %v6025_v57 = vmul.f32 0.7978846, %v5897_v47  ;;  %v6027_v42 = vmul.f32 0.7978846, %v5899_v36 }
 0xc75   : > { %15806 = vst [vmem:[#allocation70_spill] sm:$0xff] %v14443_v5  ;;  %15809 = vst [vmem:[#allocation41_spill] sm:$0xff] %v14454_v18  ;;  %v5644_v6 = vmul.f32 %v5516_v34, %v14425_v4  ;;  %v5519_v31 = vmul.f32 %v14443_v5, %v14443_v5  ;;  %v14459_v9 = vpop.eup %10280  ;;  %7019 = vmatmul.mubr.bf16.gmra.mrb[228].mxu0 %v6467_v54  ;;  %v5645_v30 = vmul.f32 %v5517_v59, %v14433_v8  ;;  %v15812_v18 = vld [vmem:[#allocation57_spill] sm:$0xff] }
 0xc76   : > { %v5770_v32 = vmul.f32 0.044715, %v5642_v37  ;;  %v5518_v58 = vmul.f32 %v14452_v1, %v14452_v1  ;;  %v14466_v53 = vadd.f32 %v15810_v52, %v12989_v3  ;;  %10284 = vtanh.f32 %v6025_v57 }
 0xc77   : > { %v14468_v47 = vpop.eup %10282  ;;  %v5772_v36 = vmul.f32 0.044715, %v5644_v6  ;;  %v5647_v34 = vmul.f32 %v5519_v31, %v14443_v5  ;;  %v5358_v62 = vmul.f32 0.5, %v15812_v18  ;;  %10286 = vtanh.f32 %v6027_v42 }
 0xc78   : > { %15811 = vst [vmem:[#allocation66_spill] sm:$0xff] %v14468_v47  ;;  %v5898_v54 = vadd.f32 %v5770_v32, %v14421_v33  ;;  %v5773_v37 = vmul.f32 0.044715, %v5645_v30  ;;  %v5646_v59 = vmul.f32 %v5518_v58, %v14452_v1  ;;  %v5520_v52 = vmul.f32 %v14466_v53, %v14466_v53 }
 0xc79   : > { %v5900_v63 = vadd.f32 %v5772_v36, %v14425_v4  ;;  %v5775_v16 = vmul.f32 0.044715, %v5647_v34  ;;  %v6254_v18 = vadd.f32 1.0, %v14225_v22  ;;  %v6258_v58 = vadd.f32 1.0, %v14253_v29 }
 0xc7a   : > { %v6026_v57 = vmul.f32 0.7978846, %v5898_v54  ;;  %v5901_v6 = vadd.f32 %v5773_v37, %v14433_v8  ;;  %v5774_v31 = vmul.f32 0.044715, %v5646_v59  ;;  %v5648_v30 = vmul.f32 %v5520_v52, %v14466_v53  ;;  %v15813_v59 = vld [vmem:[#allocation83_spill] sm:$0xff] }
 0xc7b   : > { %v6028_v42 = vmul.f32 0.7978846, %v5900_v63  ;;  %v5903_v32 = vadd.f32 %v5775_v16, %v14443_v5  ;;  %v6382_v44 = vmul.f32 %v6254_v18, %v5358_v62  ;;  %v6386_v47 = vmul.f32 %v6258_v58, %v5362_v20  ;;  %v15814_v62 = vld [vmem:[#allocation61_spill] sm:$0xff] }
 0xc7c   : > { %10288 = vtanh.f32 %v6026_v57  ;;  %v6029_v36 = vmul.f32 0.7978846, %v5901_v6  ;;  %v5902_v34 = vadd.f32 %v5774_v31, %v14452_v1  ;;  %v5776_v54 = vmul.f32 0.044715, %v5648_v30  ;;  %v15816_v20 = vld [vmem:[#allocation73_spill] sm:$0xff] }
 0xc7d   : > { %10290 = vtanh.f32 %v6028_v42  ;;  %v6031_v41 = vmul.f32 0.7978846, %v5903_v32  ;;  %v5360_v22 = vmul.f32 0.5, %v15813_v59  ;;  %v5364_v63 = vmul.f32 0.5, %v14144_v13  ;;  %v15818_v32 = vld [vmem:[#allocation56_spill] sm:$0xff] }
 0xc7e   : > { %10292 = vtanh.f32 %v6029_v36  ;;  %v6030_v37 = vmul.f32 0.7978846, %v5902_v34  ;;  %v5904_v16 = vadd.f32 %v5776_v54, %v14466_v53  ;;  %v6470_v52 = vpack.c.bf16 %v6386_v47, %v6382_v44  ;;  %v15819_v47 = vld [vmem:[#allocation86_spill] sm:$0xff] }
 0xc7f   : > { %10294 = vtanh.f32 %v6031_v41  ;;  %v6256_v29 = vadd.f32 1.0, %v14230_v43  ;;  %v6260_v57 = vadd.f32 1.0, %v14261_v39  ;;  %v14491_v6 = vadd.f32 %v15814_v62, %v12980_v24  ;;  %v15820_v41 = vld [vmem:[#allocation52_spill] sm:$0xff] }
 0xc80   : > { %10296 = vtanh.f32 %v6030_v37  ;;  %v14495_v31 = vadd.f32 %v15816_v20, %v12983_v12  ;;  %v14497_v18 = vpop.eup %10284  ;;  %v6032_v13 = vmul.f32 0.7978846, %v5904_v16  ;;  %6865 = vmatprep.mubr.bf16.mxu1 %v6470_v52  ;;  %v5357_v44 = vmul.f32 0.5, %v15818_v32  ;;  %v15821_v37 = vld [vmem:[#allocation62_spill] sm:$0xff]  ;;  %v15823_v20 = vld [vmem:[#allocation67_spill] sm:$0xff] }
 0xc81   : > { %15815 = vst [vmem:[#allocation44_spill] sm:$0xff] %v14491_v6  ;;  %v6384_v42 = vmul.f32 %v6256_v29, %v5360_v22  ;;  %v5361_v43 = vmul.f32 0.5, %v15819_v47  ;;  %v14501_v30 = vpop.eup %10286  ;;  %v6388_v39 = vmul.f32 %v6260_v57, %v5364_v63  ;;  %v5521_v58 = vmul.f32 %v14491_v6, %v14491_v6  ;;  %v15822_v22 = vld [vmem:[#allocation87_spill] sm:$0xff] }
 0xc82   : > { %15817 = vst [vmem:[#allocation75_spill] sm:$0xff] %v14495_v31  ;;  %v5523_v36 = vmul.f32 %v14495_v31, %v14495_v31  ;;  %v6253_v34 = vadd.f32 1.0, %v14210_v15  ;;  %10298 = vtanh.f32 %v6032_v13  ;;  %v6257_v54 = vadd.f32 1.0, %v15820_v41  ;;  %v15824_v15 = vld [vmem:[#allocation79_spill] sm:$0xff] }
 0xc83   : > { %v5359_v59 = vmul.f32 0.5, %v15821_v37  ;;  %v5363_v16 = vmul.f32 0.5, %v15822_v22  ;;  %v6472_v52 = vpack.c.bf16 %v6388_v39, %v6384_v42  ;;  %v5649_v29 = vmul.f32 %v5521_v58, %v14491_v6  ;;  %v15825_v42 = vld [vmem:[#allocation80_spill] sm:$0xff] }
 0xc84   : > { %v5651_v63 = vmul.f32 %v5523_v36, %v14495_v31  ;;  %v6381_v57 = vmul.f32 %v6253_v34, %v5357_v44  ;;  %v6385_v62 = vmul.f32 %v6257_v54, %v5361_v43  ;;  %v6255_v32 = vadd.f32 1.0, %v15823_v20  ;;  %v15827_v44 = vld [vmem:[#allocation65_spill] sm:$0xff] }
 0xc85   : > { %v6259_v47 = vadd.f32 1.0, %v14243_v25  ;;  %v14517_v13 = vadd.f32 %v15824_v15, %v12986_v38  ;;  %7026 = vmatprep.mubr.bf16.mxu0 %v6472_v52  ;;  %v5777_v37 = vmul.f32 0.044715, %v5649_v29  ;;  %v14523_v39 = vadd.f32 %v15825_v42, %v12989_v3  ;;  %v14533_v20 = vpop.f32.mrb[192].mxu1 }
 0xc86   : > { %v14519_v41 = vpop.eup %10288  ;;  %v5779_v22 = vmul.f32 0.044715, %v5651_v63  ;;  %v14527_v43 = vadd.f32 %v15827_v44, %v12980_v24  ;;  %v6469_v25 = vpack.c.bf16 %v6385_v62, %v6381_v57  ;;  %v6383_v36 = vmul.f32 %v6255_v32, %v5359_v59  ;;  %15829 = vst [vmem:[#allocation72_spill] sm:$0xff] %v14533_v20  ;;  %v14543_v57 = vpop.f32.mrb[193].mxu1  ;;  %v15833_v32 = vld [vmem:[#allocation81_spill] sm:$0xff] }
 0xc87   : > { %15826 = vst [vmem:[#allocation51_spill] sm:$0xff] %v14523_v39  ;;  %v14529_v58 = vpop.eup %10290  ;;  %v6387_v34 = vmul.f32 %v6259_v47, %v5363_v16  ;;  %v5522_v54 = vmul.f32 %v14517_v13, %v14517_v13  ;;  %v5905_v29 = vadd.f32 %v5777_v37, %v14491_v6  ;;  %v5524_v15 = vmul.f32 %v14523_v39, %v14523_v39  ;;  %v15834_v37 = vld [vmem:[#allocation82_spill] sm:$0xff]  ;;  %v14556_v44 = vpop.f32.mrb[192].mxu0 }
 0xc88   : > { %15828 = vst [vmem:[#allocation71_spill] sm:$0xff] %v14527_v43  ;;  %v14535_v52 = vpop.eup %10292  ;;  %v5907_v63 = vadd.f32 %v5779_v22, %v14495_v31  ;;  %v5525_v42 = vmul.f32 %v14527_v43, %v14527_v43  ;;  %15831 = vst [vmem:[#allocation77_spill] sm:$0xff] %v14543_v57  ;;  %6866 = vmatmul.mubr.bf16.gmra.mrb[232].mxu1 %v6469_v25  ;;  %v14550_v47 = vadd.f32 %v15833_v32, %v12983_v12  ;;  %v14558_v20 = vpop.f32.mrb[194].mxu1 }
 0xc89   : > { %15830 = vst [vmem:[#allocation76_spill] sm:$0xff] %v14535_v52  ;;  %v14545_v59 = vpop.eup %10294  ;;  %v6471_v16 = vpack.c.bf16 %v6387_v34, %v6383_v36  ;;  %v5650_v62 = vmul.f32 %v5522_v54, %v14517_v13  ;;  %v14554_v22 = vadd.f32 %v15834_v37, %v12986_v38  ;;  %15835 = vst [vmem:[#allocation60_spill] sm:$0xff] %v14556_v44  ;;  %v6033_v57 = vmul.f32 0.7978846, %v5905_v29  ;;  %v14564_v34 = vpop.f32.mrb[193].mxu0  ;;  %v15839_v44 = vld [vmem:[#allocation74_spill] sm:$0xff] }
 0xc8a   : > { %15832 = vst [vmem:[#allocation78_spill] sm:$0xff] %v14545_v59  ;;  %15836 = vst [vmem:[#allocation57_spill] sm:$0xff] %v14558_v20  ;;  %v14560_v31 = vpop.eup %10296  ;;  %v6035_v59 = vmul.f32 0.7978846, %v5907_v63  ;;  %v5652_v25 = vmul.f32 %v5524_v15, %v14523_v39  ;;  %v5653_v36 = vmul.f32 %v5525_v42, %v14527_v43  ;;  %v14566_v54 = vpop.f32.mrb[195].mxu1  ;;  %v5527_v37 = vmul.f32 %v14550_v47, %v14550_v47 }
 0xc8b   : > { %15837 = vst [vmem:[#allocation83_spill] sm:$0xff] %v14564_v34  ;;  %15838 = vst [vmem:[#allocation61_spill] sm:$0xff] %v14566_v54  ;;  %7027 = vmatmul.mubr.bf16.gmra.mrb[232].mxu0 %v6471_v16  ;;  %v5778_v32 = vmul.f32 0.044715, %v5650_v62  ;;  %v5526_v20 = vmul.f32 %v14554_v22, %v14554_v22  ;;  %v14574_v29 = vadd.f32 %v15839_v44, %v12989_v3  ;;  %v14576_v63 = vpop.f32.mrb[194].mxu0  ;;  %10300 = vtanh.f32 %v6033_v57  ;;  %v15841_v34 = vld [vmem:[#allocation63_spill] sm:$0xff] }
 0xc8c   : > { %15840 = vst [vmem:[#allocation73_spill] sm:$0xff] %v14576_v63  ;;  %v5780_v15 = vmul.f32 0.044715, %v5652_v25  ;;  %v5781_v42 = vmul.f32 0.044715, %v5653_v36  ;;  %v5366_v5 = vmul.f32 0.5, %v15841_v34  ;;  %v14581_v16 = vpop.eup %10298  ;;  %10302 = vtanh.f32 %v6035_v59 }
 0xc8d   : > { %v14579_v54 = vpop.f32.mrb[195].mxu0  ;;  %15843 = vst [vmem:[#allocation86_spill] sm:$0xff] %v14581_v16  ;;  %v5906_v62 = vadd.f32 %v5778_v32, %v14517_v13  ;;  %v5655_v52 = vmul.f32 %v5527_v37, %v14550_v47  ;;  %v5654_v6 = vmul.f32 %v5526_v20, %v14554_v22  ;;  %v5528_v57 = vmul.f32 %v14574_v29, %v14574_v29  ;;  %v15844_v25 = vld [vmem:[#allocation59_spill] sm:$0xff] }
 0xc8e   : > { %15842 = vst [vmem:[#allocation56_spill] sm:$0xff] %v14579_v54  ;;  %v5908_v44 = vadd.f32 %v5780_v15, %v14523_v39  ;;  %v5909_v63 = vadd.f32 %v5781_v42, %v14527_v43  ;;  %v5370_v36 = vmul.f32 0.5, %v15844_v25  ;;  %v15845_v59 = vld [vmem:[#allocation43_spill] sm:$0xff]  ;;  %v6262_v15 = vadd.f32 1.0, %v14289_v26 }
 0xc8f   : > { %v6034_v34 = vmul.f32 0.7978846, %v5906_v62  ;;  %v5783_v54 = vmul.f32 0.044715, %v5655_v52  ;;  %v5782_v8 = vmul.f32 0.044715, %v5654_v6  ;;  %v14593_v16 = vadd.f32 %v15845_v59, %v12980_v24 }
 0xc90   : > { %v6036_v32 = vmul.f32 0.7978846, %v5908_v44  ;;  %v6037_v37 = vmul.f32 0.7978846, %v5909_v63  ;;  %v5656_v20 = vmul.f32 %v5528_v57, %v14574_v29  ;;  %v6266_v25 = vadd.f32 1.0, %v14318_v27  ;;  %v15846_v62 = vld [vmem:[#allocation53_spill] sm:$0xff] }
 0xc91   : > { %10304 = vtanh.f32 %v6034_v34  ;;  %v5911_v42 = vadd.f32 %v5783_v54, %v14550_v47  ;;  %v5910_v43 = vadd.f32 %v5782_v8, %v14554_v22  ;;  %v6390_v6 = vmul.f32 %v6262_v15, %v5366_v5  ;;  %v15847_v59 = vld [vmem:[#allocation46_spill] sm:$0xff]  ;;  %v15848_v5 = vld [vmem:[#allocation84_spill] sm:$0xff] }
 0xc92   : > { %10306 = vtanh.f32 %v6036_v32  ;;  %v5784_v52 = vmul.f32 0.044715, %v5656_v20  ;;  %v5368_v39 = vmul.f32 0.5, %v15846_v62  ;;  %v6394_v63 = vmul.f32 %v6266_v25, %v5370_v36 }
 0xc93   : > { %10308 = vtanh.f32 %v6037_v37  ;;  %v6039_v24 = vmul.f32 0.7978846, %v5911_v42  ;;  %v6038_v44 = vmul.f32 0.7978846, %v5910_v43  ;;  %v5372_v26 = vmul.f32 0.5, %v15847_v59  ;;  %v15849_v42 = vld [vmem:[#allocation42_spill] sm:$0xff] }
 0xc94   : > { %v5912_v57 = vadd.f32 %v5784_v52, %v14574_v29  ;;  %v6264_v34 = vadd.f32 1.0, %v14294_v50  ;;  %v6268_v54 = vadd.f32 1.0, %v14324_v56  ;;  %v6474_v8 = vpack.c.bf16 %v6394_v63, %v6390_v6  ;;  %v15850_v52 = vld [vmem:[#allocation58_spill] sm:$0xff]  ;;  %v15851_v63 = vld [vmem:[#allocation55_spill] sm:$0xff]  ;;  %v15852_v59 = vld [vmem:[#allocation64_spill] sm:$0xff] }
 0xc95   : > { %10310 = vtanh.f32 %v6039_v24  ;;  %v5529_v27 = vmul.f32 %v14593_v16, %v14593_v16  ;;  %v14609_v32 = vadd.f32 %v15848_v5, %v12983_v12  ;;  %v14611_v37 = vpop.eup %10300  ;;  %v5365_v25 = vmul.f32 0.5, %v15849_v42 }
 0xc96   : > { %10312 = vtanh.f32 %v6038_v44  ;;  %v6040_v43 = vmul.f32 0.7978846, %v5912_v57  ;;  %v6392_v36 = vmul.f32 %v6264_v34, %v5368_v39  ;;  %v6396_v20 = vmul.f32 %v6268_v54, %v5372_v26  ;;  %v14613_v15 = vpop.eup %10302  ;;  %6873 = vmatprep.mubr.bf16.mxu1 %v6474_v8 }
 0xc97   : > { %v5657_v50 = vmul.f32 %v5529_v27, %v14593_v16  ;;  %v5531_v56 = vmul.f32 %v14609_v32, %v14609_v32  ;;  %v5369_v6 = vmul.f32 0.5, %v15850_v52  ;;  %v6261_v62 = vadd.f32 1.0, %v14277_v46 }
 0xc98   : > { %10314 = vtanh.f32 %v6040_v43  ;;  %v6476_v12 = vpack.c.bf16 %v6396_v20, %v6392_v36  ;;  %v6265_v24 = vadd.f32 1.0, %v14301_v48  ;;  %v5367_v57 = vmul.f32 0.5, %v15851_v63  ;;  %v15853_v48 = vld [vmem:[#allocation50_spill] sm:$0xff]  ;;  %v15854_v20 = vld [vmem:[#allocation85_spill] sm:$0xff] }
 0xc99   : > { %v5785_v39 = vmul.f32 0.044715, %v5657_v50  ;;  %v5659_v44 = vmul.f32 %v5531_v56, %v14609_v32  ;;  %v5371_v26 = vmul.f32 0.5, %v15852_v59  ;;  %v6389_v34 = vmul.f32 %v6261_v62, %v5365_v25 }
 0xc9a   : > { %7034 = vmatprep.mubr.bf16.mxu0 %v6476_v12  ;;  %v6393_v54 = vmul.f32 %v6265_v24, %v5369_v6  ;;  %v6263_v8 = vadd.f32 1.0, %v14285_v51  ;;  %v6267_v27 = vadd.f32 1.0, %v14307_v28  ;;  %v14632_v36 = vadd.f32 %v15853_v48, %v12986_v38 }
 0xc9b   : > { %v14627_v5 = vpop.eup %10304  ;;  %v5913_v46 = vadd.f32 %v5785_v39, %v14593_v16  ;;  %v5787_v43 = vmul.f32 0.044715, %v5659_v44  ;;  %v14636_v50 = vadd.f32 %v15854_v20, %v12989_v3  ;;  %v5374_v28 = vmul.f32 0.5, %v14259_v11 }
 0xc9c   : > { %v14638_v56 = vpop.eup %10306  ;;  %v6473_v42 = vpack.c.bf16 %v6393_v54, %v6389_v34  ;;  %v6391_v25 = vmul.f32 %v6263_v8, %v5367_v57  ;;  %v6395_v51 = vmul.f32 %v6267_v27, %v5371_v26  ;;  %v5530_v38 = vmul.f32 %v14632_v36, %v14632_v36  ;;  %v14655_v26 = vpop.f32.mrb[196].mxu1 }
 0xc9d   : > { %v14641_v52 = vpop.eup %10308  ;;  %v6041_v6 = vmul.f32 0.7978846, %v5913_v46  ;;  %v5915_v12 = vadd.f32 %v5787_v43, %v14609_v32  ;;  %v5532_v62 = vmul.f32 %v14636_v50, %v14636_v50  ;;  %v5378_v24 = vmul.f32 0.5, %v14329_v19 }
 0xc9e   : > { %6874 = vmatmul.mubr.bf16.gmra.mrb[236].mxu1 %v6473_v42  ;;  %v6475_v3 = vpack.c.bf16 %v6395_v51, %v6391_v25  ;;  %v6270_v39 = vadd.f32 1.0, %v14370_v21  ;;  %v6274_v44 = vadd.f32 1.0, %v14427_v35  ;;  %v5658_v57 = vmul.f32 %v5530_v38, %v14632_v36  ;;  %v14661_v35 = vpop.f32.mrb[197].mxu1  ;;  %v15855_v51 = vld [vmem:[#allocation69_spill] sm:$0xff] }
 0xc9f   : > { %v14651_v11 = vpop.eup %10310  ;;  %10316 = vtanh.f32 %v6041_v6  ;;  %v6043_v63 = vmul.f32 0.7978846, %v5915_v12  ;;  %v5660_v59 = vmul.f32 %v5532_v62, %v14636_v50  ;;  %v5376_v19 = vmul.f32 0.5, %v14268_v45  ;;  %v14664_v48 = vpop.f32.mrb[196].mxu0 }
 0xca0   : > { %v14657_v34 = vpop.eup %10312  ;;  %7035 = vmatmul.mubr.bf16.gmra.mrb[236].mxu0 %v6475_v3  ;;  %v6398_v54 = vmul.f32 %v6270_v39, %v5374_v28  ;;  %v6402_v8 = vmul.f32 %v6274_v44, %v5378_v24  ;;  %v5380_v21 = vmul.f32 0.5, %v14333_v61  ;;  %v5786_v27 = vmul.f32 0.044715, %v5658_v57  ;;  %v14671_v6 = vpop.f32.mrb[197].mxu0 }
 0xca1   : > { %10318 = vtanh.f32 %v6043_v63  ;;  %v5788_v46 = vmul.f32 0.044715, %v5660_v59  ;;  %v6272_v43 = vadd.f32 1.0, %v14373_v10  ;;  %v6276_v25 = vadd.f32 1.0, %v14435_v40  ;;  %v14673_v61 = vpop.f32.mrb[198].mxu1  ;;  %v14678_v3 = vpop.f32.mrb[198].mxu0 }
 0xca2   : > { %v14666_v20 = vpop.eup %10314  ;;  %v6478_v42 = vpack.c.bf16 %v6402_v8, %v6398_v54  ;;  %v5373_v28 = vmul.f32 0.5, %v15855_v51  ;;  %v5377_v45 = vmul.f32 0.5, %v14299_v49  ;;  %v5914_v12 = vadd.f32 %v5786_v27, %v14632_v36  ;;  %v14680_v24 = vpop.f32.mrb[199].mxu1 }
 0xca3   : > { %v5916_v38 = vadd.f32 %v5788_v46, %v14636_v50  ;;  %v6400_v10 = vmul.f32 %v6272_v43, %v5376_v19  ;;  %v6269_v62 = vadd.f32 1.0, %v14340_v2  ;;  %v6404_v40 = vmul.f32 %v6276_v25, %v5380_v21  ;;  %v14685_v63 = vpop.f32.mrb[199].mxu0 }
 0xca4   : > { %6881 = vmatprep.mubr.bf16.mxu1 %v6478_v42  ;;  %v6273_v39 = vadd.f32 1.0, %v14393_v0  ;;  %v5375_v49 = vmul.f32 0.5, %v14251_v17  ;;  %v5379_v44 = vmul.f32 0.5, %v14305_v60  ;;  %v6042_v57 = vmul.f32 0.7978846, %v5914_v12  ;;  %v15857_v12 = vld [vmem:[#allocation47_spill] sm:$0xff] }
 0xca5   : > { %v6044_v59 = vmul.f32 0.7978846, %v5916_v38  ;;  %v6397_v54 = vmul.f32 %v6269_v62, %v5373_v28  ;;  %v6271_v8 = vadd.f32 1.0, %v14361_v55  ;;  %v6480_v2 = vpack.c.bf16 %v6404_v40, %v6400_v10 }
 0xca6   : > { %v6401_v19 = vmul.f32 %v6273_v39, %v5377_v45  ;;  %v6275_v27 = vadd.f32 1.0, %v14403_v23  ;;  %v5382_v46 = vmul.f32 0.5, %v14355_v14  ;;  %10320 = vtanh.f32 %v6042_v57  ;;  %v15856_v14 = vld [vmem:[#allocation66_spill] sm:$0xff]  ;;  %v15859_v39 = vld [vmem:[#allocation49_spill] sm:$0xff] }
 0xca7   : > { %v6399_v21 = vmul.f32 %v6271_v8, %v5375_v49  ;;  %v5386_v0 = vmul.f32 0.5, %v14421_v33  ;;  %v6278_v17 = vadd.f32 1.0, %v14459_v9  ;;  %10322 = vtanh.f32 %v6044_v59  ;;  %7042 = vmatprep.mubr.bf16.mxu0 %v6480_v2  ;;  %v15860_v57 = vld [vmem:[#allocation54_spill] sm:$0xff] }
 0xca8   : > { %v6477_v60 = vpack.c.bf16 %v6401_v19, %v6397_v54  ;;  %v6403_v43 = vmul.f32 %v6275_v27, %v5379_v44  ;;  %v6282_v42 = vadd.f32 1.0, %v14519_v41  ;;  %v5384_v51 = vmul.f32 0.5, %v14368_v7  ;;  %v15858_v41 = vld [vmem:[#allocation68_spill] sm:$0xff]  ;;  %v15862_v19 = vld [vmem:[#allocation41_spill] sm:$0xff] }
 0xca9   : > { %v14693_v25 = vpop.eup %10316  ;;  %v6406_v55 = vmul.f32 %v6278_v17, %v5382_v46  ;;  %v5388_v23 = vmul.f32 0.5, %v14425_v4  ;;  %v6280_v28 = vadd.f32 1.0, %v15856_v14  ;;  %v6284_v9 = vadd.f32 1.0, %v14529_v58  ;;  %v15861_v54 = vld [vmem:[#allocation48_spill] sm:$0xff]  ;;  %v15863_v14 = vld [vmem:[#allocation51_spill] sm:$0xff] }
 0xcaa   : > { %6882 = vmatmul.mubr.bf16.gmra.mrb[240].mxu1 %v6477_v60  ;;  %v6479_v45 = vpack.c.bf16 %v6403_v43, %v6399_v21  ;;  %v6410_v33 = vmul.f32 %v6282_v42, %v5386_v0  ;;  %v5381_v38 = vmul.f32 0.5, %v15857_v12  ;;  %v5385_v40 = vmul.f32 0.5, %v15858_v41  ;;  %v15865_v12 = vld [vmem:[#allocation45_spill] sm:$0xff]  ;;  %v15866_v41 = vld [vmem:[#allocation44_spill] sm:$0xff] }
 0xcab   : > { %v14700_v10 = vpop.eup %10318  ;;  %v6408_v62 = vmul.f32 %v6280_v28, %v5384_v51  ;;  %v6277_v49 = vadd.f32 1.0, %v15859_v39  ;;  %v6281_v7 = vadd.f32 1.0, %v14497_v18  ;;  %v6412_v44 = vmul.f32 %v6284_v9, %v5388_v23 }
 0xcac   : > { %7043 = vmatmul.mubr.bf16.gmra.mrb[240].mxu0 %v6479_v45  ;;  %v6482_v4 = vpack.c.bf16 %v6410_v33, %v6406_v55  ;;  %v5383_v59 = vmul.f32 0.5, %v15860_v57  ;;  %v5387_v8 = vmul.f32 0.5, %v15861_v54  ;;  %v6279_v27 = vadd.f32 1.0, %v15862_v19  ;;  %v15869_v57 = vld [vmem:[#allocation75_spill] sm:$0xff] }
 0xcad   : > { %v6405_v2 = vmul.f32 %v6277_v49, %v5381_v38  ;;  %v6409_v58 = vmul.f32 %v6281_v7, %v5385_v40  ;;  %v6283_v46 = vadd.f32 1.0, %v14501_v30  ;;  %v6484_v21 = vpack.c.bf16 %v6412_v44, %v6408_v62  ;;  %v15864_v30 = vld [vmem:[#allocation86_spill] sm:$0xff]  ;;  %v15867_v40 = vld [vmem:[#allocation76_spill] sm:$0xff] }
 0xcae   : > { %6889 = vmatprep.mubr.bf16.mxu1 %v6482_v4  ;;  %v5390_v0 = vmul.f32 0.5, %v14452_v1  ;;  %v5394_v17 = vmul.f32 0.5, %v14517_v13  ;;  %v6286_v18 = vadd.f32 1.0, %v14560_v31  ;;  %v6407_v43 = vmul.f32 %v6279_v27, %v5383_v59  ;;  %v15868_v4 = vld [vmem:[#allocation70_spill] sm:$0xff] }
 0xcaf   : > { %v6481_v60 = vpack.c.bf16 %v6409_v58, %v6405_v2  ;;  %v6411_v42 = vmul.f32 %v6283_v46, %v5387_v8  ;;  %v6290_v55 = vadd.f32 1.0, %v14627_v5  ;;  %7050 = vmatprep.mubr.bf16.mxu0 %v6484_v21  ;;  %v5392_v23 = vmul.f32 0.5, %v14466_v53  ;;  %v15870_v8 = vld [vmem:[#allocation78_spill] sm:$0xff] }
 0xcb0   : > { %v6414_v51 = vmul.f32 %v6286_v18, %v5390_v0  ;;  %v5396_v28 = vmul.f32 0.5, %v15863_v14  ;;  %v6288_v45 = vadd.f32 1.0, %v15864_v30  ;;  %v10321_v33 = vpop.eup %10320  ;;  %v6292_v13 = vadd.f32 1.0, %v14638_v56 }
 0xcb1   : > { %v6483_v9 = vpack.c.bf16 %v6411_v42, %v6407_v43  ;;  %v6418_v1 = vmul.f32 %v6290_v55, %v5394_v17  ;;  %v5389_v31 = vmul.f32 0.5, %v15865_v12  ;;  %v10323_v38 = vpop.eup %10322  ;;  %v5393_v5 = vmul.f32 0.5, %v15866_v41 }
 0xcb2   : > { %6890 = vmatmul.mubr.bf16.gmra.mrb[244].mxu1 %v6481_v60  ;;  %v6416_v62 = vmul.f32 %v6288_v45, %v5392_v23  ;;  %v6285_v39 = vadd.f32 1.0, %v15867_v40  ;;  %v6289_v53 = vadd.f32 1.0, %v14611_v37  ;;  %v6420_v7 = vmul.f32 %v6292_v13, %v5396_v28  ;;  %v8773_v19 = vpop.f32.mrb[200].mxu1  ;;  %v15871_v45 = vld [vmem:[#allocation71_spill] sm:$0xff] }
 0xcb3   : > { %v6486_v49 = vpack.c.bf16 %v6418_v1, %v6414_v51  ;;  %v5391_v44 = vmul.f32 0.5, %v15868_v4  ;;  %v5395_v59 = vmul.f32 0.5, %v15869_v57  ;;  %v6287_v2 = vadd.f32 1.0, %v15870_v8  ;;  %v8774_v0 = vpop.f32.mrb[201].mxu1  ;;  %v15876_v4 = vld [vmem:[#allocation77_spill] sm:$0xff] }
 0xcb4   : > { %7051 = vmatmul.mubr.bf16.gmra.mrb[244].mxu0 %v6483_v9  ;;  %v6413_v54 = vmul.f32 %v6285_v39, %v5389_v31  ;;  %v6417_v56 = vmul.f32 %v6289_v53, %v5393_v5  ;;  %v6291_v58 = vadd.f32 1.0, %v14613_v15  ;;  %v6488_v27 = vpack.c.bf16 %v6420_v7, %v6416_v62  ;;  %v8885_v42 = vpop.f32.mrb[200].mxu0  ;;  %v8776_v55 = vpop.f32.mrb[202].mxu1  ;;  %v15875_v7 = vld [vmem:[#allocation72_spill] sm:$0xff]  ;;  %v15880_v8 = vld [vmem:[#allocation61_spill] sm:$0xff] }
 0xcb5   : > { %6897 = vmatprep.mubr.bf16.mxu1 %v6486_v49  ;;  %v5398_v46 = vmul.f32 0.5, %v14554_v22  ;;  %v5402_v37 = vmul.f32 0.5, %v14632_v36  ;;  %v6294_v21 = vadd.f32 1.0, %v14657_v34  ;;  %v6415_v18 = vmul.f32 %v6287_v2, %v5391_v44  ;;  %v8886_v22 = vpop.f32.mrb[201].mxu0  ;;  %v8777_v28 = vpop.f32.mrb[203].mxu1 }
 0xcb6   : > { %v6485_v17 = vpack.c.bf16 %v6417_v56, %v6413_v54  ;;  %v6419_v60 = vmul.f32 %v6291_v58, %v5395_v59  ;;  %v6298_v43 = vadd.f32 1.0, %v10321_v33  ;;  %7058 = vmatprep.mubr.bf16.mxu0 %v6488_v27  ;;  %v5400_v15 = vmul.f32 0.5, %v14574_v29  ;;  %v8888_v1 = vpop.f32.mrb[202].mxu0  ;;  %v15877_v59 = vld [vmem:[#allocation60_spill] sm:$0xff]  ;;  %v15878_v54 = vld [vmem:[#allocation83_spill] sm:$0xff]  ;;  %v15881_v58 = vld [vmem:[#allocation73_spill] sm:$0xff] }
 0xcb7   : > { %v6422_v51 = vmul.f32 %v6294_v21, %v5398_v46  ;;  %v5404_v23 = vmul.f32 0.5, %v14636_v50  ;;  %v6296_v14 = vadd.f32 1.0, %v14666_v20  ;;  %v6300_v34 = vadd.f32 1.0, %v10323_v38  ;;  %v8889_v29 = vpop.f32.mrb[203].mxu0  ;;  %v15882_v27 = vld [vmem:[#allocation56_spill] sm:$0xff] }
 0xcb8   : > { %v6487_v36 = vpack.c.bf16 %v6419_v60, %v6415_v18  ;;  %v6426_v30 = vmul.f32 %v6298_v43, %v5402_v37  ;;  %v5397_v9 = vmul.f32 0.5, %v15871_v45  ;;  %v5401_v33 = vmul.f32 0.5, %v14593_v16 }
 0xcb9   : > { %v6424_v13 = vmul.f32 %v6296_v14, %v5400_v15  ;;  %v6293_v12 = vadd.f32 1.0, %v14641_v52  ;;  %v6297_v31 = vadd.f32 1.0, %v14693_v25  ;;  %v6428_v62 = vmul.f32 %v6300_v34, %v5404_v23  ;;  %v15872_v52 = vld [vmem:[#allocation6_spill] sm:$0xff]  ;;  %v15874_v25 = vld [vmem:[#allocation7_spill] sm:$0xff] }
 0xcba   : > { %6898 = vmatmul.mubr.bf16.gmra.mrb[248].mxu1 %v6485_v17  ;;  %v6490_v50 = vpack.c.bf16 %v6426_v30, %v6422_v51  ;;  %v5399_v20 = vmul.f32 0.5, %v14550_v47  ;;  %v5403_v41 = vmul.f32 0.5, %v14609_v32  ;;  %v6295_v40 = vadd.f32 1.0, %v14651_v11 }
 0xcbb   : > { %v6421_v5 = vmul.f32 %v6293_v12, %v5397_v9  ;;  %v6425_v38 = vmul.f32 %v6297_v31, %v5401_v33  ;;  %v6299_v39 = vadd.f32 1.0, %v14700_v10  ;;  %v6492_v16 = vpack.c.bf16 %v6428_v62, %v6424_v13  ;;  %v15879_v10 = vld [vmem:[#allocation57_spill] sm:$0xff]  ;;  %v15887_v9 = vld [vmem:[#allocation16_spill] sm:$0xff]  ;;  %v15888_v12 = vld [vmem:[#allocation19_spill] sm:$0xff] }
 0xcbc   : > { %7059 = vmatmul.mubr.bf16.gmra.mrb[248].mxu0 %v6487_v36  ;;  %6905 = vmatprep.mubr.bf16.mxu1 %v6490_v50  ;;  %v15873_v53 = vsub.s32 6, %v15872_v52  ;;  %v8763_v44 = vadd.f32 %v15876_v4, %v15875_v7  ;;  %v6423_v57 = vmul.f32 %v6295_v40, %v5399_v20  ;;  %v8875_v56 = vadd.f32 %v15878_v54, %v15877_v59 }
 0xcbd   : > { %v6489_v47 = vpack.c.bf16 %v6425_v38, %v6421_v5  ;;  %v6427_v32 = vmul.f32 %v6299_v39, %v5403_v41  ;;  %7066 = vmatprep.mubr.bf16.mxu0 %v6492_v16  ;;  %v8766_v2 = vadd.f32 %v15880_v8, %v15879_v10  ;;  %v8878_v46 = vadd.f32 %v15882_v27, %v15881_v58 }
 0xcbe   : > { %v14742_v49 = vrot.slane %v15874_v25, %v15873_v53  ;;  %v8769_v37 = vadd.f32 %v14661_v35, %v14655_v26  ;;  %v8881_v17 = vadd.f32 %v14671_v6, %v14664_v48  ;;  %v8772_v18 = vadd.f32 %v14680_v24, %v14673_v61  ;;  %v15883_v6 = vld [vmem:[#allocation10_spill] sm:$0xff] }
 0xcbf   : > { %v6491_v21 = vpack.c.bf16 %v6427_v32, %v6423_v57  ;;  %v8884_v60 = vadd.f32 %v14685_v63, %v14678_v3  ;;  %v8775_v23 = vadd.f32 %v8774_v0, %v8773_v19  ;;  %v8887_v36 = vadd.f32 %v8886_v22, %v8885_v42  ;;  %v15884_v63 = vld [vmem:[#allocation18_spill] sm:$0xff]  ;;  %v15885_v42 = vld [vmem:[#allocation13_spill] sm:$0xff] }
 0xcc0   : > { %v6788_v11 = vadd.f32 %v8763_v44, %v14742_v49  ;;  %v6791_v51 = vadd.f32 %v8766_v2, %v14742_v49  ;;  %v6796_v15 = vadd.f32 %v8769_v37, %v14742_v49  ;;  %v6799_v14 = vadd.f32 %v8772_v18, %v14742_v49  ;;  %v15890_v32 = vld [vmem:[#allocation17_spill] sm:$0xff] }
 0xcc1   : > { %v8778_v26 = vadd.f32 %v8777_v28, %v8776_v55  ;;  %v8890_v35 = vadd.f32 %v8889_v29, %v8888_v1  ;;  %v6804_v61 = vadd.f32 %v8775_v23, %v14742_v49  ;;  %v15886_v28 = vld [vmem:[#allocation20_spill] sm:$0xff]  ;;  %v15891_v23 = vld [vmem:[#allocation22_spill] sm:$0xff] }
 0xcc2   : > { %v6949_v43 = vadd.f32 %v8875_v56, %v6788_v11  ;;  %6906 = vmatmul.mubr.bf16.gmra.mrb[252].mxu1 %v6489_v47  ;;  %v6952_v30 = vadd.f32 %v8878_v46, %v6791_v51  ;;  %v6957_v48 = vadd.f32 %v8881_v17, %v6796_v15  ;;  %v6960_v3 = vadd.f32 %v8884_v60, %v6799_v14  ;;  %v15889_v47 = vld [vmem:[#allocation15_spill] sm:$0xff] }
 0xcc3   : > { %v6807_v24 = vadd.f32 %v8778_v26, %v14742_v49  ;;  %v6965_v0 = vadd.f32 %v8887_v36, %v6804_v61 }
 0xcc4   : > { %v14765_v34 = vadd.f32 %v6949_v43, %v15883_v6  ;;  %7067 = vmatmul.mubr.bf16.gmra.mrb[252].mxu0 %v6491_v21  ;;  %v14771_v19 = vadd.f32 %v6952_v30, %v15884_v63  ;;  %v14774_v55 = vadd.f32 %v6957_v48, %v15885_v42  ;;  %v14778_v45 = vadd.f32 %v6960_v3, %v15886_v28  ;;  %v15892_v48 = vld [vmem:[#allocation21_spill] sm:$0xff] }
 0xcc5   : > { %v6968_v22 = vadd.f32 %v8890_v35, %v6807_v24  ;;  %v14782_v1 = vadd.f32 %v6965_v0, %v15887_v9 }
 0xcc6   : > { %7107 = vadd.xlane.f32.xlu0 %v14765_v34  ;;  %7109 = vadd.xlane.f32.xlu1 %v14771_v19 }
 0xcc7   : > { %v8779_v13 = vpop.f32.mrb[204].mxu1  ;;  %v14786_v31 = vadd.f32 %v6968_v22, %v15888_v12 }
 0xcc8   : > { %v8780_v33 = vpop.f32.mrb[205].mxu1 }
 0xcc9   : > { %v8891_v29 = vpop.f32.mrb[204].mxu0  ;;  %v8781_v50 = vadd.f32 %v8780_v33, %v8779_v13  ;;  %v8782_v62 = vpop.f32.mrb[206].mxu1 }
 0xcca   : > { %7111 = vadd.xlane.f32.xlu0 %v14774_v55  ;;  %7113 = vadd.xlane.f32.xlu1 %v14778_v45  ;;  %v8892_v20 = vpop.f32.mrb[205].mxu0  ;;  %v8783_v41 = vpop.f32.mrb[207].mxu1 }
 0xccb   : > { %v6812_v5 = vadd.f32 %v8781_v50, %v14742_v49  ;;  %v8893_v38 = vadd.f32 %v8892_v20, %v8891_v29  ;;  %v8894_v40 = vpop.f32.mrb[206].mxu0  ;;  %v8784_v39 = vadd.f32 %v8783_v41, %v8782_v62  ;;  %v15893_v29 = vld [vmem:[#allocation11_spill] sm:$0xff] }
 0xccc   : > { %v8895_v16 = vpop.f32.mrb[207].mxu0 }
 0xccd   : > { %v6973_v53 = vadd.f32 %v8893_v38, %v6812_v5  ;;  %v6815_v7 = vadd.f32 %v8784_v39, %v14742_v49  ;;  %v8896_v4 = vadd.f32 %v8895_v16, %v8894_v40  ;;  %v15894_v38 = vld [vmem:[#allocation23_spill] sm:$0xff] }
 0xcce   : > { %7115 = vadd.xlane.f32.xlu0 %v14782_v1  ;;  %7117 = vadd.xlane.f32.xlu1 %v14786_v31 }
 0xccf   : > { %v6976_v44 = vadd.f32 %v8896_v4, %v6815_v7  ;;  %v14793_v57 = vadd.f32 %v6973_v53, %v15889_v47 }
 0xcd1   : > { %v14797_v59 = vadd.f32 %v6976_v44, %v15890_v32 }
 0xcd2   : > { %7119 = vadd.xlane.f32.xlu0 %v14793_v57 }
 0xcd3   : > { %v8785_v54 = vpop.f32.mrb[208].mxu1  ;;  %7121 = vadd.xlane.f32.xlu1 %v14797_v59 }
 0xcd4   : > { %v8786_v56 = vpop.f32.mrb[209].mxu1 }
 0xcd5   : > { %v8787_v10 = vadd.f32 %v8786_v56, %v8785_v54  ;;  %v8788_v8 = vpop.f32.mrb[210].mxu1 }
 0xcd6   : > { %v8897_v11 = vpop.f32.mrb[208].mxu0  ;;  %v8789_v58 = vpop.f32.mrb[211].mxu1 }
 0xcd7   : > { %v8898_v2 = vpop.f32.mrb[209].mxu0  ;;  %v6820_v27 = vadd.f32 %v8787_v10, %v14742_v49  ;;  %v8790_v21 = vadd.f32 %v8789_v58, %v8788_v8  ;;  %v15895_v8 = vld [vmem:[#allocation14_spill] sm:$0xff] }
 0xcd8   : > { %v8899_v46 = vadd.f32 %v8898_v2, %v8897_v11  ;;  %v8900_v37 = vpop.f32.mrb[210].mxu0 }
 0xcd9   : > { %v8901_v17 = vpop.f32.mrb[211].mxu0  ;;  %v6823_v60 = vadd.f32 %v8790_v21, %v14742_v49  ;;  %v15896_v21 = vld [vmem:[#allocation25_spill] sm:$0xff] }
 0xcda   : > { %v6981_v18 = vadd.f32 %v8899_v46, %v6820_v27  ;;  %v8902_v43 = vadd.f32 %v8901_v17, %v8900_v37 }
 0xcdb   : > { %v8791_v15 = vpop.f32.mrb[212].mxu1 }
 0xcdc   : > { %v6984_v51 = vadd.f32 %v8902_v43, %v6823_v60  ;;  %v14803_v14 = vadd.f32 %v6981_v18, %v15891_v23  ;;  %v8792_v36 = vpop.f32.mrb[213].mxu1 }
 0xcdd   : > { %v8793_v35 = vadd.f32 %v8792_v36, %v8791_v15  ;;  %v8794_v30 = vpop.f32.mrb[214].mxu1 }
 0xcde   : > { %v8903_v26 = vpop.f32.mrb[212].mxu0  ;;  %7123 = vadd.xlane.f32.xlu0 %v14803_v14  ;;  %v14807_v6 = vadd.f32 %v6984_v51, %v15892_v48  ;;  %v8795_v3 = vpop.f32.mrb[215].mxu1 }
 0xcdf   : > { %v8904_v61 = vpop.f32.mrb[213].mxu0  ;;  %v6828_v24 = vadd.f32 %v8793_v35, %v14742_v49  ;;  %v8796_v42 = vadd.f32 %v8795_v3, %v8794_v30 }
 0xce0   : > { %v8905_v63 = vadd.f32 %v8904_v61, %v8903_v26  ;;  %v8906_v0 = vpop.f32.mrb[214].mxu0  ;;  %7125 = vadd.xlane.f32.xlu1 %v14807_v6  ;;  %v15897_v61 = vld [vmem:[#allocation9_spill] sm:$0xff] }
 0xce1   : > { %v8907_v22 = vpop.f32.mrb[215].mxu0  ;;  %v6831_v9 = vadd.f32 %v8796_v42, %v14742_v49 }
 0xce2   : > { %v6989_v28 = vadd.f32 %v8905_v63, %v6828_v24  ;;  %v8908_v13 = vadd.f32 %v8907_v22, %v8906_v0  ;;  %v15898_v24 = vld [vmem:[#allocation24_spill] sm:$0xff] }
 0xce3   : > { %v8797_v12 = vpop.f32.mrb[216].mxu1 }
 0xce4   : > { %v6992_v33 = vadd.f32 %v8908_v13, %v6831_v9  ;;  %v14813_v50 = vadd.f32 %v6989_v28, %v15893_v29  ;;  %v8798_v62 = vpop.f32.mrb[217].mxu1 }
 0xce5   : > { %v8799_v41 = vadd.f32 %v8798_v62, %v8797_v12  ;;  %v8800_v5 = vpop.f32.mrb[218].mxu1 }
 0xce6   : > { %v8909_v20 = vpop.f32.mrb[216].mxu0  ;;  %7127 = vadd.xlane.f32.xlu0 %v14813_v50  ;;  %v14817_v40 = vadd.f32 %v6992_v33, %v15894_v38  ;;  %v8801_v16 = vpop.f32.mrb[219].mxu1 }
 0xce7   : > { %v8910_v39 = vpop.f32.mrb[217].mxu0  ;;  %v6836_v53 = vadd.f32 %v8799_v41, %v14742_v49  ;;  %v8802_v44 = vadd.f32 %v8801_v16, %v8800_v5 }
 0xce8   : > { %v8911_v7 = vadd.f32 %v8910_v39, %v8909_v20  ;;  %v8912_v4 = vpop.f32.mrb[218].mxu0  ;;  %7129 = vadd.xlane.f32.xlu1 %v14817_v40 }
 0xce9   : > { %v8913_v47 = vpop.f32.mrb[219].mxu0  ;;  %v6839_v54 = vadd.f32 %v8802_v44, %v14742_v49 }
 0xcea   : > { %v6997_v32 = vadd.f32 %v8911_v7, %v6836_v53  ;;  %v8914_v56 = vadd.f32 %v8913_v47, %v8912_v4  ;;  %v15899_v53 = vld [vmem:[#allocation12_spill] sm:$0xff]  ;;  %v15900_v4 = vld [vmem:[#allocation26_spill] sm:$0xff] }
 0xceb   : > { %v8803_v10 = vpop.f32.mrb[220].mxu1 }
 0xcec   : > { %v7000_v11 = vadd.f32 %v8914_v56, %v6839_v54  ;;  %v14823_v2 = vadd.f32 %v6997_v32, %v15895_v8  ;;  %v8804_v58 = vpop.f32.mrb[221].mxu1 }
 0xced   : > { %v8805_v46 = vadd.f32 %v8804_v58, %v8803_v10  ;;  %v8806_v37 = vpop.f32.mrb[222].mxu1 }
 0xcee   : > { %v8915_v27 = vpop.f32.mrb[220].mxu0  ;;  %7131 = vadd.xlane.f32.xlu0 %v14823_v2  ;;  %v14827_v17 = vadd.f32 %v7000_v11, %v15896_v21  ;;  %v8807_v60 = vpop.f32.mrb[223].mxu1 }
 0xcef   : > { %v8916_v18 = vpop.f32.mrb[221].mxu0  ;;  %v6844_v43 = vadd.f32 %v8805_v46, %v14742_v49  ;;  %v8808_v23 = vadd.f32 %v8807_v60, %v8806_v37 }
 0xcf0   : > { %v8917_v51 = vadd.f32 %v8916_v18, %v8915_v27  ;;  %v8918_v15 = vpop.f32.mrb[222].mxu0  ;;  %7133 = vadd.xlane.f32.xlu1 %v14827_v17 }
 0xcf1   : > { %v8919_v36 = vpop.f32.mrb[223].mxu0  ;;  %v6847_v35 = vadd.f32 %v8808_v23, %v14742_v49 }
 0xcf2   : > { %v7005_v26 = vadd.f32 %v8917_v51, %v6844_v43  ;;  %v8920_v30 = vadd.f32 %v8919_v36, %v8918_v15  ;;  %v15901_v15 = vld [vmem:[#allocation28_spill] sm:$0xff]  ;;  %v15902_v36 = vld [vmem:[#allocation27_spill] sm:$0xff] }
 0xcf4   : > { %v7008_v48 = vadd.f32 %v8920_v30, %v6847_v35  ;;  %v14833_v3 = vadd.f32 %v7005_v26, %v15897_v61 }
 0xcf6   : > { %7135 = vadd.xlane.f32.xlu0 %v14833_v3  ;;  %v14837_v63 = vadd.f32 %v7008_v48, %v15898_v24 }
 0xcf8   : > { %7137 = vadd.xlane.f32.xlu1 %v14837_v63 }
 0xd31   : > { %v8809_v0 = vpop.f32.mrb[224].mxu1 }
 0xd32   : > { %v8810_v42 = vpop.f32.mrb[225].mxu1 }
 0xd33   : > { %v8921_v22 = vpop.f32.mrb[224].mxu0  ;;  %v8811_v28 = vadd.f32 %v8810_v42, %v8809_v0  ;;  %v8812_v9 = vpop.f32.mrb[226].mxu1 }
 0xd34   : > { %v8922_v13 = vpop.f32.mrb[225].mxu0  ;;  %v8813_v33 = vpop.f32.mrb[227].mxu1 }
 0xd35   : > { %v6852_v12 = vadd.f32 %v8811_v28, %v14742_v49  ;;  %v8923_v29 = vadd.f32 %v8922_v13, %v8921_v22  ;;  %v8924_v62 = vpop.f32.mrb[226].mxu0  ;;  %v8814_v20 = vadd.f32 %v8813_v33, %v8812_v9 }
 0xd36   : > { %v8925_v41 = vpop.f32.mrb[227].mxu0 }
 0xd37   : > { %v7013_v5 = vadd.f32 %v8923_v29, %v6852_v12  ;;  %v6855_v38 = vadd.f32 %v8814_v20, %v14742_v49  ;;  %v8926_v39 = vadd.f32 %v8925_v41, %v8924_v62  ;;  %v15903_v41 = vld [vmem:[#allocation30_spill] sm:$0xff] }
 0xd39   : > { %v7016_v16 = vadd.f32 %v8926_v39, %v6855_v38  ;;  %v14843_v7 = vadd.f32 %v7013_v5, %v15899_v53  ;;  %v15904_v38 = vld [vmem:[#allocation29_spill] sm:$0xff] }
 0xd3b   : > { %7139 = vadd.xlane.f32.xlu0 %v14843_v7  ;;  %v14847_v44 = vadd.f32 %v7016_v16, %v15900_v4 }
 0xd3d   : > { %7141 = vadd.xlane.f32.xlu1 %v14847_v44 }
 0xd46   : > { %v8815_v47 = vpop.f32.mrb[228].mxu1 }
 0xd47   : > { %v8816_v32 = vpop.f32.mrb[229].mxu1 }
 0xd48   : > { %v8927_v54 = vpop.f32.mrb[228].mxu0  ;;  %v8817_v56 = vadd.f32 %v8816_v32, %v8815_v47  ;;  %v8818_v11 = vpop.f32.mrb[230].mxu1 }
 0xd49   : > { %v8928_v10 = vpop.f32.mrb[229].mxu0  ;;  %v8819_v8 = vpop.f32.mrb[231].mxu1 }
 0xd4a   : > { %v6860_v58 = vadd.f32 %v8817_v56, %v14742_v49  ;;  %v8929_v27 = vadd.f32 %v8928_v10, %v8927_v54  ;;  %v8930_v46 = vpop.f32.mrb[230].mxu0  ;;  %v8820_v37 = vadd.f32 %v8819_v8, %v8818_v11 }
 0xd4b   : > { %v8931_v21 = vpop.f32.mrb[231].mxu0 }
 0xd4c   : > { %v7021_v18 = vadd.f32 %v8929_v27, %v6860_v58  ;;  %v6863_v60 = vadd.f32 %v8820_v37, %v14742_v49  ;;  %v8932_v43 = vadd.f32 %v8931_v21, %v8930_v46 }
 0xd4e   : > { %v7024_v51 = vadd.f32 %v8932_v43, %v6863_v60  ;;  %v14853_v23 = vadd.f32 %v7021_v18, %v15901_v15  ;;  %v15905_v60 = vld [vmem:[#allocation32_spill] sm:$0xff] }
 0xd50   : > { %7143 = vadd.xlane.f32.xlu0 %v14853_v23  ;;  %v14857_v26 = vadd.f32 %v7024_v51, %v15902_v36  ;;  %v15906_v51 = vld [vmem:[#allocation31_spill] sm:$0xff] }
 0xd52   : > { %7145 = vadd.xlane.f32.xlu1 %v14857_v26 }
 0xd5b   : > { %v8821_v35 = vpop.f32.mrb[232].mxu1 }
 0xd5c   : > { %v8822_v30 = vpop.f32.mrb[233].mxu1 }
 0xd5d   : > { %v8823_v61 = vadd.f32 %v8822_v30, %v8821_v35  ;;  %v8824_v24 = vpop.f32.mrb[234].mxu1 }
 0xd5e   : > { %v8933_v48 = vpop.f32.mrb[232].mxu0  ;;  %v8825_v42 = vpop.f32.mrb[235].mxu1 }
 0xd5f   : > { %v8934_v0 = vpop.f32.mrb[233].mxu0  ;;  %v6868_v22 = vadd.f32 %v8823_v61, %v14742_v49  ;;  %v8826_v13 = vadd.f32 %v8825_v42, %v8824_v24 }
 0xd60   : > { %v8935_v28 = vadd.f32 %v8934_v0, %v8933_v48  ;;  %v8936_v9 = vpop.f32.mrb[234].mxu0 }
 0xd61   : > { %v8937_v33 = vpop.f32.mrb[235].mxu0  ;;  %v6871_v29 = vadd.f32 %v8826_v13, %v14742_v49 }
 0xd62   : > { %v7029_v12 = vadd.f32 %v8935_v28, %v6868_v22  ;;  %v8938_v62 = vadd.f32 %v8937_v33, %v8936_v9 }
 0xd64   : > { %v7032_v20 = vadd.f32 %v8938_v62, %v6871_v29  ;;  %v14863_v5 = vadd.f32 %v7029_v12, %v15903_v41  ;;  %v15907_v41 = vld [vmem:[#allocation34_spill] sm:$0xff] }
 0xd66   : > { %7147 = vadd.xlane.f32.xlu0 %v14863_v5  ;;  %v14867_v39 = vadd.f32 %v7032_v20, %v15904_v38 }
 0xd68   : > { %7149 = vadd.xlane.f32.xlu1 %v14867_v39 }
 0xd71   : > { %v8827_v16 = vpop.f32.mrb[236].mxu1 }
 0xd72   : > { %v8828_v53 = vpop.f32.mrb[237].mxu1 }
 0xd73   : > { %v8939_v4 = vpop.f32.mrb[236].mxu0  ;;  %v8829_v47 = vadd.f32 %v8828_v53, %v8827_v16  ;;  %v8830_v32 = vpop.f32.mrb[238].mxu1 }
 0xd74   : > { %v8940_v54 = vpop.f32.mrb[237].mxu0  ;;  %v8831_v56 = vpop.f32.mrb[239].mxu1 }
 0xd75   : > { %v6876_v11 = vadd.f32 %v8829_v47, %v14742_v49  ;;  %v8941_v10 = vadd.f32 %v8940_v54, %v8939_v4  ;;  %v8942_v8 = vpop.f32.mrb[238].mxu0  ;;  %v8832_v58 = vadd.f32 %v8831_v56, %v8830_v32  ;;  %v15908_v32 = vld [vmem:[#allocation33_spill] sm:$0xff] }
 0xd76   : > { %v8943_v27 = vpop.f32.mrb[239].mxu0 }
 0xd77   : > { %v7037_v46 = vadd.f32 %v8941_v10, %v6876_v11  ;;  %v6879_v37 = vadd.f32 %v8832_v58, %v14742_v49  ;;  %v8944_v21 = vadd.f32 %v8943_v27, %v8942_v8 }
 0xd79   : > { %v7040_v18 = vadd.f32 %v8944_v21, %v6879_v37  ;;  %v14873_v43 = vadd.f32 %v7037_v46, %v15905_v60 }
 0xd7b   : > { %7151 = vadd.xlane.f32.xlu0 %v14873_v43  ;;  %v14877_v15 = vadd.f32 %v7040_v18, %v15906_v51 }
 0xd7d   : > { %v8833_v36 = vpop.f32.mrb[240].mxu1  ;;  %7153 = vadd.xlane.f32.xlu1 %v14877_v15 }
 0xd7e   : > { %v8834_v35 = vpop.f32.mrb[241].mxu1 }
 0xd7f   : > { %v8945_v30 = vpop.f32.mrb[240].mxu0  ;;  %v8835_v48 = vadd.f32 %v8834_v35, %v8833_v36  ;;  %v8836_v61 = vpop.f32.mrb[242].mxu1  ;;  %v15909_v36 = vld [vmem:[#allocation36_spill] sm:$0xff] }
 0xd80   : > { %v8946_v24 = vpop.f32.mrb[241].mxu0  ;;  %v8837_v0 = vpop.f32.mrb[243].mxu1 }
 0xd81   : > { %v6884_v42 = vadd.f32 %v8835_v48, %v14742_v49  ;;  %v8947_v22 = vadd.f32 %v8946_v24, %v8945_v30  ;;  %v8948_v28 = vpop.f32.mrb[242].mxu0  ;;  %v8838_v9 = vadd.f32 %v8837_v0, %v8836_v61  ;;  %v15910_v0 = vld [vmem:[#allocation35_spill] sm:$0xff] }
 0xd82   : > { %v8949_v13 = vpop.f32.mrb[243].mxu0 }
 0xd83   : > { %v7045_v33 = vadd.f32 %v8947_v22, %v6884_v42  ;;  %v6887_v12 = vadd.f32 %v8838_v9, %v14742_v49  ;;  %v8950_v29 = vadd.f32 %v8949_v13, %v8948_v28 }
 0xd85   : > { %v7048_v62 = vadd.f32 %v8950_v29, %v6887_v12  ;;  %v8839_v20 = vpop.f32.mrb[244].mxu1  ;;  %v14883_v38 = vadd.f32 %v7045_v33, %v15907_v41 }
 0xd86   : > { %v8840_v16 = vpop.f32.mrb[245].mxu1 }
 0xd87   : > { %v8951_v53 = vpop.f32.mrb[244].mxu0  ;;  %v8841_v4 = vadd.f32 %v8840_v16, %v8839_v20  ;;  %v8842_v47 = vpop.f32.mrb[246].mxu1  ;;  %7155 = vadd.xlane.f32.xlu0 %v14883_v38  ;;  %v14887_v54 = vadd.f32 %v7048_v62, %v15908_v32 }
 0xd88   : > { %v8952_v56 = vpop.f32.mrb[245].mxu0  ;;  %v8843_v11 = vpop.f32.mrb[247].mxu1 }
 0xd89   : > { %v6892_v10 = vadd.f32 %v8841_v4, %v14742_v49  ;;  %v8953_v8 = vadd.f32 %v8952_v56, %v8951_v53  ;;  %v8954_v58 = vpop.f32.mrb[246].mxu0  ;;  %v8844_v27 = vadd.f32 %v8843_v11, %v8842_v47  ;;  %7157 = vadd.xlane.f32.xlu1 %v14887_v54  ;;  %v7108_v16 = vpop.xlane.xlu0 %7107  ;;  %v15911_v47 = vld [vmem:[#allocation38_spill] sm:$0xff] }
 0xd8a   : > { %v8955_v46 = vpop.f32.mrb[247].mxu0  ;;  %v7110_v56 = vpop.xlane.xlu1 %7109 }
 0xd8b   : > { %v7053_v37 = vadd.f32 %v8953_v8, %v6892_v10  ;;  %v6895_v21 = vadd.f32 %v8844_v27, %v14742_v49  ;;  %v8956_v18 = vadd.f32 %v8955_v46, %v8954_v58  ;;  %v15912_v27 = vld [vmem:[#allocation37_spill] sm:$0xff] }
 0xd8d   : > { %v7056_v60 = vadd.f32 %v8956_v18, %v6895_v21  ;;  %v8845_v51 = vpop.f32.mrb[248].mxu1  ;;  %v14893_v35 = vadd.f32 %v7053_v37, %v15909_v36  ;;  %v7171_v18 = vmul.f32 0.0078125, %v7108_v16 }
 0xd8e   : > { %v8846_v30 = vpop.f32.mrb[249].mxu1 }
 0xd8f   : > { %v8957_v48 = vpop.f32.mrb[248].mxu0  ;;  %v8847_v61 = vadd.f32 %v8846_v30, %v8845_v51  ;;  %v8848_v24 = vpop.f32.mrb[250].mxu1  ;;  %7159 = vadd.xlane.f32.xlu0 %v14893_v35  ;;  %v14897_v42 = vadd.f32 %v7056_v60, %v15910_v0 }
 0xd90   : > { %v8958_v22 = vpop.f32.mrb[249].mxu0  ;;  %v8849_v28 = vpop.f32.mrb[251].mxu1 }
 0xd91   : > { %v6900_v9 = vadd.f32 %v8847_v61, %v14742_v49  ;;  %v8959_v13 = vadd.f32 %v8958_v22, %v8957_v48  ;;  %v8960_v33 = vpop.f32.mrb[250].mxu0  ;;  %v8850_v12 = vadd.f32 %v8849_v28, %v8848_v24  ;;  %7161 = vadd.xlane.f32.xlu1 %v14897_v42  ;;  %v7112_v48 = vpop.xlane.xlu0 %7111  ;;  %v7172_v24 = vmul.f32 0.0078125, %v7110_v56 }
 0xd92   : > { %v8961_v29 = vpop.f32.mrb[251].mxu0 }
 0xd93   : > { %v7061_v62 = vadd.f32 %v8959_v13, %v6900_v9  ;;  %v6903_v20 = vadd.f32 %v8850_v12, %v14742_v49  ;;  %v8962_v41 = vadd.f32 %v8961_v29, %v8960_v33  ;;  %v7114_v9 = vpop.xlane.xlu1 %7113  ;;  %v14913_v13 = vsub.f32 %v14765_v34, %v7171_v18  ;;  %v15913_v29 = vld [vmem:[#allocation40_spill] sm:$0xff] }
 0xd94   : > { %v7173_v33 = vmul.f32 0.0078125, %v7112_v48  ;;  %v7174_v16 = vmul.f32 0.0078125, %v7114_v9 }
 0xd95   : > { %v7064_v53 = vadd.f32 %v8962_v41, %v6903_v20  ;;  %v8851_v4 = vpop.f32.mrb[252].mxu1  ;;  %v14903_v32 = vadd.f32 %v7061_v62, %v15911_v47  ;;  %v7116_v20 = vpop.xlane.xlu0 %7115  ;;  %v14919_v41 = vsub.f32 %v14771_v19, %v7172_v24  ;;  %v7235_v56 = vmul.f32 %v14913_v13, %v14913_v13 }
 0xd96   : > { %v8852_v11 = vpop.f32.mrb[253].mxu1  ;;  %v14926_v47 = vsub.f32 %v14774_v55, %v7173_v33  ;;  %v7175_v34 = vmul.f32 0.0078125, %v7116_v20  ;;  %v14932_v19 = vsub.f32 %v14778_v45, %v7174_v16 }
 0xd97   : > { %v8963_v10 = vpop.f32.mrb[252].mxu0  ;;  %v8853_v8 = vadd.f32 %v8852_v11, %v8851_v4  ;;  %7163 = vadd.xlane.f32.xlu0 %v14903_v32  ;;  %v8854_v58 = vpop.f32.mrb[254].mxu1  ;;  %v14907_v46 = vadd.f32 %v7064_v53, %v15912_v27  ;;  %v15914_v53 = vld [vmem:[#allocation39_spill] sm:$0xff] }
 0xd98   : > { %v8964_v37 = vpop.f32.mrb[253].mxu0  ;;  %v8855_v21 = vpop.f32.mrb[255].mxu1  ;;  %v14937_v27 = vsub.f32 %v14782_v1, %v7175_v34 }
 0xd99   : > { %v6908_v60 = vadd.f32 %v8853_v8, %v14742_v49  ;;  %v8965_v51 = vadd.f32 %v8964_v37, %v8963_v10  ;;  %v8966_v36 = vpop.f32.mrb[254].mxu0  ;;  %v8856_v30 = vadd.f32 %v8855_v21, %v8854_v58  ;;  %7165 = vadd.xlane.f32.xlu1 %v14907_v46  ;;  %v7120_v11 = vpop.xlane.xlu0 %7119  ;;  %v7236_v8 = vmul.f32 %v14919_v41, %v14919_v41 }
 0xd9a   : > { %v8967_v61 = vpop.f32.mrb[255].mxu0  ;;  %v7177_v55 = vmul.f32 0.0078125, %v7120_v11  ;;  %v7237_v37 = vmul.f32 %v14926_v47, %v14926_v47 }
 0xd9b   : > { %v7069_v0 = vadd.f32 %v8965_v51, %v6908_v60  ;;  %v8968_v22 = vadd.f32 %v8967_v61, %v8966_v36  ;;  %v6911_v28 = vadd.f32 %v8856_v30, %v14742_v49  ;;  %v7118_v49 = vpop.xlane.xlu1 %7117  ;;  %v7238_v60 = vmul.f32 %v14932_v19, %v14932_v19 }
 0xd9c   : > { %v7176_v10 = vmul.f32 0.0078125, %v7118_v49  ;;  %v14947_v36 = vsub.f32 %v14793_v57, %v7177_v55  ;;  %v7239_v30 = vmul.f32 %v14937_v27, %v14937_v27 }
 0xd9d   : > { %v7072_v12 = vadd.f32 %v8968_v22, %v6911_v28  ;;  %v14916_v62 = vadd.f32 %v7069_v0, %v15913_v29  ;;  %v7124_v21 = vpop.xlane.xlu0 %7123 }
 0xd9e   : > { %v14942_v18 = vsub.f32 %v14786_v31, %v7176_v10  ;;  %v7179_v1 = vmul.f32 0.0078125, %v7124_v21  ;;  %v7241_v28 = vmul.f32 %v14947_v36, %v14947_v36 }
 0xd9f   : > { %7167 = vadd.xlane.f32.xlu0 %v14916_v62  ;;  %v14923_v4 = vadd.f32 %v7072_v12, %v15914_v53  ;;  %v7122_v58 = vpop.xlane.xlu1 %7121 }
 0xda0   : > { %v7178_v45 = vmul.f32 0.0078125, %v7122_v58  ;;  %v7240_v24 = vmul.f32 %v14942_v18, %v14942_v18  ;;  %v14957_v22 = vsub.f32 %v14803_v14, %v7179_v1 }
 0xda1   : > { %7169 = vadd.xlane.f32.xlu1 %v14923_v4  ;;  %v7128_v48 = vpop.xlane.xlu0 %7127 }
 0xda2   : > { %v14952_v61 = vsub.f32 %v14797_v59, %v7178_v45  ;;  %v7181_v57 = vmul.f32 0.0078125, %v7128_v48  ;;  %v7243_v16 = vmul.f32 %v14957_v22, %v14957_v22 }
 0xda3   : > { %7267 = vadd.xlane.f32.xlu0 %v7235_v56  ;;  %v7126_v51 = vpop.xlane.xlu1 %7125 }
 0xda4   : > { %v7180_v31 = vmul.f32 0.0078125, %v7126_v51  ;;  %v7242_v12 = vmul.f32 %v14952_v61, %v14952_v61  ;;  %v14967_v20 = vsub.f32 %v14813_v50, %v7181_v57 }
 0xda5   : > { %7269 = vadd.xlane.f32.xlu1 %v7236_v8  ;;  %v7132_v9 = vpop.xlane.xlu0 %7131 }
 0xda6   : > { %v14962_v33 = vsub.f32 %v14807_v6, %v7180_v31  ;;  %v7183_v14 = vmul.f32 0.0078125, %v7132_v9  ;;  %v7245_v10 = vmul.f32 %v14967_v20, %v14967_v20 }
 0xda7   : > { %7271 = vadd.xlane.f32.xlu0 %v7237_v37  ;;  %v7130_v0 = vpop.xlane.xlu1 %7129 }
 0xda8   : > { %v7182_v59 = vmul.f32 0.0078125, %v7130_v0  ;;  %v7244_v34 = vmul.f32 %v14962_v33, %v14962_v33  ;;  %v14977_v11 = vsub.f32 %v14823_v2, %v7183_v14 }
 0xda9   : > { %7273 = vadd.xlane.f32.xlu1 %v7238_v60  ;;  %v7136_v53 = vpop.xlane.xlu0 %7135 }
 0xdaa   : > { %v14972_v49 = vsub.f32 %v14817_v40, %v7182_v59  ;;  %v7185_v50 = vmul.f32 0.0078125, %v7136_v53  ;;  %v7247_v2 = vmul.f32 %v14977_v11, %v14977_v11 }
 0xdab   : > { %7275 = vadd.xlane.f32.xlu0 %v7239_v30  ;;  %v7134_v29 = vpop.xlane.xlu1 %7133 }
 0xdac   : > { %v7184_v6 = vmul.f32 0.0078125, %v7134_v29  ;;  %v7246_v40 = vmul.f32 %v14972_v49, %v14972_v49  ;;  %v14987_v55 = vsub.f32 %v14833_v3, %v7185_v50 }
 0xdad   : > { %7277 = vadd.xlane.f32.xlu1 %v7240_v24 }
 0xdae   : > { %v14982_v8 = vsub.f32 %v14827_v17, %v7184_v6  ;;  %v7249_v21 = vmul.f32 %v14987_v55, %v14987_v55 }
 0xdaf   : > { %7279 = vadd.xlane.f32.xlu0 %v7241_v28  ;;  %v7138_v56 = vpop.xlane.xlu1 %7137 }
 0xdb0   : > { %v7186_v58 = vmul.f32 0.0078125, %v7138_v56  ;;  %v7248_v17 = vmul.f32 %v14982_v8, %v14982_v8 }
 0xdb1   : > { %7281 = vadd.xlane.f32.xlu1 %v7242_v12 }
 0xdb2   : > { %v14992_v37 = vsub.f32 %v14837_v63, %v7186_v58 }
 0xdb3   : > { %7283 = vadd.xlane.f32.xlu0 %v7243_v16 }
 0xdb4   : > { %v7250_v3 = vmul.f32 %v14992_v37, %v14992_v37 }
 0xdb5   : > { %7285 = vadd.xlane.f32.xlu1 %v7244_v34 }
 0xdb7   : > { %7287 = vadd.xlane.f32.xlu0 %v7245_v10 }
 0xdb9   : > { %7289 = vadd.xlane.f32.xlu1 %v7246_v40 }
 0xdbb   : > { %7291 = vadd.xlane.f32.xlu0 %v7247_v2 }
 0xdbd   : > { %7293 = vadd.xlane.f32.xlu1 %v7248_v17 }
 0xdbf   : > { %7295 = vadd.xlane.f32.xlu0 %v7249_v21 }
 0xdc1   : > { %7297 = vadd.xlane.f32.xlu1 %v7250_v3 }
 0xdc8   : > { %v7140_v45 = vpop.xlane.xlu0 %7139 }
 0xdc9   : > { %v7187_v60 = vmul.f32 0.0078125, %v7140_v45 }
 0xdca   : > { %v7142_v51 = vpop.xlane.xlu1 %7141 }
 0xdcb   : > { %v15001_v1 = vsub.f32 %v14843_v7, %v7187_v60  ;;  %v7188_v63 = vmul.f32 0.0078125, %v7142_v51 }
 0xdcd   : > { %v15004_v30 = vsub.f32 %v14847_v44, %v7188_v63  ;;  %v7251_v48 = vmul.f32 %v15001_v1, %v15001_v1 }
 0xdcf   : > { %7299 = vadd.xlane.f32.xlu0 %v7251_v48  ;;  %v7252_v31 = vmul.f32 %v15004_v30, %v15004_v30 }
 0xdd1   : > { %7301 = vadd.xlane.f32.xlu1 %v7252_v31 }
 0xddd   : > { %v7144_v24 = vpop.xlane.xlu0 %7143 }
 0xdde   : > { %v7189_v0 = vmul.f32 0.0078125, %v7144_v24 }
 0xddf   : > { %v7146_v57 = vpop.xlane.xlu1 %7145 }
 0xde0   : > { %v15011_v28 = vsub.f32 %v14853_v23, %v7189_v0  ;;  %v7190_v7 = vmul.f32 0.0078125, %v7146_v57 }
 0xde2   : > { %v15014_v9 = vsub.f32 %v14857_v26, %v7190_v7  ;;  %v7253_v44 = vmul.f32 %v15011_v28, %v15011_v28 }
 0xde4   : > { %7303 = vadd.xlane.f32.xlu0 %v7253_v44  ;;  %v7254_v59 = vmul.f32 %v15014_v9, %v15014_v9 }
 0xde6   : > { %7305 = vadd.xlane.f32.xlu1 %v7254_v59 }
 0xdf3   : > { %v7148_v12 = vpop.xlane.xlu0 %7147 }
 0xdf4   : > { %v7191_v29 = vmul.f32 0.0078125, %v7148_v12 }
 0xdf5   : > { %v7150_v14 = vpop.xlane.xlu1 %7149 }
 0xdf6   : > { %v15021_v16 = vsub.f32 %v14863_v5, %v7191_v29  ;;  %v7192_v23 = vmul.f32 0.0078125, %v7150_v14 }
 0xdf8   : > { %v15024_v53 = vsub.f32 %v14867_v39, %v7192_v23  ;;  %v7255_v26 = vmul.f32 %v15021_v16, %v15021_v16 }
 0xdfa   : > { %7307 = vadd.xlane.f32.xlu0 %v7255_v26  ;;  %v7256_v6 = vmul.f32 %v15024_v53, %v15024_v53 }
 0xdfc   : > { %7309 = vadd.xlane.f32.xlu1 %v7256_v6 }
 0xe08   : > { %v7152_v34 = vpop.xlane.xlu0 %7151 }
 0xe09   : > { %v7193_v56 = vmul.f32 0.0078125, %v7152_v34 }
 0xe0a   : > { %v7154_v50 = vpop.xlane.xlu1 %7153 }
 0xe0b   : > { %v15031_v10 = vsub.f32 %v14873_v43, %v7193_v56  ;;  %v7194_v5 = vmul.f32 0.0078125, %v7154_v50 }
 0xe0d   : > { %v15034_v58 = vsub.f32 %v14877_v15, %v7194_v5  ;;  %v7257_v39 = vmul.f32 %v15031_v10, %v15031_v10 }
 0xe0f   : > { %7311 = vadd.xlane.f32.xlu0 %v7257_v39  ;;  %v7258_v40 = vmul.f32 %v15034_v58, %v15034_v58 }
 0xe11   : > { %7313 = vadd.xlane.f32.xlu1 %v7258_v40 }
 0xe14   : > { %v7156_v2 = vpop.xlane.xlu0 %7155 }
 0xe15   : > { %v7195_v17 = vmul.f32 0.0078125, %v7156_v2 }
 0xe16   : > { %v7158_v21 = vpop.xlane.xlu1 %7157 }
 0xe17   : > { %v15041_v3 = vsub.f32 %v14883_v38, %v7195_v17  ;;  %v7196_v43 = vmul.f32 0.0078125, %v7158_v21 }
 0xe19   : > { %v15044_v45 = vsub.f32 %v14887_v54, %v7196_v43  ;;  %v7259_v15 = vmul.f32 %v15041_v3, %v15041_v3 }
 0xe1b   : > { %7315 = vadd.xlane.f32.xlu0 %v7259_v15  ;;  %v7260_v60 = vmul.f32 %v15044_v45, %v15044_v45 }
 0xe1c   : > { %v7160_v51 = vpop.xlane.xlu0 %7159 }
 0xe1d   : > { %v7197_v63 = vmul.f32 0.0078125, %v7160_v51  ;;  %7317 = vadd.xlane.f32.xlu1 %v7260_v60 }
 0xe1e   : > { %v7162_v48 = vpop.xlane.xlu1 %7161 }
 0xe1f   : > { %v15051_v31 = vsub.f32 %v14893_v35, %v7197_v63  ;;  %v7198_v38 = vmul.f32 0.0078125, %v7162_v48  ;;  %v7461_v48 = vsub.s32 7, %v15872_v52 }
 0xe21   : > { %v15054_v24 = vsub.f32 %v14897_v42, %v7198_v38  ;;  %v7261_v54 = vmul.f32 %v15051_v31, %v15051_v31 }
 0xe23   : > { %7319 = vadd.xlane.f32.xlu0 %v7261_v54  ;;  %v7262_v0 = vmul.f32 %v15054_v24, %v15054_v24 }
 0xe24   : > { %v7164_v57 = vpop.xlane.xlu0 %7163 }
 0xe25   : > { %v7199_v7 = vmul.f32 0.0078125, %v7164_v57  ;;  %7321 = vadd.xlane.f32.xlu1 %v7262_v0 }
 0xe26   : > { %v7166_v44 = vpop.xlane.xlu1 %7165 }
 0xe27   : > { %v15061_v59 = vsub.f32 %v14903_v32, %v7199_v7  ;;  %v7200_v35 = vmul.f32 0.0078125, %v7166_v44 }
 0xe29   : > { %v15064_v12 = vsub.f32 %v14907_v46, %v7200_v35  ;;  %v7263_v42 = vmul.f32 %v15061_v59, %v15061_v59  ;;  %v10412_v35 = vld [vmem:[%s10562_s15] sm:$0xff]  }
 0xe2b   : > { %7323 = vadd.xlane.f32.xlu0 %v7263_v42  ;;  %v7264_v29 = vmul.f32 %v15064_v12, %v15064_v12  ;;  %v8434_v42 = vunpack.c.h.bf16 %v10412_v35 }
 0xe2c   : > { %v7168_v14 = vpop.xlane.xlu0 %7167 }
 0xe2d   : > { %v7201_v23 = vmul.f32 0.0078125, %v7168_v14  ;;  %7325 = vadd.xlane.f32.xlu1 %v7264_v29  ;;  %v15083_v29 = vrot.slane %v15874_v25, %v7461_v48 }
 0xe2e   : > { %v7170_v26 = vpop.xlane.xlu1 %7169 }
 0xe2f   : > { %v15071_v6 = vsub.f32 %v14916_v62, %v7201_v23  ;;  %v7202_v32 = vmul.f32 0.0078125, %v7170_v26 }
 0xe30   : > { %v7268_v34 = vpop.xlane.xlu0 %7267 }
 0xe31   : > { %v15074_v56 = vsub.f32 %v14923_v4, %v7202_v32  ;;  %v7331_v46 = vmul.f32 0.0078125, %v7268_v34  ;;  %v7265_v50 = vmul.f32 %v15071_v6, %v15071_v6 }
 0xe32   : > { %v7270_v5 = vpop.xlane.xlu1 %7269 }
 0xe33   : > { %v7363_v39 = vadd.f32 1e-12, %v7331_v46  ;;  %v7332_v40 = vmul.f32 0.0078125, %v7270_v5  ;;  %7327 = vadd.xlane.f32.xlu0 %v7265_v50  ;;  %v7266_v2 = vmul.f32 %v15074_v56, %v15074_v56 }
 0xe34   : > { %v7272_v17 = vpop.xlane.xlu0 %7271 }
 0xe35   : > { %10324 = vrsqrt.f32 %v7363_v39  ;;  %v7364_v62 = vadd.f32 1e-12, %v7332_v40  ;;  %v7333_v21 = vmul.f32 0.0078125, %v7272_v17  ;;  %7329 = vadd.xlane.f32.xlu1 %v7266_v2  ;;  %v15915_v39 = vld [vmem:[#allocation8_spill] sm:$0xff] }
 0xe36   : > { %v7274_v43 = vpop.xlane.xlu1 %7273  ;;  %v15087_v40 = vrot.slane %v8434_v42, %v15915_v39 }
 0xe37   : > { %10326 = vrsqrt.f32 %v7364_v62  ;;  %v7365_v4 = vadd.f32 1e-12, %v7333_v21  ;;  %v7334_v15 = vmul.f32 0.0078125, %v7274_v43 }
 0xe38   : > { %v7276_v60 = vpop.xlane.xlu0 %7275 }
 0xe39   : > { %10328 = vrsqrt.f32 %v7365_v4  ;;  %v7366_v51 = vadd.f32 1e-12, %v7334_v15  ;;  %v7335_v63 = vmul.f32 0.0078125, %v7276_v60 }
 0xe3a   : > { %v7278_v38 = vpop.xlane.xlu1 %7277 }
 0xe3b   : > { %10330 = vrsqrt.f32 %v7366_v51  ;;  %v7367_v54 = vadd.f32 1e-12, %v7335_v63  ;;  %v7336_v0 = vmul.f32 0.0078125, %v7278_v38 }
 0xe3c   : > { %v7280_v57 = vpop.xlane.xlu0 %7279 }
 0xe3d   : > { %10332 = vrsqrt.f32 %v7367_v54  ;;  %v7368_v7 = vadd.f32 1e-12, %v7336_v0  ;;  %v7337_v44 = vmul.f32 0.0078125, %v7280_v57 }
 0xe3e   : > { %v7282_v14 = vpop.xlane.xlu1 %7281 }
 0xe3f   : > { %v10325_v23 = vpop.eup %10324  ;;  %10334 = vrsqrt.f32 %v7368_v7  ;;  %v7369_v26 = vadd.f32 1e-12, %v7337_v44  ;;  %v7338_v32 = vmul.f32 0.0078125, %v7282_v14 }
 0xe40   : > { %v7427_v52 = vmul.f32 %v10325_v23, %v14913_v13  ;;  %v7284_v34 = vpop.xlane.xlu0 %7283 }
 0xe41   : > { %v10327_v46 = vpop.eup %10326  ;;  %10336 = vrsqrt.f32 %v7369_v26  ;;  %v7370_v50 = vadd.f32 1e-12, %v7338_v32  ;;  %v7339_v5 = vmul.f32 0.0078125, %v7284_v34 }
 0xe42   : > { %v7463_v2 = vmul.f32 %v15083_v29, %v7427_v52  ;;  %v7428_v25 = vmul.f32 %v10327_v46, %v14919_v41  ;;  %v7286_v17 = vpop.xlane.xlu1 %7285 }
 0xe43   : > { %v10329_v62 = vpop.eup %10328  ;;  %10338 = vrsqrt.f32 %v7370_v50  ;;  %v7371_v21 = vadd.f32 1e-12, %v7339_v5  ;;  %v7340_v43 = vmul.f32 0.0078125, %v7286_v17 }
 0xe44   : > { %v7464_v4 = vmul.f32 %v15083_v29, %v7428_v25  ;;  %v7429_v13 = vmul.f32 %v10329_v62, %v14926_v47  ;;  %v7288_v15 = vpop.xlane.xlu0 %7287  ;;  %v7499_v48 = vadd.f32 %v15087_v40, %v7463_v2 }
 0xe45   : > { %v10331_v60 = vpop.eup %10330  ;;  %10340 = vrsqrt.f32 %v7371_v21  ;;  %v7372_v51 = vadd.f32 1e-12, %v7340_v43  ;;  %v7341_v63 = vmul.f32 0.0078125, %v7288_v15 }
 0xe46   : > { %v7500_v38 = vadd.f32 %v15087_v40, %v7464_v4  ;;  %v7465_v41 = vmul.f32 %v15083_v29, %v7429_v13  ;;  %v7430_v54 = vmul.f32 %v10331_v60, %v14932_v19  ;;  %v7290_v0 = vpop.xlane.xlu1 %7289 }
 0xe47   : > { %v10333_v57 = vpop.eup %10332  ;;  %10342 = vrsqrt.f32 %v7372_v51  ;;  %v7373_v7 = vadd.f32 1e-12, %v7341_v63  ;;  %v7342_v44 = vmul.f32 0.0078125, %v7290_v0 }
 0xe48   : > { %v15097_v35 = vpack.c.bf16 %v7500_v38, %v7499_v48  ;;  %v7466_v47 = vmul.f32 %v15083_v29, %v7430_v54  ;;  %v7431_v42 = vmul.f32 %v10333_v57, %v14937_v27  ;;  %v7292_v14 = vpop.xlane.xlu0 %7291  ;;  %v7501_v19 = vadd.f32 %v15087_v40, %v7465_v41 }
 0xe49   : > { %v10335_v23 = vpop.eup %10334  ;;  %10344 = vrsqrt.f32 %v7373_v7  ;;  %v7374_v26 = vadd.f32 1e-12, %v7342_v44  ;;  %v7343_v32 = vmul.f32 0.0078125, %v7292_v14 }
 0xe4a   : > { %7547 = vst [vmem:[#allocation2] sm:$0xff] %v15097_v35  ;;  %v7502_v52 = vadd.f32 %v15087_v40, %v7466_v47  ;;  %v7467_v34 = vmul.f32 %v15083_v29, %v7431_v42  ;;  %v7432_v46 = vmul.f32 %v10335_v23, %v14942_v18  ;;  %v7294_v50 = vpop.xlane.xlu1 %7293  ;;  %9409 = vmatprep.mubr.bf16.mxu0 (!%p8286_p6), %v15097_v35  ;;  %v10417_v35 = vld [vmem:[%s15374_s10 + $0x20] sm:$0xff] (!%p8286_p6)  }
 0xe4b   : > { %v10337_v5 = vpop.eup %10336  ;;  %10346 = vrsqrt.f32 %v7374_v26  ;;  %v7375_v39 = vadd.f32 1e-12, %v7343_v32  ;;  %v7344_v27 = vmul.f32 0.0078125, %v7294_v50 }
 0xe4c   : > { %v15106_v2 = vpack.c.bf16 %v7502_v52, %v7501_v19  ;;  %v7468_v25 = vmul.f32 %v15083_v29, %v7432_v46  ;;  %v7433_v17 = vmul.f32 %v10337_v5, %v14947_v36  ;;  %v7296_v62 = vpop.xlane.xlu0 %7295  ;;  %v7503_v18 = vadd.f32 %v15087_v40, %v7467_v34 }
 0xe4d   : > { %v10339_v21 = vpop.eup %10338  ;;  %10348 = vrsqrt.f32 %v7375_v39  ;;  %v7376_v43 = vadd.f32 1e-12, %v7344_v27  ;;  %v7345_v4 = vmul.f32 0.0078125, %v7296_v62 }
 0xe4e   : > { %7548 = vst [vmem:[#allocation2 + $0x8] sm:$0xff] %v15106_v2  ;;  %v7504_v13 = vadd.f32 %v15087_v40, %v7468_v25  ;;  %v7469_v15 = vmul.f32 %v15083_v29, %v7433_v17  ;;  %v7434_v60 = vmul.f32 %v10339_v21, %v14952_v61  ;;  %v7298_v51 = vpop.xlane.xlu1 %7297 }
 0xe4f   : > { %v10341_v63 = vpop.eup %10340  ;;  %10350 = vrsqrt.f32 %v7376_v43  ;;  %v7377_v48 = vadd.f32 1e-12, %v7345_v4  ;;  %v7346_v36 = vmul.f32 0.0078125, %v7298_v51 }
 0xe50   : > { %v15115_v38 = vpack.c.bf16 %v7504_v13, %v7503_v18  ;;  %v7470_v41 = vmul.f32 %v15083_v29, %v7434_v60  ;;  %v7435_v54 = vmul.f32 %v10341_v63, %v14957_v22  ;;  %v7505_v7 = vadd.f32 %v15087_v40, %v7469_v15 }
 0xe51   : > { %v10343_v0 = vpop.eup %10342  ;;  %10352 = vrsqrt.f32 %v7377_v48  ;;  %v7378_v57 = vadd.f32 1e-12, %v7346_v36 }
 0xe52   : > { %7549 = vst [vmem:[#allocation2 + $0x10] sm:$0xff] %v15115_v38  ;;  %v7506_v61 = vadd.f32 %v15087_v40, %v7470_v41  ;;  %v7471_v44 = vmul.f32 %v15083_v29, %v7435_v54  ;;  %v7436_v47 = vmul.f32 %v10343_v0, %v14962_v33 }
 0xe53   : > { %v10345_v42 = vpop.eup %10344  ;;  %10354 = vrsqrt.f32 %v7378_v57 }
 0xe54   : > { %v15124_v14 = vpack.c.bf16 %v7506_v61, %v7505_v7  ;;  %v7472_v23 = vmul.f32 %v15083_v29, %v7436_v47  ;;  %v7437_v22 = vmul.f32 %v10345_v42, %v14967_v20  ;;  %v7507_v32 = vadd.f32 %v15087_v40, %v7471_v44 }
 0xe55   : > { %v10347_v26 = vpop.eup %10346 }
 0xe56   : > { %7550 = vst [vmem:[#allocation2 + $0x18] sm:$0xff] %v15124_v14  ;;  %v7508_v19 = vadd.f32 %v15087_v40, %v7472_v23  ;;  %v7473_v52 = vmul.f32 %v15083_v29, %v7437_v22  ;;  %v7438_v34 = vmul.f32 %v10347_v26, %v14972_v49 }
 0xe57   : > { %v10349_v33 = vpop.eup %10348 }
 0xe58   : > { %v15133_v46 = vpack.c.bf16 %v7508_v19, %v7507_v32  ;;  %v7474_v50 = vmul.f32 %v15083_v29, %v7438_v34  ;;  %v7439_v5 = vmul.f32 %v10349_v33, %v14977_v11  ;;  %v7509_v20 = vadd.f32 %v15087_v40, %v7473_v52 }
 0xe59   : > { %v10351_v39 = vpop.eup %10350 }
 0xe5a   : > { %7551 = vst [vmem:[#allocation2 + $0x20] sm:$0xff] %v15133_v46  ;;  %v7510_v27 = vadd.f32 %v15087_v40, %v7474_v50  ;;  %v7475_v25 = vmul.f32 %v15083_v29, %v7439_v5  ;;  %v7440_v17 = vmul.f32 %v10351_v39, %v14982_v8 }
 0xe5b   : > { %v10353_v62 = vpop.eup %10352 }
 0xe5c   : > { %v15142_v49 = vpack.c.bf16 %v7510_v27, %v7509_v20  ;;  %v7476_v21 = vmul.f32 %v15083_v29, %v7440_v17  ;;  %v7441_v43 = vmul.f32 %v10353_v62, %v14987_v55  ;;  %v7511_v11 = vadd.f32 %v15087_v40, %v7475_v25  ;;  %v7300_v18 = vpop.xlane.xlu0 %7299 }
 0xe5d   : > { %v10355_v4 = vpop.eup %10354  ;;  %v7347_v8 = vmul.f32 0.0078125, %v7300_v18 }
 0xe5e   : > { %7552 = vst [vmem:[#allocation2 + $0x28] sm:$0xff] %v15142_v49  ;;  %v7512_v13 = vadd.f32 %v15087_v40, %v7476_v21  ;;  %v7477_v15 = vmul.f32 %v15083_v29, %v7441_v43  ;;  %v7442_v60 = vmul.f32 %v10355_v4, %v14992_v37  ;;  %v7302_v51 = vpop.xlane.xlu1 %7301 }
 0xe5f   : > { %v7379_v36 = vadd.f32 1e-12, %v7347_v8  ;;  %v7348_v55 = vmul.f32 0.0078125, %v7302_v51 }
 0xe60   : > { %v15151_v63 = vpack.c.bf16 %v7512_v13, %v7511_v11  ;;  %v7478_v48 = vmul.f32 %v15083_v29, %v7442_v60  ;;  %v7513_v41 = vadd.f32 %v15087_v40, %v7477_v15 }
 0xe61   : > { %10356 = vrsqrt.f32 %v7379_v36  ;;  %v7380_v0 = vadd.f32 1e-12, %v7348_v55 }
 0xe62   : > { %7553 = vst [vmem:[#allocation2 + $0x30] sm:$0xff] %v15151_v63  ;;  %v7514_v54 = vadd.f32 %v15087_v40, %v7478_v48 }
 0xe63   : > { %10358 = vrsqrt.f32 %v7380_v0 }
 0xe64   : > { %v15157_v57 = vpack.c.bf16 %v7514_v54, %v7513_v41 }
 0xe66   : > { %7554 = vst [vmem:[#allocation2 + $0x38] sm:$0xff] %v15157_v57 }
 0xe6b   : > { %v10357_v37 = vpop.eup %10356 }
 0xe6c   : > { %v7443_v7 = vmul.f32 %v10357_v37, %v15001_v1 }
 0xe6d   : > { %v10359_v61 = vpop.eup %10358 }
 0xe6e   : > { %v7479_v44 = vmul.f32 %v15083_v29, %v7443_v7  ;;  %v7444_v47 = vmul.f32 %v10359_v61, %v15004_v30 }
 0xe70   : > { %v7480_v42 = vmul.f32 %v15083_v29, %v7444_v47  ;;  %v7515_v26 = vadd.f32 %v15087_v40, %v7479_v44 }
 0xe71   : > { %v7304_v23 = vpop.xlane.xlu0 %7303 }
 0xe72   : > { %v7349_v22 = vmul.f32 0.0078125, %v7304_v23  ;;  %v7516_v32 = vadd.f32 %v15087_v40, %v7480_v42 }
 0xe73   : > { %v7306_v19 = vpop.xlane.xlu1 %7305 }
 0xe74   : > { %v7381_v52 = vadd.f32 1e-12, %v7349_v22  ;;  %v7350_v34 = vmul.f32 0.0078125, %v7306_v19  ;;  %v15166_v33 = vpack.c.bf16 %v7516_v32, %v7515_v26 }
 0xe76   : > { %10360 = vrsqrt.f32 %v7381_v52  ;;  %v7382_v1 = vadd.f32 1e-12, %v7350_v34  ;;  %7555 = vst [vmem:[#allocation2 + $0x40] sm:$0xff] %v15166_v33  ;;  %9425 = vmatprep.mubr.bf16.mxu1 (!%p8286_p6), %v15166_v33  ;;  %v10418_v33 = vld [vmem:[%s15374_s10 + $0x28] sm:$0xff] (!%p8286_p6)  }
 0xe78   : > { %10362 = vrsqrt.f32 %v7382_v1 }
 0xe80   : > { %v10361_v50 = vpop.eup %10360 }
 0xe81   : > { %v7445_v30 = vmul.f32 %v10361_v50, %v15011_v28 }
 0xe82   : > { %v10363_v5 = vpop.eup %10362 }
 0xe83   : > { %v7481_v39 = vmul.f32 %v15083_v29, %v7445_v30  ;;  %v7446_v20 = vmul.f32 %v10363_v5, %v15014_v9 }
 0xe85   : > { %v7482_v27 = vmul.f32 %v15083_v29, %v7446_v20  ;;  %v7517_v17 = vadd.f32 %v15087_v40, %v7481_v39 }
 0xe87   : > { %v7308_v25 = vpop.xlane.xlu0 %7307  ;;  %v7518_v62 = vadd.f32 %v15087_v40, %v7482_v27 }
 0xe88   : > { %v7351_v21 = vmul.f32 0.0078125, %v7308_v25 }
 0xe89   : > { %v7310_v43 = vpop.xlane.xlu1 %7309  ;;  %v15175_v4 = vpack.c.bf16 %v7518_v62, %v7517_v17 }
 0xe8a   : > { %v7383_v11 = vadd.f32 1e-12, %v7351_v21  ;;  %v7352_v18 = vmul.f32 0.0078125, %v7310_v43 }
 0xe8b   : > { %7556 = vst [vmem:[#allocation2 + $0x48] sm:$0xff] %v15175_v4 }
 0xe8c   : > { %10364 = vrsqrt.f32 %v7383_v11  ;;  %v7384_v28 = vadd.f32 1e-12, %v7352_v18 }
 0xe8e   : > { %10366 = vrsqrt.f32 %v7384_v28 }
 0xe96   : > { %v10365_v13 = vpop.eup %10364 }
 0xe97   : > { %v7447_v9 = vmul.f32 %v10365_v13, %v15021_v16 }
 0xe98   : > { %v10367_v15 = vpop.eup %10366 }
 0xe99   : > { %v7483_v60 = vmul.f32 %v15083_v29, %v7447_v9  ;;  %v7448_v8 = vmul.f32 %v10367_v15, %v15024_v53 }
 0xe9b   : > { %v7484_v51 = vmul.f32 %v15083_v29, %v7448_v8  ;;  %v7519_v36 = vadd.f32 %v15087_v40, %v7483_v60 }
 0xe9c   : > { %v7312_v48 = vpop.xlane.xlu0 %7311 }
 0xe9d   : > { %v7520_v55 = vadd.f32 %v15087_v40, %v7484_v51  ;;  %v7353_v41 = vmul.f32 0.0078125, %v7312_v48 }
 0xe9e   : > { %v7314_v54 = vpop.xlane.xlu1 %7313 }
 0xe9f   : > { %v15184_v0 = vpack.c.bf16 %v7520_v55, %v7519_v36  ;;  %v7385_v37 = vadd.f32 1e-12, %v7353_v41  ;;  %v7354_v7 = vmul.f32 0.0078125, %v7314_v54 }
 0xea1   : > { %7557 = vst [vmem:[#allocation2 + $0x50] sm:$0xff] %v15184_v0  ;;  %10368 = vrsqrt.f32 %v7385_v37  ;;  %v7386_v16 = vadd.f32 1e-12, %v7354_v7 }
 0xea3   : > { %10370 = vrsqrt.f32 %v7386_v16 }
 0xea8   : > { %v7316_v61 = vpop.xlane.xlu0 %7315 }
 0xea9   : > { %v7355_v53 = vmul.f32 0.0078125, %v7316_v61 }
 0xeaa   : > { %v7318_v44 = vpop.xlane.xlu1 %7317 }
 0xeab   : > { %v10369_v47 = vpop.eup %10368  ;;  %v7387_v42 = vadd.f32 1e-12, %v7355_v53  ;;  %v7356_v23 = vmul.f32 0.0078125, %v7318_v44 }
 0xeac   : > { %v7449_v22 = vmul.f32 %v10369_v47, %v15031_v10 }
 0xead   : > { %v10371_v26 = vpop.eup %10370  ;;  %10372 = vrsqrt.f32 %v7387_v42  ;;  %v7388_v32 = vadd.f32 1e-12, %v7356_v23 }
 0xeae   : > { %v7485_v19 = vmul.f32 %v15083_v29, %v7449_v22  ;;  %v7450_v52 = vmul.f32 %v10371_v26, %v15034_v58 }
 0xeaf   : > { %10374 = vrsqrt.f32 %v7388_v32 }
 0xeb0   : > { %v7486_v34 = vmul.f32 %v15083_v29, %v7450_v52  ;;  %v7320_v1 = vpop.xlane.xlu0 %7319  ;;  %v7521_v30 = vadd.f32 %v15087_v40, %v7485_v19 }
 0xeb1   : > { %v7357_v50 = vmul.f32 0.0078125, %v7320_v1 }
 0xeb2   : > { %v7522_v5 = vadd.f32 %v15087_v40, %v7486_v34  ;;  %v7322_v39 = vpop.xlane.xlu1 %7321 }
 0xeb3   : > { %v7389_v20 = vadd.f32 1e-12, %v7357_v50  ;;  %v7358_v27 = vmul.f32 0.0078125, %v7322_v39 }
 0xeb4   : > { %v15193_v10 = vpack.c.bf16 %v7522_v5, %v7521_v30 }
 0xeb5   : > { %10376 = vrsqrt.f32 %v7389_v20  ;;  %v7390_v25 = vadd.f32 1e-12, %v7358_v27 }
 0xeb6   : > { %7558 = vst [vmem:[#allocation2 + $0x58] sm:$0xff] %v15193_v10 }
 0xeb7   : > { %v10373_v17 = vpop.eup %10372  ;;  %10378 = vrsqrt.f32 %v7390_v25 }
 0xeb8   : > { %v7451_v58 = vmul.f32 %v10373_v17, %v15041_v3  ;;  %v7324_v62 = vpop.xlane.xlu0 %7323  ;;  %v10419_v17 = vld [vmem:[%s15374_s10 + $0x30] sm:$0xff] (!%p8286_p6)  }
 0xeb9   : > { %v10375_v21 = vpop.eup %10374  ;;  %v7359_v43 = vmul.f32 0.0078125, %v7324_v62 }
 0xeba   : > { %v7487_v11 = vmul.f32 %v15083_v29, %v7451_v58  ;;  %v7452_v18 = vmul.f32 %v10375_v21, %v15044_v45  ;;  %v7326_v28 = vpop.xlane.xlu1 %7325  ;;  %v10420_v58 = vld [vmem:[%s15374_s10 + $0x38] sm:$0xff] (!%p8286_p6)  }
 0xebb   : > { %v7391_v13 = vadd.f32 1e-12, %v7359_v43  ;;  %v7360_v9 = vmul.f32 0.0078125, %v7326_v28 }
 0xebc   : > { %v7488_v15 = vmul.f32 %v15083_v29, %v7452_v18  ;;  %v7523_v8 = vadd.f32 %v15087_v40, %v7487_v11 }
 0xebd   : > { %10380 = vrsqrt.f32 %v7391_v13  ;;  %v7392_v60 = vadd.f32 1e-12, %v7360_v9 }
 0xebe   : > { %v7524_v51 = vadd.f32 %v15087_v40, %v7488_v15 }
 0xebf   : > { %v10377_v48 = vpop.eup %10376  ;;  %10382 = vrsqrt.f32 %v7392_v60 }
 0xec0   : > { %v15202_v3 = vpack.c.bf16 %v7524_v51, %v7523_v8  ;;  %v7453_v36 = vmul.f32 %v10377_v48, %v15051_v31  ;;  %v7328_v55 = vpop.xlane.xlu0 %7327 }
 0xec1   : > { %v10379_v41 = vpop.eup %10378  ;;  %v7361_v45 = vmul.f32 0.0078125, %v7328_v55 }
 0xec2   : > { %7559 = vst [vmem:[#allocation2 + $0x60] sm:$0xff] %v15202_v3  ;;  %v7489_v54 = vmul.f32 %v15083_v29, %v7453_v36  ;;  %v7454_v37 = vmul.f32 %v10379_v41, %v15054_v24  ;;  %v7330_v7 = vpop.xlane.xlu1 %7329 }
 0xec3   : > { %v7393_v16 = vadd.f32 1e-12, %v7361_v45  ;;  %v7362_v61 = vmul.f32 0.0078125, %v7330_v7 }
 0xec4   : > { %v7490_v53 = vmul.f32 %v15083_v29, %v7454_v37  ;;  %v7525_v47 = vadd.f32 %v15087_v40, %v7489_v54 }
 0xec5   : > { %10384 = vrsqrt.f32 %v7393_v16  ;;  %v7394_v44 = vadd.f32 1e-12, %v7362_v61 }
 0xec6   : > { %v7526_v31 = vadd.f32 %v15087_v40, %v7490_v53 }
 0xec7   : > { %v10381_v42 = vpop.eup %10380  ;;  %10386 = vrsqrt.f32 %v7394_v44 }
 0xec8   : > { %v15211_v23 = vpack.c.bf16 %v7526_v31, %v7525_v47  ;;  %v7455_v22 = vmul.f32 %v10381_v42, %v15061_v59 }
 0xec9   : > { %v10383_v26 = vpop.eup %10382 }
 0xeca   : > { %7560 = vst [vmem:[#allocation2 + $0x68] sm:$0xff] %v15211_v23  ;;  %v7491_v24 = vmul.f32 %v15083_v29, %v7455_v22  ;;  %v7456_v32 = vmul.f32 %v10383_v26, %v15064_v12 }
 0xecc   : > { %v7492_v19 = vmul.f32 %v15083_v29, %v7456_v32  ;;  %v7527_v52 = vadd.f32 %v15087_v40, %v7491_v24 }
 0xece   : > { %v7528_v34 = vadd.f32 %v15087_v40, %v7492_v19 }
 0xecf   : > { %v10385_v1 = vpop.eup %10384 }
 0xed0   : > { %v15220_v50 = vpack.c.bf16 %v7528_v34, %v7527_v52  ;;  %v7457_v30 = vmul.f32 %v10385_v1, %v15071_v6  ;;  %v10413_v6 = vld [vmem:[%s15374_s10] sm:$0xff] (!%p8286_p6)  }
 0xed1   : > { %v10387_v5 = vpop.eup %10386  ;;  %9393 = vmatprep.subr.bf16.mxu0 (!%p8286_p6), %v10413_v6  ;;  %9489 = vmatprep.subr.bf16.mxu1 (!%p8286_p6), %v10413_v6 }
 0xed2   : > { %7561 = vst [vmem:[#allocation2 + $0x70] sm:$0xff] %v15220_v50  ;;  %v7493_v59 = vmul.f32 %v15083_v29, %v7457_v30  ;;  %v7458_v39 = vmul.f32 %v10387_v5, %v15074_v56  ;;  %v10414_v56 = vld [vmem:[%s15374_s10 + $0x8] sm:$0xff] (!%p8286_p6)   ;;  %9394 = vmatpush3.bf16.msra.mxu0 (!%p8286_p6), %v10413_v6  ;;  %9497 = vmatpush3.bf16.msra.mxu1 (!%p8286_p6), %v10413_v6 }
 0xed3   : > { %9395 = vmatprep.subr.bf16.mxu0 (!%p8286_p6), %v10414_v56  ;;  %9490 = vmatprep.subr.bf16.mxu1 (!%p8286_p6), %v10414_v56 }
 0xed4   : > { %v7494_v12 = vmul.f32 %v15083_v29, %v7458_v39  ;;  %v7529_v20 = vadd.f32 %v15087_v40, %v7493_v59  ;;  %7566 = sbr.rel (%p8286_p6) target bundleno = 4069 (0xfe5), region = 76  ;;  %v10415_v29 = vld [vmem:[%s15374_s10 + $0x10] sm:$0xff] (!%p8286_p6)  }
 0xed6   : > { %v7530_v27 = vadd.f32 %v15087_v40, %v7494_v12  ;;  %9396 = vmatpush3.bf16.msra.mxu0 (!%p8286_p6), %v10414_v56  ;;  %9498 = vmatpush3.bf16.msra.mxu1 (!%p8286_p6), %v10414_v56  ;;  %v10416_v40 = vld [vmem:[%s15374_s10 + $0x18] sm:$0xff] (!%p8286_p6)  }
 0xed7   : > { %9397 = vmatprep.subr.bf16.mxu0 (!%p8286_p6), %v10415_v29  ;;  %9491 = vmatprep.subr.bf16.mxu1 (!%p8286_p6), %v10415_v29 }
 0xed8   : > { %v7546_v25 = vpack.c.bf16 %v7530_v27, %v7529_v20 }
 0xeda   : > { %7562 = vst [vmem:[#allocation2 + $0x78] sm:$0xff] %v7546_v25  ;;  %9398 = vmatpush3.bf16.msra.mxu0 (!%p8286_p6), %v10415_v29  ;;  %9499 = vmatpush3.bf16.msra.mxu1 (!%p8286_p6), %v10415_v29 }
 0xedb   : > { %9399 = vmatprep.subr.bf16.mxu0 %v10416_v40  ;;  %9492 = vmatprep.subr.bf16.mxu1 %v10416_v40 }
 0xede   : > { %9400 = vmatpush3.bf16.msra.mxu0 %v10416_v40  ;;  %9500 = vmatpush3.bf16.msra.mxu1 %v10416_v40 }
 0xedf   : > { %9401 = vmatprep.subr.bf16.mxu0 %v10417_v35  ;;  %9493 = vmatprep.subr.bf16.mxu1 %v10417_v35 }
 0xee2   : > { %9402 = vmatpush3.bf16.msra.mxu0 %v10417_v35  ;;  %9501 = vmatpush3.bf16.msra.mxu1 %v10417_v35 }
 0xee3   : > { %9403 = vmatprep.subr.bf16.mxu0 %v10418_v33  ;;  %9494 = vmatprep.subr.bf16.mxu1 %v10418_v33 }
 0xee6   : > { %9404 = vmatpush3.bf16.msra.mxu0 %v10418_v33  ;;  %9502 = vmatpush3.bf16.msra.mxu1 %v10418_v33 }
 0xee7   : > { %9405 = vmatprep.subr.bf16.mxu0 %v10419_v17  ;;  %9495 = vmatprep.subr.bf16.mxu1 %v10419_v17 }
 0xeea   : > { %9406 = vmatpush3.bf16.msra.mxu0 %v10419_v17  ;;  %9503 = vmatpush3.bf16.msra.mxu1 %v10419_v17 }
 0xeeb   : > { %9407 = vmatprep.subr.bf16.mxu0 %v10420_v58  ;;  %9496 = vmatprep.subr.bf16.mxu1 %v10420_v58 }
 0xeee   : > { %9408 = vmatpush3.bf16.msra.mxu0 %v10420_v58  ;;  %9504 = vmatpush3.bf16.msra.mxu1 %v10420_v58 }
 0xef1   : > { %9410 = vmatmul.mubr.bf16.vlgmr.msra.gmra.mrb[0].mxu0 %v15106_v2  ;;  %9426 = vmatmul.mubr.bf16.vlgmr.msra.gmra.mrb[0].mxu1 %v15175_v4  ;;  %v7583_v2 = vld [vmem:[%s15375_s11] sm:$0x1] }
 0xef2   : > { %9413 = vmatprep.mubr.bf16.mxu0 %v15115_v38  ;;  %9429 = vmatprep.mubr.bf16.mxu1 %v15184_v0  ;;  %v7584_v38 = vunpack.c.l.bf16 %v7583_v2 }
 0xef9   : > { %9414 = vmatmul.mubr.bf16.gmra.mrb[4].mxu0 %v15124_v14  ;;  %9430 = vmatmul.mubr.bf16.gmra.mrb[4].mxu1 %v15193_v10  ;;  %v15916_v14 = vld [vmem:[#allocation8_spill] sm:$0xff] }
 0xefa   : > { %9417 = vmatprep.mubr.bf16.mxu0 %v15133_v46  ;;  %9433 = vmatprep.mubr.bf16.mxu1 %v15202_v3  ;;  %v15273_v46 = vrot.slane %v7584_v38, %v15916_v14 }
 0xf01   : > { %9418 = vmatmul.mubr.bf16.gmra.mrb[8].mxu0 %v15142_v49  ;;  %9434 = vmatmul.mubr.bf16.gmra.mrb[8].mxu1 %v15211_v23 }
 0xf02   : > { %9421 = vmatprep.mubr.bf16.mxu0 %v15151_v63  ;;  %9437 = vmatprep.mubr.bf16.mxu1 %v15220_v50 }
 0xf09   : > { %9422 = vmatmul.mubr.bf16.gmra.mrb[12].mxu0 %v15157_v57  ;;  %9438 = vmatmul.mubr.bf16.gmra.mrb[12].mxu1 %v7546_v25 }
 0xfc4   : > { %v9411_v4 = vpop.f32.mrb[0].mxu0  ;;  %v9427_v0 = vpop.f32.mrb[0].mxu1 }
 0xfc5   : > { %v7671_v49 = vpop.f32.mrb[1].mxu0  ;;  %v7735_v10 = vpop.f32.mrb[1].mxu1  ;;  %v7680_v63 = vadd.f32 %v9411_v4, %v15273_v46  ;;  %v7744_v43 = vadd.f32 %v9427_v0, %v15273_v46 }
 0xfc6   : > { %v9412_v62 = vpop.f32.mrb[2].mxu0  ;;  %v9428_v21 = vpop.f32.mrb[2].mxu1  ;;  %v7672_v13 = vadd.f32 %v7671_v49, %v15273_v46  ;;  %v7736_v9 = vadd.f32 %v7735_v10, %v15273_v46 }
 0xfc7   : > { %v7683_v57 = vadd.f32 %v9412_v62, %v15273_v46  ;;  %v7747_v11 = vadd.f32 %v9428_v21, %v15273_v46  ;;  %v7674_v18 = vpop.f32.mrb[3].mxu0  ;;  %v7738_v28 = vpop.f32.mrb[3].mxu1 }
 0xfc8   : > { %v7675_v15 = vadd.f32 %v7674_v18, %v15273_v46  ;;  %v7739_v60 = vadd.f32 %v7738_v28, %v15273_v46 }
 0xfc9   : > { %v8443_v8 = vpack.c.bf16 %v7683_v57, %v7680_v63  ;;  %v8483_v51 = vpack.c.bf16 %v7747_v11, %v7744_v43 }
 0xfca   : > { %v8438_v48 = vpack.c.bf16 %v7675_v15, %v7672_v13  ;;  %v8478_v3 = vpack.c.bf16 %v7739_v60, %v7736_v9 }
 0xfcb   : > { %8530 = vst [vmem:[%s15376_s12 + $0x8] sm:$0xff] %v8443_v8   ;;  %8538 = vst [vmem:[%s15376_s12 + $0x48] sm:$0xff] %v8483_v51  }
 0xfcc   : > { %8439 = vst [vmem:[%s15376_s12] sm:$0xff] %v8438_v48   ;;  %8537 = vst [vmem:[%s15376_s12 + $0x40] sm:$0xff] %v8478_v3   ;;  %v9415_v36 = vpop.f32.mrb[4].mxu0  ;;  %v9431_v55 = vpop.f32.mrb[4].mxu1 }
 0xfcd   : > { %v7687_v41 = vpop.f32.mrb[5].mxu0  ;;  %v7751_v45 = vpop.f32.mrb[5].mxu1  ;;  %v7696_v7 = vadd.f32 %v9415_v36, %v15273_v46  ;;  %v7760_v16 = vadd.f32 %v9431_v55, %v15273_v46 }
 0xfce   : > { %v9416_v54 = vpop.f32.mrb[6].mxu0  ;;  %v9432_v37 = vpop.f32.mrb[6].mxu1  ;;  %v7688_v31 = vadd.f32 %v7687_v41, %v15273_v46  ;;  %v7752_v42 = vadd.f32 %v7751_v45, %v15273_v46 }
 0xfcf   : > { %v7699_v61 = vadd.f32 %v9416_v54, %v15273_v46  ;;  %v7763_v53 = vadd.f32 %v9432_v37, %v15273_v46  ;;  %v7690_v44 = vpop.f32.mrb[7].mxu0  ;;  %v7754_v47 = vpop.f32.mrb[7].mxu1 }
 0xfd0   : > { %v7691_v23 = vadd.f32 %v7690_v44, %v15273_v46  ;;  %v7755_v22 = vadd.f32 %v7754_v47, %v15273_v46 }
 0xfd1   : > { %v8453_v26 = vpack.c.bf16 %v7699_v61, %v7696_v7  ;;  %v8493_v24 = vpack.c.bf16 %v7763_v53, %v7760_v16 }
 0xfd2   : > { %v8448_v32 = vpack.c.bf16 %v7691_v23, %v7688_v31  ;;  %v8488_v19 = vpack.c.bf16 %v7755_v22, %v7752_v42 }
 0xfd3   : > { %8532 = vst [vmem:[%s15376_s12 + $0x18] sm:$0xff] %v8453_v26   ;;  %8540 = vst [vmem:[%s15376_s12 + $0x58] sm:$0xff] %v8493_v24  }
 0xfd4   : > { %8531 = vst [vmem:[%s15376_s12 + $0x10] sm:$0xff] %v8448_v32   ;;  %8539 = vst [vmem:[%s15376_s12 + $0x50] sm:$0xff] %v8488_v19   ;;  %v9419_v52 = vpop.f32.mrb[8].mxu0  ;;  %v9435_v34 = vpop.f32.mrb[8].mxu1 }
 0xfd5   : > { %v7703_v1 = vpop.f32.mrb[9].mxu0  ;;  %v7767_v50 = vpop.f32.mrb[9].mxu1  ;;  %v7712_v59 = vadd.f32 %v9419_v52, %v15273_v46  ;;  %v7776_v39 = vadd.f32 %v9435_v34, %v15273_v46 }
 0xfd6   : > { %v9420_v30 = vpop.f32.mrb[10].mxu0  ;;  %v9436_v5 = vpop.f32.mrb[10].mxu1  ;;  %v7704_v6 = vadd.f32 %v7703_v1, %v15273_v46  ;;  %v7768_v56 = vadd.f32 %v7767_v50, %v15273_v46 }
 0xfd7   : > { %v7715_v12 = vadd.f32 %v9420_v30, %v15273_v46  ;;  %v7779_v20 = vadd.f32 %v9436_v5, %v15273_v46  ;;  %v7706_v27 = vpop.f32.mrb[11].mxu0  ;;  %v7770_v25 = vpop.f32.mrb[11].mxu1 }
 0xfd8   : > { %v7707_v29 = vadd.f32 %v7706_v27, %v15273_v46  ;;  %v7771_v40 = vadd.f32 %v7770_v25, %v15273_v46 }
 0xfd9   : > { %v8463_v35 = vpack.c.bf16 %v7715_v12, %v7712_v59  ;;  %v8503_v33 = vpack.c.bf16 %v7779_v20, %v7776_v39 }
 0xfda   : > { %v8458_v17 = vpack.c.bf16 %v7707_v29, %v7704_v6  ;;  %v8498_v58 = vpack.c.bf16 %v7771_v40, %v7768_v56 }
 0xfdb   : > { %8534 = vst [vmem:[%s15376_s12 + $0x28] sm:$0xff] %v8463_v35   ;;  %8542 = vst [vmem:[%s15376_s12 + $0x68] sm:$0xff] %v8503_v33  }
 0xfdc   : > { %8533 = vst [vmem:[%s15376_s12 + $0x20] sm:$0xff] %v8458_v17   ;;  %8541 = vst [vmem:[%s15376_s12 + $0x60] sm:$0xff] %v8498_v58   ;;  %v9423_v2 = vpop.f32.mrb[12].mxu0  ;;  %v9439_v38 = vpop.f32.mrb[12].mxu1 }
 0xfdd   : > { %v7719_v14 = vpop.f32.mrb[13].mxu0  ;;  %v7783_v4 = vpop.f32.mrb[13].mxu1  ;;  %v7728_v10 = vadd.f32 %v9423_v2, %v15273_v46  ;;  %v7792_v62 = vadd.f32 %v9439_v38, %v15273_v46 }
 0xfde   : > { %v9424_v0 = vpop.f32.mrb[14].mxu0  ;;  %v9440_v49 = vpop.f32.mrb[14].mxu1  ;;  %v7720_v11 = vadd.f32 %v7719_v14, %v15273_v46  ;;  %v7784_v18 = vadd.f32 %v7783_v4, %v15273_v46 }
 0xfdf   : > { %v7731_v21 = vadd.f32 %v9424_v0, %v15273_v46  ;;  %v7795_v63 = vadd.f32 %v9440_v49, %v15273_v46  ;;  %v7722_v43 = vpop.f32.mrb[15].mxu0  ;;  %v7786_v57 = vpop.f32.mrb[15].mxu1 }
 0xfe0   : > { %v7723_v28 = vadd.f32 %v7722_v43, %v15273_v46  ;;  %v7787_v13 = vadd.f32 %v7786_v57, %v15273_v46 }
 0xfe1   : > { %v8473_v9 = vpack.c.bf16 %v7731_v21, %v7728_v10  ;;  %v8513_v15 = vpack.c.bf16 %v7795_v63, %v7792_v62 }
 0xfe2   : > { %v8468_v60 = vpack.c.bf16 %v7723_v28, %v7720_v11  ;;  %v8508_v8 = vpack.c.bf16 %v7787_v13, %v7784_v18 }
 0xfe3   : > { %8536 = vst [vmem:[%s15376_s12 + $0x38] sm:$0xff] %v8473_v9   ;;  %8544 = vst [vmem:[%s15376_s12 + $0x78] sm:$0xff] %v8513_v15  }
 0xfe4   : > { %8535 = vst [vmem:[%s15376_s12 + $0x30] sm:$0xff] %v8468_v60   ;;  %8543 = vst [vmem:[%s15376_s12 + $0x70] sm:$0xff] %v8508_v8  }
 0xfe5 PF: > { %s15917_s14 = sld [smem:[#allocation4_spill]]  ;;  %s15918_s21 = sld [smem:[#allocation3_spill]] }
 0xfe6   : > { %s15919_s22 = sld [smem:[#allocation5_spill]] }
 0xfeb   : > { %s22_s23 = sadd.s32 1, %s15917_s14  }
 0xfec   : > { %p19_p7 = scmp.ge.s32.totalorder %s22_s23, 4  }
 0xfee   :  { %21 = sbr.rel (!%p19_p7) target bundleno = 2 (0x2), region = 127 }

</bundles_post_ra>
